<compile_context>
chip_gen: v7x
topology: tpu7x:2x2x1
jax: 0.10.0
libtpu: 0.0.40
codegen_flags: <defaults>
</compile_context>

<pallas_src>
from functools import partial

import jax
import jax.numpy as jnp
from jax.experimental import pallas as pl
from jax.experimental.pallas import tpu as pltpu

_EPS = 1e-8


# ----------------------- Pallas kernels (hot path) -------------------------

def _binary_mask(m_ref, d_out):
    """0/1 f32 mask, broadcast along the C channel blocks of the feature dim."""
    m = (m_ref[...].astype(jnp.float32) > 0.0).astype(jnp.float32)   # (Dm, TM)
    reps = d_out // m.shape[0]
    return jnp.tile(m, (reps, 1)) if reps > 1 else m


def _prep_content(a_ref, m_full):
    """Upcast content patches once per tile; precompute masked content and the
    normalized content-norm term (constant across the KS2 shifts)."""
    a = a_ref[...].astype(jnp.float32)                     # (D, TM)
    na2 = jnp.sum(a * a, axis=0, keepdims=True)            # (1, TM)
    inv_a = 1.0 / (jnp.sqrt(na2) + _EPS)
    am = a * m_full                                        # mask folded in once/tile
    return am, na2 * (inv_a * inv_a), inv_a


def _slice_sim(b_ref, k, am, m_full, na2_hat, inv_a):
    """Normalized-euclidean similarity of content vs the masked condition patch
    at shift k.  Touches exactly one (D, TM) bf16 slice of the search cube,
    upcast on the fly; only (1, TM) reductions stay live afterwards."""
    b = b_ref[k].astype(jnp.float32)                           # (D, TM) slice
    nb2 = jnp.sum((b * b) * m_full, axis=0, keepdims=True)     # (1, TM)
    dot = jnp.sum(am * b, axis=0, keepdims=True)               # (1, TM)
    # Same eps placement as the torch reference: x / (||x|| + 1e-8).
    inv_b = 1.0 / (jnp.sqrt(nb2) + _EPS)
    # ||a_hat - b_hat||^2 keeping explicit norm terms so a fully-masked
    # (all-zero) condition patch gives eud ~= 1, sim = 0.5 as in torch.
    eud2 = na2_hat + nb2 * (inv_b * inv_b) - 2.0 * dot * (inv_a * inv_b)
    eud = jnp.sqrt(jnp.maximum(eud2, 0.0))
    return (2.0 - eud) * 0.5                                   # (1, TM)


def _simmax_kernel(a_ref, b_ref, m_ref, val_ref, idx_ref):
    m_full = _binary_mask(m_ref, a_ref.shape[0])
    am, na2h, inv_a = _prep_content(a_ref, m_full)
    best_v = _slice_sim(b_ref, 0, am, m_full, na2h, inv_a)
    best_i = jnp.zeros_like(best_v, dtype=jnp.int32)
    for k in range(1, b_ref.shape[0]):                     # static unroll over KS2
        sim = _slice_sim(b_ref, k, am, m_full, na2h, inv_a)
        take = sim > best_v                                # strict > -> first max
        best_v = jnp.where(take, sim, best_v)
        best_i = jnp.where(take, k, best_i)
    val_ref[...] = best_v
    idx_ref[...] = best_i


def _simmax_sem_kernel(a_ref, b_ref, m_ref, as_ref, bs_ref, val_ref, idx_ref):
    Ds = as_ref.shape[0]
    m_rgb = _binary_mask(m_ref, a_ref.shape[0])            # (D, TM)
    m_sem = m_rgb[:Ds]                                     # first mask channel
    am, na2h, inv_a = _prep_content(a_ref, m_rgb)
    ams, nas2h, inv_as = _prep_content(as_ref, m_sem)

    def blended(k):
        s1 = _slice_sim(b_ref, k, am, m_rgb, na2h, inv_a)
        s2 = _slice_sim(bs_ref, k, ams, m_sem, nas2h, inv_as)
        return 0.3 * s1 + 0.7 * s2

    best_v = blended(0)
    best_i = jnp.zeros_like(best_v, dtype=jnp.int32)
    for k in range(1, b_ref.shape[0]):
        sim = blended(k)
        take = sim > best_v
        best_v = jnp.where(take, sim, best_v)
        best_i = jnp.where(take, k, best_i)
    val_ref[...] = best_v
    idx_ref[...] = best_i


# ------------------------ tile selection / VMEM budget ----------------------

def _tpu_vmem_budget_and_cores():
    """Per-generation per-step VMEM budget (bytes) and TensorCore count."""
    phys = 64 << 20                        # conservative default = v7x physical
    try:
        phys = int(pltpu.get_tpu_info().vmem_capacity_bytes)
    except Exception:
        pass
    budget = min(int(phys * 0.65), 96 << 20)   # headroom for compiler scratch
    cores = 1
    try:
        if "v7" in jax.devices()[0].device_kind.lower():
            cores = 2                      # v7x: two TensorCores share the grid
    except Exception:
        pass
    return budget, cores


def _row_bytes(D, Dm, KS2, Ds=None):
    """Bytes live per lane column for one grid step: double-buffered bf16
    inputs, double-buffered f32/i32 outputs, and the in-kernel f32 temporaries
    (content, masked content, mask, one cube slice, small accumulator rows)."""
    in_cols = D + Dm + KS2 * D
    tmp_cols = 4 * D + 16
    if Ds is not None:
        in_cols += Ds + KS2 * Ds
        tmp_cols += 4 * Ds + 16
    return 2 * 2 * in_cols + 2 * 8 + 4 * tmp_cols


def _pick_tm(M, row_bytes, budget, cores):
    """Largest lane tile (multiple of 128, dividing M) whose live set fits the
    budget.  On 1-TC chips (v5e/v6e) take the largest fitting tile (the grid is
    a serial loop, extra steps are pure overhead); on v7x keep >= 2 grid steps
    for the two TensorCores but avoid tiles below 256 lanes."""
    cands = [c for c in (8192, 4096, 2048, 1024, 512, 256, 128) if M % c == 0]
    if not cands:
        return M                            # single full-width block
    fitting = [c for c in cands if c * row_bytes <= budget] or [cands[-1]]
    if cores <= 1:
        return fitting[0]
    for min_c in (512, 256, 128):
        for c in fitting:
            if c >= min_c and M // c >= 2:
                return c
    return fitting[0]


def patch_similarity_max(a_rgb, b_rgb, m_patch, a_sem=None, b_sem=None):
    """Fused masked similarity + max/argmax over the KS2 search shifts.

    Lane-major bf16 inputs: a_rgb (D, M), b_rgb (KS2, D, M), m_patch (Dm, M)
    with Dm in {p*p, C*p*p} (broadcast over channels in-kernel), optional
    semantic a_sem (Ds, M), b_sem (KS2, Ds, M).
    Returns (max_val (M,) float32, max_idx (M,) int32)."""
    D, M = a_rgb.shape
    KS2 = b_rgb.shape[0]
    Dm = m_patch.shape[0]
    use_sem = a_sem is not None
    Ds = a_sem.shape[0] if use_sem else None

    bf = jnp.bfloat16
    cast = lambda x: x if x.dtype == bf else x.astype(bf)

    budget, cores = _tpu_vmem_budget_and_cores()
    TM = _pick_tm(M, _row_bytes(D, Dm, KS2, Ds), budget, cores)
    grid = (M // TM,)

    vec = lambda d: pl.BlockSpec((d, TM), lambda i: (0, i))
    cube = lambda d: pl.BlockSpec((KS2, d, TM), lambda i: (0, 0, i))

    if use_sem:
        kernel = _simmax_sem_kernel
        in_specs = [vec(D), cube(D), vec(Dm), vec(Ds), cube(Ds)]
        args = (cast(a_rgb), cast(b_rgb), cast(m_patch), cast(a_sem), cast(b_sem))
    else:
        kernel = _simmax_kernel
        in_specs = [vec(D), cube(D), vec(Dm)]
        args = (cast(a_rgb), cast(b_rgb), cast(m_patch))

    max_val, max_idx = pl.pallas_call(
        kernel,
        out_shape=(jax.ShapeDtypeStruct((1, M), jnp.float32),
                   jax.ShapeDtypeStruct((1, M), jnp.int32)),
        grid_spec=pltpu.PrefetchScalarGridSpec(
            num_scalar_prefetch=0,
            grid=grid,
            in_specs=in_specs,
            out_specs=[pl.BlockSpec((1, TM), lambda i: (0, i)),
                       pl.BlockSpec((1, TM), lambda i: (0, i))]),
        compiler_params=pltpu.CompilerParams(
            dimension_semantics=("parallel",),
            vmem_limit_bytes=min(budget + (8 << 20), 112 << 20)),
    )(*args)
    return max_val.reshape(M), max_idx.reshape(M)


# ------------------------------ JAX glue ------------------------------------

def _extract_patches(x, size, stride):
    """x: (N, C, H, W) -> (N, C, Hp, Wp, size, size)  (torch unfold x2)."""
    N, C, H, W = x.shape
    Hp = (H - size) // stride + 1
    Wp = (W - size) // stride + 1
    I = (jnp.arange(Hp) * stride)[:, None] + jnp.arange(size)[None, :]
    J = (jnp.arange(Wp) * stride)[:, None] + jnp.arange(size)[None, :]
    return x[:, :, I[:, None, :, None], J[None, :, None, :]]


def _extract_search_patches(x, p, stride, S, ss, Hp, Wp):
    """x: (N, C, Hc, Wc) -> (N, C, Hp, Wp, S*S, p, p)  (torch unfold x4 + view)."""
    N, C = x.shape[:2]
    hy = jnp.arange(Hp) * stride
    wx = jnp.arange(Wp) * stride
    sh = jnp.arange(S) * ss
    a = jnp.arange(p)
    Hidx = (hy[:, None, None, None, None, None]
            + sh[None, None, :, None, None, None]
            + a[None, None, None, None, :, None])
    Widx = (wx[None, :, None, None, None, None]
            + sh[None, None, None, :, None, None]
            + a[None, None, None, None, None, :])
    Hidx = jnp.broadcast_to(Hidx, (Hp, Wp, S, S, p, p))
    Widx = jnp.broadcast_to(Widx, (Hp, Wp, S, S, p, p))
    out = x[:, :, Hidx, Widx]                    # (N, C, Hp, Wp, S, S, p, p)
    return out.reshape(N, C, Hp, Wp, S * S, p, p)


def feature_learner_forward(content, mask, condition_list, content_semantic,
                            condition_semantic_list, *, patch_size, search_size,
                            stride, search_stride, use_semantic):
    p, S, ss = patch_size, search_size, search_stride
    content = jax.lax.stop_gradient(content)                 # detach=True
    condition_list = jax.lax.stop_gradient(condition_list)
    if use_semantic:
        content_semantic = jax.lax.stop_gradient(content_semantic)
        condition_semantic_list = jax.lax.stop_gradient(condition_semantic_list)

    N, C, H, W = content.shape
    Hp = (H - p) // stride + 1
    Wp = (W - p) // stride + 1
    K = condition_list.shape[1] // 3
    KS2 = K * S * S
    M = N * Hp * Wp
    D = C * p * p
    Ds = p * p

    # ---- bf16 transport happens BEFORE the KS2-inflated patch gather so the
    # search cube only ever exists in HBM as bf16 (halves wrapper traffic).
    bf = jnp.bfloat16
    content_patches = _extract_patches(content.astype(bf), p, stride)   # (N,C,Hp,Wp,p,p)
    mask_patches = _extract_patches(mask.astype(bf), p, stride)         # (N,Cm,Hp,Wp,p,p)
    cond_cube = jnp.concatenate(
        [_extract_search_patches(condition_list[:, 3 * k:3 * k + 3].astype(bf),
                                 p, stride, S, ss, Hp, Wp)
         for k in range(K)], axis=4)                                    # (N,C,Hp,Wp,KS2,p,p)

    # ---- lane-major kernel layout: feature dim D on sublanes, patch index M
    # on lanes.  Only the native-channel mask is shipped (broadcast in-kernel).
    a_rgb = jnp.transpose(content_patches, (1, 4, 5, 0, 2, 3)).reshape(D, M)
    b_rgb = jnp.transpose(cond_cube, (4, 1, 5, 6, 0, 2, 3)).reshape(KS2, D, M)
    Cm = mask_patches.shape[1]
    m_lane = jnp.transpose(mask_patches, (1, 4, 5, 0, 2, 3)).reshape(Cm * Ds, M)

    if use_semantic:
        cs_patches = _extract_patches(content_semantic.astype(bf), p, stride)
        cond_sem_cube = jnp.concatenate(
            [_extract_search_patches(condition_semantic_list[:, k:k + 1].astype(bf),
                                     p, stride, S, ss, Hp, Wp)
             for k in range(K)], axis=4)                                # (N,1,Hp,Wp,KS2,p,p)
        a_sem = jnp.transpose(cs_patches, (1, 4, 5, 0, 2, 3)).reshape(Ds, M)
        b_sem = jnp.transpose(cond_sem_cube, (4, 1, 5, 6, 0, 2, 3)).reshape(KS2, Ds, M)
        max_val, max_idx = patch_similarity_max(a_rgb, b_rgb, m_lane, a_sem, b_sem)
    else:
        max_val, max_idx = patch_similarity_max(a_rgb, b_rgb, m_lane)

    max_val = max_val.reshape(N, Hp, Wp)
    max_idx = max_idx.reshape(N, Hp, Wp)
    maxidx = jnp.where(max_val > 0, max_idx, 0)

    # ---- slice-mean smoothing of zero indices (matches the torch loop exactly,
    # including its i*(w-swap_area) left boundary and the index-0 sentinel)
    num = 16 if Wp > 32 else 8
    w = Wp // num
    assert w >= 1, "Wp must be >= %d for the slice-mean smoothing" % num
    swap_area = w // 2
    n_slices = -(-Wp // w)
    pieces = []
    for i in range(n_slices):
        idx_s = maxidx[:, :, i * w:min((i + 1) * w, Wp)].astype(jnp.float32)
        if (i + 1) * w < Wp:
            slice_area = maxidx[:, :, i * (w - swap_area):(i + 1) * w].astype(jnp.float32)
        else:
            slice_area = maxidx[:, :, i * (w - swap_area):Wp].astype(jnp.float32)
        slice_mean = jnp.round(slice_area.sum() /
                               ((slice_area > 0.0).sum().astype(jnp.float32) + 1e-8))
        pieces.append(jnp.where(idx_s > 0.0, idx_s, slice_mean))
    maxidx = jnp.concatenate(pieces, axis=2).astype(jnp.int32)          # (N,Hp,Wp)

    # ---- swap_feature: gather the winning (unmasked) patch straight from the
    # original f32 condition images (no f32 KS2-cube ever exists) and fold back.
    kk = maxidx // (S * S)
    rr = maxidx - kk * (S * S)
    sy = rr // S
    sx = rr - sy * S
    ar = jnp.arange(p)
    rows = jnp.arange(Hp)[None, :, None] * stride + sy * ss             # (N,Hp,Wp)
    cols = jnp.arange(Wp)[None, None, :] * stride + sx * ss             # (N,Hp,Wp)
    n_idx = jnp.arange(N)[:, None, None, None, None, None]
    c_idx = (3 * kk)[:, None, :, :, None, None] \
        + jnp.arange(C)[None, :, None, None, None, None]
    r_idx = rows[:, None, :, :, None, None] + ar[None, None, None, None, :, None]
    w_idx = cols[:, None, :, :, None, None] + ar[None, None, None, None, None, :]
    gathered = condition_list[n_idx, c_idx, r_idx, w_idx]               # (N,C,Hp,Wp,p,p) f32
    val_patches = jnp.broadcast_to(max_val[:, None, :, :, None, None], gathered.shape)

    def _fold(xp):
        # xp: (N, C, Hp, Wp, p, p) -> overlap-add into (N, C, H, W)  (F.fold)
        out = jnp.zeros((N, C, H, W), xp.dtype)
        yi = (jnp.arange(Hp) * stride)[:, None, None, None] + jnp.arange(p)[None, None, :, None]
        xi = (jnp.arange(Wp) * stride)[None, :, None, None] + jnp.arange(p)[None, None, None, :]
        yi = jnp.broadcast_to(yi, (Hp, Wp, p, p))
        xi = jnp.broadcast_to(xi, (Hp, Wp, p, p))
        return out.at[:, :, yi, xi].add(xp)

    # NOTE: the nn.Module memoizes `count` per spatial shape (self.count_dict);
    # under jit it is a pure function of the shape, so we simply recompute it.
    mapped = _fold(gathered)
    simi = _fold(val_patches)
    count = jnp.maximum(_fold(jnp.ones_like(gathered)), 1.0)
    return mapped / count, simi / count


# ------------------------------- main ---------------------------------------

if __name__ == "__main__":
    key = jax.random.PRNGKey(0)
    N, C, H, W = 2, 3, 64, 64
    patch_size, search_size, stride, search_stride = 4, 2, 4, 2
    K = 2                       # number of condition images (3*K channels)
    Hc = H + search_stride * (search_size - 1)
    Wc = W + search_stride * (search_size - 1)

    k1, k2, k3, k4, k5 = jax.random.split(key, 5)
    content = jax.random.normal(k1, (N, C, H, W), jnp.float32)
    mask = (jax.random.uniform(k2, (N, 1, H, W)) > 0.3).astype(jnp.float32)
    condition_list = jax.random.normal(k3, (N, 3 * K, Hc, Wc), jnp.float32)
    content_semantic = jax.random.normal(k4, (N, 1, H, W), jnp.float32)
    condition_semantic_list = jax.random.normal(k5, (N, K, Hc, Wc), jnp.float32)

    for use_semantic in (True, False):
        fwd = jax.jit(partial(feature_learner_forward,
                              patch_size=patch_size, search_size=search_size,
                              stride=stride, search_stride=search_stride,
                              use_semantic=use_semantic))
        swapped_features, similarity = fwd(content, mask, condition_list,
                                           content_semantic, condition_semantic_list)
        jax.block_until_ready((swapped_features, similarity))
        assert swapped_features.shape == (N, C, H, W)
        assert similarity.shape == (N, C, H, W)
    print("KERNEL_OK")
</pallas_src>

<mosaic_0001>
module attributes {stable_mosaic.version = 11 : i64} {
  func.func private @main(%arg0: i32) attributes {dimension_semantics = [#tpu.dimension_semantics<core_parallel>], iteration_bounds = array<i64: 2>, tpu.core_type = #tpu.core_type<sc_scalar_subcore>, window_params = []} {
    return
  }
}

module attributes {stable_mosaic.version = 11 : i64} {
  func.func private @main(%arg0: i32) attributes {dimension_semantics = [#tpu.dimension_semantics<core_parallel>], iteration_bounds = array<i64: 2>, tpu.core_type = #tpu.core_type<sc_scalar_subcore>, window_params = []} {
    return
  }
}

module attributes {stable_mosaic.version = 11 : i64} {
  func.func @_simmax_sem_kernel(%arg0: i32, %arg1: memref<48x512xbf16, #tpu.memory_space<vmem>>, %arg2: memref<8x48x512xbf16, #tpu.memory_space<vmem>>, %arg3: memref<16x512xbf16, #tpu.memory_space<vmem>>, %arg4: memref<16x512xbf16, #tpu.memory_space<vmem>>, %arg5: memref<8x16x512xbf16, #tpu.memory_space<vmem>>, %arg6: memref<1x512xf32, #tpu.memory_space<vmem>>, %arg7: memref<1x512xi32, #tpu.memory_space<vmem>>) attributes {dimension_semantics = [#tpu.dimension_semantics<parallel>], iteration_bounds = array<i64: 1>, scalar_prefetch = 0 : i64, scratch_operands = 0 : i64, tpu.core_type = #tpu.core_type<tc>, window_params = [{transform_indices = @transform_0, window_bounds = array<i64: 48, 512>}, {transform_indices = @transform_1, window_bounds = array<i64: 8, 48, 512>}, {transform_indices = @transform_2, window_bounds = array<i64: 16, 512>}, {transform_indices = @transform_3, window_bounds = array<i64: 16, 512>}, {transform_indices = @transform_4, window_bounds = array<i64: 8, 16, 512>}, {transform_indices = @transform_5, window_bounds = array<i64: 1, 512>}, {transform_indices = @transform_6, window_bounds = array<i64: 1, 512>}]} {
    %c0 = arith.constant 0 : index
    %c0_0 = arith.constant 0 : index
    %0 = vector.load %arg3[%c0, %c0_0] : memref<16x512xbf16, #tpu.memory_space<vmem>>, vector<16x512xbf16>
    %1 = arith.extf %0 : vector<16x512xbf16> to vector<16x512xf32>
    %cst = arith.constant 0.000000e+00 : f32
    %2 = vector.broadcast %cst : f32 to vector<16x512xf32>
    %3 = arith.cmpf ogt, %1, %2 : vector<16x512xf32>
    %4 = arith.extui %3 : vector<16x512xi1> to vector<16x512xi32>
    %5 = arith.sitofp %4 : vector<16x512xi32> to vector<16x512xf32>
    %6 = tpu.concatenate %5, %5, %5 in 0 : vector<16x512xf32>, vector<16x512xf32>, vector<16x512xf32> -> vector<48x512xf32>
    %7 = vector.extract_strided_slice %6 {offsets = [0, 0], sizes = [16, 512], strides = [1, 1]} : vector<48x512xf32> to vector<16x512xf32>
    %c0_1 = arith.constant 0 : index
    %c0_2 = arith.constant 0 : index
    %8 = vector.load %arg1[%c0_1, %c0_2] : memref<48x512xbf16, #tpu.memory_space<vmem>>, vector<48x512xbf16>
    %9 = arith.extf %8 : vector<48x512xbf16> to vector<48x512xf32>
    %10 = arith.mulf %9, %9 : vector<48x512xf32>
    %cst_3 = arith.constant dense<0.000000e+00> : vector<512xf32>
    %11 = vector.multi_reduction <add>, %10, %cst_3 [0] : vector<48x512xf32> to vector<512xf32>
    %12 = vector.shape_cast %11 : vector<512xf32> to vector<1x512xf32>
    %13 = math.sqrt %12 : vector<1x512xf32>
    %cst_4 = arith.constant 9.99999993E-9 : f32
    %14 = vector.broadcast %cst_4 : f32 to vector<1x512xf32>
    %15 = arith.addf %13, %14 : vector<1x512xf32>
    %cst_5 = arith.constant 1.000000e+00 : f32
    %16 = vector.broadcast %cst_5 : f32 to vector<1x512xf32>
    %17 = arith.divf %16, %15 : vector<1x512xf32>
    %18 = arith.mulf %9, %6 : vector<48x512xf32>
    %19 = arith.mulf %17, %17 : vector<1x512xf32>
    %20 = arith.mulf %12, %19 : vector<1x512xf32>
    %c0_6 = arith.constant 0 : index
    %c0_7 = arith.constant 0 : index
    %21 = vector.load %arg4[%c0_6, %c0_7] : memref<16x512xbf16, #tpu.memory_space<vmem>>, vector<16x512xbf16>
    %22 = arith.extf %21 : vector<16x512xbf16> to vector<16x512xf32>
    %23 = arith.mulf %22, %22 : vector<16x512xf32>
    %cst_8 = arith.constant dense<0.000000e+00> : vector<512xf32>
    %24 = vector.multi_reduction <add>, %23, %cst_8 [0] : vector<16x512xf32> to vector<512xf32>
    %25 = vector.shape_cast %24 : vector<512xf32> to vector<1x512xf32>
    %26 = math.sqrt %25 : vector<1x512xf32>
    %cst_9 = arith.constant 9.99999993E-9 : f32
    %27 = vector.broadcast %cst_9 : f32 to vector<1x512xf32>
    %28 = arith.addf %26, %27 : vector<1x512xf32>
    %cst_10 = arith.constant 1.000000e+00 : f32
    %29 = vector.broadcast %cst_10 : f32 to vector<1x512xf32>
    %30 = arith.divf %29, %28 : vector<1x512xf32>
    %31 = arith.mulf %22, %7 : vector<16x512xf32>
    %32 = arith.mulf %30, %30 : vector<1x512xf32>
    %33 = arith.mulf %25, %32 : vector<1x512xf32>
    %c0_11 = arith.constant 0 : index
    %c0_12 = arith.constant 0 : index
    %c0_13 = arith.constant 0 : index
    %34 = vector.load %arg2[%c0_11, %c0_12, %c0_13] : memref<8x48x512xbf16, #tpu.memory_space<vmem>>, vector<1x48x512xbf16>
    %35 = vector.shape_cast %34 : vector<1x48x512xbf16> to vector<48x512xbf16>
    %36 = arith.extf %35 : vector<48x512xbf16> to vector<48x512xf32>
    %37 = arith.mulf %36, %36 : vector<48x512xf32>
    %38 = arith.mulf %37, %6 : vector<48x512xf32>
    %cst_14 = arith.constant dense<0.000000e+00> : vector<512xf32>
    %39 = vector.multi_reduction <add>, %38, %cst_14 [0] : vector<48x512xf32> to vector<512xf32>
    %40 = vector.shape_cast %39 : vector<512xf32> to vector<1x512xf32>
    %41 = arith.mulf %18, %36 : vector<48x512xf32>
    %cst_15 = arith.constant dense<0.000000e+00> : vector<512xf32>
    %42 = vector.multi_reduction <add>, %41, %cst_15 [0] : vector<48x512xf32> to vector<512xf32>
    %43 = vector.shape_cast %42 : vector<512xf32> to vector<1x512xf32>
    %44 = math.sqrt %40 : vector<1x512xf32>
    %cst_16 = arith.constant 9.99999993E-9 : f32
    %45 = vector.broadcast %cst_16 : f32 to vector<1x512xf32>
    %46 = arith.addf %44, %45 : vector<1x512xf32>
    %cst_17 = arith.constant 1.000000e+00 : f32
    %47 = vector.broadcast %cst_17 : f32 to vector<1x512xf32>
    %48 = arith.divf %47, %46 : vector<1x512xf32>
    %49 = arith.mulf %48, %48 : vector<1x512xf32>
    %50 = arith.mulf %40, %49 : vector<1x512xf32>
    %51 = arith.addf %20, %50 : vector<1x512xf32>
    %cst_18 = arith.constant 2.000000e+00 : f32
    %52 = vector.broadcast %cst_18 : f32 to vector<1x512xf32>
    %53 = arith.mulf %52, %43 : vector<1x512xf32>
    %54 = arith.mulf %17, %48 : vector<1x512xf32>
    %55 = arith.mulf %53, %54 : vector<1x512xf32>
    %56 = arith.subf %51, %55 : vector<1x512xf32>
    %cst_19 = arith.constant 0.000000e+00 : f32
    %57 = vector.broadcast %cst_19 : f32 to vector<1x512xf32>
    %58 = arith.maximumf %56, %57 : vector<1x512xf32>
    %59 = math.sqrt %58 : vector<1x512xf32>
    %cst_20 = arith.constant 2.000000e+00 : f32
    %60 = vector.broadcast %cst_20 : f32 to vector<1x512xf32>
    %61 = arith.subf %60, %59 : vector<1x512xf32>
    %cst_21 = arith.constant 5.000000e-01 : f32
    %62 = vector.broadcast %cst_21 : f32 to vector<1x512xf32>
    %63 = arith.mulf %61, %62 : vector<1x512xf32>
    %c0_22 = arith.constant 0 : index
    %c0_23 = arith.constant 0 : index
    %c0_24 = arith.constant 0 : index
    %64 = vector.load %arg5[%c0_22, %c0_23, %c0_24] : memref<8x16x512xbf16, #tpu.memory_space<vmem>>, vector<1x16x512xbf16>
    %65 = vector.shape_cast %64 : vector<1x16x512xbf16> to vector<16x512xbf16>
    %66 = arith.extf %65 : vector<16x512xbf16> to vector<16x512xf32>
    %67 = arith.mulf %66, %66 : vector<16x512xf32>
    %68 = arith.mulf %67, %7 : vector<16x512xf32>
    %cst_25 = arith.constant dense<0.000000e+00> : vector<512xf32>
    %69 = vector.multi_reduction <add>, %68, %cst_25 [0] : vector<16x512xf32> to vector<512xf32>
    %70 = vector.shape_cast %69 : vector<512xf32> to vector<1x512xf32>
    %71 = arith.mulf %31, %66 : vector<16x512xf32>
    %cst_26 = arith.constant dense<0.000000e+00> : vector<512xf32>
    %72 = vector.multi_reduction <add>, %71, %cst_26 [0] : vector<16x512xf32> to vector<512xf32>
    %73 = vector.shape_cast %72 : vector<512xf32> to vector<1x512xf32>
    %74 = math.sqrt %70 : vector<1x512xf32>
    %cst_27 = arith.constant 9.99999993E-9 : f32
    %75 = vector.broadcast %cst_27 : f32 to vector<1x512xf32>
    %76 = arith.addf %74, %75 : vector<1x512xf32>
    %cst_28 = arith.constant 1.000000e+00 : f32
    %77 = vector.broadcast %cst_28 : f32 to vector<1x512xf32>
    %78 = arith.divf %77, %76 : vector<1x512xf32>
    %79 = arith.mulf %78, %78 : vector<1x512xf32>
    %80 = arith.mulf %70, %79 : vector<1x512xf32>
    %81 = arith.addf %33, %80 : vector<1x512xf32>
    %cst_29 = arith.constant 2.000000e+00 : f32
    %82 = vector.broadcast %cst_29 : f32 to vector<1x512xf32>
    %83 = arith.mulf %82, %73 : vector<1x512xf32>
    %84 = arith.mulf %30, %78 : vector<1x512xf32>
    %85 = arith.mulf %83, %84 : vector<1x512xf32>
    %86 = arith.subf %81, %85 : vector<1x512xf32>
    %cst_30 = arith.constant 0.000000e+00 : f32
    %87 = vector.broadcast %cst_30 : f32 to vector<1x512xf32>
    %88 = arith.maximumf %86, %87 : vector<1x512xf32>
    %89 = math.sqrt %88 : vector<1x512xf32>
    %cst_31 = arith.constant 2.000000e+00 : f32
    %90 = vector.broadcast %cst_31 : f32 to vector<1x512xf32>
    %91 = arith.subf %90, %89 : vector<1x512xf32>
    %cst_32 = arith.constant 5.000000e-01 : f32
    %92 = vector.broadcast %cst_32 : f32 to vector<1x512xf32>
    %93 = arith.mulf %91, %92 : vector<1x512xf32>
    %cst_33 = arith.constant 3.000000e-01 : f32
    %94 = vector.broadcast %cst_33 : f32 to vector<1x512xf32>
    %95 = arith.mulf %94, %63 : vector<1x512xf32>
    %cst_34 = arith.constant 0.699999988 : f32
    %96 = vector.broadcast %cst_34 : f32 to vector<1x512xf32>
    %97 = arith.mulf %96, %93 : vector<1x512xf32>
    %98 = arith.addf %95, %97 : vector<1x512xf32>
    %c0_i32 = arith.constant 0 : i32
    %99 = vector.broadcast %c0_i32 : i32 to vector<1x512xi32>
    %c1 = arith.constant 1 : index
    %c0_35 = arith.constant 0 : index
    %c0_36 = arith.constant 0 : index
    %100 = vector.load %arg2[%c1, %c0_35, %c0_36] : memref<8x48x512xbf16, #tpu.memory_space<vmem>>, vector<1x48x512xbf16>
    %101 = vector.shape_cast %100 : vector<1x48x512xbf16> to vector<48x512xbf16>
    %102 = arith.extf %101 : vector<48x512xbf16> to vector<48x512xf32>
    %103 = arith.mulf %102, %102 : vector<48x512xf32>
    %104 = arith.mulf %103, %6 : vector<48x512xf32>
    %cst_37 = arith.constant dense<0.000000e+00> : vector<512xf32>
    %105 = vector.multi_reduction <add>, %104, %cst_37 [0] : vector<48x512xf32> to vector<512xf32>
    %106 = vector.shape_cast %105 : vector<512xf32> to vector<1x512xf32>
    %107 = arith.mulf %18, %102 : vector<48x512xf32>
    %cst_38 = arith.constant dense<0.000000e+00> : vector<512xf32>
    %108 = vector.multi_reduction <add>, %107, %cst_38 [0] : vector<48x512xf32> to vector<512xf32>
    %109 = vector.shape_cast %108 : vector<512xf32> to vector<1x512xf32>
    %110 = math.sqrt %106 : vector<1x512xf32>
    %cst_39 = arith.constant 9.99999993E-9 : f32
    %111 = vector.broadcast %cst_39 : f32 to vector<1x512xf32>
    %112 = arith.addf %110, %111 : vector<1x512xf32>
    %cst_40 = arith.constant 1.000000e+00 : f32
    %113 = vector.broadcast %cst_40 : f32 to vector<1x512xf32>
    %114 = arith.divf %113, %112 : vector<1x512xf32>
    %115 = arith.mulf %114, %114 : vector<1x512xf32>
    %116 = arith.mulf %106, %115 : vector<1x512xf32>
    %117 = arith.addf %20, %116 : vector<1x512xf32>
    %cst_41 = arith.constant 2.000000e+00 : f32
    %118 = vector.broadcast %cst_41 : f32 to vector<1x512xf32>
    %119 = arith.mulf %118, %109 : vector<1x512xf32>
    %120 = arith.mulf %17, %114 : vector<1x512xf32>
    %121 = arith.mulf %119, %120 : vector<1x512xf32>
    %122 = arith.subf %117, %121 : vector<1x512xf32>
    %cst_42 = arith.constant 0.000000e+00 : f32
    %123 = vector.broadcast %cst_42 : f32 to vector<1x512xf32>
    %124 = arith.maximumf %122, %123 : vector<1x512xf32>
    %125 = math.sqrt %124 : vector<1x512xf32>
    %cst_43 = arith.constant 2.000000e+00 : f32
    %126 = vector.broadcast %cst_43 : f32 to vector<1x512xf32>
    %127 = arith.subf %126, %125 : vector<1x512xf32>
    %cst_44 = arith.constant 5.000000e-01 : f32
    %128 = vector.broadcast %cst_44 : f32 to vector<1x512xf32>
    %129 = arith.mulf %127, %128 : vector<1x512xf32>
    %c1_45 = arith.constant 1 : index
    %c0_46 = arith.constant 0 : index
    %c0_47 = arith.constant 0 : index
    %130 = vector.load %arg5[%c1_45, %c0_46, %c0_47] : memref<8x16x512xbf16, #tpu.memory_space<vmem>>, vector<1x16x512xbf16>
    %131 = vector.shape_cast %130 : vector<1x16x512xbf16> to vector<16x512xbf16>
    %132 = arith.extf %131 : vector<16x512xbf16> to vector<16x512xf32>
    %133 = arith.mulf %132, %132 : vector<16x512xf32>
    %134 = arith.mulf %133, %7 : vector<16x512xf32>
    %cst_48 = arith.constant dense<0.000000e+00> : vector<512xf32>
    %135 = vector.multi_reduction <add>, %134, %cst_48 [0] : vector<16x512xf32> to vector<512xf32>
    %136 = vector.shape_cast %135 : vector<512xf32> to vector<1x512xf32>
    %137 = arith.mulf %31, %132 : vector<16x512xf32>
    %cst_49 = arith.constant dense<0.000000e+00> : vector<512xf32>
    %138 = vector.multi_reduction <add>, %137, %cst_49 [0] : vector<16x512xf32> to vector<512xf32>
    %139 = vector.shape_cast %138 : vector<512xf32> to vector<1x512xf32>
    %140 = math.sqrt %136 : vector<1x512xf32>
    %cst_50 = arith.constant 9.99999993E-9 : f32
    %141 = vector.broadcast %cst_50 : f32 to vector<1x512xf32>
    %142 = arith.addf %140, %141 : vector<1x512xf32>
    %cst_51 = arith.constant 1.000000e+00 : f32
    %143 = vector.broadcast %cst_51 : f32 to vector<1x512xf32>
    %144 = arith.divf %143, %142 : vector<1x512xf32>
    %145 = arith.mulf %144, %144 : vector<1x512xf32>
    %146 = arith.mulf %136, %145 : vector<1x512xf32>
    %147 = arith.addf %33, %146 : vector<1x512xf32>
    %cst_52 = arith.constant 2.000000e+00 : f32
    %148 = vector.broadcast %cst_52 : f32 to vector<1x512xf32>
    %149 = arith.mulf %148, %139 : vector<1x512xf32>
    %150 = arith.mulf %30, %144 : vector<1x512xf32>
    %151 = arith.mulf %149, %150 : vector<1x512xf32>
    %152 = arith.subf %147, %151 : vector<1x512xf32>
    %cst_53 = arith.constant 0.000000e+00 : f32
    %153 = vector.broadcast %cst_53 : f32 to vector<1x512xf32>
    %154 = arith.maximumf %152, %153 : vector<1x512xf32>
    %155 = math.sqrt %154 : vector<1x512xf32>
    %cst_54 = arith.constant 2.000000e+00 : f32
    %156 = vector.broadcast %cst_54 : f32 to vector<1x512xf32>
    %157 = arith.subf %156, %155 : vector<1x512xf32>
    %cst_55 = arith.constant 5.000000e-01 : f32
    %158 = vector.broadcast %cst_55 : f32 to vector<1x512xf32>
    %159 = arith.mulf %157, %158 : vector<1x512xf32>
    %cst_56 = arith.constant 3.000000e-01 : f32
    %160 = vector.broadcast %cst_56 : f32 to vector<1x512xf32>
    %161 = arith.mulf %160, %129 : vector<1x512xf32>
    %cst_57 = arith.constant 0.699999988 : f32
    %162 = vector.broadcast %cst_57 : f32 to vector<1x512xf32>
    %163 = arith.mulf %162, %159 : vector<1x512xf32>
    %164 = arith.addf %161, %163 : vector<1x512xf32>
    %165 = arith.cmpf ogt, %164, %98 : vector<1x512xf32>
    %166 = arith.select %165, %164, %98 : vector<1x512xi1>, vector<1x512xf32>
    %c1_i32 = arith.constant 1 : i32
    %167 = vector.broadcast %c1_i32 : i32 to vector<1x512xi32>
    %168 = arith.select %165, %167, %99 : vector<1x512xi1>, vector<1x512xi32>
    %c2 = arith.constant 2 : index
    %c0_58 = arith.constant 0 : index
    %c0_59 = arith.constant 0 : index
    %169 = vector.load %arg2[%c2, %c0_58, %c0_59] : memref<8x48x512xbf16, #tpu.memory_space<vmem>>, vector<1x48x512xbf16>
    %170 = vector.shape_cast %169 : vector<1x48x512xbf16> to vector<48x512xbf16>
    %171 = arith.extf %170 : vector<48x512xbf16> to vector<48x512xf32>
    %172 = arith.mulf %171, %171 : vector<48x512xf32>
    %173 = arith.mulf %172, %6 : vector<48x512xf32>
    %cst_60 = arith.constant dense<0.000000e+00> : vector<512xf32>
    %174 = vector.multi_reduction <add>, %173, %cst_60 [0] : vector<48x512xf32> to vector<512xf32>
    %175 = vector.shape_cast %174 : vector<512xf32> to vector<1x512xf32>
    %176 = arith.mulf %18, %171 : vector<48x512xf32>
    %cst_61 = arith.constant dense<0.000000e+00> : vector<512xf32>
    %177 = vector.multi_reduction <add>, %176, %cst_61 [0] : vector<48x512xf32> to vector<512xf32>
    %178 = vector.shape_cast %177 : vector<512xf32> to vector<1x512xf32>
    %179 = math.sqrt %175 : vector<1x512xf32>
    %cst_62 = arith.constant 9.99999993E-9 : f32
    %180 = vector.broadcast %cst_62 : f32 to vector<1x512xf32>
    %181 = arith.addf %179, %180 : vector<1x512xf32>
    %cst_63 = arith.constant 1.000000e+00 : f32
    %182 = vector.broadcast %cst_63 : f32 to vector<1x512xf32>
    %183 = arith.divf %182, %181 : vector<1x512xf32>
    %184 = arith.mulf %183, %183 : vector<1x512xf32>
    %185 = arith.mulf %175, %184 : vector<1x512xf32>
    %186 = arith.addf %20, %185 : vector<1x512xf32>
    %cst_64 = arith.constant 2.000000e+00 : f32
    %187 = vector.broadcast %cst_64 : f32 to vector<1x512xf32>
    %188 = arith.mulf %187, %178 : vector<1x512xf32>
    %189 = arith.mulf %17, %183 : vector<1x512xf32>
    %190 = arith.mulf %188, %189 : vector<1x512xf32>
    %191 = arith.subf %186, %190 : vector<1x512xf32>
    %cst_65 = arith.constant 0.000000e+00 : f32
    %192 = vector.broadcast %cst_65 : f32 to vector<1x512xf32>
    %193 = arith.maximumf %191, %192 : vector<1x512xf32>
    %194 = math.sqrt %193 : vector<1x512xf32>
    %cst_66 = arith.constant 2.000000e+00 : f32
    %195 = vector.broadcast %cst_66 : f32 to vector<1x512xf32>
    %196 = arith.subf %195, %194 : vector<1x512xf32>
    %cst_67 = arith.constant 5.000000e-01 : f32
    %197 = vector.broadcast %cst_67 : f32 to vector<1x512xf32>
    %198 = arith.mulf %196, %197 : vector<1x512xf32>
    %c2_68 = arith.constant 2 : index
    %c0_69 = arith.constant 0 : index
    %c0_70 = arith.constant 0 : index
    %199 = vector.load %arg5[%c2_68, %c0_69, %c0_70] : memref<8x16x512xbf16, #tpu.memory_space<vmem>>, vector<1x16x512xbf16>
    %200 = vector.shape_cast %199 : vector<1x16x512xbf16> to vector<16x512xbf16>
    %201 = arith.extf %200 : vector<16x512xbf16> to vector<16x512xf32>
    %202 = arith.mulf %201, %201 : vector<16x512xf32>
    %203 = arith.mulf %202, %7 : vector<16x512xf32>
    %cst_71 = arith.constant dense<0.000000e+00> : vector<512xf32>
    %204 = vector.multi_reduction <add>, %203, %cst_71 [0] : vector<16x512xf32> to vector<512xf32>
    %205 = vector.shape_cast %204 : vector<512xf32> to vector<1x512xf32>
    %206 = arith.mulf %31, %201 : vector<16x512xf32>
    %cst_72 = arith.constant dense<0.000000e+00> : vector<512xf32>
    %207 = vector.multi_reduction <add>, %206, %cst_72 [0] : vector<16x512xf32> to vector<512xf32>
    %208 = vector.shape_cast %207 : vector<512xf32> to vector<1x512xf32>
    %209 = math.sqrt %205 : vector<1x512xf32>
    %cst_73 = arith.constant 9.99999993E-9 : f32
    %210 = vector.broadcast %cst_73 : f32 to vector<1x512xf32>
    %211 = arith.addf %209, %210 : vector<1x512xf32>
    %cst_74 = arith.constant 1.000000e+00 : f32
    %212 = vector.broadcast %cst_74 : f32 to vector<1x512xf32>
    %213 = arith.divf %212, %211 : vector<1x512xf32>
    %214 = arith.mulf %213, %213 : vector<1x512xf32>
    %215 = arith.mulf %205, %214 : vector<1x512xf32>
    %216 = arith.addf %33, %215 : vector<1x512xf32>
    %cst_75 = arith.constant 2.000000e+00 : f32
    %217 = vector.broadcast %cst_75 : f32 to vector<1x512xf32>
    %218 = arith.mulf %217, %208 : vector<1x512xf32>
    %219 = arith.mulf %30, %213 : vector<1x512xf32>
    %220 = arith.mulf %218, %219 : vector<1x512xf32>
    %221 = arith.subf %216, %220 : vector<1x512xf32>
    %cst_76 = arith.constant 0.000000e+00 : f32
    %222 = vector.broadcast %cst_76 : f32 to vector<1x512xf32>
    %223 = arith.maximumf %221, %222 : vector<1x512xf32>
    %224 = math.sqrt %223 : vector<1x512xf32>
    %cst_77 = arith.constant 2.000000e+00 : f32
    %225 = vector.broadcast %cst_77 : f32 to vector<1x512xf32>
    %226 = arith.subf %225, %224 : vector<1x512xf32>
    %cst_78 = arith.constant 5.000000e-01 : f32
    %227 = vector.broadcast %cst_78 : f32 to vector<1x512xf32>
    %228 = arith.mulf %226, %227 : vector<1x512xf32>
    %cst_79 = arith.constant 3.000000e-01 : f32
    %229 = vector.broadcast %cst_79 : f32 to vector<1x512xf32>
    %230 = arith.mulf %229, %198 : vector<1x512xf32>
    %cst_80 = arith.constant 0.699999988 : f32
    %231 = vector.broadcast %cst_80 : f32 to vector<1x512xf32>
    %232 = arith.mulf %231, %228 : vector<1x512xf32>
    %233 = arith.addf %230, %232 : vector<1x512xf32>
    %234 = arith.cmpf ogt, %233, %166 : vector<1x512xf32>
    %235 = arith.select %234, %233, %166 : vector<1x512xi1>, vector<1x512xf32>
    %c2_i32 = arith.constant 2 : i32
    %236 = vector.broadcast %c2_i32 : i32 to vector<1x512xi32>
    %237 = arith.select %234, %236, %168 : vector<1x512xi1>, vector<1x512xi32>
    %c3 = arith.constant 3 : index
    %c0_81 = arith.constant 0 : index
    %c0_82 = arith.constant 0 : index
    %238 = vector.load %arg2[%c3, %c0_81, %c0_82] : memref<8x48x512xbf16, #tpu.memory_space<vmem>>, vector<1x48x512xbf16>
    %239 = vector.shape_cast %238 : vector<1x48x512xbf16> to vector<48x512xbf16>
    %240 = arith.extf %239 : vector<48x512xbf16> to vector<48x512xf32>
    %241 = arith.mulf %240, %240 : vector<48x512xf32>
    %242 = arith.mulf %241, %6 : vector<48x512xf32>
    %cst_83 = arith.constant dense<0.000000e+00> : vector<512xf32>
    %243 = vector.multi_reduction <add>, %242, %cst_83 [0] : vector<48x512xf32> to vector<512xf32>
    %244 = vector.shape_cast %243 : vector<512xf32> to vector<1x512xf32>
    %245 = arith.mulf %18, %240 : vector<48x512xf32>
    %cst_84 = arith.constant dense<0.000000e+00> : vector<512xf32>
    %246 = vector.multi_reduction <add>, %245, %cst_84 [0] : vector<48x512xf32> to vector<512xf32>
    %247 = vector.shape_cast %246 : vector<512xf32> to vector<1x512xf32>
    %248 = math.sqrt %244 : vector<1x512xf32>
    %cst_85 = arith.constant 9.99999993E-9 : f32
    %249 = vector.broadcast %cst_85 : f32 to vector<1x512xf32>
    %250 = arith.addf %248, %249 : vector<1x512xf32>
    %cst_86 = arith.constant 1.000000e+00 : f32
    %251 = vector.broadcast %cst_86 : f32 to vector<1x512xf32>
    %252 = arith.divf %251, %250 : vector<1x512xf32>
    %253 = arith.mulf %252, %252 : vector<1x512xf32>
    %254 = arith.mulf %244, %253 : vector<1x512xf32>
    %255 = arith.addf %20, %254 : vector<1x512xf32>
    %cst_87 = arith.constant 2.000000e+00 : f32
    %256 = vector.broadcast %cst_87 : f32 to vector<1x512xf32>
    %257 = arith.mulf %256, %247 : vector<1x512xf32>
    %258 = arith.mulf %17, %252 : vector<1x512xf32>
    %259 = arith.mulf %257, %258 : vector<1x512xf32>
    %260 = arith.subf %255, %259 : vector<1x512xf32>
    %cst_88 = arith.constant 0.000000e+00 : f32
    %261 = vector.broadcast %cst_88 : f32 to vector<1x512xf32>
    %262 = arith.maximumf %260, %261 : vector<1x512xf32>
    %263 = math.sqrt %262 : vector<1x512xf32>
    %cst_89 = arith.constant 2.000000e+00 : f32
    %264 = vector.broadcast %cst_89 : f32 to vector<1x512xf32>
    %265 = arith.subf %264, %263 : vector<1x512xf32>
    %cst_90 = arith.constant 5.000000e-01 : f32
    %266 = vector.broadcast %cst_90 : f32 to vector<1x512xf32>
    %267 = arith.mulf %265, %266 : vector<1x512xf32>
    %c3_91 = arith.constant 3 : index
    %c0_92 = arith.constant 0 : index
    %c0_93 = arith.constant 0 : index
    %268 = vector.load %arg5[%c3_91, %c0_92, %c0_93] : memref<8x16x512xbf16, #tpu.memory_space<vmem>>, vector<1x16x512xbf16>
    %269 = vector.shape_cast %268 : vector<1x16x512xbf16> to vector<16x512xbf16>
    %270 = arith.extf %269 : vector<16x512xbf16> to vector<16x512xf32>
    %271 = arith.mulf %270, %270 : vector<16x512xf32>
    %272 = arith.mulf %271, %7 : vector<16x512xf32>
    %cst_94 = arith.constant dense<0.000000e+00> : vector<512xf32>
    %273 = vector.multi_reduction <add>, %272, %cst_94 [0] : vector<16x512xf32> to vector<512xf32>
    %274 = vector.shape_cast %273 : vector<512xf32> to vector<1x512xf32>
    %275 = arith.mulf %31, %270 : vector<16x512xf32>
    %cst_95 = arith.constant dense<0.000000e+00> : vector<512xf32>
    %276 = vector.multi_reduction <add>, %275, %cst_95 [0] : vector<16x512xf32> to vector<512xf32>
    %277 = vector.shape_cast %276 : vector<512xf32> to vector<1x512xf32>
    %278 = math.sqrt %274 : vector<1x512xf32>
    %cst_96 = arith.constant 9.99999993E-9 : f32
    %279 = vector.broadcast %cst_96 : f32 to vector<1x512xf32>
    %280 = arith.addf %278, %279 : vector<1x512xf32>
    %cst_97 = arith.constant 1.000000e+00 : f32
    %281 = vector.broadcast %cst_97 : f32 to vector<1x512xf32>
    %282 = arith.divf %281, %280 : vector<1x512xf32>
    %283 = arith.mulf %282, %282 : vector<1x512xf32>
    %284 = arith.mulf %274, %283 : vector<1x512xf32>
    %285 = arith.addf %33, %284 : vector<1x512xf32>
    %cst_98 = arith.constant 2.000000e+00 : f32
    %286 = vector.broadcast %cst_98 : f32 to vector<1x512xf32>
    %287 = arith.mulf %286, %277 : vector<1x512xf32>
    %288 = arith.mulf %30, %282 : vector<1x512xf32>
    %289 = arith.mulf %287, %288 : vector<1x512xf32>
    %290 = arith.subf %285, %289 : vector<1x512xf32>
    %cst_99 = arith.constant 0.000000e+00 : f32
    %291 = vector.broadcast %cst_99 : f32 to vector<1x512xf32>
    %292 = arith.maximumf %290, %291 : vector<1x512xf32>
    %293 = math.sqrt %292 : vector<1x512xf32>
    %cst_100 = arith.constant 2.000000e+00 : f32
    %294 = vector.broadcast %cst_100 : f32 to vector<1x512xf32>
    %295 = arith.subf %294, %293 : vector<1x512xf32>
    %cst_101 = arith.constant 5.000000e-01 : f32
    %296 = vector.broadcast %cst_101 : f32 to vector<1x512xf32>
    %297 = arith.mulf %295, %296 : vector<1x512xf32>
    %cst_102 = arith.constant 3.000000e-01 : f32
    %298 = vector.broadcast %cst_102 : f32 to vector<1x512xf32>
    %299 = arith.mulf %298, %267 : vector<1x512xf32>
    %cst_103 = arith.constant 0.699999988 : f32
    %300 = vector.broadcast %cst_103 : f32 to vector<1x512xf32>
    %301 = arith.mulf %300, %297 : vector<1x512xf32>
    %302 = arith.addf %299, %301 : vector<1x512xf32>
    %303 = arith.cmpf ogt, %302, %235 : vector<1x512xf32>
    %304 = arith.select %303, %302, %235 : vector<1x512xi1>, vector<1x512xf32>
    %c3_i32 = arith.constant 3 : i32
    %305 = vector.broadcast %c3_i32 : i32 to vector<1x512xi32>
    %306 = arith.select %303, %305, %237 : vector<1x512xi1>, vector<1x512xi32>
    %c4 = arith.constant 4 : index
    %c0_104 = arith.constant 0 : index
    %c0_105 = arith.constant 0 : index
    %307 = vector.load %arg2[%c4, %c0_104, %c0_105] : memref<8x48x512xbf16, #tpu.memory_space<vmem>>, vector<1x48x512xbf16>
    %308 = vector.shape_cast %307 : vector<1x48x512xbf16> to vector<48x512xbf16>
    %309 = arith.extf %308 : vector<48x512xbf16> to vector<48x512xf32>
    %310 = arith.mulf %309, %309 : vector<48x512xf32>
    %311 = arith.mulf %310, %6 : vector<48x512xf32>
    %cst_106 = arith.constant dense<0.000000e+00> : vector<512xf32>
    %312 = vector.multi_reduction <add>, %311, %cst_106 [0] : vector<48x512xf32> to vector<512xf32>
    %313 = vector.shape_cast %312 : vector<512xf32> to vector<1x512xf32>
    %314 = arith.mulf %18, %309 : vector<48x512xf32>
    %cst_107 = arith.constant dense<0.000000e+00> : vector<512xf32>
    %315 = vector.multi_reduction <add>, %314, %cst_107 [0] : vector<48x512xf32> to vector<512xf32>
    %316 = vector.shape_cast %315 : vector<512xf32> to vector<1x512xf32>
    %317 = math.sqrt %313 : vector<1x512xf32>
    %cst_108 = arith.constant 9.99999993E-9 : f32
    %318 = vector.broadcast %cst_108 : f32 to vector<1x512xf32>
    %319 = arith.addf %317, %318 : vector<1x512xf32>
    %cst_109 = arith.constant 1.000000e+00 : f32
    %320 = vector.broadcast %cst_109 : f32 to vector<1x512xf32>
    %321 = arith.divf %320, %319 : vector<1x512xf32>
    %322 = arith.mulf %321, %321 : vector<1x512xf32>
    %323 = arith.mulf %313, %322 : vector<1x512xf32>
    %324 = arith.addf %20, %323 : vector<1x512xf32>
    %cst_110 = arith.constant 2.000000e+00 : f32
    %325 = vector.broadcast %cst_110 : f32 to vector<1x512xf32>
    %326 = arith.mulf %325, %316 : vector<1x512xf32>
    %327 = arith.mulf %17, %321 : vector<1x512xf32>
    %328 = arith.mulf %326, %327 : vector<1x512xf32>
    %329 = arith.subf %324, %328 : vector<1x512xf32>
    %cst_111 = arith.constant 0.000000e+00 : f32
    %330 = vector.broadcast %cst_111 : f32 to vector<1x512xf32>
    %331 = arith.maximumf %329, %330 : vector<1x512xf32>
    %332 = math.sqrt %331 : vector<1x512xf32>
    %cst_112 = arith.constant 2.000000e+00 : f32
    %333 = vector.broadcast %cst_112 : f32 to vector<1x512xf32>
    %334 = arith.subf %333, %332 : vector<1x512xf32>
    %cst_113 = arith.constant 5.000000e-01 : f32
    %335 = vector.broadcast %cst_113 : f32 to vector<1x512xf32>
    %336 = arith.mulf %334, %335 : vector<1x512xf32>
    %c4_114 = arith.constant 4 : index
    %c0_115 = arith.constant 0 : index
    %c0_116 = arith.constant 0 : index
    %337 = vector.load %arg5[%c4_114, %c0_115, %c0_116] : memref<8x16x512xbf16, #tpu.memory_space<vmem>>, vector<1x16x512xbf16>
    %338 = vector.shape_cast %337 : vector<1x16x512xbf16> to vector<16x512xbf16>
    %339 = arith.extf %338 : vector<16x512xbf16> to vector<16x512xf32>
    %340 = arith.mulf %339, %339 : vector<16x512xf32>
    %341 = arith.mulf %340, %7 : vector<16x512xf32>
    %cst_117 = arith.constant dense<0.000000e+00> : vector<512xf32>
    %342 = vector.multi_reduction <add>, %341, %cst_117 [0] : vector<16x512xf32> to vector<512xf32>
    %343 = vector.shape_cast %342 : vector<512xf32> to vector<1x512xf32>
    %344 = arith.mulf %31, %339 : vector<16x512xf32>
    %cst_118 = arith.constant dense<0.000000e+00> : vector<512xf32>
    %345 = vector.multi_reduction <add>, %344, %cst_118 [0] : vector<16x512xf32> to vector<512xf32>
    %346 = vector.shape_cast %345 : vector<512xf32> to vector<1x512xf32>
    %347 = math.sqrt %343 : vector<1x512xf32>
    %cst_119 = arith.constant 9.99999993E-9 : f32
    %348 = vector.broadcast %cst_119 : f32 to vector<1x512xf32>
    %349 = arith.addf %347, %348 : vector<1x512xf32>
    %cst_120 = arith.constant 1.000000e+00 : f32
    %350 = vector.broadcast %cst_120 : f32 to vector<1x512xf32>
    %351 = arith.divf %350, %349 : vector<1x512xf32>
    %352 = arith.mulf %351, %351 : vector<1x512xf32>
    %353 = arith.mulf %343, %352 : vector<1x512xf32>
    %354 = arith.addf %33, %353 : vector<1x512xf32>
    %cst_121 = arith.constant 2.000000e+00 : f32
    %355 = vector.broadcast %cst_121 : f32 to vector<1x512xf32>
    %356 = arith.mulf %355, %346 : vector<1x512xf32>
    %357 = arith.mulf %30, %351 : vector<1x512xf32>
    %358 = arith.mulf %356, %357 : vector<1x512xf32>
    %359 = arith.subf %354, %358 : vector<1x512xf32>
    %cst_122 = arith.constant 0.000000e+00 : f32
    %360 = vector.broadcast %cst_122 : f32 to vector<1x512xf32>
    %361 = arith.maximumf %359, %360 : vector<1x512xf32>
    %362 = math.sqrt %361 : vector<1x512xf32>
    %cst_123 = arith.constant 2.000000e+00 : f32
    %363 = vector.broadcast %cst_123 : f32 to vector<1x512xf32>
    %364 = arith.subf %363, %362 : vector<1x512xf32>
    %cst_124 = arith.constant 5.000000e-01 : f32
    %365 = vector.broadcast %cst_124 : f32 to vector<1x512xf32>
    %366 = arith.mulf %364, %365 : vector<1x512xf32>
    %cst_125 = arith.constant 3.000000e-01 : f32
    %367 = vector.broadcast %cst_125 : f32 to vector<1x512xf32>
    %368 = arith.mulf %367, %336 : vector<1x512xf32>
    %cst_126 = arith.constant 0.699999988 : f32
    %369 = vector.broadcast %cst_126 : f32 to vector<1x512xf32>
    %370 = arith.mulf %369, %366 : vector<1x512xf32>
    %371 = arith.addf %368, %370 : vector<1x512xf32>
    %372 = arith.cmpf ogt, %371, %304 : vector<1x512xf32>
    %373 = arith.select %372, %371, %304 : vector<1x512xi1>, vector<1x512xf32>
    %c4_i32 = arith.constant 4 : i32
    %374 = vector.broadcast %c4_i32 : i32 to vector<1x512xi32>
    %375 = arith.select %372, %374, %306 : vector<1x512xi1>, vector<1x512xi32>
    %c5 = arith.constant 5 : index
    %c0_127 = arith.constant 0 : index
    %c0_128 = arith.constant 0 : index
    %376 = vector.load %arg2[%c5, %c0_127, %c0_128] : memref<8x48x512xbf16, #tpu.memory_space<vmem>>, vector<1x48x512xbf16>
    %377 = vector.shape_cast %376 : vector<1x48x512xbf16> to vector<48x512xbf16>
    %378 = arith.extf %377 : vector<48x512xbf16> to vector<48x512xf32>
    %379 = arith.mulf %378, %378 : vector<48x512xf32>
    %380 = arith.mulf %379, %6 : vector<48x512xf32>
    %cst_129 = arith.constant dense<0.000000e+00> : vector<512xf32>
    %381 = vector.multi_reduction <add>, %380, %cst_129 [0] : vector<48x512xf32> to vector<512xf32>
    %382 = vector.shape_cast %381 : vector<512xf32> to vector<1x512xf32>
    %383 = arith.mulf %18, %378 : vector<48x512xf32>
    %cst_130 = arith.constant dense<0.000000e+00> : vector<512xf32>
    %384 = vector.multi_reduction <add>, %383, %cst_130 [0] : vector<48x512xf32> to vector<512xf32>
    %385 = vector.shape_cast %384 : vector<512xf32> to vector<1x512xf32>
    %386 = math.sqrt %382 : vector<1x512xf32>
    %cst_131 = arith.constant 9.99999993E-9 : f32
    %387 = vector.broadcast %cst_131 : f32 to vector<1x512xf32>
    %388 = arith.addf %386, %387 : vector<1x512xf32>
    %cst_132 = arith.constant 1.000000e+00 : f32
    %389 = vector.broadcast %cst_132 : f32 to vector<1x512xf32>
    %390 = arith.divf %389, %388 : vector<1x512xf32>
    %391 = arith.mulf %390, %390 : vector<1x512xf32>
    %392 = arith.mulf %382, %391 : vector<1x512xf32>
    %393 = arith.addf %20, %392 : vector<1x512xf32>
    %cst_133 = arith.constant 2.000000e+00 : f32
    %394 = vector.broadcast %cst_133 : f32 to vector<1x512xf32>
    %395 = arith.mulf %394, %385 : vector<1x512xf32>
    %396 = arith.mulf %17, %390 : vector<1x512xf32>
    %397 = arith.mulf %395, %396 : vector<1x512xf32>
    %398 = arith.subf %393, %397 : vector<1x512xf32>
    %cst_134 = arith.constant 0.000000e+00 : f32
    %399 = vector.broadcast %cst_134 : f32 to vector<1x512xf32>
    %400 = arith.maximumf %398, %399 : vector<1x512xf32>
    %401 = math.sqrt %400 : vector<1x512xf32>
    %cst_135 = arith.constant 2.000000e+00 : f32
    %402 = vector.broadcast %cst_135 : f32 to vector<1x512xf32>
    %403 = arith.subf %402, %401 : vector<1x512xf32>
    %cst_136 = arith.constant 5.000000e-01 : f32
    %404 = vector.broadcast %cst_136 : f32 to vector<1x512xf32>
    %405 = arith.mulf %403, %404 : vector<1x512xf32>
    %c5_137 = arith.constant 5 : index
    %c0_138 = arith.constant 0 : index
    %c0_139 = arith.constant 0 : index
    %406 = vector.load %arg5[%c5_137, %c0_138, %c0_139] : memref<8x16x512xbf16, #tpu.memory_space<vmem>>, vector<1x16x512xbf16>
    %407 = vector.shape_cast %406 : vector<1x16x512xbf16> to vector<16x512xbf16>
    %408 = arith.extf %407 : vector<16x512xbf16> to vector<16x512xf32>
    %409 = arith.mulf %408, %408 : vector<16x512xf32>
    %410 = arith.mulf %409, %7 : vector<16x512xf32>
    %cst_140 = arith.constant dense<0.000000e+00> : vector<512xf32>
    %411 = vector.multi_reduction <add>, %410, %cst_140 [0] : vector<16x512xf32> to vector<512xf32>
    %412 = vector.shape_cast %411 : vector<512xf32> to vector<1x512xf32>
    %413 = arith.mulf %31, %408 : vector<16x512xf32>
    %cst_141 = arith.constant dense<0.000000e+00> : vector<512xf32>
    %414 = vector.multi_reduction <add>, %413, %cst_141 [0] : vector<16x512xf32> to vector<512xf32>
    %415 = vector.shape_cast %414 : vector<512xf32> to vector<1x512xf32>
    %416 = math.sqrt %412 : vector<1x512xf32>
    %cst_142 = arith.constant 9.99999993E-9 : f32
    %417 = vector.broadcast %cst_142 : f32 to vector<1x512xf32>
    %418 = arith.addf %416, %417 : vector<1x512xf32>
    %cst_143 = arith.constant 1.000000e+00 : f32
    %419 = vector.broadcast %cst_143 : f32 to vector<1x512xf32>
    %420 = arith.divf %419, %418 : vector<1x512xf32>
    %421 = arith.mulf %420, %420 : vector<1x512xf32>
    %422 = arith.mulf %412, %421 : vector<1x512xf32>
    %423 = arith.addf %33, %422 : vector<1x512xf32>
    %cst_144 = arith.constant 2.000000e+00 : f32
    %424 = vector.broadcast %cst_144 : f32 to vector<1x512xf32>
    %425 = arith.mulf %424, %415 : vector<1x512xf32>
    %426 = arith.mulf %30, %420 : vector<1x512xf32>
    %427 = arith.mulf %425, %426 : vector<1x512xf32>
    %428 = arith.subf %423, %427 : vector<1x512xf32>
    %cst_145 = arith.constant 0.000000e+00 : f32
    %429 = vector.broadcast %cst_145 : f32 to vector<1x512xf32>
    %430 = arith.maximumf %428, %429 : vector<1x512xf32>
    %431 = math.sqrt %430 : vector<1x512xf32>
    %cst_146 = arith.constant 2.000000e+00 : f32
    %432 = vector.broadcast %cst_146 : f32 to vector<1x512xf32>
    %433 = arith.subf %432, %431 : vector<1x512xf32>
    %cst_147 = arith.constant 5.000000e-01 : f32
    %434 = vector.broadcast %cst_147 : f32 to vector<1x512xf32>
    %435 = arith.mulf %433, %434 : vector<1x512xf32>
    %cst_148 = arith.constant 3.000000e-01 : f32
    %436 = vector.broadcast %cst_148 : f32 to vector<1x512xf32>
    %437 = arith.mulf %436, %405 : vector<1x512xf32>
    %cst_149 = arith.constant 0.699999988 : f32
    %438 = vector.broadcast %cst_149 : f32 to vector<1x512xf32>
    %439 = arith.mulf %438, %435 : vector<1x512xf32>
    %440 = arith.addf %437, %439 : vector<1x512xf32>
    %441 = arith.cmpf ogt, %440, %373 : vector<1x512xf32>
    %442 = arith.select %441, %440, %373 : vector<1x512xi1>, vector<1x512xf32>
    %c5_i32 = arith.constant 5 : i32
    %443 = vector.broadcast %c5_i32 : i32 to vector<1x512xi32>
    %444 = arith.select %441, %443, %375 : vector<1x512xi1>, vector<1x512xi32>
    %c6 = arith.constant 6 : index
    %c0_150 = arith.constant 0 : index
    %c0_151 = arith.constant 0 : index
    %445 = vector.load %arg2[%c6, %c0_150, %c0_151] : memref<8x48x512xbf16, #tpu.memory_space<vmem>>, vector<1x48x512xbf16>
    %446 = vector.shape_cast %445 : vector<1x48x512xbf16> to vector<48x512xbf16>
    %447 = arith.extf %446 : vector<48x512xbf16> to vector<48x512xf32>
    %448 = arith.mulf %447, %447 : vector<48x512xf32>
    %449 = arith.mulf %448, %6 : vector<48x512xf32>
    %cst_152 = arith.constant dense<0.000000e+00> : vector<512xf32>
    %450 = vector.multi_reduction <add>, %449, %cst_152 [0] : vector<48x512xf32> to vector<512xf32>
    %451 = vector.shape_cast %450 : vector<512xf32> to vector<1x512xf32>
    %452 = arith.mulf %18, %447 : vector<48x512xf32>
    %cst_153 = arith.constant dense<0.000000e+00> : vector<512xf32>
    %453 = vector.multi_reduction <add>, %452, %cst_153 [0] : vector<48x512xf32> to vector<512xf32>
    %454 = vector.shape_cast %453 : vector<512xf32> to vector<1x512xf32>
    %455 = math.sqrt %451 : vector<1x512xf32>
    %cst_154 = arith.constant 9.99999993E-9 : f32
    %456 = vector.broadcast %cst_154 : f32 to vector<1x512xf32>
    %457 = arith.addf %455, %456 : vector<1x512xf32>
    %cst_155 = arith.constant 1.000000e+00 : f32
    %458 = vector.broadcast %cst_155 : f32 to vector<1x512xf32>
    %459 = arith.divf %458, %457 : vector<1x512xf32>
    %460 = arith.mulf %459, %459 : vector<1x512xf32>
    %461 = arith.mulf %451, %460 : vector<1x512xf32>
    %462 = arith.addf %20, %461 : vector<1x512xf32>
    %cst_156 = arith.constant 2.000000e+00 : f32
    %463 = vector.broadcast %cst_156 : f32 to vector<1x512xf32>
    %464 = arith.mulf %463, %454 : vector<1x512xf32>
    %465 = arith.mulf %17, %459 : vector<1x512xf32>
    %466 = arith.mulf %464, %465 : vector<1x512xf32>
    %467 = arith.subf %462, %466 : vector<1x512xf32>
    %cst_157 = arith.constant 0.000000e+00 : f32
    %468 = vector.broadcast %cst_157 : f32 to vector<1x512xf32>
    %469 = arith.maximumf %467, %468 : vector<1x512xf32>
    %470 = math.sqrt %469 : vector<1x512xf32>
    %cst_158 = arith.constant 2.000000e+00 : f32
    %471 = vector.broadcast %cst_158 : f32 to vector<1x512xf32>
    %472 = arith.subf %471, %470 : vector<1x512xf32>
    %cst_159 = arith.constant 5.000000e-01 : f32
    %473 = vector.broadcast %cst_159 : f32 to vector<1x512xf32>
    %474 = arith.mulf %472, %473 : vector<1x512xf32>
    %c6_160 = arith.constant 6 : index
    %c0_161 = arith.constant 0 : index
    %c0_162 = arith.constant 0 : index
    %475 = vector.load %arg5[%c6_160, %c0_161, %c0_162] : memref<8x16x512xbf16, #tpu.memory_space<vmem>>, vector<1x16x512xbf16>
    %476 = vector.shape_cast %475 : vector<1x16x512xbf16> to vector<16x512xbf16>
    %477 = arith.extf %476 : vector<16x512xbf16> to vector<16x512xf32>
    %478 = arith.mulf %477, %477 : vector<16x512xf32>
    %479 = arith.mulf %478, %7 : vector<16x512xf32>
    %cst_163 = arith.constant dense<0.000000e+00> : vector<512xf32>
    %480 = vector.multi_reduction <add>, %479, %cst_163 [0] : vector<16x512xf32> to vector<512xf32>
    %481 = vector.shape_cast %480 : vector<512xf32> to vector<1x512xf32>
    %482 = arith.mulf %31, %477 : vector<16x512xf32>
    %cst_164 = arith.constant dense<0.000000e+00> : vector<512xf32>
    %483 = vector.multi_reduction <add>, %482, %cst_164 [0] : vector<16x512xf32> to vector<512xf32>
    %484 = vector.shape_cast %483 : vector<512xf32> to vector<1x512xf32>
    %485 = math.sqrt %481 : vector<1x512xf32>
    %cst_165 = arith.constant 9.99999993E-9 : f32
    %486 = vector.broadcast %cst_165 : f32 to vector<1x512xf32>
    %487 = arith.addf %485, %486 : vector<1x512xf32>
    %cst_166 = arith.constant 1.000000e+00 : f32
    %488 = vector.broadcast %cst_166 : f32 to vector<1x512xf32>
    %489 = arith.divf %488, %487 : vector<1x512xf32>
    %490 = arith.mulf %489, %489 : vector<1x512xf32>
    %491 = arith.mulf %481, %490 : vector<1x512xf32>
    %492 = arith.addf %33, %491 : vector<1x512xf32>
    %cst_167 = arith.constant 2.000000e+00 : f32
    %493 = vector.broadcast %cst_167 : f32 to vector<1x512xf32>
    %494 = arith.mulf %493, %484 : vector<1x512xf32>
    %495 = arith.mulf %30, %489 : vector<1x512xf32>
    %496 = arith.mulf %494, %495 : vector<1x512xf32>
    %497 = arith.subf %492, %496 : vector<1x512xf32>
    %cst_168 = arith.constant 0.000000e+00 : f32
    %498 = vector.broadcast %cst_168 : f32 to vector<1x512xf32>
    %499 = arith.maximumf %497, %498 : vector<1x512xf32>
    %500 = math.sqrt %499 : vector<1x512xf32>
    %cst_169 = arith.constant 2.000000e+00 : f32
    %501 = vector.broadcast %cst_169 : f32 to vector<1x512xf32>
    %502 = arith.subf %501, %500 : vector<1x512xf32>
    %cst_170 = arith.constant 5.000000e-01 : f32
    %503 = vector.broadcast %cst_170 : f32 to vector<1x512xf32>
    %504 = arith.mulf %502, %503 : vector<1x512xf32>
    %cst_171 = arith.constant 3.000000e-01 : f32
    %505 = vector.broadcast %cst_171 : f32 to vector<1x512xf32>
    %506 = arith.mulf %505, %474 : vector<1x512xf32>
    %cst_172 = arith.constant 0.699999988 : f32
    %507 = vector.broadcast %cst_172 : f32 to vector<1x512xf32>
    %508 = arith.mulf %507, %504 : vector<1x512xf32>
    %509 = arith.addf %506, %508 : vector<1x512xf32>
    %510 = arith.cmpf ogt, %509, %442 : vector<1x512xf32>
    %511 = arith.select %510, %509, %442 : vector<1x512xi1>, vector<1x512xf32>
    %c6_i32 = arith.constant 6 : i32
    %512 = vector.broadcast %c6_i32 : i32 to vector<1x512xi32>
    %513 = arith.select %510, %512, %444 : vector<1x512xi1>, vector<1x512xi32>
    %c7 = arith.constant 7 : index
    %c0_173 = arith.constant 0 : index
    %c0_174 = arith.constant 0 : index
    %514 = vector.load %arg2[%c7, %c0_173, %c0_174] : memref<8x48x512xbf16, #tpu.memory_space<vmem>>, vector<1x48x512xbf16>
    %515 = vector.shape_cast %514 : vector<1x48x512xbf16> to vector<48x512xbf16>
    %516 = arith.extf %515 : vector<48x512xbf16> to vector<48x512xf32>
    %517 = arith.mulf %516, %516 : vector<48x512xf32>
    %518 = arith.mulf %517, %6 : vector<48x512xf32>
    %cst_175 = arith.constant dense<0.000000e+00> : vector<512xf32>
    %519 = vector.multi_reduction <add>, %518, %cst_175 [0] : vector<48x512xf32> to vector<512xf32>
    %520 = vector.shape_cast %519 : vector<512xf32> to vector<1x512xf32>
    %521 = arith.mulf %18, %516 : vector<48x512xf32>
    %cst_176 = arith.constant dense<0.000000e+00> : vector<512xf32>
    %522 = vector.multi_reduction <add>, %521, %cst_176 [0] : vector<48x512xf32> to vector<512xf32>
    %523 = vector.shape_cast %522 : vector<512xf32> to vector<1x512xf32>
    %524 = math.sqrt %520 : vector<1x512xf32>
    %cst_177 = arith.constant 9.99999993E-9 : f32
    %525 = vector.broadcast %cst_177 : f32 to vector<1x512xf32>
    %526 = arith.addf %524, %525 : vector<1x512xf32>
    %cst_178 = arith.constant 1.000000e+00 : f32
    %527 = vector.broadcast %cst_178 : f32 to vector<1x512xf32>
    %528 = arith.divf %527, %526 : vector<1x512xf32>
    %529 = arith.mulf %528, %528 : vector<1x512xf32>
    %530 = arith.mulf %520, %529 : vector<1x512xf32>
    %531 = arith.addf %20, %530 : vector<1x512xf32>
    %cst_179 = arith.constant 2.000000e+00 : f32
    %532 = vector.broadcast %cst_179 : f32 to vector<1x512xf32>
    %533 = arith.mulf %532, %523 : vector<1x512xf32>
    %534 = arith.mulf %17, %528 : vector<1x512xf32>
    %535 = arith.mulf %533, %534 : vector<1x512xf32>
    %536 = arith.subf %531, %535 : vector<1x512xf32>
    %cst_180 = arith.constant 0.000000e+00 : f32
    %537 = vector.broadcast %cst_180 : f32 to vector<1x512xf32>
    %538 = arith.maximumf %536, %537 : vector<1x512xf32>
    %539 = math.sqrt %538 : vector<1x512xf32>
    %cst_181 = arith.constant 2.000000e+00 : f32
    %540 = vector.broadcast %cst_181 : f32 to vector<1x512xf32>
    %541 = arith.subf %540, %539 : vector<1x512xf32>
    %cst_182 = arith.constant 5.000000e-01 : f32
    %542 = vector.broadcast %cst_182 : f32 to vector<1x512xf32>
    %543 = arith.mulf %541, %542 : vector<1x512xf32>
    %c7_183 = arith.constant 7 : index
    %c0_184 = arith.constant 0 : index
    %c0_185 = arith.constant 0 : index
    %544 = vector.load %arg5[%c7_183, %c0_184, %c0_185] : memref<8x16x512xbf16, #tpu.memory_space<vmem>>, vector<1x16x512xbf16>
    %545 = vector.shape_cast %544 : vector<1x16x512xbf16> to vector<16x512xbf16>
    %546 = arith.extf %545 : vector<16x512xbf16> to vector<16x512xf32>
    %547 = arith.mulf %546, %546 : vector<16x512xf32>
    %548 = arith.mulf %547, %7 : vector<16x512xf32>
    %cst_186 = arith.constant dense<0.000000e+00> : vector<512xf32>
    %549 = vector.multi_reduction <add>, %548, %cst_186 [0] : vector<16x512xf32> to vector<512xf32>
    %550 = vector.shape_cast %549 : vector<512xf32> to vector<1x512xf32>
    %551 = arith.mulf %31, %546 : vector<16x512xf32>
    %cst_187 = arith.constant dense<0.000000e+00> : vector<512xf32>
    %552 = vector.multi_reduction <add>, %551, %cst_187 [0] : vector<16x512xf32> to vector<512xf32>
    %553 = vector.shape_cast %552 : vector<512xf32> to vector<1x512xf32>
    %554 = math.sqrt %550 : vector<1x512xf32>
    %cst_188 = arith.constant 9.99999993E-9 : f32
    %555 = vector.broadcast %cst_188 : f32 to vector<1x512xf32>
    %556 = arith.addf %554, %555 : vector<1x512xf32>
    %cst_189 = arith.constant 1.000000e+00 : f32
    %557 = vector.broadcast %cst_189 : f32 to vector<1x512xf32>
    %558 = arith.divf %557, %556 : vector<1x512xf32>
    %559 = arith.mulf %558, %558 : vector<1x512xf32>
    %560 = arith.mulf %550, %559 : vector<1x512xf32>
    %561 = arith.addf %33, %560 : vector<1x512xf32>
    %cst_190 = arith.constant 2.000000e+00 : f32
    %562 = vector.broadcast %cst_190 : f32 to vector<1x512xf32>
    %563 = arith.mulf %562, %553 : vector<1x512xf32>
    %564 = arith.mulf %30, %558 : vector<1x512xf32>
    %565 = arith.mulf %563, %564 : vector<1x512xf32>
    %566 = arith.subf %561, %565 : vector<1x512xf32>
    %cst_191 = arith.constant 0.000000e+00 : f32
    %567 = vector.broadcast %cst_191 : f32 to vector<1x512xf32>
    %568 = arith.maximumf %566, %567 : vector<1x512xf32>
    %569 = math.sqrt %568 : vector<1x512xf32>
    %cst_192 = arith.constant 2.000000e+00 : f32
    %570 = vector.broadcast %cst_192 : f32 to vector<1x512xf32>
    %571 = arith.subf %570, %569 : vector<1x512xf32>
    %cst_193 = arith.constant 5.000000e-01 : f32
    %572 = vector.broadcast %cst_193 : f32 to vector<1x512xf32>
    %573 = arith.mulf %571, %572 : vector<1x512xf32>
    %cst_194 = arith.constant 3.000000e-01 : f32
    %574 = vector.broadcast %cst_194 : f32 to vector<1x512xf32>
    %575 = arith.mulf %574, %543 : vector<1x512xf32>
    %cst_195 = arith.constant 0.699999988 : f32
    %576 = vector.broadcast %cst_195 : f32 to vector<1x512xf32>
    %577 = arith.mulf %576, %573 : vector<1x512xf32>
    %578 = arith.addf %575, %577 : vector<1x512xf32>
    %579 = arith.cmpf ogt, %578, %511 : vector<1x512xf32>
    %580 = arith.select %579, %578, %511 : vector<1x512xi1>, vector<1x512xf32>
    %c7_i32 = arith.constant 7 : i32
    %581 = vector.broadcast %c7_i32 : i32 to vector<1x512xi32>
    %582 = arith.select %579, %581, %513 : vector<1x512xi1>, vector<1x512xi32>
    %c0_196 = arith.constant 0 : index
    %c0_197 = arith.constant 0 : index
    %583 = vector.load %arg6[%c0_196, %c0_197] : memref<1x512xf32, #tpu.memory_space<vmem>>, vector<1x512xf32>
    tpu.vector_store %arg6[%c0_196, %c0_197], %580 {strides = array<i32>} : memref<1x512xf32, #tpu.memory_space<vmem>>, vector<1x512xf32>,
    %c0_198 = arith.constant 0 : index
    %c0_199 = arith.constant 0 : index
    %584 = vector.load %arg7[%c0_198, %c0_199] : memref<1x512xi32, #tpu.memory_space<vmem>>, vector<1x512xi32>
    tpu.vector_store %arg7[%c0_198, %c0_199], %582 {strides = array<i32>} : memref<1x512xi32, #tpu.memory_space<vmem>>, vector<1x512xi32>,
    return
  }
  func.func @transform_0(%arg0: i32) -> (i32, i32) {
    %c0_i32 = arith.constant 0 : i32
    %c0_i32_0 = arith.constant 0 : i32
    return %c0_i32, %arg0 : i32, i32
  }
  func.func @transform_1(%arg0: i32) -> (i32, i32, i32) {
    %c0_i32 = arith.constant 0 : i32
    %c0_i32_0 = arith.constant 0 : i32
    %c0_i32_1 = arith.constant 0 : i32
    return %c0_i32, %c0_i32_0, %arg0 : i32, i32, i32
  }
  func.func @transform_2(%arg0: i32) -> (i32, i32) {
    %c0_i32 = arith.constant 0 : i32
    %c0_i32_0 = arith.constant 0 : i32
    return %c0_i32, %arg0 : i32, i32
  }
  func.func @transform_3(%arg0: i32) -> (i32, i32) {
    %c0_i32 = arith.constant 0 : i32
    %c0_i32_0 = arith.constant 0 : i32
    return %c0_i32, %arg0 : i32, i32
  }
  func.func @transform_4(%arg0: i32) -> (i32, i32, i32) {
    %c0_i32 = arith.constant 0 : i32
    %c0_i32_0 = arith.constant 0 : i32
    %c0_i32_1 = arith.constant 0 : i32
    return %c0_i32, %c0_i32_0, %arg0 : i32, i32, i32
  }
  func.func @transform_5(%arg0: i32) -> (i32, i32) {
    %c0_i32 = arith.constant 0 : i32
    %c0_i32_0 = arith.constant 0 : i32
    return %c0_i32, %arg0 : i32, i32
  }
  func.func @transform_6(%arg0: i32) -> (i32, i32) {
    %c0_i32 = arith.constant 0 : i32
    %c0_i32_0 = arith.constant 0 : i32
    return %c0_i32, %arg0 : i32, i32
  }
}

</mosaic_0001>

<bundles_post_ra>
// kernel: feature_learner_forward.1
= control target key start
LH: loop header
LB: loop body
LE: loop exit
PB: predicated region body
PF: predicated region fallthrough
CT: control target
= control target key end

     0   :  { %v5214_v40 = vmov 1935823168   ;;  %v10578_v43 = vlaneseq  ;;  %s10571_s0 = inlined_call_operand.vmem [shape: bf16[48,512], index: 0, kind: input, shape index: {}]   ;;  %s10572_s2 = inlined_call_operand.vmem [shape: bf16[16,512], index: 2, kind: input, shape index: {}]   ;;  %s10573_s3 = inlined_call_operand.vmem [shape: bf16[16,512], index: 3, kind: input, shape index: {}]   ;;  %s10574_s1 = inlined_call_operand.vmem [shape: bf16[8,48,512], index: 1, kind: input, shape index: {}]   ;;  %s10575_s4 = inlined_call_operand.vmem [shape: bf16[8,16,512], index: 4, kind: input, shape index: {}]   ;;  %s10576_s5 = inlined_call_operand.vmem [shape: f32[1,512], index: 5, kind: output, shape index: {0}]   ;;  %s10577_s6 = inlined_call_operand.vmem [shape: s32[1,512], index: 6, kind: output, shape index: {1}]  }
   0x1   :  { %v5256_v0 = vld [vmem:[%s10571_s0] sm:$0xff]  ;;  %v5261_v1 = vld [vmem:[%s10571_s0 + $0x10] sm:$0xff]  ;;  %v5273_v5 = vld [vmem:[%s10571_s0 + $0x8] sm:$0xff]  ;;  %v5180_v41 = vunpack.c.l.s4 %v5214_v40 }
   0x2   :  { %v70_v2 = vunpack.c.l.bf16 %v5256_v0  ;;  %v74_v3 = vunpack.c.l.bf16 %v5261_v1  ;;  %v5268_v4 = vld [vmem:[%s10571_s0 + $0x20] sm:$0xff]  ;;  %v71_v6 = vunpack.c.h.bf16 %v5256_v0  ;;  %v75_v7 = vunpack.c.h.bf16 %v5261_v1  ;;  %v5280_v8 = vld [vmem:[%s10571_s0 + $0x18] sm:$0xff]  ;;  %v5286_v10 = vld [vmem:[%s10571_s0 + $0x30] sm:$0xff] }
   0x3   :  { %v78_v9 = vunpack.c.l.bf16 %v5268_v4  ;;  %v72_v11 = vunpack.c.l.bf16 %v5273_v5  ;;  %v5292_v12 = vld [vmem:[%s10571_s0 + $0x28] sm:$0xff]  ;;  %v76_v13 = vunpack.c.l.bf16 %v5280_v8  ;;  %v79_v14 = vunpack.c.h.bf16 %v5268_v4  ;;  %v5306_v18 = vld [vmem:[%s10571_s0 + $0x40] sm:$0xff]  ;;  %v5313_v21 = vld [vmem:[%s10571_s0 + $0x38] sm:$0xff] }
   0x4   :  { %v73_v15 = vunpack.c.h.bf16 %v5273_v5  ;;  %v77_v16 = vunpack.c.h.bf16 %v5280_v8  ;;  %5170 = vmul.bf16.f32.vacc0 %v5256_v0, %v5256_v0  ;;  %v5322_v24 = vld [vmem:[%s10571_s0 + $0x50] sm:$0xff]  ;;  %v5329_v27 = vld [vmem:[%s10571_s0 + $0x48] sm:$0xff]  ;;  %5192 = vmul.bf16.f32.vacc1 %v5273_v5, %v5273_v5  ;;  %v5344_v32 = vld [vmem:[%s10571_s0 + $0x58] sm:$0xff] }
   0x5   :  { %5171 = vmac.bf16.f32.vacc0 %v5261_v1, %v5261_v1  ;;  %5193 = vmac.bf16.f32.vacc1 %v5280_v8, %v5280_v8  ;;  %10860 = vst [vmem:[#allocation2_spill] sm:$0xff] %v5344_v32  ;;  %v5181_v42 = vunpack.c.0.s8 %v5180_v41  ;;  %v5358_v44 = vshrl.u32 %v10578_v43, 7  ;;  %v22_v49 = vld [vmem:[%s10572_s2] sm:$0xff]  ;;  %v23_v50 = vld [vmem:[%s10572_s2 + $0x8] sm:$0xff]  ;;  %v24_v58 = vld [vmem:[%s10572_s2 + $0x10] sm:$0xff] }
   0x6   :  { %5172 = vmac.bf16.f32.vacc0 %v5268_v4, %v5268_v4  ;;  %5194 = vmac.bf16.f32.vacc1 %v5292_v12, %v5292_v12  ;;  %v25_v59 = vld [vmem:[%s10572_s2 + $0x18] sm:$0xff]  ;;  %v26_v61 = vunpack.c.l.bf16 %v22_v49  ;;  %v27_v62 = vunpack.c.h.bf16 %v22_v49  ;;  %v338_v8 = vld [vmem:[%s10574_s1] sm:$0xff]  ;;  %v339_v4 = vld [vmem:[%s10574_s1 + $0x8] sm:$0xff] }
   0x7   :  { %5173 = vmac.bf16.f32.vacc0 %v5286_v10, %v5286_v10  ;;  %5195 = vmac.bf16.f32.vacc1 %v5313_v21, %v5313_v21  ;;  %10861 = vst [vmem:[#allocation3_spill] sm:$0xff] %v5358_v44  ;;  %v5184_v45 = vsub.s32 %v5181_v42, %v5358_v44  ;;  %v28_v63 = vunpack.c.l.bf16 %v23_v50  ;;  %v237_v1 = vld [vmem:[%s10573_s3 + $0x18] sm:$0xff]  ;;  %v342_v35 = vld [vmem:[%s10574_s1 + $0x20] sm:$0xff]  ;;  %v343_v29 = vld [vmem:[%s10574_s1 + $0x28] sm:$0xff] }
   0x8   :  { %5174 = vmac.bf16.f32.vacc0 %v5306_v18, %v5306_v18  ;;  %5196 = vmac.bf16.f32.vacc1 %v5329_v27, %v5329_v27  ;;  %v31_v40 = vunpack.c.h.bf16 %v24_v58  ;;  %v32_v41 = vunpack.c.l.bf16 %v25_v59  ;;  %v344_v23 = vld [vmem:[%s10574_s1 + $0x30] sm:$0xff]  ;;  %v346_v22 = vld [vmem:[%s10574_s1 + $0x40] sm:$0xff] }
   0x9   :  { %5175 = vmac.bf16.f32.vacc0 %v5322_v24, %v5322_v24  ;;  %5197 = vmac.bf16.f32.vacc1 %v5344_v32, %v5344_v32  ;;  %vm34_vm0 = vcmp.gt.f32.partialorder %v26_v61, 0.0  ;;  %vm35_vm1 = vcmp.gt.f32.partialorder %v27_v62, 0.0 }
   0xa   :  { %vm36_vm2 = vcmp.gt.f32.partialorder %v28_v63, 0.0  ;;  %vm39_vm5 = vcmp.gt.f32.partialorder %v31_v40, 0.0  ;;  %vm40_vm6 = vcmp.gt.f32.partialorder %v32_v41, 0.0  ;;  %v5517_v33 = vunpack.c.l.bf16 %v339_v4 }
   0xb   :  { %v5176_v36 = vmovacc.add.low.vacc0  ;;  %v5198_v52 = vmovacc.add.low.vacc1  ;;  %v5519_v30 = vunpack.c.h.bf16 %v339_v4  ;;  %v5539_v17 = vunpack.c.h.bf16 %v342_v35 }
   0xc   :  { %v5177_v37 = vmovacc.add.high.vacc0  ;;  %v5199_v53 = vmovacc.add.high.vacc1  ;;  %10886 = vst [vmem:[#allocation28_spill] sm:$0xff] %v5517_v33  ;;  %v5547_v19 = vunpack.c.l.bf16 %v343_v29  ;;  %v5549_v34 = vunpack.c.h.bf16 %v343_v29 }
   0xd   :  { %10887 = vst [vmem:[#allocation29_spill] sm:$0xff] %v5519_v30  ;;  %10892 = vst [vmem:[#allocation34_spill] sm:$0xff] %v5539_v17 }
   0xe   :  { %v5178_v38 = vcombine.low %v5176_v36, %v5177_v37  ;;  %v5179_v39 = vcombine.high %v5176_v36, %v5177_v37  ;;  %v5200_v54 = vcombine.low %v5198_v52, %v5199_v53  ;;  %v5201_v55 = vcombine.high %v5198_v52, %v5199_v53  ;;  %10893 = vst [vmem:[#allocation35_spill] sm:$0xff] %v5547_v19 }
   0xf   :  { %v29_v36 = vunpack.c.h.bf16 %v23_v50  ;;  %v30_v37 = vunpack.c.l.bf16 %v24_v58  ;;  %10894 = vst [vmem:[#allocation36_spill] sm:$0xff] %v5549_v34 }
  0x10   :  { %v5185_v46 = vrot.slane %v5178_v38, %v5184_v45  ;;  %v5191_v47 = vrot.slane %v5179_v39, %v5184_v45  ;;  %v5207_v56 = vrot.slane %v5200_v54, %v5184_v45  ;;  %v5213_v57 = vrot.slane %v5201_v55, %v5184_v45 }
  0x11   :  { %v33_v45 = vunpack.c.h.bf16 %v25_v59  ;;  %vm37_vm3 = vcmp.gt.f32.partialorder %v29_v36, 0.0  ;;  %vm38_vm4 = vcmp.gt.f32.partialorder %v30_v37, 0.0 }
  0x12   :  { %v123_v48 = vrot.slane %v5185_v46, 4  ;;  %v134_v51 = vrot.slane %v5191_v47, 4  ;;  %v145_v39 = vrot.slane %v5207_v56, 4  ;;  %v156_v42 = vrot.slane %v5213_v57, 4 }
  0x13   :  { %vm41_vm7 = vcmp.gt.f32.partialorder %v33_v45, 0.0 }
  0x14   :  { %v124_v60 = vadd.f32 %v5185_v46, %v123_v48  ;;  %v135_v38 = vadd.f32 %v5191_v47, %v134_v51  ;;  %v146_v54 = vadd.f32 %v5207_v56, %v145_v39  ;;  %v157_v46 = vadd.f32 %v5213_v57, %v156_v42  ;;  %v234_v57 = vld [vmem:[%s10573_s3] sm:$0xff] }
  0x15   :  { %v5215_v48 = vmov 0.0   ;;  %v5447_v42 = vunpack.c.h.bf16 %v234_v57 }
  0x16   :  { %v125_v52 = vrot.slane %v124_v60, 2  ;;  %v136_v53 = vrot.slane %v135_v38, 2  ;;  %v5377_v49 = vsel %vm34_vm0, 1.0, %v5215_v48  ;;  %v5379_v50 = vsel %vm35_vm1, 1.0, %v5215_v48 }
  0x17   :  { %10862 = vst [vmem:[#allocation4_spill] sm:$0xff] %v5377_v49  ;;  %v5381_v51 = vsel %vm36_vm2, 1.0, %v5215_v48  ;;  %v5383_v55 = vsel %vm37_vm3, 1.0, %v5215_v48  ;;  %v5385_v58 = vsel %vm38_vm4, 1.0, %v5215_v48  ;;  %v5387_v59 = vsel %vm39_vm5, 1.0, %v5215_v48  ;;  %10874 = vst [vmem:[#allocation16_spill] sm:$0xff] %v5447_v42 }
  0x18   :  { %v126_v47 = vadd.f32 %v125_v52, %v124_v60  ;;  %10863 = vst [vmem:[#allocation5_spill] sm:$0xff] %v5385_v58  ;;  %10864 = vst [vmem:[#allocation6_spill] sm:$0xff] %v5387_v59  ;;  %v5389_v61 = vsel %vm40_vm6, 1.0, %v5215_v48  ;;  %v137_v56 = vadd.f32 %v136_v53, %v135_v38  ;;  %v147_v62 = vrot.slane %v146_v54, 2  ;;  %v236_v38 = vld [vmem:[%s10573_s3 + $0x10] sm:$0xff] }
  0x19   :  { %v5394_v63 = vsel %vm41_vm7, 1.0, %v5215_v48  ;;  %v158_v60 = vrot.slane %v157_v46, 2  ;;  %v5399_v36 = vmul.f32 %v5377_v49, %v70_v2  ;;  %v5404_v37 = vmul.f32 %v5379_v50, %v71_v6 }
  0x1a   :  { %v127_v39 = vrot.slane %v126_v47, 1  ;;  %v5412_v40 = vmul.f32 %v5381_v51, %v72_v11  ;;  %v5417_v2 = vmul.f32 %v5383_v55, %v73_v15  ;;  %v5422_v0 = vmul.f32 %v5385_v58, %v74_v3  ;;  %v235_v3 = vld [vmem:[%s10573_s3 + $0x8] sm:$0xff] }
  0x1b   :  { %10865 = vst [vmem:[#allocation7_spill] sm:$0xff] %v5399_v36  ;;  %10866 = vst [vmem:[#allocation8_spill] sm:$0xff] %v5404_v37  ;;  %v5427_v6 = vmul.f32 %v5387_v59, %v75_v7  ;;  %v5432_v11 = vmul.f32 %v5389_v61, %v76_v13  ;;  %v5437_v5 = vmul.f32 %v5394_v63, %v77_v16  ;;  %v5445_v7 = vunpack.c.l.bf16 %v234_v57  ;;  %v340_v16 = vld [vmem:[%s10574_s1 + $0x10] sm:$0xff] }
  0x1c   :  { %10867 = vst [vmem:[#allocation9_spill] sm:$0xff] %v5412_v40  ;;  %10868 = vst [vmem:[#allocation10_spill] sm:$0xff] %v5417_v2  ;;  %v138_v15 = vrot.slane %v137_v56, 1  ;;  %v148_v41 = vadd.f32 %v147_v62, %v146_v54  ;;  %v5449_v13 = vunpack.c.l.bf16 %v236_v38  ;;  %v5457_v45 = vadd.f32 %v158_v60, %v157_v46 }
  0x1d   :  { %10869 = vst [vmem:[#allocation11_spill] sm:$0xff] %v5422_v0  ;;  %10870 = vst [vmem:[#allocation12_spill] sm:$0xff] %v5427_v6  ;;  %v5462_v52 = vmul.f32 %v5377_v49, %v78_v9  ;;  %v5467_v53 = vmul.f32 %v5379_v50, %v79_v14  ;;  %v5469_v54 = vunpack.c.h.bf16 %v236_v38  ;;  %v5471_v48 = vadd.f32 %v127_v39, %v126_v47  ;;  %v341_v14 = vld [vmem:[%s10574_s1 + $0x18] sm:$0xff] }
  0x1e   :  { %10871 = vst [vmem:[#allocation13_spill] sm:$0xff] %v5432_v11  ;;  %10872 = vst [vmem:[#allocation14_spill] sm:$0xff] %v5437_v5  ;;  %v5473_v62 = vunpack.c.l.bf16 %v235_v3  ;;  %v5475_v57 = vunpack.c.h.bf16 %v235_v3  ;;  %v5477_v46 = vunpack.c.l.bf16 %v237_v1  ;;  %v5479_v60 = vunpack.c.h.bf16 %v237_v1  ;;  %v347_v5 = vld [vmem:[%s10574_s1 + $0x48] sm:$0xff] }
  0x1f   :  { %10873 = vst [vmem:[#allocation15_spill] sm:$0xff] %v5445_v7  ;;  %10875 = vst [vmem:[#allocation17_spill] sm:$0xff] %v5449_v13  ;;  %v246_v9 = vmul.f32 %v5445_v7, %v5445_v7  ;;  %v5489_v47 = vunpack.c.l.bf16 %v338_v8  ;;  %v5491_v38 = vunpack.c.l.bf16 %v340_v16  ;;  %v5493_v39 = vadd.f32 %v138_v15, %v137_v56 }
  0x20   :  { %10876 = vst [vmem:[#allocation18_spill] sm:$0xff] %v5462_v52  ;;  %10877 = vst [vmem:[#allocation19_spill] sm:$0xff] %v5467_v53  ;;  %v149_v3 = vrot.slane %v148_v41, 1  ;;  %v5497_v1 = vmul.f32 %v5447_v42, %v5447_v42  ;;  %v250_v43 = vmul.f32 %v5449_v13, %v5449_v13  ;;  %v5507_v31 = vmul.f32 %v5469_v54, %v5469_v54 }
  0x21   :  { %10878 = vst [vmem:[#allocation20_spill] sm:$0xff] %v5469_v54  ;;  %10879 = vst [vmem:[#allocation21_spill] sm:$0xff] %v5471_v48  ;;  %v5509_v56 = vunpack.c.h.bf16 %v338_v8  ;;  %v5511_v15 = vunpack.c.h.bf16 %v340_v16  ;;  %4754 = vrsqrt.f32 %v5471_v48  ;;  %v5521_v26 = vunpack.c.l.bf16 %v341_v14 }
  0x22   :  { %10880 = vst [vmem:[#allocation22_spill] sm:$0xff] %v5473_v62  ;;  %10881 = vst [vmem:[#allocation23_spill] sm:$0xff] %v5475_v57  ;;  %v5526_v8 = vunpack.c.h.bf16 %v341_v14  ;;  %v5528_v16 = vunpack.c.l.bf16 %v342_v35  ;;  %v374_v28 = vmul.f32 %v5489_v47, %v5489_v47  ;;  %v378_v25 = vmul.f32 %v5491_v38, %v5491_v38  ;;  %v345_v14 = vld [vmem:[%s10574_s1 + $0x38] sm:$0xff] }
  0x23   :  { %10882 = vst [vmem:[#allocation24_spill] sm:$0xff] %v5477_v46  ;;  %10883 = vst [vmem:[#allocation25_spill] sm:$0xff] %v5479_v60  ;;  %v5534_v20 = vadd.f32 %v149_v3, %v148_v41  ;;  %4756 = vrsqrt.f32 %v5493_v39  ;;  %v5537_v4 = vadd.f32 %v250_v43, %v246_v9  ;;  %v375_v41 = vmul.f32 %v5509_v56, %v5509_v56 }
  0x24   :  { %10884 = vst [vmem:[#allocation26_spill] sm:$0xff] %v5491_v38  ;;  %10885 = vst [vmem:[#allocation27_spill] sm:$0xff] %v5511_v15  ;;  %v379_v43 = vmul.f32 %v5511_v15, %v5511_v15  ;;  %v5555_v35 = vunpack.c.l.bf16 %v344_v23  ;;  %v376_v9 = vmul.f32 %v5517_v33, %v5517_v33  ;;  %v377_v3 = vmul.f32 %v5519_v30, %v5519_v30 }
  0x25   :  { %10888 = vst [vmem:[#allocation30_spill] sm:$0xff] %v5521_v26  ;;  %10889 = vst [vmem:[#allocation31_spill] sm:$0xff] %v5526_v8  ;;  %v380_v44 = vmul.f32 %v5521_v26, %v5521_v26  ;;  %v381_v29 = vmul.f32 %v5526_v8, %v5526_v8  ;;  %v382_v54 = vmul.f32 %v5528_v16, %v5528_v16  ;;  %v5569_v7 = vunpack.c.h.bf16 %v344_v23 }
  0x26   :  { %10890 = vst [vmem:[#allocation32_spill] sm:$0xff] %v5528_v16  ;;  %10891 = vst [vmem:[#allocation33_spill] sm:$0xff] %v5534_v20  ;;  %v398_v42 = vmul.f32 %v5377_v49, %v374_v28  ;;  %v402_v13 = vmul.f32 %v5385_v58, %v378_v25  ;;  %v5571_v32 = vunpack.c.l.bf16 %v345_v14  ;;  %v5573_v53 = vunpack.c.h.bf16 %v345_v14  ;;  %v348_v16 = vld [vmem:[%s10574_s1 + $0x50] sm:$0xff] }
  0x27   :  { %10895 = vst [vmem:[#allocation37_spill] sm:$0xff] %v5555_v35  ;;  %10896 = vst [vmem:[#allocation38_spill] sm:$0xff] %v5569_v7  ;;  %v5575_v52 = vunpack.c.l.bf16 %v346_v22  ;;  %v383_v28 = vmul.f32 %v5539_v17, %v5539_v17  ;;  %v384_v23 = vmul.f32 %v5547_v19, %v5547_v19  ;;  %v399_v25 = vmul.f32 %v5379_v50, %v375_v41 }
  0x28   :  { %10897 = vst [vmem:[#allocation39_spill] sm:$0xff] %v5571_v32  ;;  %v403_v14 = vmul.f32 %v5387_v59, %v379_v43  ;;  %v385_v8 = vmul.f32 %v5549_v34, %v5549_v34  ;;  %v386_v26 = vmul.f32 %v5555_v35, %v5555_v35  ;;  %v400_v11 = vmul.f32 %v5381_v51, %v376_v9 }
  0x29   :  { %10898 = vst [vmem:[#allocation40_spill] sm:$0xff] %v5575_v52  ;;  %v404_v30 = vmul.f32 %v5389_v61, %v380_v44  ;;  %v401_v2 = vmul.f32 %v5383_v55, %v377_v3  ;;  %v405_v17 = vmul.f32 %v5394_v63, %v381_v29  ;;  %v406_v19 = vmul.f32 %v5377_v49, %v382_v54  ;;  %v349_v44 = vld [vmem:[%s10574_s1 + $0x58] sm:$0xff] }
  0x2a   :  { %v422_v33 = vadd.f32 %v402_v13, %v398_v42  ;;  %v5600_v43 = vunpack.c.h.bf16 %v346_v22  ;;  %v5602_v40 = vunpack.c.l.bf16 %v347_v5  ;;  %v5604_v34 = vunpack.c.h.bf16 %v347_v5 }
  0x2b   :  { %v5598_v41 = vpop.eup %4754  ;;  %v5606_v35 = vunpack.c.l.bf16 %v348_v16  ;;  %v387_v9 = vmul.f32 %v5569_v7, %v5569_v7  ;;  %v388_v42 = vmul.f32 %v5571_v32, %v5571_v32  ;;  %v407_v13 = vmul.f32 %v5379_v50, %v383_v28 }
  0x2c   :  { %10899 = vst [vmem:[#allocation41_spill] sm:$0xff] %v5602_v40  ;;  %v433_v22 = vadd.f32 %v403_v14, %v399_v25  ;;  %v389_v5 = vmul.f32 %v5573_v53, %v5573_v53  ;;  %v390_v3 = vmul.f32 %v5575_v52, %v5575_v52  ;;  %v408_v29 = vmul.f32 %v5381_v51, %v384_v23 }
  0x2d   :  { %v5616_v54 = vpop.eup %4756  ;;  %v444_v15 = vadd.f32 %v404_v30, %v400_v11  ;;  %v409_v6 = vmul.f32 %v5383_v55, %v385_v8  ;;  %v410_v7 = vmul.f32 %v5385_v58, %v386_v26  ;;  %v423_v38 = vadd.f32 %v422_v33, %v406_v19 }
  0x2e   :  { %v455_v32 = vadd.f32 %v405_v17, %v401_v2  ;;  %4758 = vrsqrt.f32 %v5534_v20  ;;  %v5626_v28 = vunpack.c.h.bf16 %v348_v16  ;;  %v5628_v25 = vunpack.c.l.bf16 %v349_v44 }
  0x2f   :  { %v5630_v14 = vunpack.c.h.bf16 %v349_v44  ;;  %v391_v52 = vmul.f32 %v5600_v43, %v5600_v43  ;;  %v392_v30 = vmul.f32 %v5602_v40, %v5602_v40  ;;  %v411_v11 = vmul.f32 %v5387_v59, %v387_v9 }
  0x30   :  { %v434_v8 = vadd.f32 %v433_v22, %v407_v13  ;;  %v393_v17 = vmul.f32 %v5604_v34, %v5604_v34  ;;  %v394_v19 = vmul.f32 %v5606_v35, %v5606_v35  ;;  %v412_v26 = vmul.f32 %v5389_v61, %v388_v42 }
  0x31   :  { %10900 = vst [vmem:[#allocation42_spill] sm:$0xff] %v5630_v14  ;;  %v445_v33 = vadd.f32 %v444_v15, %v408_v29  ;;  %v413_v2 = vmul.f32 %v5394_v63, %v389_v5  ;;  %v414_v16 = vmul.f32 %v5377_v49, %v390_v3  ;;  %v424_v23 = vadd.f32 %v423_v38, %v410_v7 }
  0x32   :  { %v456_v44 = vadd.f32 %v455_v32, %v409_v6  ;;  %v10901_v40 = vrot.slane %v5457_v45, 1  ;;  %v248_v13 = vmul.f32 %v5473_v62, %v5473_v62  ;;  %v252_v22 = vmul.f32 %v5477_v46, %v5477_v46 }
  0x33   :  { %v261_v15 = vadd.f32 %v5507_v31, %v5497_v1  ;;  %v255_v42 = vrot.slane %v5537_v4, 4  ;;  %v395_v7 = vmul.f32 %v5626_v28, %v5626_v28  ;;  %v415_v32 = vmul.f32 %v5379_v50, %v391_v52 }
  0x34   :  { %v5647_v9 = vadd.f32 %v10901_v40, %v5457_v45  ;;  %v435_v6 = vadd.f32 %v434_v8, %v411_v11  ;;  %v396_v40 = vmul.f32 %v5628_v25, %v5628_v25  ;;  %v397_v45 = vmul.f32 %v5630_v14, %v5630_v14 }
  0x35   :  { %v416_v38 = vmul.f32 %v5381_v51, %v392_v30  ;;  %v446_v5 = vadd.f32 %v445_v33, %v412_v26  ;;  %v417_v3 = vmul.f32 %v5383_v55, %v393_v17  ;;  %v418_v31 = vmul.f32 %v5385_v58, %v394_v19 }
  0x36   :  { %10902 = vst [vmem:[#allocation43_spill] sm:$0xff] %v5647_v9  ;;  %v425_v1 = vadd.f32 %v424_v23, %v414_v16  ;;  %v457_v29 = vadd.f32 %v456_v44, %v413_v2  ;;  %4760 = vrsqrt.f32 %v5647_v9  ;;  %v10903_v52 = vunpack.c.l.bf16 %v5292_v12 }
  0x37   :  { %v249_v8 = vmul.f32 %v5475_v57, %v5475_v57  ;;  %v268_v46 = vadd.f32 %v252_v22, %v248_v13  ;;  %v253_v30 = vmul.f32 %v5479_v60, %v5479_v60  ;;  %v262_v26 = vrot.slane %v261_v15, 4 }
  0x38   :  { %v5670_v11 = vmul.f32 %v5381_v51, %v10903_v52  ;;  %v419_v17 = vmul.f32 %v5387_v59, %v395_v7  ;;  %v436_v19 = vadd.f32 %v435_v6, %v415_v32  ;;  %v4759_v33 = vpop.eup %4758  ;;  %v10905_v2 = vunpack.c.h.bf16 %v5292_v12 }
  0x39   :  { %v10907_v23 = vunpack.c.l.bf16 %v5286_v10  ;;  %v420_v13 = vmul.f32 %v5389_v61, %v396_v40  ;;  %v447_v22 = vadd.f32 %v446_v5, %v416_v38  ;;  %v256_v52 = vadd.f32 %v255_v42, %v5537_v4 }
  0x3a   :  { %10904 = vst [vmem:[#allocation44_spill] sm:$0xff] %v5670_v11  ;;  %v5680_v16 = vmul.f32 %v5383_v55, %v10905_v2  ;;  %v421_v60 = vmul.f32 %v5394_v63, %v397_v45  ;;  %v426_v7 = vadd.f32 %v425_v1, %v418_v31  ;;  %v458_v32 = vadd.f32 %v457_v29, %v417_v3 }
  0x3b   :  { %v5685_v44 = vmul.f32 %v5385_v58, %v10907_v23  ;;  %v10909_v6 = vunpack.c.h.bf16 %v5286_v10  ;;  %v10911_v2 = vunpack.c.l.bf16 %v5313_v21  ;;  %v10913_v23 = vunpack.c.h.bf16 %v5313_v21 }
  0x3c   :  { %10906 = vst [vmem:[#allocation45_spill] sm:$0xff] %v5680_v16  ;;  %v269_v4 = vrot.slane %v268_v46, 4  ;;  %vm164_vm8 = vcmp.eq.f32.partialorder %v5471_v48, inf  ;;  %v263_v42 = vadd.f32 %v262_v26, %v261_v15  ;;  %v275_v45 = vadd.f32 %v253_v30, %v249_v8 }
  0x3d   :  { %10908 = vst [vmem:[#allocation46_spill] sm:$0xff] %v5685_v44  ;;  %v5693_v12 = vmul.f32 %v5387_v59, %v10909_v6  ;;  %v5698_v57 = vmul.f32 %v5389_v61, %v10911_v2  ;;  %v5703_v40 = vmul.f32 %v5394_v63, %v10913_v23  ;;  %v437_v38 = vadd.f32 %v436_v19, %v419_v17 }
  0x3e   :  { %v163_v10 = vmul.f32 %v5598_v41, %v5471_v48  ;;  %vm166_vm9 = vcmp.eq.f32.partialorder %v5471_v48, 0.0  ;;  %v167_v5 = vand.u32 2147483648, %v5471_v48  ;;  %v448_v3 = vadd.f32 %v447_v22, %v420_v13 }
  0x3f   :  { %10910 = vst [vmem:[#allocation47_spill] sm:$0xff] %v5693_v12  ;;  %10912 = vst [vmem:[#allocation48_spill] sm:$0xff] %v5698_v57  ;;  %v170_v21 = vmul.f32 %v5616_v54, %v5493_v39  ;;  %v257_v31 = vrot.slane %v256_v52, 2  ;;  %v427_v1 = vrot.slane %v426_v7, 4  ;;  %v459_v29 = vadd.f32 %v458_v32, %v421_v60 }
  0x40   :  { %10914 = vst [vmem:[#allocation49_spill] sm:$0xff] %v5703_v40  ;;  %vm171_vm10 = vcmp.eq.f32.partialorder %v5493_v39, inf  ;;  %vm173_vm11 = vcmp.eq.f32.partialorder %v5493_v39, 0.0  ;;  %v177_v15 = vmul.f32 %v4759_v33, %v5534_v20  ;;  %v270_v8 = vadd.f32 %v269_v4, %v268_v46  ;;  %v4761_v17 = vpop.eup %4760 }
  0x41   :  { %v174_v41 = vand.u32 2147483648, %v5493_v39  ;;  %vm178_vm12 = vcmp.eq.f32.partialorder %v5534_v20, inf  ;;  %v264_v30 = vrot.slane %v263_v42, 2  ;;  %v438_v26 = vrot.slane %v437_v38, 4 }
  0x42   :  { %v165_v54 = vsel %vm164_vm8, %v5471_v48, %v163_v10  ;;  %v181_v60 = vand.u32 2147483648, %v5534_v20  ;;  %v276_v19 = vrot.slane %v275_v45, 4  ;;  %v449_v13 = vrot.slane %v448_v3, 4 }
  0x43   :  { %v172_v22 = vsel %vm171_vm10, %v5493_v39, %v170_v21  ;;  %v258_v32 = vadd.f32 %v257_v31, %v256_v52  ;;  %v428_v33 = vadd.f32 %v427_v1, %v426_v7  ;;  %v460_v46 = vrot.slane %v459_v29, 4 }
  0x44   :  { %v179_v6 = vsel %vm178_vm12, %v5534_v20, %v177_v15  ;;  %vm180_vm13 = vcmp.eq.f32.partialorder %v5534_v20, 0.0  ;;  %v10915_v2 = vunpack.c.l.bf16 %v5306_v18  ;;  %v271_v4 = vrot.slane %v270_v8, 2 }
  0x45   :  { %v168_v10 = vsel %vm166_vm9, %v167_v5, %v165_v54  ;;  %v184_v62 = vmul.f32 %v4761_v17, %v5647_v9  ;;  %v265_v14 = vadd.f32 %v264_v30, %v263_v42  ;;  %v439_v21 = vadd.f32 %v438_v26, %v437_v38 }
  0x46   :  { %v5727_v23 = vmul.f32 %v5377_v49, %v10915_v2  ;;  %v175_v52 = vsel %vm173_vm11, %v174_v41, %v172_v22  ;;  %vm185_vm14 = vcmp.eq.f32.partialorder %v5647_v9, inf  ;;  %v277_v7 = vadd.f32 %v276_v19, %v275_v45 }
  0x47   :  { %v450_v31 = vadd.f32 %v449_v13, %v448_v3  ;;  %v182_v1 = vsel %vm180_vm13, %v181_v60, %v179_v6  ;;  %v259_v15 = vrot.slane %v258_v32, 1  ;;  %v429_v20 = vrot.slane %v428_v33, 2 }
  0x48   :  { %10916 = vst [vmem:[#allocation50_spill] sm:$0xff] %v5727_v23  ;;  %v461_v2 = vadd.f32 %v460_v46, %v459_v29  ;;  %vm187_vm15 = vcmp.eq.f32.partialorder %v5647_v9, 0.0  ;;  %v188_v48 = vand.u32 2147483648, %v5647_v9  ;;  %v190_v5 = vadd.f32 1e-08, %v168_v10 }
  0x49   :  { %v272_v54 = vadd.f32 %v271_v4, %v270_v8  ;;  %v186_v42 = vsel %vm185_vm14, %v5647_v9, %v184_v62  ;;  %v191_v38 = vadd.f32 1e-08, %v175_v52  ;;  %v266_v30 = vrot.slane %v265_v14, 1 }
  0x4a   :  { %v440_v26 = vrot.slane %v439_v21, 2  ;;  %v192_v41 = vadd.f32 1e-08, %v182_v1  ;;  %v10917_v17 = vunpack.c.h.bf16 %v5306_v18  ;;  %v278_v3 = vrot.slane %v277_v7, 2 }
  0x4b   :  { %v451_v60 = vrot.slane %v450_v31, 2  ;;  %v10919_v29 = vunpack.c.l.bf16 %v5329_v27  ;;  %v5748_v13 = vadd.f32 %v259_v15, %v258_v32  ;;  %v430_v8 = vadd.f32 %v429_v20, %v428_v33 }
  0x4c   :  { %v5741_v45 = vmul.f32 %v5379_v50, %v10917_v17  ;;  %v462_v62 = vrot.slane %v461_v2, 2  ;;  %v189_v22 = vsel %vm187_vm15, %v188_v48, %v186_v42  ;;  %4762 = vrcp.f32 %v190_v5  ;;  %v10932_v17 = vld [vmem:[#allocation28_spill] sm:$0xff] }
  0x4d   :  { %v5746_v19 = vmul.f32 %v5381_v51, %v10919_v29  ;;  %v10921_v18 = vunpack.c.h.bf16 %v5329_v27  ;;  %v10923_v6 = vunpack.c.l.bf16 %v5322_v24  ;;  %4764 = vrcp.f32 %v191_v38 }
  0x4e   :  { %10918 = vst [vmem:[#allocation51_spill] sm:$0xff] %v5741_v45  ;;  %v5762_v10 = vadd.f32 %v266_v30, %v265_v14  ;;  %v273_v32 = vrot.slane %v272_v54, 1  ;;  %v441_v20 = vadd.f32 %v440_v26, %v439_v21  ;;  %4766 = vrcp.f32 %v192_v41  ;;  %v10927_v21 = vld [vmem:[#allocation26_spill] sm:$0xff]  ;;  %v10929_v30 = vld [vmem:[#allocation27_spill] sm:$0xff] }
  0x4f   :  { %10920 = vst [vmem:[#allocation52_spill] sm:$0xff] %v5746_v19  ;;  %v5755_v46 = vmul.f32 %v5383_v55, %v10921_v18  ;;  %v5760_v4 = vmul.f32 %v5385_v58, %v10923_v6  ;;  %v10925_v33 = vunpack.c.h.bf16 %v5322_v24  ;;  %v279_v27 = vadd.f32 %v278_v3, %v277_v7  ;;  %v10928_v24 = vld [vmem:[#allocation12_spill] sm:$0xff]  ;;  %v10937_v18 = vld [vmem:[#allocation14_spill] sm:$0xff]  ;;  %v10938_v6 = vld [vmem:[#allocation31_spill] sm:$0xff] }
  0x50   :  { %v452_v52 = vadd.f32 %v451_v60, %v450_v31  ;;  %v193_v1 = vadd.f32 1e-08, %v189_v22  ;;  %4768 = vrsqrt.f32 %v5748_v13  ;;  %v431_v15 = vrot.slane %v430_v8, 1  ;;  %v10931_v31 = vld [vmem:[#allocation9_spill] sm:$0xff]  ;;  %v10933_v60 = vld [vmem:[#allocation10_spill] sm:$0xff] }
  0x51   :  { %10922 = vst [vmem:[#allocation53_spill] sm:$0xff] %v5755_v46  ;;  %10924 = vst [vmem:[#allocation54_spill] sm:$0xff] %v5760_v4  ;;  %v5767_v48 = vmul.f32 %v5387_v59, %v10925_v33  ;;  %v463_v5 = vadd.f32 %v462_v62, %v461_v2  ;;  %v466_v42 = vmul.f32 %v5489_v47, %v5399_v36  ;;  %4770 = vrsqrt.f32 %v5762_v10  ;;  %v10934_v47 = vld [vmem:[#allocation29_spill] sm:$0xff] }
  0x52   :  { %v467_v14 = vmul.f32 %v5509_v56, %v5404_v37  ;;  %v470_v38 = vmul.f32 %v10927_v21, %v5422_v0  ;;  %v471_v26 = vmul.f32 %v10929_v30, %v10928_v24  ;;  %v5778_v41 = vadd.f32 %v273_v32, %v272_v54  ;;  %v10935_v62 = vld [vmem:[#allocation13_spill] sm:$0xff]  ;;  %v10936_v56 = vld [vmem:[#allocation30_spill] sm:$0xff]  ;;  %v10940_v24 = vld [vmem:[#allocation32_spill] sm:$0xff] }
  0x53   :  { %10926 = vst [vmem:[#allocation55_spill] sm:$0xff] %v5767_v48  ;;  %v442_v7 = vrot.slane %v441_v20, 1  ;;  %v468_v2 = vmul.f32 %v10932_v17, %v10931_v31  ;;  %v453_v3 = vrot.slane %v452_v52, 1  ;;  %v469_v29 = vmul.f32 %v10934_v47, %v10933_v60  ;;  %v10939_v30 = vld [vmem:[#allocation18_spill] sm:$0xff]  ;;  %v10941_v0 = vld [vmem:[#allocation19_spill] sm:$0xff] }
  0x54   :  { %10930 = vst [vmem:[#allocation26_spill] sm:$0xff] %v5778_v41  ;;  %v472_v22 = vmul.f32 %v10936_v56, %v10935_v62  ;;  %v473_v33 = vmul.f32 %v10938_v6, %v10937_v18  ;;  %4772 = vrcp.f32 %v193_v1  ;;  %v280_v21 = vrot.slane %v279_v27, 1  ;;  %v10942_v17 = vld [vmem:[#allocation34_spill] sm:$0xff] }
  0x55   :  { %v5789_v54 = vadd.f32 %v431_v15, %v430_v8  ;;  %v464_v32 = vrot.slane %v463_v5, 1  ;;  %v474_v37 = vmul.f32 %v10940_v24, %v10939_v30  ;;  %v475_v31 = vmul.f32 %v10942_v17, %v10941_v0  ;;  %v10943_v47 = vld [vmem:[#allocation2_spill] sm:$0xff]  ;;  %v10946_v8 = vld [vmem:[#allocation35_spill] sm:$0xff]  ;;  %v10948_v17 = vld [vmem:[#allocation36_spill] sm:$0xff] }
  0x56   :  { %v490_v36 = vadd.f32 %v470_v38, %v466_v42  ;;  %v501_v9 = vadd.f32 %v471_v26, %v467_v14  ;;  %v10944_v60 = vunpack.c.l.bf16 %v10943_v47  ;;  %4774 = vrsqrt.f32 %v5778_v41  ;;  %v5805_v6 = vpop.eup %4762 }
  0x57   :  { %v5801_v1 = vadd.f32 %v442_v7, %v441_v20  ;;  %v476_v15 = vmul.f32 %v10946_v8, %v5670_v11  ;;  %10947 = vst [vmem:[#allocation28_spill] sm:$0xff] %v5805_v6  ;;  %v5807_v24 = vadd.f32 %v453_v3, %v452_v52  ;;  %v477_v42 = vmul.f32 %v10948_v17, %v5680_v16  ;;  %v5811_v26 = vpop.eup %4764  ;;  %v10954_v3 = vld [vmem:[#allocation37_spill] sm:$0xff]  ;;  %v10956_v17 = vld [vmem:[#allocation39_spill] sm:$0xff] }
  0x58   :  { %v5798_v56 = vmul.f32 %v5389_v61, %v10944_v60  ;;  %v512_v14 = vadd.f32 %v472_v22, %v468_v2  ;;  %v523_v38 = vadd.f32 %v473_v33, %v469_v29  ;;  %10949 = vst [vmem:[#allocation29_spill] sm:$0xff] %v5811_v26  ;;  %v10950_v60 = vunpack.c.h.bf16 %v10943_v47  ;;  %v5823_v52 = vpop.eup %4766  ;;  %v10955_v2 = vld [vmem:[#allocation38_spill] sm:$0xff] }
  0x59   :  { %v5818_v20 = vadd.f32 %v280_v21, %v279_v27  ;;  %v5820_v7 = vadd.f32 %v464_v32, %v463_v5  ;;  %4776 = vrsqrt.f32 %v5789_v54  ;;  %10953 = vst [vmem:[#allocation32_spill] sm:$0xff] %v5823_v52  ;;  %v478_v8 = vmul.f32 %v10954_v3, %v5685_v44  ;;  %v642_v47 = vld [vmem:[%s10575_s4] sm:$0xff]  ;;  %v644_v27 = vld [vmem:[%s10575_s4 + $0x10] sm:$0xff] }
  0x5a   :  { %10945 = vst [vmem:[#allocation27_spill] sm:$0xff] %v5798_v56  ;;  %v5816_v0 = vmul.f32 %v5394_v63, %v10950_v60  ;;  %v479_v29 = vmul.f32 %v10955_v2, %v5693_v12  ;;  %v491_v22 = vadd.f32 %v490_v36, %v474_v37  ;;  %v502_v33 = vadd.f32 %v501_v9, %v475_v31  ;;  %v4769_v5 = vpop.eup %4768 }
  0x5b   :  { %10952 = vst [vmem:[#allocation31_spill] sm:$0xff] %v5818_v20  ;;  %v480_v60 = vmul.f32 %v10956_v17, %v5698_v57  ;;  %4778 = vrsqrt.f32 %v5801_v1  ;;  %v481_v36 = vmul.f32 %v5573_v53, %v5703_v40  ;;  %v513_v37 = vadd.f32 %v512_v14, %v476_v15  ;;  %v4771_v31 = vpop.eup %4770  ;;  %v10957_v17 = vld [vmem:[#allocation40_spill] sm:$0xff]  ;;  %v10959_v40 = vld [vmem:[#allocation41_spill] sm:$0xff] }
  0x5c   :  { %10951 = vst [vmem:[#allocation30_spill] sm:$0xff] %v5816_v0  ;;  %v524_v9 = vadd.f32 %v523_v38, %v477_v42  ;;  %4780 = vrsqrt.f32 %v5807_v24  ;;  %v5845_v2 = vunpack.c.l.bf16 %v642_v47  ;;  %v5847_v32 = vunpack.c.l.bf16 %v644_v27 }
  0x5d   :  { %4782 = vrsqrt.f32 %v5820_v7  ;;  %v482_v21 = vmul.f32 %v10957_v17, %v5727_v23  ;;  %v483_v57 = vmul.f32 %v5600_v43, %v5741_v45  ;;  %v492_v53 = vadd.f32 %v491_v22, %v478_v8  ;;  %v5868_v8 = vld [vmem:[%s10575_s4 + $0x8] sm:$0xff] }
  0x5e   :  { %v503_v15 = vadd.f32 %v502_v33, %v479_v29  ;;  %v5853_v42 = vpop.eup %4772  ;;  %4784 = vrsqrt.f32 %v5818_v20  ;;  %v5857_v38 = vunpack.c.h.bf16 %v642_v47  ;;  %v5859_v3 = vunpack.c.h.bf16 %v644_v27  ;;  %v5873_v29 = vld [vmem:[%s10575_s4 + $0x18] sm:$0xff] }
  0x5f   :  { %10958 = vst [vmem:[#allocation34_spill] sm:$0xff] %v5853_v42  ;;  %v484_v12 = vmul.f32 %v10959_v40, %v5746_v19  ;;  %v485_v17 = vmul.f32 %v5604_v34, %v5755_v46  ;;  %v514_v23 = vadd.f32 %v513_v37, %v480_v60  ;;  %v525_v43 = vadd.f32 %v524_v9, %v481_v36 }
  0x60   :  { %v5875_v22 = vpop.eup %4774  ;;  %v5878_v33 = vmul.f32 %v4769_v5, %v5748_v13  ;;  %v5881_v40 = vmul.f32 %v4771_v31, %v5762_v10  ;;  %v654_v34 = vmul.f32 %v5845_v2, %v5845_v2  ;;  %v658_v47 = vmul.f32 %v5847_v32, %v5847_v32 }
  0x61   :  { %v486_v27 = vmul.f32 %v5606_v35, %v5760_v4  ;;  %v487_v60 = vmul.f32 %v5626_v28, %v5767_v48  ;;  %v493_v36 = vadd.f32 %v492_v53, %v482_v21  ;;  %v504_v37 = vadd.f32 %v503_v15, %v483_v57  ;;  %v10960_v28 = vld [vmem:[#allocation42_spill] sm:$0xff] }
  0x62   :  { %v5892_v5 = vunpack.c.l.bf16 %v5868_v8  ;;  %v5895_v31 = vunpack.c.l.bf16 %v5873_v29  ;;  %v655_v14 = vmul.f32 %v5857_v38, %v5857_v38  ;;  %v659_v46 = vmul.f32 %v5859_v3, %v5859_v3 }
  0x63   :  { %v4777_v9 = vpop.eup %4776  ;;  %v488_v35 = vmul.f32 %v5628_v25, %v5798_v56  ;;  %v489_v21 = vmul.f32 %v10960_v28, %v5816_v0  ;;  %v515_v57 = vadd.f32 %v514_v23, %v484_v12  ;;  %v526_v53 = vadd.f32 %v525_v43, %v485_v17 }
  0x64   :  { %vm536_vm0 = vcmp.eq.f32.partialorder %v5789_v54, inf  ;;  %vm538_vm1 = vcmp.eq.f32.partialorder %v5789_v54, 0.0  ;;  %v662_v48 = vmul.f32 %v5377_v49, %v654_v34  ;;  %v666_v4 = vmul.f32 %v5385_v58, %v658_v47 }
  0x65   :  { %v4779_v15 = vpop.eup %4778  ;;  %vm284_vm2 = vcmp.eq.f32.partialorder %v5748_v13, inf  ;;  %v494_v45 = vadd.f32 %v493_v36, %v486_v27  ;;  %v505_v44 = vadd.f32 %v504_v37, %v487_v60  ;;  %v535_v25 = vmul.f32 %v4777_v9, %v5789_v54 }
  0x66   :  { %v4781_v19 = vpop.eup %4780  ;;  %v539_v28 = vand.u32 2147483648, %v5789_v54  ;;  %v656_v23 = vmul.f32 %v5892_v5, %v5892_v5  ;;  %v660_v17 = vmul.f32 %v5895_v31, %v5895_v31  ;;  %v663_v43 = vmul.f32 %v5379_v50, %v655_v14 }
  0x67   :  { %v4783_v12 = vpop.eup %4782  ;;  %v667_v34 = vmul.f32 %v5387_v59, %v659_v46  ;;  %v516_v47 = vadd.f32 %v515_v57, %v488_v35  ;;  %v527_v0 = vadd.f32 %v526_v53, %v489_v21  ;;  %v542_v27 = vmul.f32 %v4779_v15, %v5801_v1 }
  0x68   :  { %vm543_vm3 = vcmp.eq.f32.partialorder %v5801_v1, inf  ;;  %v4785_v60 = vpop.eup %4784  ;;  %vm545_vm4 = vcmp.eq.f32.partialorder %v5801_v1, 0.0  ;;  %v546_v36 = vand.u32 2147483648, %v5801_v1  ;;  %v549_v37 = vmul.f32 %v4781_v19, %v5807_v24 }
  0x69   :  { %v670_v9 = vadd.f32 %v666_v4, %v662_v48  ;;  %vm286_vm5 = vcmp.eq.f32.partialorder %v5748_v13, 0.0  ;;  %vm291_vm6 = vcmp.eq.f32.partialorder %v5762_v10, inf  ;;  %v495_v14 = vrot.slane %v494_v45, 4 }
  0x6a   :  { %v537_v46 = vsel %vm536_vm0, %v5789_v54, %v535_v25  ;;  %vm550_vm7 = vcmp.eq.f32.partialorder %v5807_v24, inf  ;;  %v556_v35 = vmul.f32 %v4783_v12, %v5820_v7  ;;  %vm557_vm8 = vcmp.eq.f32.partialorder %v5820_v7, inf }
  0x6b   :  { %v664_v21 = vmul.f32 %v5381_v51, %v656_v23  ;;  %v668_v19 = vmul.f32 %v5389_v61, %v660_v17  ;;  %v677_v4 = vadd.f32 %v667_v34, %v663_v43  ;;  %vm298_vm9 = vcmp.eq.f32.partialorder %v5778_v41, inf }
  0x6c   :  { %v506_v48 = vrot.slane %v505_v44, 4  ;;  %v544_v57 = vsel %vm543_vm3, %v5801_v1, %v542_v27  ;;  %vm552_vm10 = vcmp.eq.f32.partialorder %v5807_v24, 0.0  ;;  %v553_v53 = vand.u32 2147483648, %v5807_v24 }
  0x6d   :  { %v540_v15 = vsel %vm538_vm1, %v539_v28, %v537_v46  ;;  %v551_v25 = vsel %vm550_vm7, %v5807_v24, %v549_v37  ;;  %v560_v12 = vand.u32 2147483648, %v5820_v7  ;;  %v671_v23 = vrot.slane %v670_v9, 4 }
  0x6e   :  { %vm305_vm11 = vcmp.eq.f32.partialorder %v5818_v20, inf  ;;  %v558_v17 = vsel %vm557_vm8, %v5820_v7, %v556_v35  ;;  %vm559_vm12 = vcmp.eq.f32.partialorder %v5820_v7, 0.0  ;;  %v5947_v43 = vunpack.c.h.bf16 %v5868_v8 }
  0x6f   :  { %v5950_v34 = vunpack.c.h.bf16 %v5873_v29  ;;  %vm293_vm13 = vcmp.eq.f32.partialorder %v5762_v10, 0.0  ;;  %v517_v28 = vrot.slane %v516_v47, 4  ;;  %v547_v27 = vsel %vm545_vm4, %v546_v36, %v544_v57 }
  0x70   :  { %v678_v37 = vrot.slane %v677_v4, 4  ;;  %v684_v46 = vadd.f32 %v668_v19, %v664_v21  ;;  %vm300_vm14 = vcmp.eq.f32.partialorder %v5778_v41, 0.0  ;;  %v496_v56 = vadd.f32 %v495_v14, %v494_v45 }
  0x71   :  { %v528_v35 = vrot.slane %v527_v0, 4  ;;  %v554_v16 = vsel %vm552_vm10, %v553_v53, %v551_v25  ;;  %v562_v8 = vadd.f32 1e-08, %v540_v15  ;;  %v285_v29 = vsel %vm284_vm2, %v5748_v13, %v5878_v33 }
  0x72   :  { %v297_v11 = vmul.f32 %v5875_v22, %v5778_v41  ;;  %v561_v30 = vsel %vm559_vm12, %v560_v12, %v558_v17  ;;  %v672_v36 = vadd.f32 %v671_v23, %v670_v9  ;;  %v507_v57 = vadd.f32 %v506_v48, %v505_v44 }
  0x73   :  { %v563_v21 = vadd.f32 1e-08, %v547_v27  ;;  %v657_v45 = vmul.f32 %v5947_v43, %v5947_v43  ;;  %v661_v14 = vmul.f32 %v5950_v34, %v5950_v34  ;;  %v518_v19 = vadd.f32 %v517_v28, %v516_v47 }
  0x74   :  { %v564_v53 = vadd.f32 1e-08, %v554_v16  ;;  %v679_v15 = vadd.f32 %v678_v37, %v677_v4  ;;  %v685_v25 = vrot.slane %v684_v46, 4  ;;  %v497_v18 = vrot.slane %v496_v56, 2 }
  0x75   :  { %v529_v62 = vadd.f32 %v528_v35, %v527_v0  ;;  %v565_v33 = vadd.f32 1e-08, %v561_v30  ;;  %4786 = vrcp.f32 %v562_v8  ;;  %v10961_v22 = vand.u32 2147483648, %v5748_v13 }
  0x76   :  { %v292_v9 = vsel %vm291_vm6, %v5762_v10, %v5881_v40  ;;  %v304_v48 = vmul.f32 %v4785_v60, %v5818_v20  ;;  %v673_v47 = vrot.slane %v672_v36, 2  ;;  %v508_v16 = vrot.slane %v507_v57, 2  ;;  %v10962_v60 = vld [vmem:[#allocation15_spill] sm:$0xff] }
  0x77   :  { %v288_v44 = vsel %vm286_vm5, %v10961_v22, %v285_v29  ;;  %4788 = vrcp.f32 %v563_v21  ;;  %v665_v4 = vmul.f32 %v5383_v55, %v657_v45  ;;  %v669_v0 = vmul.f32 %v5394_v63, %v661_v14 }
  0x78   :  { %v299_v30 = vsel %vm298_vm9, %v5778_v41, %v297_v11  ;;  %4790 = vrcp.f32 %v564_v53  ;;  %v680_v12 = vrot.slane %v679_v15, 2  ;;  %v686_v23 = vadd.f32 %v685_v25, %v684_v46 }
  0x79   :  { %v498_v17 = vadd.f32 %v497_v18, %v496_v56  ;;  %v519_v28 = vrot.slane %v518_v19, 2  ;;  %v530_v27 = vrot.slane %v529_v62, 2  ;;  %4792 = vrcp.f32 %v565_v33 }
  0x7a   :  { %v306_v40 = vsel %vm305_vm11, %v5818_v20, %v304_v48  ;;  %vm307_vm15 = vcmp.eq.f32.partialorder %v5818_v20, 0.0  ;;  %v5988_v37 = vmul.f32 %v5377_v49, %v10962_v60  ;;  %v674_v35 = vadd.f32 %v673_v47, %v672_v36 }
  0x7b   :  { %v226_v11 = vmul.f32 %v5805_v6, %v5805_v6  ;;  %v10964_v46 = vand.u32 2147483648, %v5762_v10  ;;  %v509_v56 = vadd.f32 %v508_v16, %v507_v57  ;;  %v691_v8 = vadd.f32 %v669_v0, %v665_v4  ;;  %v10967_v57 = vld [vmem:[#allocation17_spill] sm:$0xff] }
  0x7c   :  { %10963 = vst [vmem:[#allocation2_spill] sm:$0xff] %v5988_v37  ;;  %v10965_v29 = vand.u32 2147483648, %v5778_v41  ;;  %v310_v45 = vadd.f32 1e-08, %v288_v44  ;;  %v681_v14 = vadd.f32 %v680_v12, %v679_v15  ;;  %v687_v53 = vrot.slane %v686_v23, 2 }
  0x7d   :  { %v295_v18 = vsel %vm293_vm13, %v10964_v46, %v292_v9  ;;  %v10966_v36 = vand.u32 2147483648, %v5818_v20  ;;  %v499_v33 = vrot.slane %v498_v17, 1  ;;  %v520_v22 = vadd.f32 %v519_v28, %v518_v19 }
  0x7e   :  { %v302_v21 = vsel %vm300_vm14, %v10965_v29, %v299_v30  ;;  %v531_v48 = vadd.f32 %v530_v27, %v529_v62  ;;  %v227_v47 = vmul.f32 %v5811_v26, %v5811_v26  ;;  %v311_v9 = vadd.f32 1e-08, %v295_v18 }
  0x7f   :  { %v309_v25 = vsel %vm307_vm15, %v10966_v36, %v306_v40  ;;  %v6006_v16 = vmul.f32 %v5385_v58, %v10967_v57  ;;  %v675_v4 = vrot.slane %v674_v35, 1  ;;  %v4787_v0 = vpop.eup %4786  ;;  %v228_v15 = vmul.f32 %v5823_v52, %v5823_v52  ;;  %v10969_v40 = vld [vmem:[#allocation21_spill] sm:$0xff] }
  0x80   :  { %v312_v44 = vadd.f32 1e-08, %v302_v21  ;;  %v510_v30 = vrot.slane %v509_v56, 1  ;;  %v692_v12 = vrot.slane %v691_v8, 4  ;;  %v6011_v60 = vmul.f32 %v226_v11, %v10969_v40 }
  0x81   :  { %10968 = vst [vmem:[#allocation35_spill] sm:$0xff] %v6006_v16  ;;  %v313_v62 = vadd.f32 1e-08, %v309_v25  ;;  %v682_v19 = vrot.slane %v681_v14, 1  ;;  %v688_v28 = vadd.f32 %v687_v53, %v686_v23  ;;  %v4789_v27 = vpop.eup %4788  ;;  %4794 = vrcp.f32 %v310_v45 }
  0x82   :  { %10970 = vst [vmem:[#allocation36_spill] sm:$0xff] %v6011_v60  ;;  %v500_v46 = vadd.f32 %v499_v33, %v498_v17  ;;  %v521_v18 = vrot.slane %v520_v22, 1  ;;  %v532_v29 = vrot.slane %v531_v48, 1  ;;  %v4791_v36 = vpop.eup %4790  ;;  %v229_v57 = vmul.f32 %v5853_v42, %v5853_v42 }
  0x83   :  { %4796 = vrcp.f32 %v311_v9  ;;  %v574_v20 = vmul.f32 %v4787_v0, %v4787_v0  ;;  %v6015_v21 = vadd.f32 %v675_v4, %v674_v35  ;;  %v4793_v58 = vpop.eup %4792  ;;  %v6018_v11 = vmul.f32 %v227_v47, %v5493_v39  ;;  %v10972_v39 = vld [vmem:[#allocation33_spill] sm:$0xff] }
  0x84   :  { %4798 = vrcp.f32 %v312_v44  ;;  %v511_v25 = vadd.f32 %v510_v30, %v509_v56  ;;  %v693_v23 = vadd.f32 %v692_v12, %v691_v8  ;;  %v575_v45 = vmul.f32 %v4789_v27, %v4789_v27  ;;  %v10974_v56 = vld [vmem:[#allocation43_spill] sm:$0xff] }
  0x85   :  { %10971 = vst [vmem:[#allocation37_spill] sm:$0xff] %v6018_v11  ;;  %4800 = vrcp.f32 %v313_v62  ;;  %v6020_v17 = vadd.f32 %v682_v19, %v681_v14  ;;  %v689_v53 = vrot.slane %v688_v28, 1  ;;  %v522_v33 = vadd.f32 %v521_v18, %v520_v22  ;;  %v10979_v18 = vld [vmem:[#allocation20_spill] sm:$0xff] }
  0x86   :  { %v533_v40 = vadd.f32 %v532_v29, %v531_v48  ;;  %v576_v49 = vmul.f32 %v4791_v36, %v4791_v36  ;;  %v586_v41 = vmul.f32 2.0, %v500_v46  ;;  %v577_v9 = vmul.f32 %v4793_v58, %v4793_v58 }
  0x87   :  { %v578_v35 = vmul.f32 %v574_v20, %v5789_v54  ;;  %v590_v4 = vmul.f32 %v4787_v0, %v5805_v6  ;;  %4802 = vrsqrt.f32 %v6015_v21  ;;  %v6026_v47 = vmul.f32 %v228_v15, %v10972_v39  ;;  %v4646_v6 = vld [vmem:[%s10574_s1 + $0x98] sm:$0xff] }
  0x88   :  { %v6029_v8 = vmul.f32 %v229_v57, %v10974_v56  ;;  %v587_v14 = vmul.f32 2.0, %v511_v25  ;;  %v694_v44 = vrot.slane %v693_v23, 2  ;;  %v579_v22 = vmul.f32 %v575_v45, %v5801_v1  ;;  %v10983_v25 = vld [vmem:[#allocation22_spill] sm:$0xff] }
  0x89   :  { %10973 = vst [vmem:[#allocation38_spill] sm:$0xff] %v6026_v47  ;;  %v591_v48 = vmul.f32 %v4789_v27, %v5811_v26  ;;  %v6033_v30 = vadd.f32 %v689_v53, %v688_v28  ;;  %4804 = vrsqrt.f32 %v6020_v17  ;;  %v580_v54 = vmul.f32 %v576_v49, %v5807_v24  ;;  %v10977_v27 = vld [vmem:[#allocation16_spill] sm:$0xff] }
  0x8a   :  { %10975 = vst [vmem:[#allocation39_spill] sm:$0xff] %v6029_v8  ;;  %v588_v20 = vmul.f32 2.0, %v522_v33  ;;  %v589_v0 = vmul.f32 2.0, %v533_v40  ;;  %v592_v15 = vmul.f32 %v4791_v36, %v5823_v52  ;;  %v581_v12 = vmul.f32 %v577_v9, %v5820_v7 }
  0x8b   :  { %v582_v62 = vadd.f32 %v578_v35, %v6011_v60  ;;  %v593_v19 = vmul.f32 %v4793_v58, %v5853_v42  ;;  %v594_v46 = vmul.f32 %v590_v4, %v586_v41  ;;  %v6041_v1 = vpop.eup %4794  ;;  %v6045_v28 = vmul.f32 %v5379_v50, %v10977_v27 }
  0x8c   :  { %10976 = vst [vmem:[#allocation40_spill] sm:$0xff] %v6041_v1  ;;  %v6049_v49 = vmul.f32 %v5387_v59, %v10979_v18  ;;  %v695_v24 = vadd.f32 %v694_v44, %v693_v23  ;;  %v698_v29 = vmul.f32 %v5845_v2, %v5988_v37  ;;  %v583_v36 = vadd.f32 %v579_v22, %v6018_v11  ;;  %v10985_v23 = vld [vmem:[#allocation24_spill] sm:$0xff]  ;;  %v10988_v22 = vld [vmem:[#allocation23_spill] sm:$0xff] }
  0x8d   :  { %10978 = vst [vmem:[#allocation41_spill] sm:$0xff] %v6045_v28  ;;  %v6053_v7 = vpop.eup %4796  ;;  %v595_v58 = vmul.f32 %v591_v48, %v587_v14  ;;  %v702_v41 = vmul.f32 %v5847_v32, %v6006_v16  ;;  %4806 = vrsqrt.f32 %v6033_v30  ;;  %v6063_v45 = vmul.f32 %v5381_v51, %v10983_v25 }
  0x8e   :  { %10980 = vst [vmem:[#allocation42_spill] sm:$0xff] %v6049_v49  ;;  %10981 = vst [vmem:[#allocation15_spill] sm:$0xff] %v6053_v7  ;;  %v6059_v57 = vpop.eup %4798  ;;  %v6067_v53 = vmul.f32 %v5389_v61, %v10985_v23  ;;  %v584_v2 = vadd.f32 %v580_v54, %v6026_v47  ;;  %v596_v33 = vmul.f32 %v592_v15, %v588_v20  ;;  %v696_v39 = vrot.slane %v695_v24, 1 }
  0x8f   :  { %10982 = vst [vmem:[#allocation17_spill] sm:$0xff] %v6059_v57  ;;  %10984 = vst [vmem:[#allocation21_spill] sm:$0xff] %v6063_v45  ;;  %v6070_v40 = vpop.eup %4800  ;;  %v330_v32 = vmul.f32 %v6041_v1, %v6041_v1  ;;  %v585_v9 = vadd.f32 %v581_v12, %v6029_v8  ;;  %v597_v35 = vmul.f32 %v593_v19, %v589_v0  ;;  %v10990_v12 = vld [vmem:[#allocation25_spill] sm:$0xff]  ;;  %vm736_vm0 = vcmp.eq.f32.partialorder %v6015_v21, inf  ;;  %v4644_v8 = vld [vmem:[%s10574_s1 + $0x88] sm:$0xff] }
  0x90   :  { %10986 = vst [vmem:[#allocation33_spill] sm:$0xff] %v6067_v53  ;;  %10987 = vst [vmem:[#allocation43_spill] sm:$0xff] %v6070_v40  ;;  %v598_v4 = vsub.f32 %v582_v62, %v594_v46  ;;  %v699_v56 = vmul.f32 %v5857_v38, %v6045_v28  ;;  %v703_v14 = vmul.f32 %v5859_v3, %v6049_v49  ;;  %vm743_vm1 = vcmp.eq.f32.partialorder %v6020_v17, inf }
  0x91   :  { %v4803_v44 = vpop.eup %4802  ;;  %v6081_v48 = vmul.f32 %v5383_v55, %v10988_v22  ;;  %v331_v54 = vmul.f32 %v6053_v7, %v6053_v7  ;;  %v599_v20 = vsub.f32 %v583_v36, %v595_v58  ;;  %v706_v15 = vadd.f32 %v702_v41, %v698_v29 }
  0x92   :  { %v6087_v0 = vmul.f32 %v5394_v63, %v10990_v12  ;;  %v600_v62 = vsub.f32 %v584_v2, %v596_v33  ;;  %v700_v38 = vmul.f32 %v5892_v5, %v6063_v45  ;;  %v704_v3 = vmul.f32 %v5895_v31, %v6067_v53 }
  0x93   :  { %10989 = vst [vmem:[#allocation16_spill] sm:$0xff] %v6081_v48  ;;  %v4805_v19 = vpop.eup %4804  ;;  %v332_v46 = vmul.f32 %v6059_v57, %v6059_v57  ;;  %v6096_v27 = vmul.f32 %v330_v32, %v5748_v13  ;;  %v601_v18 = vsub.f32 %v585_v9, %v597_v35  ;;  %v6098_v29 = vmax.f32 %v598_v4, 0.0 }
  0x94   :  { %10991 = vst [vmem:[#allocation20_spill] sm:$0xff] %v6087_v0  ;;  %v6102_v36 = vmul.f32 %v6070_v40, %v6070_v40  ;;  %v6104_v58 = vadd.f32 %v696_v39, %v695_v24  ;;  %v713_v5 = vadd.f32 %v703_v14, %v699_v56  ;;  %v735_v41 = vmul.f32 %v4803_v44, %v6015_v21  ;;  %v4641_v39 = vld [vmem:[%s10574_s1 + $0x70] sm:$0xff] }
  0x95   :  { %10992 = vst [vmem:[#allocation22_spill] sm:$0xff] %v6096_v27  ;;  %v6108_v31 = vmul.f32 %v331_v54, %v5762_v10  ;;  %v6110_v25 = vmax.f32 %v599_v20, 0.0  ;;  %v707_v23 = vrot.slane %v706_v15, 4  ;;  %v6113_v13 = vmax.f32 %v600_v62, 0.0 }
  0x96   :  { %v701_v2 = vmul.f32 %v5947_v43, %v6081_v48  ;;  %v6117_v33 = vadd.f32 %v704_v3, %v700_v38  ;;  %v742_v24 = vmul.f32 %v4805_v19, %v6020_v17  ;;  %v6120_v9 = vmax.f32 %v601_v18, 0.0  ;;  %v4639_v43 = vld [vmem:[%s10574_s1 + $0x60] sm:$0xff]  ;;  %v11008_v48 = vld [vmem:[#allocation5_spill] sm:$0xff] }
  0x97   :  { %10993 = vst [vmem:[#allocation24_spill] sm:$0xff] %v6108_v31  ;;  %v4807_v32 = vpop.eup %4806  ;;  %4808 = vrsqrt.f32 %v6098_v29  ;;  %v739_v10 = vand.u32 2147483648, %v6015_v21  ;;  %v714_v35 = vrot.slane %v713_v5, 4  ;;  %v737_v4 = vsel %vm736_vm0, %v6015_v21, %v735_v41  ;;  %v4643_v19 = vld [vmem:[%s10574_s1 + $0x80] sm:$0xff] }
  0x98   :  { %vm738_vm2 = vcmp.eq.f32.partialorder %v6015_v21, 0.0  ;;  %4810 = vrsqrt.f32 %v6104_v58  ;;  %v705_v56 = vmul.f32 %v5950_v34, %v6087_v0  ;;  %v6137_v14 = vadd.f32 %v707_v23, %v706_v15  ;;  %v10996_v34 = vld [vmem:[#allocation26_spill] sm:$0xff] }
  0x99   :  { %4812 = vrsqrt.f32 %v6110_v25  ;;  %v746_v44 = vand.u32 2147483648, %v6020_v17  ;;  %v744_v22 = vsel %vm743_vm1, %v6020_v17, %v742_v24  ;;  %vm745_vm3 = vcmp.eq.f32.partialorder %v6020_v17, 0.0 }
  0x9a   :  { %4814 = vrsqrt.f32 %v6113_v13  ;;  %v749_v54 = vmul.f32 %v4807_v32, %v6033_v30  ;;  %v740_v20 = vsel %vm738_vm2, %v739_v10, %v737_v4  ;;  %vm750_vm4 = vcmp.eq.f32.partialorder %v6033_v30, inf }
  0x9b   :  { %v6145_v12 = vunpack.c.l.bf16 %v4639_v43  ;;  %v6147_v62 = vunpack.c.l.bf16 %v4641_v39  ;;  %v6150_v15 = vmul.f32 %v332_v46, %v10996_v34  ;;  %4816 = vrsqrt.f32 %v6120_v9  ;;  %v4640_v46 = vld [vmem:[%s10574_s1 + $0x68] sm:$0xff] }
  0x9c   :  { %v6153_v38 = vadd.f32 %v714_v35, %v713_v5  ;;  %v6160_v41 = vadd.f32 %v705_v56, %v701_v2  ;;  %v747_v23 = vsel %vm745_vm3, %v746_v44, %v744_v22  ;;  %v753_v24 = vand.u32 2147483648, %v6033_v30  ;;  %v4642_v5 = vld [vmem:[%s10574_s1 + $0x78] sm:$0xff]  ;;  %v4645_v2 = vld [vmem:[%s10574_s1 + $0x90] sm:$0xff] }
  0x9d   :  { %10994 = vst [vmem:[#allocation23_spill] sm:$0xff] %v6145_v12  ;;  %10995 = vst [vmem:[#allocation25_spill] sm:$0xff] %v6147_v62  ;;  %v751_v32 = vsel %vm750_vm4, %v6033_v30, %v749_v54  ;;  %vm752_vm5 = vcmp.eq.f32.partialorder %v6033_v30, 0.0  ;;  %v762_v10 = vadd.f32 1e-08, %v740_v20  ;;  %v6171_v35 = vunpack.c.h.bf16 %v4639_v43 }
  0x9e   :  { %10997 = vst [vmem:[#allocation26_spill] sm:$0xff] %v6150_v15  ;;  %v6176_v4 = vunpack.c.h.bf16 %v4641_v39  ;;  %v6178_v56 = vunpack.c.l.bf16 %v4643_v19  ;;  %v891_v44 = vmul.f32 %v6145_v12, %v6145_v12  ;;  %v895_v22 = vmul.f32 %v6147_v62, %v6147_v62 }
  0x9f   :  { %10998 = vst [vmem:[#allocation56_spill] sm:$0xff] %v6171_v35  ;;  %v763_v34 = vadd.f32 1e-08, %v747_v23  ;;  %v6185_v20 = vunpack.c.l.bf16 %v4640_v46  ;;  %v6187_v43 = vunpack.c.l.bf16 %v4642_v5  ;;  %v6191_v3 = vsel %vm752_vm5, %v753_v24, %v751_v32 }
  0xa0   :  { %10999 = vst [vmem:[#allocation57_spill] sm:$0xff] %v6176_v4  ;;  %11000 = vst [vmem:[#allocation58_spill] sm:$0xff] %v6178_v56  ;;  %v6197_v47 = vunpack.c.h.bf16 %v4640_v46  ;;  %v6199_v11 = vunpack.c.h.bf16 %v4642_v5  ;;  %4818 = vrcp.f32 %v762_v10  ;;  %v6201_v23 = vunpack.c.h.bf16 %v4643_v19  ;;  %v4647_v46 = vld [vmem:[%s10574_s1 + $0xa0] sm:$0xff]  ;;  %v11007_v10 = vld [vmem:[#allocation4_spill] sm:$0xff] }
  0xa1   :  { %11001 = vst [vmem:[#allocation59_spill] sm:$0xff] %v6185_v20  ;;  %11002 = vst [vmem:[#allocation60_spill] sm:$0xff] %v6187_v43  ;;  %v6189_v18 = vpop.eup %4808  ;;  %v6203_v0 = vunpack.c.l.bf16 %v4645_v2  ;;  %v892_v24 = vmul.f32 %v6171_v35, %v6171_v35  ;;  %vm757_vm6 = vcmp.eq.f32.partialorder %v6104_v58, inf  ;;  %v896_v5 = vmul.f32 %v6176_v4, %v6176_v4 }
  0xa2   :  { %11003 = vst [vmem:[#allocation61_spill] sm:$0xff] %v6197_v47  ;;  %11004 = vst [vmem:[#allocation62_spill] sm:$0xff] %v6199_v11  ;;  %v4811_v54 = vpop.eup %4810  ;;  %v899_v19 = vmul.f32 %v6178_v56, %v6178_v56  ;;  %v915_v39 = vmul.f32 %v11007_v10, %v891_v44  ;;  %v919_v42 = vmul.f32 %v11008_v48, %v895_v22  ;;  %4820 = vrcp.f32 %v763_v34 }
  0xa3   :  { %11005 = vst [vmem:[#allocation63_spill] sm:$0xff] %v6201_v23  ;;  %11006 = vst [vmem:[#allocation64_spill] sm:$0xff] %v6203_v0  ;;  %v6207_v32 = vpop.eup %4812  ;;  %v6221_v53 = vunpack.c.l.bf16 %v4644_v8  ;;  %v893_v45 = vmul.f32 %v6185_v20, %v6185_v20  ;;  %v897_v26 = vmul.f32 %v6187_v43, %v6187_v43  ;;  %v756_v60 = vmul.f32 %v4811_v54, %v6104_v58  ;;  %v4648_v20 = vld [vmem:[%s10574_s1 + $0xa8] sm:$0xff] }
  0xa4   :  { %v6219_v52 = vpop.eup %4814  ;;  %v6231_v44 = vunpack.c.h.bf16 %v4644_v8  ;;  %v894_v22 = vmul.f32 %v6197_v47, %v6197_v47  ;;  %v898_v34 = vmul.f32 %v6199_v11, %v6199_v11  ;;  %v6239_v28 = vunpack.c.h.bf16 %v4645_v2  ;;  %v4649_v8 = vld [vmem:[%s10574_s1 + $0xb0] sm:$0xff] }
  0xa5   :  { %11009 = vst [vmem:[#allocation5_spill] sm:$0xff] %v6221_v53  ;;  %v6237_v49 = vpop.eup %4816  ;;  %v6241_v16 = vunpack.c.l.bf16 %v4647_v46  ;;  %v900_v54 = vmul.f32 %v6201_v23, %v6201_v23  ;;  %v903_v37 = vmul.f32 %v6203_v0, %v6203_v0  ;;  %vm759_vm7 = vcmp.eq.f32.partialorder %v6104_v58, 0.0 }
  0xa6   :  { %11010 = vst [vmem:[#allocation65_spill] sm:$0xff] %v6231_v44  ;;  %11011 = vst [vmem:[#allocation66_spill] sm:$0xff] %v6239_v28  ;;  %v916_v56 = vmul.f32 %v5379_v50, %v892_v24  ;;  %v920_v11 = vmul.f32 %v5387_v59, %v896_v5  ;;  %v923_v2 = vmul.f32 %v11007_v10, %v899_v19  ;;  %v6254_v43 = vunpack.c.l.bf16 %v4646_v6 }
  0xa7   :  { %11012 = vst [vmem:[#allocation67_spill] sm:$0xff] %v6241_v16  ;;  %v939_v47 = vadd.f32 %v919_v42, %v915_v39  ;;  %v901_v23 = vmul.f32 %v6221_v53, %v6221_v53  ;;  %v917_v0 = vmul.f32 %v5381_v51, %v893_v45  ;;  %v921_v4 = vmul.f32 %v5389_v61, %v897_v26 }
  0xa8   :  { %11013 = vst [vmem:[#allocation68_spill] sm:$0xff] %v6254_v43  ;;  %v6263_v35 = vunpack.c.h.bf16 %v4646_v6  ;;  %v902_v24 = vmul.f32 %v6231_v44, %v6231_v44  ;;  %v918_v42 = vmul.f32 %v5383_v55, %v894_v22  ;;  %v922_v39 = vmul.f32 %v5394_v63, %v898_v34 }
  0xa9   :  { %v6269_v5 = vunpack.c.h.bf16 %v4647_v46  ;;  %v6271_v19 = vunpack.c.l.bf16 %v4649_v8  ;;  %v904_v26 = vmul.f32 %v6239_v28, %v6239_v28  ;;  %v907_v45 = vmul.f32 %v6241_v16, %v6241_v16  ;;  %v4650_v16 = vld [vmem:[%s10574_s1 + $0xb8] sm:$0xff] }
  0xaa   :  { %11014 = vst [vmem:[#allocation69_spill] sm:$0xff] %v6263_v35  ;;  %v924_v6 = vmul.f32 %v5379_v50, %v900_v54  ;;  %v927_v53 = vmul.f32 %v11008_v48, %v903_v37  ;;  %v940_v62 = vadd.f32 %v939_v47, %v923_v2  ;;  %v950_v44 = vadd.f32 %v920_v11, %v916_v56  ;;  %v6279_v12 = vpop.eup %4818 }
  0xab   :  { %11015 = vst [vmem:[#allocation70_spill] sm:$0xff] %v6269_v5  ;;  %11016 = vst [vmem:[#allocation71_spill] sm:$0xff] %v6271_v19  ;;  %v6281_v22 = vunpack.c.l.bf16 %v4648_v20  ;;  %v905_v46 = vmul.f32 %v6254_v43, %v6254_v43  ;;  %v925_v34 = vmul.f32 %v5381_v51, %v901_v23  ;;  %v961_v15 = vadd.f32 %v921_v4, %v917_v0 }
  0xac   :  { %v6289_v28 = vunpack.c.h.bf16 %v4648_v20  ;;  %v906_v37 = vmul.f32 %v6263_v35, %v6263_v35  ;;  %v926_v11 = vmul.f32 %v5383_v55, %v902_v24  ;;  %v972_v47 = vadd.f32 %v922_v39, %v918_v42  ;;  %v6294_v56 = vpop.eup %4820 }
  0xad   :  { %v758_v54 = vsel %vm757_vm6, %v6104_v58, %v756_v60  ;;  %v6299_v23 = vunpack.c.h.bf16 %v4649_v8  ;;  %v908_v0 = vmul.f32 %v6269_v5, %v6269_v5  ;;  %v911_v4 = vmul.f32 %v6271_v19, %v6271_v19 }
  0xae   :  { %v928_v20 = vmul.f32 %v5387_v59, %v904_v26  ;;  %v931_v2 = vmul.f32 %v11007_v10, %v907_v45  ;;  %v941_v24 = vadd.f32 %v940_v62, %v927_v53  ;;  %v951_v42 = vadd.f32 %v950_v44, %v924_v6 }
  0xaf   :  { %v6307_v39 = vunpack.c.l.bf16 %v4650_v16  ;;  %v909_v35 = vmul.f32 %v6281_v22, %v6281_v22  ;;  %v929_v60 = vmul.f32 %v5389_v61, %v905_v46  ;;  %v962_v8 = vadd.f32 %v961_v15, %v925_v34 }
  0xb0   :  { %v6312_v43 = vunpack.c.h.bf16 %v4650_v16  ;;  %v910_v5 = vmul.f32 %v6289_v28, %v6289_v28  ;;  %v930_v19 = vmul.f32 %v5394_v63, %v906_v37  ;;  %v973_v26 = vadd.f32 %v972_v47, %v926_v11 }
  0xb1   :  { %v11017_v53 = vrot.slane %v6117_v33, 4  ;;  %v728_v44 = vrot.slane %v6160_v41, 4  ;;  %v11018_v45 = vand.u32 2147483648, %v6104_v58  ;;  %v912_v16 = vmul.f32 %v6299_v23, %v6299_v23 }
  0xb2   :  { %v932_v15 = vmul.f32 %v5379_v50, %v908_v0  ;;  %v935_v46 = vmul.f32 %v11008_v48, %v911_v4  ;;  %v942_v34 = vadd.f32 %v941_v24, %v931_v2  ;;  %v952_v37 = vadd.f32 %v951_v42, %v928_v20 }
  0xb3   :  { %v722_v62 = vadd.f32 %v11017_v53, %v6117_v33  ;;  %v761_v6 = vsel %vm759_vm7, %v11018_v45, %v758_v54  ;;  %vm608_vm8 = vcmp.eq.f32.partialorder %v6098_v29, inf  ;;  %v764_v33 = vadd.f32 1e-08, %v6191_v3 }
  0xb4   :  { %v913_v11 = vmul.f32 %v6307_v39, %v6307_v39  ;;  %v933_v47 = vmul.f32 %v5381_v51, %v909_v35  ;;  %v963_v53 = vadd.f32 %v962_v8, %v929_v60  ;;  %v11019_v54 = vrot.slane %v6137_v14, 2 }
  0xb5   :  { %v914_v0 = vmul.f32 %v6312_v43, %v6312_v43  ;;  %v934_v4 = vmul.f32 %v5383_v55, %v910_v5  ;;  %v974_v20 = vadd.f32 %v973_v26, %v930_v19  ;;  %v611_v2 = vand.u32 2147483648, %v6098_v29 }
  0xb6   :  { %v710_v45 = vadd.f32 %v11019_v54, %v6137_v14  ;;  %v11020_v3 = vrot.slane %v6153_v38, 2  ;;  %v729_v42 = vadd.f32 %v728_v44, %v6160_v41  ;;  %v765_v35 = vadd.f32 1e-08, %v761_v6 }
  0xb7   :  { %vm615_vm9 = vcmp.eq.f32.partialorder %v6110_v25, inf  ;;  %v936_v60 = vmul.f32 %v5387_v59, %v912_v16  ;;  %v943_v14 = vadd.f32 %v942_v34, %v935_v46  ;;  %v953_v8 = vadd.f32 %v952_v37, %v932_v15 }
  0xb8   :  { %v717_v24 = vadd.f32 %v11020_v3, %v6153_v38  ;;  %vm610_vm10 = vcmp.eq.f32.partialorder %v6098_v29, 0.0  ;;  %vm617_vm11 = vcmp.eq.f32.partialorder %v6110_v25, 0.0  ;;  %v723_v5 = vrot.slane %v722_v62, 2 }
  0xb9   :  { %4822 = vrcp.f32 %v764_v33  ;;  %v937_v19 = vmul.f32 %v5389_v61, %v913_v11  ;;  %v964_v26 = vadd.f32 %v963_v53, %v933_v47  ;;  %v618_v38 = vand.u32 2147483648, %v6110_v25 }
  0xba   :  { %v711_v54 = vrot.slane %v710_v45, 1  ;;  %v938_v41 = vmul.f32 %v5394_v63, %v914_v0  ;;  %v975_v44 = vadd.f32 %v974_v20, %v934_v4  ;;  %vm622_vm12 = vcmp.eq.f32.partialorder %v6113_v13, inf }
  0xbb   :  { %v718_v6 = vrot.slane %v717_v24, 1  ;;  %v730_v16 = vrot.slane %v729_v42, 2  ;;  %4824 = vrcp.f32 %v765_v35  ;;  %v607_v15 = vmul.f32 %v6189_v18, %v6098_v29 }
  0xbc   :  { %v614_v46 = vmul.f32 %v6207_v32, %v6110_v25  ;;  %v944_v34 = vrot.slane %v943_v14, 4  ;;  %v954_v37 = vadd.f32 %v953_v8, %v936_v60  ;;  %v625_v33 = vand.u32 2147483648, %v6113_v13 }
  0xbd   :  { %vm629_vm13 = vcmp.eq.f32.partialorder %v6120_v9, inf  ;;  %v724_v11 = vadd.f32 %v723_v5, %v722_v62  ;;  %v965_v47 = vadd.f32 %v964_v26, %v937_v19  ;;  %vm624_vm14 = vcmp.eq.f32.partialorder %v6113_v13, 0.0 }
  0xbe   :  { %vm631_vm15 = vcmp.eq.f32.partialorder %v6120_v9, 0.0  ;;  %v712_v53 = vadd.f32 %v711_v54, %v710_v45  ;;  %v774_v0 = vmul.f32 %v6279_v12, %v6279_v12  ;;  %v976_v18 = vadd.f32 %v975_v44, %v938_v41 }
  0xbf   :  { %v632_v4 = vand.u32 2147483648, %v6120_v9  ;;  %v719_v32 = vadd.f32 %v718_v6, %v717_v24  ;;  %v731_v20 = vadd.f32 %v730_v16, %v729_v42  ;;  %v775_v3 = vmul.f32 %v6294_v56, %v6294_v56 }
  0xc0   :  { %v609_v62 = vsel %vm608_vm8, %v6098_v29, %v607_v15  ;;  %v616_v35 = vsel %vm615_vm9, %v6110_v25, %v614_v46  ;;  %v945_v45 = vadd.f32 %v944_v34, %v943_v14  ;;  %v955_v60 = vrot.slane %v954_v37, 4 }
  0xc1   :  { %v621_v8 = vmul.f32 %v6219_v52, %v6113_v13  ;;  %v628_v24 = vmul.f32 %v6237_v49, %v6120_v9  ;;  %v725_v42 = vrot.slane %v724_v11, 1  ;;  %v966_v5 = vrot.slane %v965_v47, 4 }
  0xc2   :  { %v778_v19 = vmul.f32 %v774_v0, %v6015_v21  ;;  %v786_v26 = vmul.f32 2.0, %v712_v53  ;;  %v790_v54 = vmul.f32 %v6279_v12, %v6041_v1  ;;  %v977_v41 = vrot.slane %v976_v18, 4  ;;  %v11066_v1 = vld [vmem:[#allocation27_spill] sm:$0xff] }
  0xc3   :  { %v4823_v44 = vpop.eup %4822  ;;  %v732_v6 = vrot.slane %v731_v20, 1  ;;  %v779_v14 = vmul.f32 %v775_v3, %v6020_v17  ;;  %v787_v16 = vmul.f32 2.0, %v719_v32  ;;  %v791_v52 = vmul.f32 %v6294_v56, %v6053_v7 }
  0xc4   :  { %v612_v49 = vsel %vm610_vm10, %v611_v2, %v609_v62  ;;  %v619_v15 = vsel %vm617_vm11, %v618_v38, %v616_v35  ;;  %v946_v21 = vrot.slane %v945_v45, 2  ;;  %v956_v46 = vadd.f32 %v955_v60, %v954_v37 }
  0xc5   :  { %v4825_v34 = vpop.eup %4824  ;;  %v623_v12 = vsel %vm622_vm12, %v6113_v13, %v621_v8  ;;  %v630_v17 = vsel %vm629_vm13, %v6120_v9, %v628_v24  ;;  %v726_v53 = vadd.f32 %v725_v42, %v724_v11  ;;  %v967_v0 = vadd.f32 %v966_v5, %v965_v47 }
  0xc6   :  { %v776_v56 = vmul.f32 %v4823_v44, %v4823_v44  ;;  %v782_v29 = vadd.f32 %v778_v19, %v6096_v27  ;;  %v794_v2 = vmul.f32 %v790_v54, %v786_v26  ;;  %v978_v32 = vadd.f32 %v977_v41, %v976_v18  ;;  %v11021_v19 = vld [vmem:[#allocation31_spill] sm:$0xff] }
  0xc7   :  { %v634_v25 = vsub.f32 2.0, %v612_v49  ;;  %v733_v38 = vadd.f32 %v732_v6, %v731_v20  ;;  %v783_v37 = vadd.f32 %v779_v14, %v6108_v31  ;;  %v795_v3 = vmul.f32 %v791_v52, %v787_v16  ;;  %v11023_v16 = vld [vmem:[#allocation26_spill] sm:$0xff] }
  0xc8   :  { %v635_v62 = vsub.f32 2.0, %v619_v15  ;;  %v777_v35 = vmul.f32 %v4825_v34, %v4825_v34  ;;  %v947_v60 = vadd.f32 %v946_v21, %v945_v45  ;;  %v957_v8 = vrot.slane %v956_v46, 2 }
  0xc9   :  { %v6396_v7 = vsel %vm624_vm14, %v625_v33, %v623_v12  ;;  %v6400_v11 = vsel %vm631_vm15, %v632_v4, %v630_v17  ;;  %v788_v47 = vmul.f32 2.0, %v726_v53  ;;  %v968_v24 = vrot.slane %v967_v0, 2  ;;  %v11026_v17 = vld [vmem:[#allocation11_spill] sm:$0xff]  ;;  %v11027_v53 = vld [vmem:[#allocation25_spill] sm:$0xff] }
  0xca   :  { %v780_v18 = vmul.f32 %v776_v56, %v6033_v30  ;;  %v792_v20 = vmul.f32 %v4823_v44, %v6059_v57  ;;  %v798_v42 = vsub.f32 %v782_v29, %v794_v2  ;;  %v979_v5 = vrot.slane %v978_v32, 2  ;;  %v11042_v44 = vld [vmem:[#allocation19_spill] sm:$0xff] }
  0xcb   :  { %v6406_v45 = vmul.f32 %v6102_v36, %v11021_v19  ;;  %v789_v26 = vmul.f32 2.0, %v733_v38  ;;  %v793_v13 = vmul.f32 %v4825_v34, %v6070_v40  ;;  %v799_v33 = vsub.f32 %v783_v37, %v795_v3  ;;  %v11025_v34 = vld [vmem:[#allocation23_spill] sm:$0xff]  ;;  %v11029_v38 = vld [vmem:[#allocation56_spill] sm:$0xff]  ;;  %v11030_v3 = vld [vmem:[#allocation9_spill] sm:$0xff] }
  0xcc   :  { %v6409_v54 = vmul.f32 0.5, %v634_v25  ;;  %v781_v9 = vmul.f32 %v777_v35, %v6104_v58  ;;  %v948_v4 = vrot.slane %v947_v60, 1  ;;  %v958_v41 = vadd.f32 %v957_v8, %v956_v46  ;;  %v11024_v46 = vld [vmem:[#allocation7_spill] sm:$0xff]  ;;  %v11028_v25 = vld [vmem:[#allocation8_spill] sm:$0xff]  ;;  %v11036_v19 = vld [vmem:[#allocation10_spill] sm:$0xff] }
  0xcd   :  { %11022 = vst [vmem:[#allocation31_spill] sm:$0xff] %v6406_v45  ;;  %v6414_v6 = vmul.f32 0.5, %v635_v62  ;;  %v969_v14 = vadd.f32 %v968_v24, %v967_v0  ;;  %v6417_v36 = vadd.f32 %v780_v18, %v11023_v16  ;;  %v6419_v52 = vmul.f32 %v792_v20, %v788_v47  ;;  %v11031_v62 = vld [vmem:[#allocation59_spill] sm:$0xff]  ;;  %v11032_v8 = vld [vmem:[#allocation12_spill] sm:$0xff]  ;;  %v11033_v47 = vld [vmem:[#allocation57_spill] sm:$0xff] }
  0xce   :  { %v6421_v49 = vmax.f32 %v798_v42, 0.0  ;;  %v980_v15 = vadd.f32 %v979_v5, %v978_v32  ;;  %v6423_v21 = vmul.f32 %v793_v13, %v789_v26  ;;  %v6425_v58 = vmax.f32 %v799_v33, 0.0  ;;  %v11034_v18 = vld [vmem:[#allocation13_spill] sm:$0xff]  ;;  %v11035_v20 = vld [vmem:[#allocation60_spill] sm:$0xff]  ;;  %v11038_v13 = vld [vmem:[#allocation14_spill] sm:$0xff] }
  0xcf   :  { %v983_v12 = vmul.f32 %v11025_v34, %v11024_v46  ;;  %v987_v56 = vmul.f32 %v11027_v53, %v11026_v17  ;;  %v6432_v0 = vadd.f32 %v781_v9, %v6406_v45  ;;  %v6434_v29 = vadd.f32 %v948_v4, %v947_v60  ;;  %v11037_v60 = vld [vmem:[#allocation61_spill] sm:$0xff]  ;;  %v11039_v33 = vld [vmem:[#allocation62_spill] sm:$0xff]  ;;  %v11043_v30 = vld [vmem:[#allocation63_spill] sm:$0xff] }
  0xd0   :  { %v959_v2 = vrot.slane %v958_v41, 1  ;;  %v984_v37 = vmul.f32 %v11029_v38, %v11028_v25  ;;  %v970_v32 = vrot.slane %v969_v14, 1  ;;  %v985_v35 = vmul.f32 %v11031_v62, %v11030_v3  ;;  %v11040_v34 = vld [vmem:[#allocation18_spill] sm:$0xff]  ;;  %v4653_v4 = vld [vmem:[%s10575_s4 + $0x30] sm:$0xff]  ;;  %v11050_v17 = vld [vmem:[#allocation47_spill] sm:$0xff] }
  0xd1   :  { %v988_v24 = vmul.f32 %v11033_v47, %v11032_v8  ;;  %v989_v42 = vmul.f32 %v11035_v20, %v11034_v18  ;;  %4826 = vrsqrt.f32 %v6421_v49  ;;  %v981_v5 = vrot.slane %v980_v15, 1  ;;  %v11041_v53 = vld [vmem:[#allocation58_spill] sm:$0xff]  ;;  %v11049_v18 = vld [vmem:[#allocation64_spill] sm:$0xff]  ;;  %v11065_v40 = vld [vmem:[#allocation55_spill] sm:$0xff] }
  0xd2   :  { %v986_v26 = vmul.f32 %v11037_v60, %v11036_v19  ;;  %v990_v9 = vmul.f32 %v11039_v33, %v11038_v13  ;;  %4828 = vrsqrt.f32 %v6425_v58  ;;  %v991_v38 = vmul.f32 %v11041_v53, %v11040_v34  ;;  %v4651_v33 = vld [vmem:[%s10575_s4 + $0x20] sm:$0xff] }
  0xd3   :  { %v1007_v62 = vadd.f32 %v987_v56, %v983_v12  ;;  %v6456_v20 = vadd.f32 %v959_v2, %v958_v41  ;;  %v992_v60 = vmul.f32 %v11043_v30, %v11042_v44  ;;  %4830 = vrsqrt.f32 %v6434_v29  ;;  %v11044_v12 = vld [vmem:[#allocation44_spill] sm:$0xff]  ;;  %v11045_v56 = vld [vmem:[#allocation5_spill] sm:$0xff]  ;;  %v11048_v19 = vld [vmem:[#allocation46_spill] sm:$0xff] }
  0xd4   :  { %v6467_v53 = vadd.f32 %v970_v32, %v969_v14  ;;  %v993_v47 = vmul.f32 %v11045_v56, %v11044_v12  ;;  %v1018_v41 = vadd.f32 %v988_v24, %v984_v37  ;;  %v1029_v2 = vadd.f32 %v989_v42, %v985_v35  ;;  %v11046_v30 = vld [vmem:[#allocation45_spill] sm:$0xff]  ;;  %v11051_v25 = vld [vmem:[#allocation66_spill] sm:$0xff]  ;;  %v6482_v14 = vld [vmem:[%s10575_s4 + $0x28] sm:$0xff] }
  0xd5   :  { %v6471_v34 = vadd.f32 %v981_v5, %v980_v15  ;;  %v11047_v44 = vld [vmem:[#allocation65_spill] sm:$0xff]  ;;  %v995_v8 = vmul.f32 %v11049_v18, %v11048_v19  ;;  %v1040_v3 = vadd.f32 %v990_v9, %v986_v26  ;;  %v996_v46 = vmul.f32 %v11051_v25, %v11050_v17  ;;  %v11052_v32 = vld [vmem:[#allocation48_spill] sm:$0xff]  ;;  %v11064_v12 = vld [vmem:[#allocation71_spill] sm:$0xff] }
  0xd6   :  { %v994_v13 = vmul.f32 %v11047_v44, %v11046_v30  ;;  %v1008_v45 = vadd.f32 %v1007_v62, %v991_v38  ;;  %v6487_v15 = vld [vmem:[%s10575_s4 + $0x38] sm:$0xff]  ;;  %v6489_v37 = vunpack.c.l.bf16 %v4651_v33  ;;  %v6491_v44 = vunpack.c.l.bf16 %v4653_v4  ;;  %v11053_v35 = vld [vmem:[#allocation68_spill] sm:$0xff]  ;;  %v11063_v30 = vld [vmem:[#allocation54_spill] sm:$0xff] }
  0xd7   :  { %v997_v24 = vmul.f32 %v11053_v35, %v11052_v32  ;;  %4832 = vrsqrt.f32 %v6456_v20  ;;  %v6496_v25 = vunpack.c.h.bf16 %v4651_v33  ;;  %v6498_v18 = vunpack.c.h.bf16 %v4653_v4  ;;  %v11055_v42 = vld [vmem:[#allocation49_spill] sm:$0xff]  ;;  %v11057_v33 = vld [vmem:[#allocation50_spill] sm:$0xff]  ;;  %v11058_v32 = vld [vmem:[#allocation67_spill] sm:$0xff] }
  0xd8   :  { %v11056_v5 = vld [vmem:[#allocation69_spill] sm:$0xff]  ;;  %v1019_v9 = vadd.f32 %v1018_v41, %v992_v60  ;;  %v1030_v38 = vadd.f32 %v1029_v2, %v993_v47  ;;  %4834 = vrsqrt.f32 %v6467_v53  ;;  %v1041_v62 = vadd.f32 %v1040_v3, %v994_v13  ;;  %v11059_v3 = vld [vmem:[#allocation51_spill] sm:$0xff]  ;;  %v11060_v13 = vld [vmem:[#allocation70_spill] sm:$0xff] }
  0xd9   :  { %11054 = vst [vmem:[#allocation23_spill] sm:$0xff] %v6498_v18  ;;  %v998_v26 = vmul.f32 %v11056_v5, %v11055_v42  ;;  %4836 = vrsqrt.f32 %v6471_v34  ;;  %v6505_v56 = vunpack.c.l.bf16 %v6482_v14  ;;  %v6508_v35 = vunpack.c.l.bf16 %v6487_v15  ;;  %v11061_v2 = vld [vmem:[#allocation52_spill] sm:$0xff] }
  0xda   :  { %v999_v4 = vmul.f32 %v11058_v32, %v11057_v33  ;;  %v1009_v17 = vadd.f32 %v1008_v45, %v995_v8  ;;  %v1172_v5 = vmul.f32 %v6489_v37, %v6489_v37  ;;  %v1176_v47 = vmul.f32 %v6491_v44, %v6491_v44  ;;  %v11062_v32 = vld [vmem:[#allocation53_spill] sm:$0xff] }
  0xdb   :  { %v6516_v60 = vpop.eup %4826  ;;  %v1000_v41 = vmul.f32 %v11060_v13, %v11059_v3  ;;  %v1001_v42 = vmul.f32 %v6281_v22, %v11061_v2  ;;  %v1173_v19 = vmul.f32 %v6496_v25, %v6496_v25  ;;  %v1177_v45 = vmul.f32 %v6498_v18, %v6498_v18 }
  0xdc   :  { %v6526_v8 = vpop.eup %4828  ;;  %v1002_v33 = vmul.f32 %v6289_v28, %v11062_v32  ;;  %v1003_v16 = vmul.f32 %v11064_v12, %v11063_v30  ;;  %v1004_v13 = vmul.f32 %v6299_v23, %v11065_v40  ;;  %v1020_v3 = vadd.f32 %v1019_v9, %v996_v46  ;;  %v11067_v30 = vld [vmem:[#allocation30_spill] sm:$0xff] }
  0xdd   :  { %v4831_v31 = vpop.eup %4830  ;;  %v1031_v22 = vadd.f32 %v1030_v38, %v997_v24  ;;  %v1042_v2 = vadd.f32 %v1041_v62, %v998_v26  ;;  %v1174_v57 = vmul.f32 %v6505_v56, %v6505_v56  ;;  %v1178_v27 = vmul.f32 %v6508_v35, %v6508_v35 }
  0xde   :  { %v1005_v18 = vmul.f32 %v6307_v39, %v11066_v1  ;;  %v1010_v28 = vadd.f32 %v1009_v17, %v999_v4  ;;  %v1180_v32 = vmul.f32 %v11007_v10, %v1172_v5  ;;  %v1184_v12 = vmul.f32 %v11008_v48, %v1176_v47 }
  0xdf   :  { %v1006_v23 = vmul.f32 %v6312_v43, %v11067_v30  ;;  %vm1053_vm0 = vcmp.eq.f32.partialorder %v6434_v29, inf  ;;  %v1181_v46 = vmul.f32 %v5379_v50, %v1173_v19  ;;  %v1185_v24 = vmul.f32 %v5387_v59, %v1177_v45 }
  0xe0   :  { %v1021_v26 = vadd.f32 %v1020_v3, %v1000_v41  ;;  %v1052_v9 = vmul.f32 %v4831_v31, %v6434_v29  ;;  %vm1055_vm1 = vcmp.eq.f32.partialorder %v6434_v29, 0.0  ;;  %v1056_v39 = vand.u32 2147483648, %v6434_v29 }
  0xe1   :  { %v4833_v17 = vpop.eup %4832  ;;  %v1032_v38 = vadd.f32 %v1031_v22, %v1001_v42  ;;  %v1043_v62 = vadd.f32 %v1042_v2, %v1002_v33  ;;  %v1182_v4 = vmul.f32 %v5381_v51, %v1174_v57  ;;  %v1186_v43 = vmul.f32 %v5389_v61, %v1178_v27 }
  0xe2   :  { %v4835_v5 = vpop.eup %4834  ;;  %v1011_v47 = vadd.f32 %v1010_v28, %v1003_v16  ;;  %vm1060_vm2 = vcmp.eq.f32.partialorder %v6456_v20, inf  ;;  %vm1062_vm3 = vcmp.eq.f32.partialorder %v6456_v20, 0.0  ;;  %v1188_v19 = vadd.f32 %v1184_v12, %v1180_v32 }
  0xe3   :  { %v4837_v3 = vpop.eup %4836  ;;  %v1063_v31 = vand.u32 2147483648, %v6456_v20  ;;  %vm1067_vm4 = vcmp.eq.f32.partialorder %v6467_v53, inf  ;;  %vm1069_vm5 = vcmp.eq.f32.partialorder %v6467_v53, 0.0  ;;  %v1195_v42 = vadd.f32 %v1185_v24, %v1181_v46 }
  0xe4   :  { %v1022_v33 = vadd.f32 %v1021_v26, %v1004_v13  ;;  %v1054_v57 = vsel %vm1053_vm0, %v6434_v29, %v1052_v9  ;;  %v1059_v27 = vmul.f32 %v4833_v17, %v6456_v20  ;;  %v1070_v16 = vand.u32 2147483648, %v6467_v53 }
  0xe5   :  { %v1033_v41 = vadd.f32 %v1032_v38, %v1005_v18  ;;  %v1044_v2 = vadd.f32 %v1043_v62, %v1006_v23  ;;  %v1066_v45 = vmul.f32 %v4835_v5, %v6467_v53  ;;  %v1202_v32 = vadd.f32 %v1186_v43, %v1182_v4 }
  0xe6   :  { %v1012_v22 = vrot.slane %v1011_v47, 4  ;;  %v1073_v28 = vmul.f32 %v4837_v3, %v6471_v34  ;;  %vm1074_vm6 = vcmp.eq.f32.partialorder %v6471_v34, inf  ;;  %v1189_v12 = vrot.slane %v1188_v19, 4 }
  0xe7   :  { %v1057_v13 = vsel %vm1055_vm1, %v1056_v39, %v1054_v57  ;;  %vm1076_vm7 = vcmp.eq.f32.partialorder %v6471_v34, 0.0  ;;  %v1077_v46 = vand.u32 2147483648, %v6471_v34  ;;  %v1196_v24 = vrot.slane %v1195_v42, 4 }
  0xe8   :  { %v1023_v26 = vrot.slane %v1022_v33, 4  ;;  %v1061_v18 = vsel %vm1060_vm2, %v6456_v20, %v1059_v27  ;;  %v6573_v23 = vunpack.c.h.bf16 %v6482_v14  ;;  %v6576_v9 = vunpack.c.h.bf16 %v6487_v15 }
  0xe9   :  { %v1034_v17 = vrot.slane %v1033_v41, 4  ;;  %v1045_v38 = vrot.slane %v1044_v2, 4  ;;  %v1068_v39 = vsel %vm1067_vm4, %v6467_v53, %v1066_v45  ;;  %v1203_v62 = vrot.slane %v1202_v32, 4 }
  0xea   :  { %v1013_v4 = vadd.f32 %v1012_v22, %v1011_v47  ;;  %v1075_v43 = vsel %vm1074_vm6, %v6471_v34, %v1073_v28  ;;  %v1079_v5 = vadd.f32 1e-08, %v1057_v13  ;;  %v1190_v3 = vadd.f32 %v1189_v12, %v1188_v19 }
  0xeb   :  { %v11068_v57 = vsub.f32 %v6417_v36, %v6419_v52  ;;  %v11069_v15 = vsub.f32 %v6432_v0, %v6423_v21  ;;  %v1064_v30 = vsel %vm1062_vm3, %v1063_v31, %v1061_v18  ;;  %v1197_v45 = vadd.f32 %v1196_v24, %v1195_v42 }
  0xec   :  { %v1024_v1 = vadd.f32 %v1023_v26, %v1022_v33  ;;  %v1071_v47 = vsel %vm1069_vm5, %v1070_v16, %v1068_v39  ;;  %v1175_v19 = vmul.f32 %v6573_v23, %v6573_v23  ;;  %v1179_v36 = vmul.f32 %v6576_v9, %v6576_v9 }
  0xed   :  { %v6585_v14 = vmax.f32 %v11068_v57, 0.0  ;;  %v6590_v27 = vmax.f32 %v11069_v15, 0.0  ;;  %v1035_v52 = vadd.f32 %v1034_v17, %v1033_v41  ;;  %v1046_v22 = vadd.f32 %v1045_v38, %v1044_v2 }
  0xee   :  { %v1078_v21 = vsel %vm1076_vm7, %v1077_v46, %v1075_v43  ;;  %v1204_v0 = vadd.f32 %v1203_v62, %v1202_v32  ;;  %v1014_v28 = vrot.slane %v1013_v4, 2  ;;  %v1080_v12 = vadd.f32 1e-08, %v1064_v30 }
  0xef   :  { %4838 = vrcp.f32 %v1079_v5  ;;  %v1191_v31 = vrot.slane %v1190_v3, 2  ;;  %v11070_v42 = vsub.f32 2.0, %v6396_v7  ;;  %v1081_v16 = vadd.f32 1e-08, %v1071_v47 }
  0xf0   :  { %4840 = vrsqrt.f32 %v6585_v14  ;;  %v1198_v13 = vrot.slane %v1197_v45, 2  ;;  %v1082_v24 = vadd.f32 1e-08, %v1078_v21  ;;  %v1183_v41 = vmul.f32 %v5383_v55, %v1175_v19 }
  0xf1   :  { %v640_v33 = vmul.f32 0.5, %v11070_v42  ;;  %4842 = vrsqrt.f32 %v6590_v27  ;;  %v1187_v2 = vmul.f32 %v5394_v63, %v1179_v36  ;;  %v1025_v46 = vrot.slane %v1024_v1, 2 }
  0xf2   :  { %v1036_v32 = vrot.slane %v1035_v52, 2  ;;  %v1047_v26 = vrot.slane %v1046_v22, 2  ;;  %v1205_v30 = vrot.slane %v1204_v0, 2  ;;  %v11071_v18 = vsub.f32 2.0, %v6400_v11 }
  0xf3   :  { %v1015_v7 = vadd.f32 %v1014_v28, %v1013_v4  ;;  %4844 = vrcp.f32 %v1080_v12  ;;  %v1192_v38 = vadd.f32 %v1191_v31, %v1190_v3  ;;  %v6613_v39 = vmul.f32 0.3, %v6409_v54 }
  0xf4   :  { %v6610_v17 = vmul.f32 0.5, %v11071_v18  ;;  %v6616_v62 = vmul.f32 0.3, %v6414_v6  ;;  %4846 = vrcp.f32 %v1081_v16  ;;  %v1199_v43 = vadd.f32 %v1198_v13, %v1197_v45  ;;  %v11075_v18 = vld [vmem:[#allocation2_spill] sm:$0xff] }
  0xf5   :  { %11072 = vst [vmem:[#allocation25_spill] sm:$0xff] %v6613_v39  ;;  %v807_v5 = vmul.f32 %v6516_v60, %v6421_v49  ;;  %vm808_vm8 = vcmp.eq.f32.partialorder %v6421_v49, inf  ;;  %4848 = vrcp.f32 %v1082_v24  ;;  %v1209_v11 = vadd.f32 %v1187_v2, %v1183_v41 }
  0xf6   :  { %11073 = vst [vmem:[#allocation56_spill] sm:$0xff] %v6616_v62  ;;  %v1026_v57 = vadd.f32 %v1025_v46, %v1024_v1  ;;  %v1037_v15 = vadd.f32 %v1036_v32, %v1035_v52  ;;  %v1048_v4 = vadd.f32 %v1047_v26, %v1046_v22  ;;  %v1206_v47 = vadd.f32 %v1205_v30, %v1204_v0 }
  0xf7   :  { %vm810_vm9 = vcmp.eq.f32.partialorder %v6421_v49, 0.0  ;;  %v6622_v54 = vmul.f32 0.3, %v640_v33  ;;  %v1016_v3 = vrot.slane %v1015_v7, 1  ;;  %v1193_v6 = vrot.slane %v1192_v38, 1 }
  0xf8   :  { %v811_v19 = vand.u32 2147483648, %v6421_v49  ;;  %v814_v45 = vmul.f32 %v6526_v8, %v6425_v58  ;;  %vm815_vm10 = vcmp.eq.f32.partialorder %v6425_v58, inf  ;;  %v1200_v60 = vrot.slane %v1199_v43, 1 }
  0xf9   :  { %11074 = vst [vmem:[#allocation59_spill] sm:$0xff] %v6622_v54  ;;  %v4839_v36 = vpop.eup %4838  ;;  %v809_v1 = vsel %vm808_vm8, %v6421_v49, %v807_v5  ;;  %vm817_vm11 = vcmp.eq.f32.partialorder %v6425_v58, 0.0  ;;  %v818_v52 = vand.u32 2147483648, %v6425_v58  ;;  %v1210_v22 = vrot.slane %v1209_v11, 4 }
  0xfa   :  { %v4841_v21 = vpop.eup %4840  ;;  %v1027_v0 = vrot.slane %v1026_v57, 1  ;;  %v1038_v28 = vrot.slane %v1037_v15, 1  ;;  %v1049_v12 = vrot.slane %v1048_v4, 1  ;;  %v1207_v31 = vrot.slane %v1206_v47, 1 }
  0xfb   :  { %v4843_v42 = vpop.eup %4842  ;;  %v1017_v16 = vadd.f32 %v1016_v3, %v1015_v7  ;;  %v6635_v13 = vadd.f32 %v1193_v6, %v1192_v38  ;;  %v6639_v24 = vsel %vm810_vm9, %v811_v19, %v809_v1  ;;  %v816_v41 = vsel %vm815_vm10, %v6425_v58, %v814_v45  ;;  %v11076_v38 = vld [vmem:[#allocation35_spill] sm:$0xff]  ;;  %v11077_v1 = vld [vmem:[#allocation41_spill] sm:$0xff] }
  0xfc   :  { %vm822_vm12 = vcmp.eq.f32.partialorder %v6585_v14, inf  ;;  %v1091_v2 = vmul.f32 %v4839_v36, %v4839_v36  ;;  %v6645_v46 = vadd.f32 %v1200_v60, %v1199_v43  ;;  %v821_v26 = vmul.f32 %v4841_v21, %v6585_v14 }
  0xfd   :  { %v4845_v32 = vpop.eup %4844  ;;  %v1211_v30 = vadd.f32 %v1210_v22, %v1209_v11  ;;  %v1216_v7 = vmul.f32 %v6489_v37, %v11075_v18  ;;  %v1220_v49 = vmul.f32 %v6491_v44, %v11076_v38  ;;  %vm829_vm13 = vcmp.eq.f32.partialorder %v6590_v27, inf  ;;  %v11078_v11 = vld [vmem:[#allocation42_spill] sm:$0xff]  ;;  %v11079_v22 = vld [vmem:[#allocation23_spill] sm:$0xff] }
  0xfe   :  { %v4847_v5 = vpop.eup %4846  ;;  %v1028_v3 = vadd.f32 %v1027_v0, %v1026_v57  ;;  %v1039_v6 = vadd.f32 %v1038_v28, %v1037_v15  ;;  %v1050_v19 = vadd.f32 %v1049_v12, %v1048_v4  ;;  %v6653_v45 = vadd.f32 %v1207_v31, %v1206_v47  ;;  %v11080_v57 = vld [vmem:[#allocation28_spill] sm:$0xff] }
  0xff   :  { %v4849_v43 = vpop.eup %4848  ;;  %v1103_v60 = vmul.f32 2.0, %v1017_v16  ;;  %v1217_v21 = vmul.f32 %v6496_v25, %v11077_v1  ;;  %v1221_v33 = vmul.f32 %v11079_v22, %v11078_v11  ;;  %4850 = vrsqrt.f32 %v6635_v13  ;;  %v11082_v22 = vld [vmem:[#allocation29_spill] sm:$0xff] }
 0x100   :  { %vm824_vm14 = vcmp.eq.f32.partialorder %v6585_v14, 0.0  ;;  %v1092_v37 = vmul.f32 %v4845_v32, %v4845_v32  ;;  %v1095_v44 = vmul.f32 %v1091_v2, %v6434_v29  ;;  %v1107_v15 = vmul.f32 %v4839_v36, %v11080_v57  ;;  %v11083_v11 = vld [vmem:[#allocation21_spill] sm:$0xff] }
 0x101   :  { %4852 = vrsqrt.f32 %v6645_v46  ;;  %v6666_v4 = vsel %vm817_vm11, %v818_v52, %v816_v41  ;;  %vm831_vm15 = vcmp.eq.f32.partialorder %v6590_v27, 0.0  ;;  %v834_v25 = vsub.f32 2.0, %v6639_v24  ;;  %v11081_v52 = vld [vmem:[#allocation36_spill] sm:$0xff] }
 0x102   :  { %v1212_v47 = vrot.slane %v1211_v30, 2  ;;  %v1224_v0 = vadd.f32 %v1220_v49, %v1216_v7  ;;  %v828_v28 = vmul.f32 %v4843_v42, %v6590_v27  ;;  %v1093_v12 = vmul.f32 %v4847_v5, %v4847_v5  ;;  %v11084_v42 = vld [vmem:[#allocation33_spill] sm:$0xff] }
 0x103   :  { %v1094_v31 = vmul.f32 %v4849_v43, %v4849_v43  ;;  %4854 = vrsqrt.f32 %v6653_v45  ;;  %v1104_v29 = vmul.f32 2.0, %v1028_v3  ;;  %v1105_v36 = vmul.f32 2.0, %v1039_v6 }
 0x104   :  { %v1106_v16 = vmul.f32 2.0, %v1050_v19  ;;  %v1231_v2 = vadd.f32 %v1221_v33, %v1217_v21  ;;  %v1096_v58 = vmul.f32 %v1092_v37, %v6456_v20  ;;  %v1099_v41 = vadd.f32 %v1095_v44, %v11081_v52  ;;  %v11085_v33 = vld [vmem:[#allocation32_spill] sm:$0xff]  ;;  %v11086_v20 = vld [vmem:[#allocation34_spill] sm:$0xff]  ;;  %v11091_v52 = vld [vmem:[#allocation39_spill] sm:$0xff] }
 0x105   :  { %v1108_v8 = vmul.f32 %v4845_v32, %v11082_v22  ;;  %v1111_v57 = vmul.f32 %v1107_v15, %v1103_v60  ;;  %v1213_v24 = vadd.f32 %v1212_v47, %v1211_v30  ;;  %v1218_v7 = vmul.f32 %v6505_v56, %v11083_v11  ;;  %v11087_v30 = vld [vmem:[#allocation16_spill] sm:$0xff] }
 0x106   :  { %v1222_v49 = vmul.f32 %v6508_v35, %v11084_v42  ;;  %v1225_v1 = vrot.slane %v1224_v0, 4  ;;  %v1097_v3 = vmul.f32 %v1093_v12, %v6467_v53  ;;  %v1098_v6 = vmul.f32 %v1094_v31, %v6471_v34  ;;  %v11088_v56 = vld [vmem:[#allocation20_spill] sm:$0xff]  ;;  %v11089_v53 = vld [vmem:[#allocation37_spill] sm:$0xff] }
 0x107   :  { %v1109_v19 = vmul.f32 %v4847_v5, %v11085_v33  ;;  %v1110_v21 = vmul.f32 %v4849_v43, %v11086_v20  ;;  %v823_v32 = vsel %vm822_vm12, %v6585_v14, %v821_v26  ;;  %v1219_v60 = vmul.f32 %v6573_v23, %v11087_v30  ;;  %v11090_v23 = vld [vmem:[#allocation38_spill] sm:$0xff] }
 0x108   :  { %v1223_v37 = vmul.f32 %v6576_v9, %v11088_v56  ;;  %v1232_v35 = vrot.slane %v1231_v2, 4  ;;  %v835_v44 = vsub.f32 2.0, %v6666_v4  ;;  %v1100_v15 = vadd.f32 %v1096_v58, %v11089_v53 }
 0x109   :  { %v1112_v34 = vmul.f32 %v1108_v8, %v1104_v29  ;;  %v1115_v47 = vsub.f32 %v1099_v41, %v1111_v57  ;;  %v4851_v5 = vpop.eup %4850  ;;  %v830_v43 = vsel %vm829_vm13, %v6590_v27, %v828_v28  ;;  %v1214_v12 = vrot.slane %v1213_v24, 1 }
 0x10a   :  { %v1226_v26 = vadd.f32 %v1225_v1, %v1224_v0  ;;  %v1238_v31 = vadd.f32 %v1222_v49, %v1218_v7  ;;  %v1101_v30 = vadd.f32 %v1097_v3, %v11090_v23  ;;  %v1102_v9 = vadd.f32 %v1098_v6, %v11091_v52 }
 0x10b   :  { %v4853_v20 = vpop.eup %4852  ;;  %v1113_v56 = vmul.f32 %v1109_v19, %v1105_v36  ;;  %v1114_v33 = vmul.f32 %v1110_v21, %v1106_v16  ;;  %v11092_v4 = vand.u32 2147483648, %v6585_v14  ;;  %v6703_v57 = vmul.f32 0.5, %v834_v25 }
 0x10c   :  { %v1233_v29 = vadd.f32 %v1232_v35, %v1231_v2  ;;  %v1245_v28 = vadd.f32 %v1223_v37, %v1219_v60  ;;  %v11094_v1 = vand.u32 2147483648, %v6590_v27  ;;  %v1116_v41 = vsub.f32 %v1100_v15, %v1112_v34 }
 0x10d   :  { %v6701_v8 = vsel %vm824_vm14, %v11092_v4, %v823_v32  ;;  %11093 = vst [vmem:[#allocation57_spill] sm:$0xff] %v6703_v57  ;;  %v4855_v58 = vpop.eup %4854  ;;  %v6711_v36 = vmax.f32 %v1115_v47, 0.0  ;;  %v1253_v16 = vmul.f32 %v4851_v5, %v6635_v13  ;;  %v6714_v7 = vadd.f32 %v1214_v12, %v1213_v24  ;;  %v4655_v4 = vld [vmem:[%s10574_s1 + $0xc0] sm:$0xff] }
 0x10e   :  { %v6709_v0 = vsel %vm831_vm15, %v11094_v1, %v830_v43  ;;  %v1227_v14 = vrot.slane %v1226_v26, 2  ;;  %vm1254_vm0 = vcmp.eq.f32.partialorder %v6635_v13, inf  ;;  %v1260_v25 = vmul.f32 %v4853_v20, %v6645_v46 }
 0x10f   :  { %v1117_v2 = vsub.f32 %v1101_v30, %v1113_v56  ;;  %v1118_v49 = vsub.f32 %v1102_v9, %v1114_v33  ;;  %v1239_v3 = vrot.slane %v1238_v31, 4  ;;  %vm1261_vm1 = vcmp.eq.f32.partialorder %v6645_v46, inf }
 0x110   :  { %v1234_v27 = vrot.slane %v1233_v29, 2  ;;  %v1246_v6 = vrot.slane %v1245_v28, 4  ;;  %v1257_v19 = vand.u32 2147483648, %v6635_v13  ;;  %v1267_v21 = vmul.f32 %v4855_v58, %v6653_v45  ;;  %v4657_v58 = vld [vmem:[%s10574_s1 + $0xd0] sm:$0xff] }
 0x111   :  { %v1255_v32 = vsel %vm1254_vm0, %v6635_v13, %v1253_v16  ;;  %vm1256_vm2 = vcmp.eq.f32.partialorder %v6635_v13, 0.0  ;;  %v1264_v24 = vand.u32 2147483648, %v6645_v46  ;;  %vm1268_vm3 = vcmp.eq.f32.partialorder %v6653_v45, inf  ;;  %v4663_v16 = vld [vmem:[%s10574_s1 + $0x100] sm:$0xff] }
 0x112   :  { %v1228_v20 = vadd.f32 %v1227_v14, %v1226_v26  ;;  %v1262_v33 = vsel %vm1261_vm1, %v6645_v46, %v1260_v25  ;;  %vm1263_vm4 = vcmp.eq.f32.partialorder %v6645_v46, 0.0  ;;  %4856 = vrsqrt.f32 %v6714_v7  ;;  %v4656_v25 = vld [vmem:[%s10574_s1 + $0xc8] sm:$0xff] }
 0x113   :  { %v6729_v60 = vmul.f32 0.5, %v835_v44  ;;  %v6731_v56 = vmax.f32 %v1116_v41, 0.0  ;;  %v1271_v37 = vand.u32 2147483648, %v6653_v45  ;;  %v6734_v35 = vmax.f32 %v1117_v2, 0.0  ;;  %v4658_v2 = vld [vmem:[%s10574_s1 + $0xd8] sm:$0xff] }
 0x114   :  { %v1258_v15 = vsel %vm1256_vm2, %v1257_v19, %v1255_v32  ;;  %v1269_v34 = vsel %vm1268_vm3, %v6653_v45, %v1267_v21  ;;  %vm1270_vm5 = vcmp.eq.f32.partialorder %v6653_v45, 0.0  ;;  %v6739_v5 = vmax.f32 %v1118_v49, 0.0  ;;  %v4659_v32 = vld [vmem:[%s10574_s1 + $0xe0] sm:$0xff] }
 0x115   :  { %11095 = vst [vmem:[#allocation60_spill] sm:$0xff] %v6729_v60  ;;  %v6741_v43 = vadd.f32 %v1239_v3, %v1238_v31  ;;  %v1265_v12 = vsel %vm1263_vm4, %v1264_v24, %v1262_v33  ;;  %4858 = vrsqrt.f32 %v6711_v36  ;;  %v1229_v44 = vrot.slane %v1228_v20, 1  ;;  %v4660_v24 = vld [vmem:[%s10574_s1 + $0xe8] sm:$0xff] }
 0x116   :  { %v6744_v26 = vadd.f32 %v1234_v27, %v1233_v29  ;;  %v6746_v9 = vadd.f32 %v1246_v6, %v1245_v28  ;;  %4860 = vrsqrt.f32 %v6731_v56  ;;  %v1272_v31 = vsel %vm1270_vm5, %v1271_v37, %v1269_v34 }
 0x117   :  { %v1280_v41 = vadd.f32 1e-08, %v1258_v15  ;;  %4862 = vrsqrt.f32 %v6734_v35  ;;  %v1281_v28 = vadd.f32 1e-08, %v1265_v12  ;;  %v6767_v49 = vunpack.c.l.bf16 %v4655_v4 }
 0x118   :  { %4864 = vrsqrt.f32 %v6739_v5  ;;  %v6769_v3 = vunpack.c.l.bf16 %v4657_v58  ;;  %v6771_v27 = vadd.f32 %v1229_v44, %v1228_v20  ;;  %v1282_v21 = vadd.f32 1e-08, %v1272_v31  ;;  %v4661_v44 = vld [vmem:[%s10574_s1 + $0xf0] sm:$0xff] }
 0x119   :  { %11096 = vst [vmem:[#allocation61_spill] sm:$0xff] %v6767_v49  ;;  %vm1275_vm6 = vcmp.eq.f32.partialorder %v6714_v7, inf  ;;  %4866 = vrcp.f32 %v1280_v41  ;;  %v6782_v33 = vunpack.c.h.bf16 %v4655_v4  ;;  %v6784_v20 = vunpack.c.h.bf16 %v4657_v58 }
 0x11a   :  { %11097 = vst [vmem:[#allocation62_spill] sm:$0xff] %v6769_v3  ;;  %vm1277_vm7 = vcmp.eq.f32.partialorder %v6714_v7, 0.0  ;;  %v1278_v15 = vand.u32 2147483648, %v6714_v7  ;;  %4868 = vrcp.f32 %v1281_v28  ;;  %v6788_v34 = vunpack.c.l.bf16 %v4656_v25  ;;  %v4662_v28 = vld [vmem:[%s10574_s1 + $0xf8] sm:$0xff] }
 0x11b   :  { %11098 = vst [vmem:[#allocation58_spill] sm:$0xff] %v6782_v33  ;;  %11099 = vst [vmem:[#allocation63_spill] sm:$0xff] %v6784_v20  ;;  %v6790_v12 = vunpack.c.l.bf16 %v4658_v2  ;;  %v6795_v31 = vunpack.c.h.bf16 %v4656_v25  ;;  %v6797_v4 = vunpack.c.l.bf16 %v4659_v32  ;;  %v1421_v58 = vmul.f32 %v6767_v49, %v6767_v49 }
 0x11c   :  { %v4857_v37 = vpop.eup %4856  ;;  %11100 = vst [vmem:[#allocation5_spill] sm:$0xff] %v6788_v34  ;;  %v1425_v41 = vmul.f32 %v6769_v3, %v6769_v3  ;;  %4870 = vrcp.f32 %v1282_v21  ;;  %v6806_v47 = vunpack.c.h.bf16 %v4658_v2  ;;  %v6808_v30 = vunpack.c.h.bf16 %v4659_v32 }
 0x11d   :  { %11101 = vst [vmem:[#allocation65_spill] sm:$0xff] %v6790_v12  ;;  %11102 = vst [vmem:[#allocation64_spill] sm:$0xff] %v6795_v31  ;;  %v6810_v29 = vunpack.c.l.bf16 %v4660_v24  ;;  %v1274_v25 = vmul.f32 %v4857_v37, %v6714_v7  ;;  %v6816_v1 = vunpack.c.h.bf16 %v4660_v24  ;;  %v1422_v21 = vmul.f32 %v6782_v33, %v6782_v33 }
 0x11e   :  { %11103 = vst [vmem:[#allocation66_spill] sm:$0xff] %v6797_v4  ;;  %11104 = vst [vmem:[#allocation68_spill] sm:$0xff] %v6806_v47  ;;  %v1426_v6 = vmul.f32 %v6784_v20, %v6784_v20  ;;  %v6824_v32 = vunpack.c.l.bf16 %v4661_v44  ;;  %v6826_v19 = vunpack.c.h.bf16 %v4661_v44  ;;  %v1423_v37 = vmul.f32 %v6788_v34, %v6788_v34  ;;  %v4664_v44 = vld [vmem:[%s10574_s1 + $0x108] sm:$0xff] }
 0x11f   :  { %11105 = vst [vmem:[#allocation69_spill] sm:$0xff] %v6808_v30  ;;  %11106 = vst [vmem:[#allocation67_spill] sm:$0xff] %v6810_v29  ;;  %v6822_v2 = vpop.eup %4858  ;;  %v1427_v14 = vmul.f32 %v6790_v12, %v6790_v12  ;;  %v6834_v52 = vunpack.c.l.bf16 %v4662_v28  ;;  %v1429_v23 = vmul.f32 %v6797_v4, %v6797_v4  ;;  %v1445_v53 = vmul.f32 %v11007_v10, %v1421_v58 }
 0x120   :  { %11107 = vst [vmem:[#allocation70_spill] sm:$0xff] %v6816_v1  ;;  %11108 = vst [vmem:[#allocation71_spill] sm:$0xff] %v6824_v32  ;;  %v6832_v24 = vpop.eup %4860  ;;  %v1449_v22 = vmul.f32 %v11008_v48, %v1425_v41  ;;  %v6845_v11 = vunpack.c.h.bf16 %v4662_v28  ;;  %v6847_v38 = vunpack.c.l.bf16 %v4663_v16  ;;  %v1424_v18 = vmul.f32 %v6795_v31, %v6795_v31 }
 0x121   :  { %11109 = vst [vmem:[#allocation23_spill] sm:$0xff] %v6826_v19  ;;  %v6840_v42 = vpop.eup %4862  ;;  %v1428_v40 = vmul.f32 %v6806_v47, %v6806_v47  ;;  %v6855_v58 = vunpack.c.h.bf16 %v4663_v16  ;;  %v1430_v41 = vmul.f32 %v6808_v30, %v6808_v30  ;;  %v1446_v12 = vmul.f32 %v5379_v50, %v1422_v21  ;;  %v4665_v30 = vld [vmem:[%s10574_s1 + $0x110] sm:$0xff] }
 0x122   :  { %v6853_v4 = vpop.eup %4864  ;;  %v1450_v28 = vmul.f32 %v5387_v59, %v1426_v6  ;;  %v1276_v20 = vsel %vm1275_vm6, %v6714_v7, %v1274_v25  ;;  %v1431_v31 = vmul.f32 %v6810_v29, %v6810_v29  ;;  %v1447_v47 = vmul.f32 %v5381_v51, %v1423_v37 }
 0x123   :  { %v1451_v34 = vmul.f32 %v5389_v61, %v1427_v14  ;;  %v4867_v16 = vpop.eup %4866  ;;  %v6871_v3 = vunpack.c.l.bf16 %v4664_v44  ;;  %v1433_v6 = vmul.f32 %v6824_v32, %v6824_v32  ;;  %v1453_v21 = vmul.f32 %v11007_v10, %v1429_v23 }
 0x124   :  { %v1469_v25 = vadd.f32 %v1449_v22, %v1445_v53  ;;  %v6876_v33 = vpop.eup %4868  ;;  %v6878_v29 = vunpack.c.h.bf16 %v4664_v44  ;;  %v1432_v14 = vmul.f32 %v6816_v1, %v6816_v1  ;;  %v1448_v37 = vmul.f32 %v5383_v55, %v1424_v18  ;;  %v4666_v44 = vld [vmem:[%s10574_s1 + $0x118] sm:$0xff] }
 0x125   :  { %v1452_v49 = vmul.f32 %v5394_v63, %v1428_v40  ;;  %v1279_v54 = vsel %vm1277_vm7, %v1278_v15, %v1276_v20  ;;  %v1434_v32 = vmul.f32 %v6826_v19, %v6826_v19  ;;  %v1454_v23 = vmul.f32 %v5379_v50, %v1430_v41 }
 0x126   :  { %v1480_v22 = vadd.f32 %v1450_v28, %v1446_v12  ;;  %v6889_v53 = vpop.eup %4870  ;;  %v6894_v1 = vunpack.c.l.bf16 %v4665_v30  ;;  %v1435_v40 = vmul.f32 %v6834_v52, %v6834_v52  ;;  %v1455_v18 = vmul.f32 %v5381_v51, %v1431_v31 }
 0x127   :  { %v1491_v20 = vadd.f32 %v1451_v34, %v1447_v47  ;;  %v6899_v15 = vunpack.c.h.bf16 %v4665_v30  ;;  %v1437_v41 = vmul.f32 %v6847_v38, %v6847_v38  ;;  %v1457_v12 = vmul.f32 %v11008_v48, %v1433_v6 }
 0x128   :  { %v1470_v28 = vadd.f32 %v1469_v25, %v1453_v21  ;;  %v1283_v19 = vadd.f32 1e-08, %v1279_v54  ;;  %v1436_v62 = vmul.f32 %v6845_v11, %v6845_v11  ;;  %v1456_v39 = vmul.f32 %v5383_v55, %v1432_v14 }
 0x129   :  { %v1502_v60 = vadd.f32 %v1452_v49, %v1448_v37  ;;  %v6907_v57 = vunpack.c.l.bf16 %v4666_v44  ;;  %v1438_v47 = vmul.f32 %v6855_v58, %v6855_v58  ;;  %v1458_v30 = vmul.f32 %v5387_v59, %v1434_v32 }
 0x12a   :  { %v1481_v34 = vadd.f32 %v1480_v22, %v1454_v23  ;;  %vm1125_vm8 = vcmp.eq.f32.partialorder %v6711_v36, inf  ;;  %v6913_v31 = vunpack.c.h.bf16 %v4666_v44  ;;  %v1439_v54 = vmul.f32 %v6871_v3, %v6871_v3 }
 0x12b   :  { %v1459_v6 = vmul.f32 %v5389_v61, %v1435_v40  ;;  %v1492_v21 = vadd.f32 %v1491_v20, %v1455_v18  ;;  %vm1132_vm9 = vcmp.eq.f32.partialorder %v6731_v56, inf  ;;  %v1292_v49 = vmul.f32 %v4867_v16, %v4867_v16 }
 0x12c   :  { %v1441_v25 = vmul.f32 %v6894_v1, %v6894_v1  ;;  %v1461_v14 = vmul.f32 %v11007_v10, %v1437_v41  ;;  %v1471_v32 = vadd.f32 %v1470_v28, %v1457_v12  ;;  %vm1139_vm10 = vcmp.eq.f32.partialorder %v6734_v35, inf  ;;  %v11112_v28 = vld [vmem:[#allocation40_spill] sm:$0xff] }
 0x12d   :  { %4872 = vrcp.f32 %v1283_v19  ;;  %v1440_v37 = vmul.f32 %v6878_v29, %v6878_v29  ;;  %v1460_v23 = vmul.f32 %v5394_v63, %v1436_v62  ;;  %v1503_v22 = vadd.f32 %v1502_v60, %v1456_v39 }
 0x12e   :  { %v11110_v44 = vrot.slane %v6741_v43, 2  ;;  %v1442_v18 = vmul.f32 %v6899_v15, %v6899_v15  ;;  %v1462_v20 = vmul.f32 %v5379_v50, %v1438_v47  ;;  %v1482_v41 = vadd.f32 %v1481_v34, %v1458_v30 }
 0x12f   :  { %vm1127_vm11 = vcmp.eq.f32.partialorder %v6711_v36, 0.0  ;;  %v11111_v19 = vrot.slane %v6746_v9, 2  ;;  %v1443_v62 = vmul.f32 %v6907_v57, %v6907_v57  ;;  %v1463_v39 = vmul.f32 %v5381_v51, %v1439_v54 }
 0x130   :  { %v1242_v40 = vadd.f32 %v11110_v44, %v6741_v43  ;;  %v1493_v60 = vadd.f32 %v1492_v21, %v1459_v6  ;;  %v1304_v43 = vmul.f32 2.0, %v6771_v27  ;;  %v1308_v44 = vmul.f32 %v4867_v16, %v11112_v28 }
 0x131   :  { %v1249_v12 = vadd.f32 %v11111_v19, %v6746_v9  ;;  %v1465_v10 = vmul.f32 %v11008_v48, %v1441_v25  ;;  %v1472_v47 = vadd.f32 %v1471_v32, %v1461_v14  ;;  %vm1134_vm12 = vcmp.eq.f32.partialorder %v6731_v56, 0.0 }
 0x132   :  { %vm1141_vm13 = vcmp.eq.f32.partialorder %v6734_v35, 0.0  ;;  %v1296_v30 = vmul.f32 %v1292_v49, %v6635_v13  ;;  %v1444_v9 = vmul.f32 %v6913_v31, %v6913_v31  ;;  %v1464_v34 = vmul.f32 %v5383_v55, %v1440_v37 }
 0x133   :  { %v1504_v54 = vadd.f32 %v1503_v22, %v1460_v23  ;;  %v1124_v27 = vmul.f32 %v6822_v2, %v6711_v36  ;;  %vm1146_vm14 = vcmp.eq.f32.partialorder %v6739_v5, inf  ;;  %v1466_v16 = vmul.f32 %v5387_v59, %v1442_v18  ;;  %v11114_v22 = vld [vmem:[#allocation22_spill] sm:$0xff] }
 0x134   :  { %v1483_v6 = vadd.f32 %v1482_v41, %v1462_v20  ;;  %v1131_v21 = vmul.f32 %v6832_v24, %v6731_v56  ;;  %v1243_v25 = vrot.slane %v1242_v40, 1  ;;  %v1467_v13 = vmul.f32 %v5389_v61, %v1443_v62 }
 0x135   :  { %v1494_v49 = vadd.f32 %v1493_v60, %v1463_v39  ;;  %v1138_v14 = vmul.f32 %v6840_v42, %v6734_v35  ;;  %v11113_v32 = vrot.slane %v6744_v26, 1  ;;  %v1250_v2 = vrot.slane %v1249_v12, 1 }
 0x136   :  { %v1473_v23 = vadd.f32 %v1472_v47, %v1465_v10  ;;  %vm1148_vm15 = vcmp.eq.f32.partialorder %v6739_v5, 0.0  ;;  %v1300_v18 = vadd.f32 %v1296_v30, %v11114_v22  ;;  %v1312_v20 = vmul.f32 %v1308_v44, %v1304_v43 }
 0x137   :  { %v1237_v37 = vadd.f32 %v11113_v32, %v6744_v26  ;;  %v1468_v24 = vmul.f32 %v5394_v63, %v1444_v9  ;;  %v1505_v41 = vadd.f32 %v1504_v54, %v1464_v34  ;;  %v1126_v19 = vsel %vm1125_vm8, %v6711_v36, %v1124_v27  ;;  %v4873_v39 = vpop.eup %4872  ;;  %v11115_v27 = vld [vmem:[#allocation15_spill] sm:$0xff] }
 0x138   :  { %v1149_v42 = vand.u32 2147483648, %v6739_v5  ;;  %v1293_v62 = vmul.f32 %v6876_v33, %v6876_v33  ;;  %v1484_v26 = vadd.f32 %v1483_v6, %v1466_v16  ;;  %v1133_v10 = vsel %vm1132_vm9, %v6731_v56, %v1131_v21 }
 0x139   :  { %v1244_v60 = vadd.f32 %v1243_v25, %v1242_v40  ;;  %v1294_v43 = vmul.f32 %v6889_v53, %v6889_v53  ;;  %v1495_v44 = vadd.f32 %v1494_v49, %v1467_v13  ;;  %v1140_v47 = vsel %vm1139_vm10, %v6734_v35, %v1138_v14 }
 0x13a   :  { %v1145_v30 = vmul.f32 %v6853_v4, %v6739_v5  ;;  %v1251_v9 = vadd.f32 %v1250_v2, %v1249_v12  ;;  %v1474_v34 = vrot.slane %v1473_v23, 4  ;;  %v1305_v54 = vmul.f32 2.0, %v1237_v37  ;;  %v11117_v12 = vld [vmem:[#allocation17_spill] sm:$0xff] }
 0x13b   :  { %v1309_v16 = vmul.f32 %v6876_v33, %v11115_v27  ;;  %v1316_v6 = vsub.f32 %v1300_v18, %v1312_v20  ;;  %v1506_v21 = vadd.f32 %v1505_v41, %v1468_v24  ;;  %v11116_v40 = vand.u32 2147483648, %v6711_v36  ;;  %v11174_v27 = vld [vmem:[#allocation55_spill] sm:$0xff] }
 0x13c   :  { %v1295_v13 = vmul.f32 %v4873_v39, %v4873_v39  ;;  %v1297_v49 = vmul.f32 %v1293_v62, %v6645_v46  ;;  %v1485_v14 = vrot.slane %v1484_v26, 4  ;;  %v1298_v32 = vmul.f32 %v1294_v43, %v6653_v45 }
 0x13d   :  { %v1129_v25 = vsel %vm1127_vm11, %v11116_v40, %v1126_v19  ;;  %v1306_v4 = vmul.f32 2.0, %v1244_v60  ;;  %v1310_v37 = vmul.f32 %v6889_v53, %v11117_v12  ;;  %v1496_v2 = vrot.slane %v1495_v44, 4  ;;  %v11120_v60 = vld [vmem:[#allocation24_spill] sm:$0xff] }
 0x13e   :  { %v11118_v33 = vand.u32 2147483648, %v6731_v56  ;;  %v11119_v20 = vand.u32 2147483648, %v6734_v35  ;;  %v1147_v46 = vsel %vm1146_vm14, %v6739_v5, %v1145_v30  ;;  %v1475_v45 = vadd.f32 %v1474_v34, %v1473_v23 }
 0x13f   :  { %v1307_v24 = vmul.f32 2.0, %v1251_v9  ;;  %v1313_v41 = vmul.f32 %v1309_v16, %v1305_v54  ;;  %v7000_v19 = vmax.f32 %v1316_v6, 0.0  ;;  %v1507_v53 = vrot.slane %v1506_v21, 4 }
 0x140   :  { %v1136_v18 = vsel %vm1134_vm12, %v11118_v33, %v1133_v10  ;;  %v1143_v36 = vsel %vm1141_vm13, %v11119_v20, %v1140_v47  ;;  %v1299_v62 = vmul.f32 %v1295_v13, %v6714_v7  ;;  %v1301_v56 = vadd.f32 %v1297_v49, %v11120_v60  ;;  %v11121_v10 = vld [vmem:[#allocation43_spill] sm:$0xff]  ;;  %v11123_v33 = vld [vmem:[#allocation26_spill] sm:$0xff] }
 0x141   :  { %v1311_v43 = vmul.f32 %v4873_v39, %v11121_v10  ;;  %v1486_v40 = vadd.f32 %v1485_v14, %v1484_v26  ;;  %v11122_v35 = vsub.f32 2.0, %v6701_v8  ;;  %v1302_v20 = vadd.f32 %v1298_v32, %v11123_v33  ;;  %v11125_v39 = vld [vmem:[#allocation31_spill] sm:$0xff] }
 0x142   :  { %v1314_v12 = vmul.f32 %v1310_v37, %v1306_v4  ;;  %v1497_v30 = vadd.f32 %v1496_v2, %v1495_v44  ;;  %v11124_v23 = vsub.f32 2.0, %v6709_v0  ;;  %v1150_v34 = vsel %vm1148_vm15, %v1149_v42, %v1147_v46  ;;  %v11126_v37 = vld [vmem:[#allocation57_spill] sm:$0xff]  ;;  %v11127_v42 = vld [vmem:[#allocation60_spill] sm:$0xff]  ;;  %v11170_v10 = vld [vmem:[#allocation51_spill] sm:$0xff] }
 0x143   :  { %v840_v47 = vmul.f32 0.5, %v11122_v35  ;;  %v1151_v54 = vsub.f32 2.0, %v1129_v25  ;;  %v1476_v7 = vrot.slane %v1475_v45, 2  ;;  %v1152_v16 = vsub.f32 2.0, %v1136_v18 }
 0x144   :  { %v841_v9 = vmul.f32 0.5, %v11124_v23  ;;  %v1153_v6 = vsub.f32 2.0, %v1143_v36  ;;  %4874 = vrsqrt.f32 %v7000_v19  ;;  %v1508_v26 = vadd.f32 %v1507_v53, %v1506_v21  ;;  %v11130_v23 = vld [vmem:[#allocation56_spill] sm:$0xff] }
 0x145   :  { %v1303_v8 = vadd.f32 %v1299_v62, %v11125_v39  ;;  %v1315_v13 = vmul.f32 %v1311_v43, %v1307_v24  ;;  %v1317_v49 = vsub.f32 %v1301_v56, %v1313_v41  ;;  %v1487_v14 = vrot.slane %v1486_v40, 2  ;;  %v11128_v43 = vld [vmem:[#allocation25_spill] sm:$0xff]  ;;  %v7092_v39 = vld [vmem:[%s10575_s4 + $0x48] sm:$0xff] }
 0x146   :  { %v845_v44 = vmul.f32 0.3, %v6610_v17  ;;  %v1154_v32 = vsub.f32 2.0, %v1150_v34  ;;  %v1318_v0 = vsub.f32 %v1302_v20, %v1314_v12  ;;  %v1498_v4 = vrot.slane %v1497_v30, 2 }
 0x147   :  { %v846_v5 = vmul.f32 0.7, %v11126_v37  ;;  %v847_v25 = vmul.f32 0.7, %v11127_v42  ;;  %v848_v2 = vmul.f32 0.7, %v840_v47  ;;  %v1477_v18 = vadd.f32 %v1476_v7, %v1475_v45 }
 0x148   :  { %v849_v36 = vmul.f32 0.7, %v841_v9  ;;  %v1155_v46 = vmul.f32 0.5, %v1151_v54  ;;  %v1156_v35 = vmul.f32 0.5, %v1152_v16  ;;  %v1509_v21 = vrot.slane %v1508_v26, 2  ;;  %v11132_v45 = vld [vmem:[#allocation59_spill] sm:$0xff] }
 0x149   :  { %v1157_v53 = vmul.f32 0.5, %v1153_v6  ;;  %v1319_v62 = vsub.f32 %v1303_v8, %v1315_v13  ;;  %v7017_v24 = vmax.f32 %v1317_v49, 0.0  ;;  %v1488_v41 = vadd.f32 %v1487_v14, %v1486_v40  ;;  %v11141_v37 = vld [vmem:[#allocation8_spill] sm:$0xff]  ;;  %v11151_v49 = vld [vmem:[#allocation10_spill] sm:$0xff] }
 0x14a   :  { %v1158_v56 = vmul.f32 0.5, %v1154_v32  ;;  %v7019_v17 = vmax.f32 %v1318_v0, 0.0  ;;  %v1499_v12 = vadd.f32 %v1498_v4, %v1497_v30  ;;  %v7022_v20 = vadd.f32 %v846_v5, %v11128_v43  ;;  %v11139_v0 = vld [vmem:[#allocation7_spill] sm:$0xff]  ;;  %v11140_v4 = vld [vmem:[#allocation61_spill] sm:$0xff]  ;;  %v11142_v5 = vld [vmem:[#allocation58_spill] sm:$0xff] }
 0x14b   :  { %v7025_v34 = vadd.f32 %v847_v25, %v11130_v23  ;;  %v7028_v47 = vadd.f32 %v848_v2, %v11132_v45  ;;  %v1478_v9 = vrot.slane %v1477_v18, 1  ;;  %v7030_v54 = vadd.f32 %v849_v36, %v845_v44  ;;  %v11143_v25 = vld [vmem:[#allocation11_spill] sm:$0xff]  ;;  %v11144_v2 = vld [vmem:[#allocation62_spill] sm:$0xff]  ;;  %v11149_v23 = vld [vmem:[#allocation13_spill] sm:$0xff] }
 0x14c   :  { %11129 = vst [vmem:[#allocation57_spill] sm:$0xff] %v7022_v20  ;;  %v7032_v7 = vmul.f32 0.3, %v1155_v46  ;;  %v7034_v16 = vmul.f32 0.3, %v1156_v35  ;;  %v1510_v40 = vadd.f32 %v1509_v21, %v1508_v26  ;;  %v7036_v6 = vmax.f32 %v1319_v62, 0.0 }
 0x14d   :  { %11131 = vst [vmem:[#allocation60_spill] sm:$0xff] %v7025_v34  ;;  %11133 = vst [vmem:[#allocation25_spill] sm:$0xff] %v7028_v47  ;;  %4876 = vrsqrt.f32 %v7017_v24  ;;  %v7039_v30 = vmul.f32 0.3, %v1157_v53  ;;  %v1489_v8 = vrot.slane %v1488_v41, 1  ;;  %v1500_v44 = vrot.slane %v1499_v12, 1 }
 0x14e   :  { %11134 = vst [vmem:[#allocation56_spill] sm:$0xff] %v7030_v54  ;;  %11135 = vst [vmem:[#allocation59_spill] sm:$0xff] %v7032_v7  ;;  %v4875_v13 = vpop.eup %4874  ;;  %4878 = vrsqrt.f32 %v7019_v17  ;;  %v7043_v14 = vmul.f32 0.3, %v1158_v56  ;;  %v7045_v32 = vadd.f32 %v1478_v9, %v1477_v18  ;;  %v1513_v26 = vmul.f32 %v11140_v4, %v11139_v0  ;;  %v11145_v35 = vld [vmem:[#allocation9_spill] sm:$0xff]  ;;  %v11147_v62 = vld [vmem:[#allocation12_spill] sm:$0xff] }
 0x14f   :  { %11136 = vst [vmem:[#allocation72_spill] sm:$0xff] %v7034_v16  ;;  %11137 = vst [vmem:[#allocation73_spill] sm:$0xff] %v7039_v30  ;;  %v1514_v42 = vmul.f32 %v11142_v5, %v11141_v37  ;;  %v1517_v36 = vmul.f32 %v11144_v2, %v11143_v25  ;;  %v1511_v46 = vrot.slane %v1510_v40, 1  ;;  %v11146_v21 = vld [vmem:[#allocation5_spill] sm:$0xff]  ;;  %v11148_v43 = vld [vmem:[#allocation63_spill] sm:$0xff]  ;;  %v7060_v9 = vmul.f32 %v4875_v13, %v7000_v19 }
 0x150   :  { %11138 = vst [vmem:[#allocation74_spill] sm:$0xff] %v7043_v14  ;;  %v1515_v53 = vmul.f32 %v11146_v21, %v11145_v35  ;;  %v1518_v56 = vmul.f32 %v11148_v43, %v11147_v62  ;;  %v11150_v45 = vld [vmem:[#allocation65_spill] sm:$0xff]  ;;  %4880 = vrsqrt.f32 %v7036_v6  ;;  %v7064_v5 = vadd.f32 %v1489_v8, %v1488_v41  ;;  %v11152_v25 = vld [vmem:[#allocation64_spill] sm:$0xff]  ;;  %v11153_v35 = vld [vmem:[#allocation14_spill] sm:$0xff] }
 0x151   :  { %v1519_v18 = vmul.f32 %v11150_v45, %v11149_v23  ;;  %v7066_v2 = vadd.f32 %v1500_v44, %v1499_v12  ;;  %v1516_v21 = vmul.f32 %v11152_v25, %v11151_v49  ;;  %v11154_v37 = vld [vmem:[#allocation68_spill] sm:$0xff]  ;;  %v11155_v62 = vld [vmem:[#allocation18_spill] sm:$0xff]  ;;  %v11157_v8 = vld [vmem:[#allocation19_spill] sm:$0xff]  ;;  %v1537_v49 = vadd.f32 %v1517_v36, %v1513_v26 }
 0x152   :  { %v1520_v43 = vmul.f32 %v11154_v37, %v11153_v35  ;;  %v11156_v0 = vld [vmem:[#allocation66_spill] sm:$0xff]  ;;  %v4669_v41 = vld [vmem:[%s10575_s4 + $0x50] sm:$0xff]  ;;  %v11158_v12 = vld [vmem:[#allocation69_spill] sm:$0xff]  ;;  %4882 = vrsqrt.f32 %v7045_v32  ;;  %v7085_v37 = vadd.f32 %v1511_v46, %v1510_v40  ;;  %v1548_v54 = vadd.f32 %v1518_v56, %v1514_v42 }
 0x153   :  { %v1521_v45 = vmul.f32 %v11156_v0, %v11155_v62  ;;  %v4667_v13 = vld [vmem:[%s10575_s4 + $0x40] sm:$0xff]  ;;  %v1522_v44 = vmul.f32 %v11158_v12, %v11157_v8  ;;  %v11159_v4 = vld [vmem:[#allocation44_spill] sm:$0xff]  ;;  %v11160_v23 = vld [vmem:[#allocation67_spill] sm:$0xff]  ;;  %v1559_v47 = vadd.f32 %v1519_v18, %v1515_v53  ;;  %4884 = vrsqrt.f32 %v7064_v5 }
 0x154   :  { %v1523_v25 = vmul.f32 %v11160_v23, %v11159_v4  ;;  %v11161_v0 = vld [vmem:[#allocation45_spill] sm:$0xff]  ;;  %v11162_v62 = vld [vmem:[#allocation70_spill] sm:$0xff]  ;;  %v11164_v36 = vld [vmem:[#allocation71_spill] sm:$0xff]  ;;  %v7102_v40 = vunpack.c.l.bf16 %v4667_v13  ;;  %v7104_v46 = vunpack.c.l.bf16 %v4669_v41  ;;  %v1570_v42 = vadd.f32 %v1520_v43, %v1516_v21 }
 0x155   :  { %v1524_v35 = vmul.f32 %v11162_v62, %v11161_v0  ;;  %v7097_v12 = vld [vmem:[%s10575_s4 + $0x58] sm:$0xff]  ;;  %v11163_v26 = vld [vmem:[#allocation46_spill] sm:$0xff]  ;;  %4886 = vrsqrt.f32 %v7066_v2  ;;  %v7107_v53 = vunpack.c.h.bf16 %v4667_v13  ;;  %v7109_v62 = vunpack.c.h.bf16 %v4669_v41  ;;  %v11165_v18 = vld [vmem:[#allocation47_spill] sm:$0xff] }
 0x156   :  { %v1525_v23 = vmul.f32 %v11164_v36, %v11163_v26  ;;  %v11166_v0 = vld [vmem:[#allocation23_spill] sm:$0xff]  ;;  %v1538_v8 = vadd.f32 %v1537_v49, %v1521_v45  ;;  %v7116_v36 = vunpack.c.l.bf16 %v7092_v39  ;;  %v7119_v26 = vunpack.c.l.bf16 %v7097_v12  ;;  %v11167_v21 = vld [vmem:[#allocation48_spill] sm:$0xff]  ;;  %v11168_v14 = vld [vmem:[#allocation49_spill] sm:$0xff] }
 0x157   :  { %v7111_v56 = vpop.eup %4876  ;;  %v1526_v4 = vmul.f32 %v11166_v0, %v11165_v18  ;;  %v1527_v43 = vmul.f32 %v6834_v52, %v11167_v21  ;;  %v1549_v13 = vadd.f32 %v1548_v54, %v1522_v44  ;;  %v1560_v41 = vadd.f32 %v1559_v47, %v1523_v25  ;;  %v11169_v0 = vld [vmem:[#allocation50_spill] sm:$0xff]  ;;  %v11171_v44 = vld [vmem:[#allocation52_spill] sm:$0xff] }
 0x158   :  { %v7121_v34 = vpop.eup %4878  ;;  %4888 = vrsqrt.f32 %v7085_v37  ;;  %v1528_v30 = vmul.f32 %v6845_v11, %v11168_v14  ;;  %v1529_v49 = vmul.f32 %v6847_v38, %v11169_v0  ;;  %v1702_v45 = vmul.f32 %v7102_v40, %v7102_v40  ;;  %v11177_v16 = vld [vmem:[#allocation30_spill] sm:$0xff] }
 0x159   :  { %v1706_v18 = vmul.f32 %v7104_v46, %v7104_v46  ;;  %v1530_v33 = vmul.f32 %v6855_v58, %v11170_v10  ;;  %v1571_v52 = vadd.f32 %v1570_v42, %v1524_v35  ;;  %v1703_v47 = vmul.f32 %v7107_v53, %v7107_v53  ;;  %v11172_v58 = vld [vmem:[#allocation53_spill] sm:$0xff]  ;;  %v11173_v42 = vld [vmem:[#allocation54_spill] sm:$0xff] }
 0x15a   :  { %v1707_v54 = vmul.f32 %v7109_v62, %v7109_v62  ;;  %v7140_v11 = vpop.eup %4880  ;;  %v1531_v38 = vmul.f32 %v6871_v3, %v11171_v44  ;;  %v1539_v25 = vadd.f32 %v1538_v8, %v1525_v23  ;;  %v1704_v0 = vmul.f32 %v7116_v36, %v7116_v36  ;;  %v11175_v3 = vld [vmem:[#allocation27_spill] sm:$0xff]  ;;  %v11176_v23 = vld [vmem:[#allocation4_spill] sm:$0xff] }
 0x15b   :  { %v1708_v14 = vmul.f32 %v7119_v26, %v7119_v26  ;;  %v1532_v35 = vmul.f32 %v6878_v29, %v11172_v58  ;;  %v1533_v10 = vmul.f32 %v6894_v1, %v11173_v42  ;;  %v1550_v21 = vadd.f32 %v1549_v13, %v1526_v4 }
 0x15c   :  { %v1561_v60 = vadd.f32 %v1560_v41, %v1527_v43  ;;  %v4883_v22 = vpop.eup %4882  ;;  %v1534_v28 = vmul.f32 %v6899_v15, %v11174_v27  ;;  %v1535_v8 = vmul.f32 %v6907_v57, %v11175_v3  ;;  %v1710_v44 = vmul.f32 %v11176_v23, %v1702_v45 }
 0x15d   :  { %v1714_v20 = vmul.f32 %v11008_v48, %v1706_v18  ;;  %v1536_v7 = vmul.f32 %v6913_v31, %v11177_v16  ;;  %v1572_v29 = vadd.f32 %v1571_v52, %v1528_v30  ;;  %v1711_v58 = vmul.f32 %v5379_v50, %v1703_v47  ;;  %v4885_v4 = vpop.eup %4884 }
 0x15e   :  { %v1715_v1 = vmul.f32 %v5387_v59, %v1707_v54  ;;  %v1540_v43 = vadd.f32 %v1539_v25, %v1529_v49  ;;  %vm1583_vm0 = vcmp.eq.f32.partialorder %v7045_v32, inf  ;;  %v1712_v15 = vmul.f32 %v5381_v51, %v1704_v0 }
 0x15f   :  { %v1716_v57 = vmul.f32 %v5389_v61, %v1708_v14  ;;  %v4887_v13 = vpop.eup %4886  ;;  %vm1326_vm1 = vcmp.eq.f32.partialorder %v7000_v19, inf  ;;  %v1551_v18 = vadd.f32 %v1550_v21, %v1530_v33  ;;  %v1562_v41 = vadd.f32 %v1561_v60, %v1531_v38 }
 0x160   :  { %v1582_v31 = vmul.f32 %v4883_v22, %v7045_v32  ;;  %vm1585_vm2 = vcmp.eq.f32.partialorder %v7045_v32, 0.0  ;;  %v1586_v30 = vand.u32 2147483648, %v7045_v32  ;;  %vm1590_vm3 = vcmp.eq.f32.partialorder %v7064_v5, inf }
 0x161   :  { %vm1592_vm4 = vcmp.eq.f32.partialorder %v7064_v5, 0.0  ;;  %v1718_v49 = vadd.f32 %v1714_v20, %v1710_v44  ;;  %v1573_v0 = vadd.f32 %v1572_v29, %v1532_v35  ;;  %v1589_v14 = vmul.f32 %v4885_v4, %v7064_v5 }
 0x162   :  { %v4889_v45 = vpop.eup %4888  ;;  %v1593_v52 = vand.u32 2147483648, %v7064_v5  ;;  %v1725_v47 = vadd.f32 %v1715_v1, %v1711_v58  ;;  %vm1328_vm5 = vcmp.eq.f32.partialorder %v7000_v19, 0.0  ;;  %v1541_v60 = vadd.f32 %v1540_v43, %v1533_v10 }
 0x163   :  { %v1596_v22 = vmul.f32 %v4887_v13, %v7066_v2  ;;  %vm1597_vm6 = vcmp.eq.f32.partialorder %v7066_v2, inf  ;;  %v1732_v33 = vadd.f32 %v1716_v57, %v1712_v15  ;;  %vm1333_vm7 = vcmp.eq.f32.partialorder %v7017_v24, inf }
 0x164   :  { %v1552_v21 = vadd.f32 %v1551_v18, %v1534_v28  ;;  %v1563_v54 = vadd.f32 %v1562_v41, %v1535_v8  ;;  %v1584_v20 = vsel %vm1583_vm0, %v7045_v32, %v1582_v31  ;;  %vm1599_vm8 = vcmp.eq.f32.partialorder %v7066_v2, 0.0 }
 0x165   :  { %v1600_v44 = vand.u32 2147483648, %v7066_v2  ;;  %v1603_v38 = vmul.f32 %v4889_v45, %v7085_v37  ;;  %vm1604_vm9 = vcmp.eq.f32.partialorder %v7085_v37, inf  ;;  %v1719_v10 = vrot.slane %v1718_v49, 4 }
 0x166   :  { %v1574_v25 = vadd.f32 %v1573_v0, %v1536_v7  ;;  %v1591_v58 = vsel %vm1590_vm3, %v7064_v5, %v1589_v14  ;;  %vm1606_vm10 = vcmp.eq.f32.partialorder %v7085_v37, 0.0  ;;  %v1726_v28 = vrot.slane %v1725_v47, 4 }
 0x167   :  { %vm1335_vm11 = vcmp.eq.f32.partialorder %v7017_v24, 0.0  ;;  %v1542_v35 = vrot.slane %v1541_v60, 4  ;;  %v1587_v8 = vsel %vm1585_vm2, %v1586_v30, %v1584_v20  ;;  %v1598_v29 = vsel %vm1597_vm6, %v7066_v2, %v1596_v22 }
 0x168   :  { %v1733_v1 = vrot.slane %v1732_v33, 4  ;;  %v1553_v4 = vrot.slane %v1552_v21, 4  ;;  %v1564_v7 = vrot.slane %v1563_v54, 4  ;;  %v1607_v43 = vand.u32 2147483648, %v7085_v37 }
 0x169   :  { %v7196_v15 = vunpack.c.h.bf16 %v7092_v39  ;;  %v1594_v57 = vsel %vm1592_vm4, %v1593_v52, %v1591_v58  ;;  %v1605_v13 = vsel %vm1604_vm9, %v7085_v37, %v1603_v38  ;;  %v7204_v18 = vunpack.c.h.bf16 %v7097_v12 }
 0x16a   :  { %v1720_v41 = vadd.f32 %v1719_v10, %v1718_v49  ;;  %v1575_v31 = vrot.slane %v1574_v25, 4  ;;  %v1601_v30 = vsel %vm1599_vm8, %v1600_v44, %v1598_v29  ;;  %v1609_v45 = vadd.f32 1e-08, %v1587_v8 }
 0x16b   :  { %v1727_v0 = vadd.f32 %v1726_v28, %v1725_v47  ;;  %v1327_v39 = vsel %vm1326_vm1, %v7000_v19, %v7060_v9  ;;  %v1332_v14 = vmul.f32 %v7111_v56, %v7017_v24  ;;  %v1543_v52 = vadd.f32 %v1542_v35, %v1541_v60 }
 0x16c   :  { %v1734_v22 = vadd.f32 %v1733_v1, %v1732_v33  ;;  %v1554_v20 = vadd.f32 %v1553_v4, %v1552_v21  ;;  %v1565_v12 = vadd.f32 %v1564_v7, %v1563_v54  ;;  %v1608_v49 = vsel %vm1606_vm10, %v1607_v43, %v1605_v13 }
 0x16d   :  { %v1610_v38 = vadd.f32 1e-08, %v1594_v57  ;;  %v1611_v10 = vadd.f32 1e-08, %v1601_v30  ;;  %v1705_v47 = vmul.f32 %v7196_v15, %v7196_v15  ;;  %v1709_v44 = vmul.f32 %v7204_v18, %v7204_v18 }
 0x16e   :  { %v1721_v58 = vrot.slane %v1720_v41, 2  ;;  %v11178_v9 = vand.u32 2147483648, %v7000_v19  ;;  %v1576_v60 = vadd.f32 %v1575_v31, %v1574_v25  ;;  %4890 = vrcp.f32 %v1609_v45 }
 0x16f   :  { %v1728_v33 = vrot.slane %v1727_v0, 2  ;;  %v1334_v21 = vsel %vm1333_vm7, %v7017_v24, %v1332_v14  ;;  %v1544_v54 = vrot.slane %v1543_v52, 2  ;;  %v1612_v28 = vadd.f32 1e-08, %v1608_v49 }
 0x170   :  { %v1330_v56 = vsel %vm1328_vm5, %v11178_v9, %v1327_v39  ;;  %v1735_v35 = vrot.slane %v1734_v22, 2  ;;  %v1555_v8 = vrot.slane %v1554_v20, 2  ;;  %v1566_v29 = vrot.slane %v1565_v12, 2  ;;  %v11180_v9 = vld [vmem:[#allocation2_spill] sm:$0xff] }
 0x171   :  { %4892 = vrcp.f32 %v1610_v38  ;;  %v1713_v1 = vmul.f32 %v5383_v55, %v1705_v47  ;;  %v1717_v4 = vmul.f32 %v5394_v63, %v1709_v44  ;;  %v1722_v19 = vadd.f32 %v1721_v58, %v1720_v41 }
 0x172   :  { %4894 = vrcp.f32 %v1611_v10  ;;  %v11179_v25 = vand.u32 2147483648, %v7017_v24  ;;  %v1352_v43 = vsub.f32 2.0, %v1330_v56  ;;  %v1577_v57 = vrot.slane %v1576_v60, 2 }
 0x173   :  { %v1729_v13 = vadd.f32 %v1728_v33, %v1727_v0  ;;  %v1339_v31 = vmul.f32 %v7121_v34, %v7019_v17  ;;  %v1545_v30 = vadd.f32 %v1544_v54, %v1543_v52  ;;  %4896 = vrcp.f32 %v1612_v28  ;;  %v11181_v33 = vld [vmem:[#allocation35_spill] sm:$0xff]  ;;  %v11182_v28 = vld [vmem:[#allocation41_spill] sm:$0xff] }
 0x174   :  { %v1337_v7 = vsel %vm1335_vm11, %v11179_v25, %v1334_v21  ;;  %v1736_v45 = vadd.f32 %v1735_v35, %v1734_v22  ;;  %vm1340_vm12 = vcmp.eq.f32.partialorder %v7019_v17, inf  ;;  %vm1342_vm13 = vcmp.eq.f32.partialorder %v7019_v17, 0.0 }
 0x175   :  { %v1556_v39 = vadd.f32 %v1555_v8, %v1554_v20  ;;  %v1567_v41 = vadd.f32 %v1566_v29, %v1565_v12  ;;  %v1343_v14 = vand.u32 2147483648, %v7019_v17  ;;  %vm1347_vm14 = vcmp.eq.f32.partialorder %v7036_v6, inf  ;;  %v11183_v8 = vld [vmem:[#allocation42_spill] sm:$0xff] }
 0x176   :  { %v1723_v24 = vrot.slane %v1722_v19, 1  ;;  %v1739_v49 = vadd.f32 %v1717_v4, %v1713_v1  ;;  %v1353_v38 = vsub.f32 2.0, %v1337_v7  ;;  %v1356_v0 = vmul.f32 0.5, %v1352_v43 }
 0x177   :  { %v1578_v10 = vadd.f32 %v1577_v57, %v1576_v60  ;;  %v1730_v47 = vrot.slane %v1729_v13, 1  ;;  %v1341_v34 = vsel %vm1340_vm12, %v7019_v17, %v1339_v31  ;;  %v1346_v52 = vmul.f32 %v7140_v11, %v7036_v6 }
 0x178   :  { %v1546_v22 = vrot.slane %v1545_v30, 1  ;;  %v1737_v44 = vrot.slane %v1736_v45, 1  ;;  %v4891_v58 = vpop.eup %4890  ;;  %v1557_v20 = vrot.slane %v1556_v39, 1  ;;  %v1568_v12 = vrot.slane %v1567_v41, 1 }
 0x179   :  { %v1746_v56 = vmul.f32 %v7102_v40, %v11180_v9  ;;  %v1750_v21 = vmul.f32 %v7104_v46, %v11181_v33  ;;  %v7246_v54 = vadd.f32 %v1723_v24, %v1722_v19  ;;  %v1740_v60 = vrot.slane %v1739_v49, 4 }
 0x17a   :  { %v1747_v35 = vmul.f32 %v7107_v53, %v11182_v28  ;;  %v1751_v11 = vmul.f32 %v7109_v62, %v11183_v8  ;;  %v1344_v1 = vsel %vm1342_vm13, %v1343_v14, %v1341_v34  ;;  %vm1349_vm15 = vcmp.eq.f32.partialorder %v7036_v6, 0.0 }
 0x17b   :  { %v4893_v29 = vpop.eup %4892  ;;  %v1350_v40 = vand.u32 2147483648, %v7036_v6  ;;  %v1579_v4 = vrot.slane %v1578_v10, 1  ;;  %v7256_v25 = vadd.f32 %v1730_v47, %v1729_v13  ;;  %v1357_v19 = vmul.f32 0.5, %v1353_v38 }
 0x17c   :  { %v4895_v46 = vpop.eup %4894  ;;  %v1547_v7 = vadd.f32 %v1546_v22, %v1545_v30  ;;  %v1621_v43 = vmul.f32 %v4891_v58, %v4891_v58  ;;  %v7258_v57 = vadd.f32 %v1737_v44, %v1736_v45  ;;  %v1364_v53 = vmul.f32 0.7, %v1356_v0 }
 0x17d   :  { %v1558_v31 = vadd.f32 %v1557_v20, %v1556_v39  ;;  %v1569_v62 = vadd.f32 %v1568_v12, %v1567_v41  ;;  %v1754_v24 = vadd.f32 %v1750_v21, %v1746_v56  ;;  %v4897_v8 = vpop.eup %4896  ;;  %v1348_v17 = vsel %vm1347_vm14, %v7036_v6, %v1346_v52  ;;  %v11184_v39 = vld [vmem:[#allocation28_spill] sm:$0xff]  ;;  %v11185_v20 = vld [vmem:[#allocation21_spill] sm:$0xff] }
 0x17e   :  { %v1741_v14 = vadd.f32 %v1740_v60, %v1739_v49  ;;  %v1761_v34 = vadd.f32 %v1751_v11, %v1747_v35  ;;  %4898 = vrsqrt.f32 %v7246_v54  ;;  %v1580_v13 = vadd.f32 %v1579_v4, %v1578_v10  ;;  %v11186_v10 = vld [vmem:[#allocation33_spill] sm:$0xff]  ;;  %v11188_v11 = vld [vmem:[#allocation32_spill] sm:$0xff] }
 0x17f   :  { %v1622_v47 = vmul.f32 %v4893_v29, %v4893_v29  ;;  %v1623_v38 = vmul.f32 %v4895_v46, %v4895_v46  ;;  %4900 = vrsqrt.f32 %v7256_v25  ;;  %v1625_v30 = vmul.f32 %v1621_v43, %v7045_v32  ;;  %v11187_v35 = vld [vmem:[#allocation29_spill] sm:$0xff] }
 0x180   :  { %v1633_v45 = vmul.f32 2.0, %v1547_v7  ;;  %v1637_v41 = vmul.f32 %v4891_v58, %v11184_v39  ;;  %4902 = vrsqrt.f32 %v7258_v57  ;;  %v1624_v0 = vmul.f32 %v4897_v8, %v4897_v8 }
 0x181   :  { %v1634_v22 = vmul.f32 2.0, %v1558_v31  ;;  %v1635_v44 = vmul.f32 2.0, %v1569_v62  ;;  %v1755_v52 = vrot.slane %v1754_v24, 4  ;;  %v1742_v49 = vrot.slane %v1741_v14, 2  ;;  %v11189_v31 = vld [vmem:[#allocation36_spill] sm:$0xff] }
 0x182   :  { %v1748_v12 = vmul.f32 %v7116_v36, %v11185_v20  ;;  %v1752_v56 = vmul.f32 %v7119_v26, %v11186_v10  ;;  %v1762_v21 = vrot.slane %v1761_v34, 4  ;;  %v1626_v60 = vmul.f32 %v1622_v47, %v7064_v5  ;;  %v11190_v20 = vld [vmem:[#allocation34_spill] sm:$0xff] }
 0x183   :  { %v1627_v32 = vmul.f32 %v1623_v38, %v7066_v2  ;;  %v1638_v58 = vmul.f32 %v4893_v29, %v11187_v35  ;;  %v1639_v4 = vmul.f32 %v4895_v46, %v11188_v11  ;;  %v1354_v7 = vsub.f32 2.0, %v1344_v1  ;;  %v11191_v29 = vld [vmem:[#allocation37_spill] sm:$0xff]  ;;  %v11192_v46 = vld [vmem:[#allocation38_spill] sm:$0xff]  ;;  %v4681_v35 = vld [vmem:[%s10574_s1 + $0x170] sm:$0xff] }
 0x184   :  { %v1365_v43 = vmul.f32 0.7, %v1357_v19  ;;  %v1629_v62 = vadd.f32 %v1625_v30, %v11189_v31  ;;  %v1641_v39 = vmul.f32 %v1637_v41, %v1633_v45  ;;  %v1628_v33 = vmul.f32 %v1624_v0, %v7085_v37  ;;  %v11193_v45 = vld [vmem:[#allocation59_spill] sm:$0xff] }
 0x185   :  { %v1636_v36 = vmul.f32 2.0, %v1580_v13  ;;  %v1640_v28 = vmul.f32 %v4897_v8, %v11190_v20  ;;  %v1756_v26 = vadd.f32 %v1755_v52, %v1754_v24  ;;  %v1351_v5 = vsel %vm1349_vm15, %v1350_v40, %v1348_v17  ;;  %v11195_v13 = vld [vmem:[#allocation16_spill] sm:$0xff] }
 0x186   :  { %v1743_v47 = vadd.f32 %v1742_v49, %v1741_v14  ;;  %v1763_v2 = vadd.f32 %v1762_v21, %v1761_v34  ;;  %v1768_v38 = vadd.f32 %v1752_v56, %v1748_v12  ;;  %v1630_v10 = vadd.f32 %v1626_v60, %v11191_v29  ;;  %v11196_v24 = vld [vmem:[#allocation20_spill] sm:$0xff]  ;;  %v11197_v14 = vld [vmem:[#allocation39_spill] sm:$0xff] }
 0x187   :  { %v1631_v1 = vadd.f32 %v1627_v32, %v11192_v46  ;;  %v1642_v19 = vmul.f32 %v1638_v58, %v1634_v22  ;;  %v1643_v11 = vmul.f32 %v1639_v4, %v1635_v44  ;;  %v7284_v41 = vadd.f32 %v1364_v53, %v11193_v45  ;;  %v11198_v44 = vld [vmem:[#allocation72_spill] sm:$0xff] }
 0x188   :  { %v4899_v30 = vpop.eup %4898  ;;  %v1645_v37 = vsub.f32 %v1629_v62, %v1641_v39  ;;  %v1749_v8 = vmul.f32 %v7196_v15, %v11195_v13  ;;  %v1753_v6 = vmul.f32 %v7204_v18, %v11196_v24  ;;  %v1358_v17 = vmul.f32 0.5, %v1354_v7 }
 0x189   :  { %11194 = vst [vmem:[#allocation61_spill] sm:$0xff] %v7284_v41  ;;  %v4901_v40 = vpop.eup %4900  ;;  %v1632_v34 = vadd.f32 %v1628_v33, %v11197_v14  ;;  %v1644_v0 = vmul.f32 %v1640_v28, %v1636_v36  ;;  %v1757_v52 = vrot.slane %v1756_v26, 2  ;;  %v1355_v22 = vsub.f32 2.0, %v1351_v5 }
 0x18a   :  { %v4903_v49 = vpop.eup %4902  ;;  %v7292_v12 = vadd.f32 %v1365_v43, %v11198_v44  ;;  %v1744_v53 = vrot.slane %v1743_v47, 1  ;;  %v1764_v56 = vrot.slane %v1763_v2, 2  ;;  %v1646_v39 = vsub.f32 %v1630_v10, %v1642_v19 }
 0x18b   :  { %v1647_v21 = vsub.f32 %v1631_v1, %v1643_v11  ;;  %v1769_v60 = vrot.slane %v1768_v38, 4  ;;  %v1783_v15 = vmul.f32 %v4899_v30, %v7246_v54  ;;  %v7295_v32 = vmax.f32 %v1645_v37, 0.0 }
 0x18c   :  { %11199 = vst [vmem:[#allocation58_spill] sm:$0xff] %v7292_v12  ;;  %v1775_v18 = vadd.f32 %v1753_v6, %v1749_v8  ;;  %vm1784_vm0 = vcmp.eq.f32.partialorder %v7246_v54, inf  ;;  %v1790_v33 = vmul.f32 %v4901_v40, %v7256_v25  ;;  %v1648_v28 = vsub.f32 %v1632_v34, %v1644_v0  ;;  %v11200_v8 = vld [vmem:[#allocation57_spill] sm:$0xff] }
 0x18d   :  { %v1758_v58 = vadd.f32 %v1757_v52, %v1756_v26  ;;  %vm1791_vm1 = vcmp.eq.f32.partialorder %v7256_v25, inf  ;;  %v1797_v4 = vmul.f32 %v4903_v49, %v7258_v57  ;;  %v7301_v7 = vadd.f32 %v1744_v53, %v1743_v47 }
 0x18e   :  { %v1765_v10 = vadd.f32 %v1764_v56, %v1763_v2  ;;  %v1787_v11 = vand.u32 2147483648, %v7246_v54  ;;  %vm1798_vm2 = vcmp.eq.f32.partialorder %v7258_v57, inf  ;;  %v1770_v43 = vadd.f32 %v1769_v60, %v1768_v38 }
 0x18f   :  { %v1785_v62 = vsel %vm1784_vm0, %v7246_v54, %v1783_v15  ;;  %vm1786_vm3 = vcmp.eq.f32.partialorder %v7246_v54, 0.0  ;;  %v1794_v36 = vand.u32 2147483648, %v7256_v25  ;;  %v1776_v5 = vrot.slane %v1775_v18, 4 }
 0x190   :  { %v1792_v26 = vsel %vm1791_vm1, %v7256_v25, %v1790_v33  ;;  %vm1793_vm4 = vcmp.eq.f32.partialorder %v7256_v25, 0.0  ;;  %v1801_v47 = vand.u32 2147483648, %v7258_v57  ;;  %v7311_v1 = vmax.f32 %v1646_v39, 0.0 }
 0x191   :  { %v1759_v2 = vrot.slane %v1758_v58, 1  ;;  %v1799_v19 = vsel %vm1798_vm2, %v7258_v57, %v1797_v4  ;;  %vm1800_vm5 = vcmp.eq.f32.partialorder %v7258_v57, 0.0  ;;  %v7315_v38 = vmax.f32 %v1647_v21, 0.0  ;;  %v4673_v21 = vld [vmem:[%s10574_s1 + $0x130] sm:$0xff]  ;;  %v4672_v4 = vld [vmem:[%s10574_s1 + $0x128] sm:$0xff] }
 0x192   :  { %v1766_v30 = vrot.slane %v1765_v10, 1  ;;  %v1788_v45 = vsel %vm1786_vm3, %v1787_v11, %v1785_v62  ;;  %4904 = vrsqrt.f32 %v7301_v7  ;;  %v1359_v37 = vmul.f32 0.5, %v1355_v22  ;;  %v4676_v62 = vld [vmem:[%s10574_s1 + $0x148] sm:$0xff] }
 0x193   :  { %vm1372_vm6 = vcmp.gt.f32.partialorder %v7284_v41, %v11200_v8  ;;  %v7320_v6 = vmax.f32 %v1648_v28, 0.0  ;;  %v1795_v40 = vsel %vm1793_vm4, %v1794_v36, %v1792_v26  ;;  %4906 = vrsqrt.f32 %v7295_v32 }
 0x194   :  { %v1771_v34 = vrot.slane %v1770_v43, 2  ;;  %v7323_v0 = vadd.f32 %v1776_v5, %v1775_v18  ;;  %v1802_v52 = vsel %vm1800_vm5, %v1801_v47, %v1799_v19  ;;  %v7325_v49 = vmul.f32 0.7, %v1358_v17  ;;  %v4671_v17 = vld [vmem:[%s10574_s1 + $0x120] sm:$0xff]  ;;  %v4677_v47 = vld [vmem:[%s10574_s1 + $0x150] sm:$0xff] }
 0x195   :  { %4908 = vrsqrt.f32 %v7311_v1  ;;  %v1760_v44 = vadd.f32 %v1759_v2, %v1758_v58  ;;  %v1810_v53 = vadd.f32 1e-08, %v1788_v45  ;;  %v7333_v22 = vsel %vm1372_vm6, %v7284_v41, %v11200_v8 }
 0x196   :  { %11201 = vst [vmem:[#allocation62_spill] sm:$0xff] %v7333_v22  ;;  %4910 = vrsqrt.f32 %v7315_v38  ;;  %v1767_v56 = vadd.f32 %v1766_v30, %v1765_v10  ;;  %v1811_v39 = vadd.f32 1e-08, %v1795_v40  ;;  %v7342_v60 = vmul.f32 0.7, %v1359_v37  ;;  %v4674_v10 = vld [vmem:[%s10574_s1 + $0x138] sm:$0xff] }
 0x197   :  { %4912 = vrsqrt.f32 %v7320_v6  ;;  %v1812_v18 = vadd.f32 1e-08, %v1802_v52  ;;  %v7346_v33 = vadd.f32 %v1771_v34, %v1770_v43  ;;  %vm1805_vm7 = vcmp.eq.f32.partialorder %v7301_v7, inf  ;;  %v4675_v43 = vld [vmem:[%s10574_s1 + $0x140] sm:$0xff]  ;;  %v4678_v30 = vld [vmem:[%s10574_s1 + $0x158] sm:$0xff] }
 0x198   :  { %4914 = vrcp.f32 %v1810_v53  ;;  %v7357_v11 = vmul.f32 2.0, %v1760_v44  ;;  %v7365_v36 = vunpack.c.l.bf16 %v4671_v17  ;;  %v7367_v5 = vunpack.c.l.bf16 %v4673_v21 }
 0x199   :  { %4916 = vrcp.f32 %v1811_v39  ;;  %v7369_v26 = vmul.f32 2.0, %v1767_v56  ;;  %v7374_v2 = vunpack.c.h.bf16 %v4671_v17  ;;  %v7376_v19 = vunpack.c.h.bf16 %v4673_v21  ;;  %v4679_v39 = vld [vmem:[%s10574_s1 + $0x160] sm:$0xff] }
 0x19a   :  { %11202 = vst [vmem:[#allocation5_spill] sm:$0xff] %v7365_v36  ;;  %11203 = vst [vmem:[#allocation63_spill] sm:$0xff] %v7367_v5  ;;  %vm1807_vm8 = vcmp.eq.f32.partialorder %v7301_v7, 0.0  ;;  %4918 = vrcp.f32 %v1812_v18  ;;  %v7382_v45 = vunpack.c.l.bf16 %v4672_v4  ;;  %v7384_v37 = vunpack.c.h.bf16 %v4672_v4 }
 0x19b   :  { %11204 = vst [vmem:[#allocation65_spill] sm:$0xff] %v7374_v2  ;;  %11205 = vst [vmem:[#allocation64_spill] sm:$0xff] %v7376_v19  ;;  %v7386_v40 = vunpack.c.l.bf16 %v4674_v10  ;;  %v7388_v52 = vunpack.c.h.bf16 %v4674_v10  ;;  %v7390_v44 = vunpack.c.l.bf16 %v4675_v43  ;;  %v7392_v53 = vunpack.c.h.bf16 %v4675_v43  ;;  %v4680_v43 = vld [vmem:[%s10574_s1 + $0x168] sm:$0xff] }
 0x19c   :  { %11206 = vst [vmem:[#allocation68_spill] sm:$0xff] %v7382_v45  ;;  %11207 = vst [vmem:[#allocation66_spill] sm:$0xff] %v7384_v37  ;;  %v4905_v34 = vpop.eup %4904  ;;  %v7394_v56 = vunpack.c.l.bf16 %v4676_v62  ;;  %v7399_v17 = vunpack.c.h.bf16 %v4676_v62  ;;  %v7401_v21 = vunpack.c.l.bf16 %v4677_v47  ;;  %v1951_v18 = vmul.f32 %v7365_v36, %v7365_v36 }
 0x19d   :  { %11208 = vst [vmem:[#allocation69_spill] sm:$0xff] %v7386_v40  ;;  %11209 = vst [vmem:[#allocation67_spill] sm:$0xff] %v7388_v52  ;;  %v1955_v4 = vmul.f32 %v7367_v5, %v7367_v5  ;;  %v7407_v10 = vpop.eup %4906  ;;  %v7412_v15 = vunpack.c.h.bf16 %v4677_v47  ;;  %v7414_v28 = vunpack.c.l.bf16 %v4678_v30  ;;  %v1952_v62 = vmul.f32 %v7374_v2, %v7374_v2 }
 0x19e   :  { %11210 = vst [vmem:[#allocation70_spill] sm:$0xff] %v7390_v44  ;;  %11211 = vst [vmem:[#allocation71_spill] sm:$0xff] %v7392_v53  ;;  %v1956_v58 = vmul.f32 %v7376_v19, %v7376_v19  ;;  %v1804_v13 = vmul.f32 %v4905_v34, %v7301_v7  ;;  %v7423_v22 = vunpack.c.h.bf16 %v4678_v30  ;;  %v1953_v14 = vmul.f32 %v7382_v45, %v7382_v45 }
 0x19f   :  { %11212 = vst [vmem:[#allocation23_spill] sm:$0xff] %v7394_v56  ;;  %11213 = vst [vmem:[#allocation59_spill] sm:$0xff] %v7399_v17  ;;  %v7420_v24 = vpop.eup %4908  ;;  %v1957_v47 = vmul.f32 %v7386_v40, %v7386_v40  ;;  %v7431_v29 = vunpack.c.l.bf16 %v4679_v39  ;;  %v7433_v31 = vunpack.c.h.bf16 %v4679_v39  ;;  %v1954_v20 = vmul.f32 %v7384_v37, %v7384_v37 }
 0x1a0   :  { %11214 = vst [vmem:[#allocation72_spill] sm:$0xff] %v7401_v21  ;;  %11215 = vst [vmem:[#allocation75_spill] sm:$0xff] %v7412_v15  ;;  %v7429_v46 = vpop.eup %4910  ;;  %v1958_v34 = vmul.f32 %v7388_v52, %v7388_v52  ;;  %v7444_v9 = vunpack.c.l.bf16 %v4680_v43  ;;  %v1959_v16 = vmul.f32 %v7390_v44, %v7390_v44  ;;  %v1975_v39 = vmul.f32 %v11176_v23, %v1951_v18 }
 0x1a1   :  { %11216 = vst [vmem:[#allocation76_spill] sm:$0xff] %v7414_v28  ;;  %v7439_v30 = vpop.eup %4912  ;;  %v1979_v3 = vmul.f32 %v11008_v48, %v1955_v4  ;;  %v7450_v27 = vunpack.c.h.bf16 %v4680_v43  ;;  %v1960_v42 = vmul.f32 %v7392_v53, %v7392_v53  ;;  %v1976_v52 = vmul.f32 %v5379_v50, %v1952_v62  ;;  %v4682_v53 = vld [vmem:[%s10574_s1 + $0x178] sm:$0xff] }
 0x1a2   :  { %v1980_v37 = vmul.f32 %v5387_v59, %v1956_v58  ;;  %v4915_v40 = vpop.eup %4914  ;;  %v1806_v19 = vsel %vm1805_vm7, %v7301_v7, %v1804_v13  ;;  %v1961_v44 = vmul.f32 %v7394_v56, %v7394_v56  ;;  %v1977_v18 = vmul.f32 %v5381_v51, %v1953_v14 }
 0x1a3   :  { %11217 = vst [vmem:[#allocation77_spill] sm:$0xff] %v7450_v27  ;;  %v1981_v4 = vmul.f32 %v5389_v61, %v1957_v47  ;;  %v4917_v43 = vpop.eup %4916  ;;  %v7466_v62 = vunpack.c.l.bf16 %v4681_v35  ;;  %v1962_v58 = vmul.f32 %v7399_v17, %v7399_v17  ;;  %v1978_v45 = vmul.f32 %v5383_v55, %v1954_v20 }
 0x1a4   :  { %v1982_v13 = vmul.f32 %v5394_v63, %v1958_v34  ;;  %v7472_v5 = vpop.eup %4918  ;;  %v7474_v56 = vunpack.c.h.bf16 %v4681_v35  ;;  %v1963_v14 = vmul.f32 %v7401_v21, %v7401_v21  ;;  %v1983_v47 = vmul.f32 %v11176_v23, %v1959_v16 }
 0x1a5   :  { %v1999_v2 = vadd.f32 %v1979_v3, %v1975_v39  ;;  %v11218_v36 = vand.u32 2147483648, %v7301_v7  ;;  %v1964_v20 = vmul.f32 %v7412_v15, %v7412_v15  ;;  %v1984_v34 = vmul.f32 %v5379_v50, %v1960_v42 }
 0x1a6   :  { %v2010_v17 = vadd.f32 %v1980_v37, %v1976_v52  ;;  %v7486_v41 = vunpack.c.l.bf16 %v4682_v53  ;;  %v1965_v35 = vmul.f32 %v7414_v28, %v7414_v28  ;;  %v1985_v21 = vmul.f32 %v5381_v51, %v1961_v44 }
 0x1a7   :  { %v1809_v8 = vsel %vm1807_vm8, %v11218_v36, %v1806_v19  ;;  %v2021_v16 = vadd.f32 %v1981_v4, %v1977_v18  ;;  %v7491_v3 = vunpack.c.h.bf16 %v4682_v53  ;;  %v1966_v39 = vmul.f32 %v7423_v22, %v7423_v22  ;;  %v11219_v4 = vld [vmem:[#allocation40_spill] sm:$0xff] }
 0x1a8   :  { %v1986_v36 = vmul.f32 %v5383_v55, %v1962_v58  ;;  %v2032_v19 = vadd.f32 %v1982_v13, %v1978_v45  ;;  %v1813_v15 = vadd.f32 1e-08, %v1809_v8  ;;  %v1967_v42 = vmul.f32 %v7431_v29, %v7431_v29 }
 0x1a9   :  { %v1987_v37 = vmul.f32 %v11008_v48, %v1963_v14  ;;  %v2000_v52 = vadd.f32 %v1999_v2, %v1983_v47  ;;  %v1822_v12 = vmul.f32 %v4915_v40, %v4915_v40  ;;  %v1968_v44 = vmul.f32 %v7433_v31, %v7433_v31 }
 0x1aa   :  { %v1988_v53 = vmul.f32 %v5387_v59, %v1964_v20  ;;  %v2011_v18 = vadd.f32 %v2010_v17, %v1984_v34  ;;  %v1838_v28 = vmul.f32 %v4915_v40, %v11219_v4  ;;  %v1969_v58 = vmul.f32 %v7444_v9, %v7444_v9  ;;  %v11220_v34 = vld [vmem:[#allocation15_spill] sm:$0xff] }
 0x1ab   :  { %v1989_v8 = vmul.f32 %v5389_v61, %v1965_v35  ;;  %v2022_v45 = vadd.f32 %v2021_v16, %v1985_v21  ;;  %vm1655_vm9 = vcmp.eq.f32.partialorder %v7295_v32, inf  ;;  %v1823_v13 = vmul.f32 %v4917_v43, %v4917_v43 }
 0x1ac   :  { %v1970_v2 = vmul.f32 %v7450_v27, %v7450_v27  ;;  %v1990_v14 = vmul.f32 %v5394_v63, %v1966_v39  ;;  %v2033_v47 = vadd.f32 %v2032_v19, %v1986_v36  ;;  %4920 = vrcp.f32 %v1813_v15 }
 0x1ad   :  { %v1971_v17 = vmul.f32 %v7466_v62, %v7466_v62  ;;  %v1991_v40 = vmul.f32 %v11176_v23, %v1967_v42  ;;  %v2001_v20 = vadd.f32 %v2000_v52, %v1987_v37  ;;  %v1839_v4 = vmul.f32 %v4917_v43, %v11220_v34  ;;  %v11223_v34 = vld [vmem:[#allocation24_spill] sm:$0xff] }
 0x1ae   :  { %v1972_v21 = vmul.f32 %v7474_v56, %v7474_v56  ;;  %v1992_v35 = vmul.f32 %v5379_v50, %v1968_v44  ;;  %v2012_v16 = vadd.f32 %v2011_v18, %v1988_v53  ;;  %v1826_v27 = vmul.f32 %v1822_v12, %v7246_v54 }
 0x1af   :  { %v1973_v39 = vmul.f32 %v7486_v41, %v7486_v41  ;;  %v1993_v15 = vmul.f32 %v5381_v51, %v1969_v58  ;;  %v2023_v36 = vadd.f32 %v2022_v45, %v1989_v8  ;;  %vm1657_vm10 = vcmp.eq.f32.partialorder %v7295_v32, 0.0  ;;  %v11222_v45 = vld [vmem:[#allocation22_spill] sm:$0xff] }
 0x1b0   :  { %v1827_v19 = vmul.f32 %v1823_v13, %v7256_v25  ;;  %v1974_v43 = vmul.f32 %v7491_v3, %v7491_v3  ;;  %v1994_v42 = vmul.f32 %v5383_v55, %v1970_v2  ;;  %v2034_v37 = vadd.f32 %v2033_v47, %v1990_v14 }
 0x1b1   :  { %vm1662_vm11 = vcmp.eq.f32.partialorder %v7311_v1, inf  ;;  %v1773_v54 = vrot.slane %v7346_v33, 1  ;;  %v11221_v12 = vrot.slane %v7323_v0, 2  ;;  %v1995_v44 = vmul.f32 %v11008_v48, %v1971_v17 }
 0x1b2   :  { %v2002_v53 = vadd.f32 %v2001_v20, %v1991_v40  ;;  %v1654_v25 = vmul.f32 %v7407_v10, %v7295_v32  ;;  %v1665_v18 = vand.u32 2147483648, %v7311_v1  ;;  %v1996_v58 = vmul.f32 %v5387_v59, %v1972_v21 }
 0x1b3   :  { %v1779_v52 = vadd.f32 %v11221_v12, %v7323_v0  ;;  %v2013_v8 = vadd.f32 %v2012_v16, %v1992_v35  ;;  %v1830_v13 = vadd.f32 %v1826_v27, %v11222_v45  ;;  %v1842_v2 = vmul.f32 %v1838_v28, %v7357_v11  ;;  %v11282_v45 = vld [vmem:[#allocation77_spill] sm:$0xff] }
 0x1b4   :  { %v1997_v14 = vmul.f32 %v5389_v61, %v1973_v39  ;;  %v2024_v47 = vadd.f32 %v2023_v36, %v1993_v15  ;;  %v1831_v0 = vadd.f32 %v1827_v19, %v11223_v34  ;;  %v1843_v17 = vmul.f32 %v1839_v4, %v7369_v26  ;;  %v11279_v34 = vld [vmem:[#allocation51_spill] sm:$0xff] }
 0x1b5   :  { %v1998_v40 = vmul.f32 %v5394_v63, %v1974_v43  ;;  %v2035_v20 = vadd.f32 %v2034_v37, %v1994_v42  ;;  %vm1664_vm12 = vcmp.eq.f32.partialorder %v7311_v1, 0.0  ;;  %vm1669_vm13 = vcmp.eq.f32.partialorder %v7315_v38, inf }
 0x1b6   :  { %v1774_v10 = vadd.f32 %v1773_v54, %v7346_v33  ;;  %v1780_v21 = vrot.slane %v1779_v52, 1  ;;  %v2003_v27 = vadd.f32 %v2002_v53, %v1995_v44  ;;  %vm1671_vm14 = vcmp.eq.f32.partialorder %v7315_v38, 0.0  ;;  %v4921_v4 = vpop.eup %4920  ;;  %v11224_v54 = vld [vmem:[#allocation17_spill] sm:$0xff] }
 0x1b7   :  { %v1672_v28 = vand.u32 2147483648, %v7315_v38  ;;  %vm1676_vm15 = vcmp.eq.f32.partialorder %v7320_v6, inf  ;;  %v1824_v11 = vmul.f32 %v7472_v5, %v7472_v5  ;;  %v2014_v26 = vadd.f32 %v2013_v8, %v1996_v58 }
 0x1b8   :  { %v1656_v35 = vsel %vm1655_vm9, %v7295_v32, %v1654_v25  ;;  %v1661_v33 = vmul.f32 %v7420_v24, %v7311_v1  ;;  %v1846_v16 = vsub.f32 %v1830_v13, %v1842_v2  ;;  %v2025_v39 = vadd.f32 %v2024_v47, %v1997_v14 }
 0x1b9   :  { %v1668_v15 = vmul.f32 %v7429_v46, %v7315_v38  ;;  %v1675_v36 = vmul.f32 %v7439_v30, %v7320_v6  ;;  %v1847_v19 = vsub.f32 %v1831_v0, %v1843_v17  ;;  %v2036_v43 = vadd.f32 %v2035_v20, %v1998_v40  ;;  %v11226_v40 = vld [vmem:[#allocation26_spill] sm:$0xff] }
 0x1ba   :  { %v1781_v42 = vadd.f32 %v1780_v21, %v1779_v52  ;;  %v1836_v37 = vmul.f32 2.0, %v1774_v10  ;;  %v1840_v12 = vmul.f32 %v7472_v5, %v11224_v54  ;;  %v2004_v44 = vrot.slane %v2003_v27, 4  ;;  %v11227_v10 = vld [vmem:[#allocation43_spill] sm:$0xff] }
 0x1bb   :  { %vm1678_vm0 = vcmp.eq.f32.partialorder %v7320_v6, 0.0  ;;  %v1825_v53 = vmul.f32 %v4921_v4, %v4921_v4  ;;  %v1828_v24 = vmul.f32 %v1824_v11, %v7258_v57  ;;  %v2015_v25 = vrot.slane %v2014_v26, 4 }
 0x1bc   :  { %v11225_v58 = vand.u32 2147483648, %v7295_v32  ;;  %v1679_v30 = vand.u32 2147483648, %v7320_v6  ;;  %v7568_v8 = vmax.f32 %v1846_v16, 0.0  ;;  %v2026_v52 = vrot.slane %v2025_v39, 4  ;;  %v11229_v16 = vld [vmem:[#allocation74_spill] sm:$0xff] }
 0x1bd   :  { %v1663_v5 = vsel %vm1662_vm11, %v7311_v1, %v1661_v33  ;;  %v1670_v13 = vsel %vm1669_vm13, %v7315_v38, %v1668_v15  ;;  %v7576_v57 = vmax.f32 %v1847_v19, 0.0  ;;  %v2037_v2 = vrot.slane %v2036_v43, 4  ;;  %v11234_v1 = vld [vmem:[#allocation56_spill] sm:$0xff] }
 0x1be   :  { %v1659_v46 = vsel %vm1657_vm10, %v11225_v58, %v1656_v35  ;;  %v1677_v32 = vsel %vm1676_vm15, %v7320_v6, %v1675_v36  ;;  %v1837_v14 = vmul.f32 2.0, %v1781_v42  ;;  %v1844_v47 = vmul.f32 %v1840_v12, %v1836_v37  ;;  %v11228_v35 = vld [vmem:[#allocation73_spill] sm:$0xff]  ;;  %v11230_v36 = vld [vmem:[#allocation60_spill] sm:$0xff]  ;;  %v11231_v42 = vld [vmem:[#allocation58_spill] sm:$0xff] }
 0x1bf   :  { %v2005_v0 = vadd.f32 %v2004_v44, %v2003_v27  ;;  %v1829_v17 = vmul.f32 %v1825_v53, %v7301_v7  ;;  %v1832_v20 = vadd.f32 %v1828_v24, %v11226_v40  ;;  %v1841_v21 = vmul.f32 %v4921_v4, %v11227_v10  ;;  %v11232_v37 = vld [vmem:[#allocation31_spill] sm:$0xff]  ;;  %v11233_v24 = vld [vmem:[#allocation25_spill] sm:$0xff] }
 0x1c0   :  { %v2016_v11 = vadd.f32 %v2015_v25, %v2014_v26  ;;  %v1370_v33 = vadd.f32 %v7325_v49, %v11228_v35  ;;  %v1371_v15 = vadd.f32 %v7342_v60, %v11229_v16  ;;  %4922 = vrsqrt.f32 %v7568_v8  ;;  %v11249_v25 = vld [vmem:[#allocation11_spill] sm:$0xff] }
 0x1c1   :  { %v2027_v19 = vadd.f32 %v2026_v52, %v2025_v39  ;;  %vm1373_vm1 = vcmp.gt.f32.partialorder %v11231_v42, %v11230_v36  ;;  %v1666_v7 = vsel %vm1664_vm12, %v1665_v18, %v1663_v5  ;;  %4924 = vrsqrt.f32 %v7576_v57 }
 0x1c2   :  { %v2038_v27 = vadd.f32 %v2037_v2, %v2036_v43  ;;  %v1673_v26 = vsel %vm1671_vm14, %v1672_v28, %v1670_v13  ;;  %v1680_v49 = vsel %vm1678_vm0, %v1679_v30, %v1677_v32  ;;  %v1681_v4 = vsub.f32 2.0, %v1659_v46  ;;  %v11250_v43 = vld [vmem:[#allocation63_spill] sm:$0xff] }
 0x1c3   :  { %v2006_v60 = vrot.slane %v2005_v0, 2  ;;  %v1833_v12 = vadd.f32 %v1829_v17, %v11232_v37  ;;  %v1845_v39 = vmul.f32 %v1841_v21, %v1837_v14  ;;  %v1848_v44 = vsub.f32 %v1832_v20, %v1844_v47 }
 0x1c4   :  { %v2017_v53 = vrot.slane %v2016_v11, 2  ;;  %vm1374_vm2 = vcmp.gt.f32.partialorder %v1370_v33, %v11233_v24  ;;  %vm1375_vm3 = vcmp.gt.f32.partialorder %v1371_v15, %v11234_v1  ;;  %v5216_v18 = vmov 0  }
 0x1c5   :  { %v7604_v38 = vsel %vm1372_vm6, 1, %v5216_v18  ;;  %v2028_v28 = vrot.slane %v2027_v19, 2  ;;  %v1682_v6 = vsub.f32 2.0, %v1666_v7  ;;  %v1683_v58 = vsub.f32 2.0, %v1673_v26  ;;  %v11255_v26 = vld [vmem:[#allocation13_spill] sm:$0xff] }
 0x1c6   :  { %11237 = vst [vmem:[#allocation73_spill] sm:$0xff] %v7604_v38  ;;  %v1684_v46 = vsub.f32 2.0, %v1680_v49  ;;  %v2039_v30 = vrot.slane %v2038_v27, 2  ;;  %v7611_v52 = vsel %vm1373_vm1, %v11231_v42, %v11230_v36  ;;  %v7616_v5 = vsel %vm1373_vm1, 1, %v5216_v18  ;;  %v11283_v38 = vld [vmem:[#allocation54_spill] sm:$0xff] }
 0x1c7   :  { %11238 = vst [vmem:[#allocation74_spill] sm:$0xff] %v7611_v52  ;;  %11239 = vst [vmem:[#allocation60_spill] sm:$0xff] %v7616_v5  ;;  %v1685_v13 = vmul.f32 0.5, %v1681_v4  ;;  %v2007_v2 = vadd.f32 %v2006_v60, %v2005_v0  ;;  %v7621_v32 = vsel %vm1374_vm2, %v1370_v33, %v11233_v24  ;;  %v1849_v14 = vsub.f32 %v1833_v12, %v1845_v39  ;;  %v11247_v24 = vld [vmem:[#allocation8_spill] sm:$0xff] }
 0x1c8   :  { %11240 = vst [vmem:[#allocation58_spill] sm:$0xff] %v7621_v32  ;;  %v7623_v47 = vmax.f32 %v1848_v44, 0.0  ;;  %v2018_v17 = vadd.f32 %v2017_v53, %v2016_v11  ;;  %v7628_v20 = vsel %vm1375_vm3, %v1371_v15, %v11234_v1  ;;  %v7632_v21 = vsel %vm1374_vm2, 1, %v5216_v18  ;;  %v11245_v44 = vld [vmem:[#allocation7_spill] sm:$0xff]  ;;  %v11246_v53 = vld [vmem:[#allocation5_spill] sm:$0xff] }
 0x1c9   :  { %11241 = vst [vmem:[#allocation25_spill] sm:$0xff] %v7628_v20  ;;  %11242 = vst [vmem:[#allocation56_spill] sm:$0xff] %v7632_v21  ;;  %v7636_v0 = vsel %vm1375_vm3, 1, %v5216_v18  ;;  %v2029_v35 = vadd.f32 %v2028_v28, %v2027_v19  ;;  %v7638_v16 = vmul.f32 0.5, %v1682_v6  ;;  %v7640_v36 = vmul.f32 0.5, %v1683_v58  ;;  %v11248_v1 = vld [vmem:[#allocation65_spill] sm:$0xff] }
 0x1ca   :  { %11243 = vst [vmem:[#allocation61_spill] sm:$0xff] %v7636_v0  ;;  %v7642_v42 = vmul.f32 0.5, %v1684_v46  ;;  %v2040_v11 = vadd.f32 %v2039_v30, %v2038_v27  ;;  %v4923_v7 = vpop.eup %4922  ;;  %v7646_v33 = vmul.f32 0.3, %v1685_v13  ;;  %v2008_v4 = vrot.slane %v2007_v2, 1  ;;  %v11251_v58 = vld [vmem:[#allocation9_spill] sm:$0xff] }
 0x1cb   :  { %v4925_v60 = vpop.eup %4924  ;;  %v7648_v15 = vmax.f32 %v1849_v14, 0.0  ;;  %4926 = vrsqrt.f32 %v7623_v47  ;;  %v2019_v12 = vrot.slane %v2018_v17, 1  ;;  %v2030_v39 = vrot.slane %v2029_v35, 1  ;;  %v11252_v46 = vld [vmem:[#allocation68_spill] sm:$0xff]  ;;  %v11256_v19 = vld [vmem:[#allocation69_spill] sm:$0xff]  ;;  %v7701_v32 = vld [vmem:[%s10575_s4 + $0x68] sm:$0xff] }
 0x1cc   :  { %11244 = vst [vmem:[#allocation57_spill] sm:$0xff] %v7646_v33  ;;  %v2043_v27 = vmul.f32 %v11246_v53, %v11245_v44  ;;  %v2044_v18 = vmul.f32 %v11248_v1, %v11247_v24  ;;  %v2047_v28 = vmul.f32 %v11250_v43, %v11249_v25  ;;  %v2041_v6 = vrot.slane %v2040_v11, 1  ;;  %v11253_v13 = vld [vmem:[#allocation12_spill] sm:$0xff]  ;;  %v11257_v24 = vld [vmem:[#allocation10_spill] sm:$0xff]  ;;  %v11284_v33 = vld [vmem:[#allocation55_spill] sm:$0xff] }
 0x1cd   :  { %v2045_v30 = vmul.f32 %v11252_v46, %v11251_v58  ;;  %v11254_v14 = vld [vmem:[#allocation64_spill] sm:$0xff]  ;;  %v2049_v37 = vmul.f32 %v11256_v19, %v11255_v26  ;;  %v7665_v10 = vmul.f32 %v4923_v7, %v7568_v8  ;;  %v7668_v53 = vmul.f32 %v4925_v60, %v7576_v57  ;;  %v11258_v43 = vld [vmem:[#allocation66_spill] sm:$0xff]  ;;  %v11260_v58 = vld [vmem:[#allocation67_spill] sm:$0xff] }
 0x1ce   :  { %v2048_v49 = vmul.f32 %v11254_v14, %v11253_v13  ;;  %v7670_v1 = vadd.f32 %v2008_v4, %v2007_v2  ;;  %v2046_v25 = vmul.f32 %v11258_v43, %v11257_v24  ;;  %v7674_v44 = vadd.f32 %v2019_v12, %v2018_v17  ;;  %v11259_v46 = vld [vmem:[#allocation14_spill] sm:$0xff]  ;;  %v11263_v19 = vld [vmem:[#allocation19_spill] sm:$0xff]  ;;  %v4685_v2 = vld [vmem:[%s10575_s4 + $0x70] sm:$0xff] }
 0x1cf   :  { %v2050_v0 = vmul.f32 %v11260_v58, %v11259_v46  ;;  %v11261_v14 = vld [vmem:[#allocation18_spill] sm:$0xff]  ;;  %v11264_v26 = vld [vmem:[#allocation71_spill] sm:$0xff]  ;;  %v7688_v4 = vadd.f32 %v2030_v39, %v2029_v35  ;;  %v11265_v17 = vld [vmem:[#allocation44_spill] sm:$0xff]  ;;  %v2089_v20 = vadd.f32 %v2049_v37, %v2045_v30  ;;  %v7722_v30 = vunpack.c.l.bf16 %v7701_v32 }
 0x1d0   :  { %v11262_v13 = vld [vmem:[#allocation70_spill] sm:$0xff]  ;;  %v2052_v7 = vmul.f32 %v11264_v26, %v11263_v19  ;;  %v11266_v12 = vld [vmem:[#allocation23_spill] sm:$0xff]  ;;  %v11267_v58 = vld [vmem:[#allocation45_spill] sm:$0xff]  ;;  %v2078_v54 = vadd.f32 %v2048_v49, %v2044_v18  ;;  %4928 = vrsqrt.f32 %v7670_v1  ;;  %v7718_v18 = vunpack.c.h.bf16 %v4685_v2 }
 0x1d1   :  { %v2051_v21 = vmul.f32 %v11262_v13, %v11261_v14  ;;  %v4683_v60 = vld [vmem:[%s10575_s4 + $0x60] sm:$0xff]  ;;  %v2053_v43 = vmul.f32 %v11266_v12, %v11265_v17  ;;  %v11268_v46 = vld [vmem:[#allocation59_spill] sm:$0xff]  ;;  %v2067_v13 = vadd.f32 %v2047_v28, %v2043_v27  ;;  %v7694_v14 = vadd.f32 %v2041_v6, %v2040_v11  ;;  %v11270_v19 = vld [vmem:[#allocation72_spill] sm:$0xff]  ;;  %11273 = vst [vmem:[#allocation5_spill] sm:$0xff] %v7722_v30 }
 0x1d2   :  { %v2054_v24 = vmul.f32 %v11268_v46, %v11267_v58  ;;  %v11269_v26 = vld [vmem:[#allocation46_spill] sm:$0xff]  ;;  %v7706_v35 = vld [vmem:[%s10575_s4 + $0x78] sm:$0xff]  ;;  %v11271_v39 = vld [vmem:[#allocation47_spill] sm:$0xff]  ;;  %v7711_v11 = vunpack.c.l.bf16 %v4683_v60  ;;  %v7713_v28 = vunpack.c.l.bf16 %v4685_v2  ;;  %v2100_v37 = vadd.f32 %v2050_v0, %v2046_v25 }
 0x1d3   :  { %v2055_v40 = vmul.f32 %v11270_v19, %v11269_v26  ;;  %v11272_v46 = vld [vmem:[#allocation75_spill] sm:$0xff]  ;;  %4930 = vrsqrt.f32 %v7674_v44  ;;  %v7716_v49 = vunpack.c.h.bf16 %v4683_v60  ;;  %v2068_v6 = vadd.f32 %v2067_v13, %v2051_v21  ;;  %v11277_v21 = vld [vmem:[#allocation49_spill] sm:$0xff]  ;;  %v11278_v58 = vld [vmem:[#allocation50_spill] sm:$0xff] }
 0x1d4   :  { %v2056_v27 = vmul.f32 %v11272_v46, %v11271_v39  ;;  %4932 = vrsqrt.f32 %v7688_v4  ;;  %v7725_v19 = vunpack.c.l.bf16 %v7706_v35  ;;  %v11275_v46 = vld [vmem:[#allocation48_spill] sm:$0xff]  ;;  %v2079_v25 = vadd.f32 %v2078_v54, %v2052_v7 }
 0x1d5   :  { %v7727_v12 = vpop.eup %4926  ;;  %v11276_v39 = vld [vmem:[#allocation76_spill] sm:$0xff]  ;;  %v2090_v26 = vadd.f32 %v2089_v20, %v2053_v43  ;;  %4934 = vrsqrt.f32 %v7694_v14  ;;  %v2058_v60 = vmul.f32 %v7423_v22, %v11277_v21  ;;  %v2232_v2 = vmul.f32 %v7711_v11, %v7711_v11 }
 0x1d6   :  { %11274 = vst [vmem:[#allocation65_spill] sm:$0xff] %v7725_v19  ;;  %v2057_v0 = vmul.f32 %v11276_v39, %v11275_v46  ;;  %4936 = vrsqrt.f32 %v7648_v15  ;;  %v2236_v13 = vmul.f32 %v7713_v28, %v7713_v28  ;;  %v2059_v17 = vmul.f32 %v7431_v29, %v11278_v58  ;;  %v11280_v46 = vld [vmem:[#allocation52_spill] sm:$0xff]  ;;  %v11281_v58 = vld [vmem:[#allocation53_spill] sm:$0xff] }
 0x1d7   :  { %v2060_v54 = vmul.f32 %v7433_v31, %v11279_v34  ;;  %v2233_v20 = vmul.f32 %v7716_v49, %v7716_v49  ;;  %v2237_v7 = vmul.f32 %v7718_v18, %v7718_v18  ;;  %v2069_v43 = vadd.f32 %v2068_v6, %v2055_v40  ;;  %v11285_v6 = vld [vmem:[#allocation27_spill] sm:$0xff] }
 0x1d8   :  { %v2101_v22 = vadd.f32 %v2100_v37, %v2054_v24  ;;  %v2234_v39 = vmul.f32 %v7722_v30, %v7722_v30  ;;  %v2238_v21 = vmul.f32 %v7725_v19, %v7725_v19  ;;  %v2061_v29 = vmul.f32 %v7444_v9, %v11280_v46  ;;  %v11286_v30 = vld [vmem:[#allocation30_spill] sm:$0xff] }
 0x1d9   :  { %v2062_v31 = vmul.f32 %v11282_v45, %v11281_v58  ;;  %v2080_v34 = vadd.f32 %v2079_v25, %v2056_v27  ;;  %v2091_v5 = vadd.f32 %v2090_v26, %v2057_v0  ;;  %v2063_v52 = vmul.f32 %v7466_v62, %v11283_v38 }
 0x1da   :  { %v2064_v40 = vmul.f32 %v7474_v56, %v11284_v33  ;;  %v2240_v24 = vmul.f32 %v11176_v23, %v2232_v2  ;;  %v2244_v37 = vmul.f32 %v11008_v48, %v2236_v13  ;;  %v2065_v19 = vmul.f32 %v7486_v41, %v11285_v6  ;;  %v4929_v27 = vpop.eup %4928 }
 0x1db   :  { %v2066_v9 = vmul.f32 %v7491_v3, %v11286_v30  ;;  %v2241_v45 = vmul.f32 %v5379_v50, %v2233_v20  ;;  %v2245_v26 = vmul.f32 %v5387_v59, %v2237_v7  ;;  %vm1856_vm4 = vcmp.eq.f32.partialorder %v7568_v8, inf }
 0x1dc   :  { %v2070_v62 = vadd.f32 %v2069_v43, %v2059_v17  ;;  %v2102_v0 = vadd.f32 %v2101_v22, %v2058_v60  ;;  %v2242_v56 = vmul.f32 %v5381_v51, %v2234_v39  ;;  %v2246_v25 = vmul.f32 %v5389_v61, %v2238_v21 }
 0x1dd   :  { %v4931_v2 = vpop.eup %4930  ;;  %v2081_v13 = vadd.f32 %v2080_v34, %v2060_v54  ;;  %v2092_v33 = vadd.f32 %v2091_v5, %v2061_v29  ;;  %vm2113_vm5 = vcmp.eq.f32.partialorder %v7670_v1, inf  ;;  %vm2115_vm6 = vcmp.eq.f32.partialorder %v7670_v1, 0.0 }
 0x1de   :  { %v4933_v41 = vpop.eup %4932  ;;  %v2116_v3 = vand.u32 2147483648, %v7670_v1  ;;  %vm2120_vm7 = vcmp.eq.f32.partialorder %v7674_v44, inf  ;;  %vm2122_vm8 = vcmp.eq.f32.partialorder %v7674_v44, 0.0  ;;  %v2248_v17 = vadd.f32 %v2244_v37, %v2240_v24 }
 0x1df   :  { %v4935_v60 = vpop.eup %4934  ;;  %v2112_v20 = vmul.f32 %v4929_v27, %v7670_v1  ;;  %v2123_v21 = vand.u32 2147483648, %v7674_v44  ;;  %vm2127_vm9 = vcmp.eq.f32.partialorder %v7688_v4, inf  ;;  %v2255_v34 = vadd.f32 %v2245_v26, %v2241_v45 }
 0x1e0   :  { %v7778_v5 = vpop.eup %4936  ;;  %vm1858_vm10 = vcmp.eq.f32.partialorder %v7568_v8, 0.0  ;;  %vm1863_vm11 = vcmp.eq.f32.partialorder %v7576_v57, inf  ;;  %v2071_v54 = vadd.f32 %v2070_v62, %v2063_v52  ;;  %v2103_v7 = vadd.f32 %v2102_v0, %v2062_v31 }
 0x1e1   :  { %v2119_v43 = vmul.f32 %v4931_v2, %v7674_v44  ;;  %v2262_v22 = vadd.f32 %v2246_v25, %v2242_v56  ;;  %v2082_v39 = vadd.f32 %v2081_v13, %v2064_v40  ;;  %v2093_v29 = vadd.f32 %v2092_v33, %v2065_v19 }
 0x1e2   :  { %v2126_v24 = vmul.f32 %v4933_v41, %v7688_v4  ;;  %vm2129_vm12 = vcmp.eq.f32.partialorder %v7688_v4, 0.0  ;;  %vm1870_vm13 = vcmp.eq.f32.partialorder %v7623_v47, inf  ;;  %v2130_v37 = vand.u32 2147483648, %v7688_v4 }
 0x1e3   :  { %v2133_v45 = vmul.f32 %v4935_v60, %v7694_v14  ;;  %vm2134_vm14 = vcmp.eq.f32.partialorder %v7694_v14, inf  ;;  %v2249_v26 = vrot.slane %v2248_v17, 4  ;;  %v2114_v52 = vsel %vm2113_vm5, %v7670_v1, %v2112_v20 }
 0x1e4   :  { %vm2136_vm15 = vcmp.eq.f32.partialorder %v7694_v14, 0.0  ;;  %v2137_v33 = vand.u32 2147483648, %v7694_v14  ;;  %v2256_v19 = vrot.slane %v2255_v34, 4  ;;  %vm1865_vm0 = vcmp.eq.f32.partialorder %v7576_v57, 0.0 }
 0x1e5   :  { %v2072_v31 = vrot.slane %v2071_v54, 4  ;;  %v2104_v40 = vadd.f32 %v2103_v7, %v2066_v9  ;;  %v2121_v27 = vsel %vm2120_vm7, %v7674_v44, %v2119_v43  ;;  %v2263_v62 = vrot.slane %v2262_v22, 4 }
 0x1e6   :  { %v2083_v0 = vrot.slane %v2082_v39, 4  ;;  %v2094_v56 = vrot.slane %v2093_v29, 4  ;;  %v2128_v25 = vsel %vm2127_vm9, %v7688_v4, %v2126_v24  ;;  %v7802_v2 = vunpack.c.h.bf16 %v7701_v32 }
 0x1e7   :  { %vm1872_vm1 = vcmp.eq.f32.partialorder %v7623_v47, 0.0  ;;  %v2117_v13 = vsel %vm2115_vm6, %v2116_v3, %v2114_v52  ;;  %v2135_v9 = vsel %vm2134_vm14, %v7694_v14, %v2133_v45  ;;  %v7811_v41 = vunpack.c.h.bf16 %v7706_v35 }
 0x1e8   :  { %v2250_v60 = vadd.f32 %v2249_v26, %v2248_v17  ;;  %v1857_v20 = vsel %vm1856_vm4, %v7568_v8, %v7665_v10  ;;  %v1869_v32 = vmul.f32 %v7727_v12, %v7623_v47  ;;  %v2124_v7 = vsel %vm2122_vm8, %v2123_v21, %v2121_v27 }
 0x1e9   :  { %v2257_v3 = vadd.f32 %v2256_v19, %v2255_v34  ;;  %v2073_v43 = vadd.f32 %v2072_v31, %v2071_v54  ;;  %v2105_v24 = vrot.slane %v2104_v40, 4  ;;  %v2131_v45 = vsel %vm2129_vm12, %v2130_v37, %v2128_v25 }
 0x1ea   :  { %v2264_v35 = vadd.f32 %v2263_v62, %v2262_v22  ;;  %v2084_v52 = vadd.f32 %v2083_v0, %v2082_v39  ;;  %v2095_v17 = vadd.f32 %v2094_v56, %v2093_v29  ;;  %v2138_v26 = vsel %vm2136_vm15, %v2137_v33, %v2135_v9 }
 0x1eb   :  { %v2139_v30 = vadd.f32 1e-08, %v2117_v13  ;;  %v2140_v10 = vadd.f32 1e-08, %v2124_v7  ;;  %v2235_v12 = vmul.f32 %v7802_v2, %v7802_v2  ;;  %v2239_v21 = vmul.f32 %v7811_v41, %v7811_v41 }
 0x1ec   :  { %v2251_v34 = vrot.slane %v2250_v60, 2  ;;  %v11287_v54 = vand.u32 2147483648, %v7568_v8  ;;  %v1864_v22 = vsel %vm1863_vm11, %v7576_v57, %v7668_v53  ;;  %v2141_v39 = vadd.f32 1e-08, %v2131_v45 }
 0x1ed   :  { %v2258_v29 = vrot.slane %v2257_v3, 2  ;;  %v2074_v33 = vrot.slane %v2073_v43, 2  ;;  %v2106_v19 = vadd.f32 %v2105_v24, %v2104_v40  ;;  %v2142_v31 = vadd.f32 1e-08, %v2138_v26 }
 0x1ee   :  { %v1860_v37 = vsel %vm1858_vm10, %v11287_v54, %v1857_v20  ;;  %v2265_v27 = vrot.slane %v2264_v35, 2  ;;  %v1871_v62 = vsel %vm1870_vm13, %v7623_v47, %v1869_v32  ;;  %v2085_v0 = vrot.slane %v2084_v52, 2 }
 0x1ef   :  { %v2096_v56 = vrot.slane %v2095_v17, 2  ;;  %4938 = vrcp.f32 %v2139_v30  ;;  %v2243_v8 = vmul.f32 %v5383_v55, %v2235_v12  ;;  %v2247_v25 = vmul.f32 %v5394_v63, %v2239_v21 }
 0x1f0   :  { %4940 = vrcp.f32 %v2140_v10  ;;  %v2252_v13 = vadd.f32 %v2251_v34, %v2250_v60  ;;  %v11288_v53 = vand.u32 2147483648, %v7576_v57  ;;  %v1882_v9 = vsub.f32 2.0, %v1860_v37 }
 0x1f1   :  { %4942 = vrcp.f32 %v2141_v39  ;;  %v2259_v20 = vadd.f32 %v2258_v29, %v2257_v3  ;;  %v2075_v7 = vadd.f32 %v2074_v33, %v2073_v43  ;;  %v2107_v24 = vrot.slane %v2106_v19, 2  ;;  %v11291_v39 = vld [vmem:[#allocation41_spill] sm:$0xff] }
 0x1f2   :  { %v1867_v40 = vsel %vm1865_vm0, %v11288_v53, %v1864_v22  ;;  %4944 = vrcp.f32 %v2142_v31  ;;  %v2266_v32 = vadd.f32 %v2265_v27, %v2264_v35  ;;  %v11289_v30 = vand.u32 2147483648, %v7623_v47  ;;  %v11292_v31 = vld [vmem:[#allocation35_spill] sm:$0xff] }
 0x1f3   :  { %v7851_v26 = vmul.f32 0.3, %v7638_v16  ;;  %v2086_v60 = vadd.f32 %v2085_v0, %v2084_v52  ;;  %v2097_v10 = vadd.f32 %v2096_v56, %v2095_v17  ;;  %v7854_v57 = vmul.f32 0.3, %v7640_v36  ;;  %v11290_v17 = vld [vmem:[#allocation2_spill] sm:$0xff] }
 0x1f4   :  { %v1874_v45 = vsel %vm1872_vm1, %v11289_v30, %v1871_v62  ;;  %v7857_v12 = vmul.f32 0.3, %v7642_v42  ;;  %v2253_v3 = vrot.slane %v2252_v13, 1  ;;  %v2269_v43 = vadd.f32 %v2247_v25, %v2243_v8  ;;  %v11293_v62 = vld [vmem:[#allocation42_spill] sm:$0xff] }
 0x1f5   :  { %vm1877_vm2 = vcmp.eq.f32.partialorder %v7648_v15, inf  ;;  %v1883_v35 = vsub.f32 2.0, %v1867_v40  ;;  %v1886_v21 = vmul.f32 0.5, %v1882_v9  ;;  %v2260_v34 = vrot.slane %v2259_v20, 1 }
 0x1f6   :  { %v1884_v47 = vsub.f32 2.0, %v1874_v45  ;;  %v2076_v54 = vrot.slane %v2075_v7, 1  ;;  %v2108_v37 = vadd.f32 %v2107_v24, %v2106_v19  ;;  %v2267_v16 = vrot.slane %v2266_v32, 1 }
 0x1f7   :  { %v2087_v22 = vrot.slane %v2086_v60, 1  ;;  %v2098_v52 = vrot.slane %v2097_v10, 1  ;;  %v2276_v36 = vmul.f32 %v7711_v11, %v11290_v17  ;;  %v2277_v42 = vmul.f32 %v7716_v49, %v11291_v39 }
 0x1f8   :  { %v7864_v29 = vadd.f32 %v2253_v3, %v2252_v13  ;;  %v2270_v33 = vrot.slane %v2269_v43, 4  ;;  %v2280_v27 = vmul.f32 %v7713_v28, %v11292_v31  ;;  %v2281_v0 = vmul.f32 %v7718_v18, %v11293_v62 }
 0x1f9   :  { %v4939_v56 = vpop.eup %4938  ;;  %vm1879_vm3 = vcmp.eq.f32.partialorder %v7648_v15, 0.0  ;;  %v1880_v19 = vand.u32 2147483648, %v7648_v15  ;;  %v1887_v8 = vmul.f32 0.5, %v1883_v35  ;;  %v7872_v25 = vadd.f32 %v2260_v34, %v2259_v20 }
 0x1fa   :  { %v4941_v11 = vpop.eup %4940  ;;  %v1876_v49 = vmul.f32 %v7778_v5, %v7648_v15  ;;  %v1888_v13 = vmul.f32 0.5, %v1884_v47  ;;  %v1894_v53 = vmul.f32 0.7, %v1886_v21  ;;  %v7876_v40 = vadd.f32 %v2267_v16, %v2266_v32  ;;  %v11294_v32 = vld [vmem:[#allocation57_spill] sm:$0xff] }
 0x1fb   :  { %v4943_v28 = vpop.eup %4942  ;;  %v2077_v9 = vadd.f32 %v2076_v54, %v2075_v7  ;;  %v2088_v24 = vadd.f32 %v2087_v22, %v2086_v60  ;;  %v2099_v18 = vadd.f32 %v2098_v52, %v2097_v10  ;;  %v2109_v30 = vrot.slane %v2108_v37, 1 }
 0x1fc   :  { %v4945_v45 = vpop.eup %4944  ;;  %v2271_v3 = vadd.f32 %v2270_v33, %v2269_v43  ;;  %v2284_v62 = vadd.f32 %v2280_v27, %v2276_v36  ;;  %v2291_v31 = vadd.f32 %v2281_v0, %v2277_v42  ;;  %4946 = vrsqrt.f32 %v7864_v29  ;;  %v11295_v33 = vld [vmem:[#allocation28_spill] sm:$0xff]  ;;  %v11296_v0 = vld [vmem:[#allocation29_spill] sm:$0xff] }
 0x1fd   :  { %v1895_v20 = vmul.f32 0.7, %v1887_v8  ;;  %v2151_v35 = vmul.f32 %v4939_v56, %v4939_v56  ;;  %v2152_v34 = vmul.f32 %v4941_v11, %v4941_v11  ;;  %4948 = vrsqrt.f32 %v7872_v25 }
 0x1fe   :  { %v1878_v5 = vsel %vm1877_vm2, %v7648_v15, %v1876_v49  ;;  %v7884_v7 = vadd.f32 %v1894_v53, %v11294_v32  ;;  %v2153_v60 = vmul.f32 %v4943_v28, %v4943_v28  ;;  %4950 = vrsqrt.f32 %v7876_v40  ;;  %v11297_v53 = vld [vmem:[#allocation32_spill] sm:$0xff] }
 0x1ff   :  { %v2110_v10 = vadd.f32 %v2109_v30, %v2108_v37  ;;  %v2154_v43 = vmul.f32 %v4945_v45, %v4945_v45  ;;  %v2163_v21 = vmul.f32 2.0, %v2077_v9  ;;  %v2164_v47 = vmul.f32 2.0, %v2088_v24  ;;  %v11298_v37 = vld [vmem:[#allocation21_spill] sm:$0xff] }
 0x200   :  { %v2165_v54 = vmul.f32 2.0, %v2099_v18  ;;  %v2272_v16 = vrot.slane %v2271_v3, 2  ;;  %v2285_v22 = vrot.slane %v2284_v62, 4  ;;  %v2292_v52 = vrot.slane %v2291_v31, 4  ;;  %v11299_v30 = vld [vmem:[#allocation5_spill] sm:$0xff] }
 0x201   :  { %v2155_v36 = vmul.f32 %v2151_v35, %v7670_v1  ;;  %v2156_v42 = vmul.f32 %v2152_v34, %v7674_v44  ;;  %v2167_v27 = vmul.f32 %v4939_v56, %v11295_v33  ;;  %v2168_v8 = vmul.f32 %v4941_v11, %v11296_v0  ;;  %v11300_v24 = vld [vmem:[#allocation33_spill] sm:$0xff]  ;;  %v11302_v35 = vld [vmem:[#allocation34_spill] sm:$0xff] }
 0x202   :  { %v2157_v49 = vmul.f32 %v2153_v60, %v7688_v4  ;;  %v2169_v32 = vmul.f32 %v4943_v28, %v11297_v53  ;;  %v2278_v9 = vmul.f32 %v11299_v30, %v11298_v37  ;;  %v11301_v18 = vld [vmem:[#allocation65_spill] sm:$0xff]  ;;  %v1896_v17 = vmul.f32 0.7, %v1888_v13  ;;  %v11303_v60 = vld [vmem:[#allocation36_spill] sm:$0xff] }
 0x203   :  { %v2282_v39 = vmul.f32 %v11301_v18, %v11300_v24  ;;  %v2158_v6 = vmul.f32 %v2154_v43, %v7694_v14  ;;  %v2166_v1 = vmul.f32 2.0, %v2110_v10  ;;  %v2170_v44 = vmul.f32 %v4945_v45, %v11302_v35  ;;  %v11304_v53 = vld [vmem:[#allocation37_spill] sm:$0xff]  ;;  %v11305_v14 = vld [vmem:[#allocation38_spill] sm:$0xff] }
 0x204   :  { %v1881_v56 = vsel %vm1879_vm3, %v1880_v19, %v1878_v5  ;;  %v2273_v11 = vadd.f32 %v2272_v16, %v2271_v3  ;;  %v2286_v34 = vadd.f32 %v2285_v22, %v2284_v62  ;;  %v2293_v4 = vadd.f32 %v2292_v52, %v2291_v31  ;;  %v11306_v31 = vld [vmem:[#allocation39_spill] sm:$0xff]  ;;  %v11307_v16 = vld [vmem:[#allocation62_spill] sm:$0xff]  ;;  %v11309_v52 = vld [vmem:[#allocation20_spill] sm:$0xff] }
 0x205   :  { %v2159_v28 = vadd.f32 %v2155_v36, %v11303_v60  ;;  %v2160_v0 = vadd.f32 %v2156_v42, %v11304_v53  ;;  %v2171_v30 = vmul.f32 %v2167_v27, %v2163_v21  ;;  %v2172_v33 = vmul.f32 %v2168_v8, %v2164_v47  ;;  %v11308_v47 = vld [vmem:[#allocation16_spill] sm:$0xff] }
 0x206   :  { %v4947_v37 = vpop.eup %4946  ;;  %v7904_v13 = vadd.f32 %v1895_v20, %v7851_v26  ;;  %v2161_v10 = vadd.f32 %v2157_v49, %v11305_v14  ;;  %v2173_v43 = vmul.f32 %v2169_v32, %v2165_v54  ;;  %v2298_v45 = vadd.f32 %v2282_v39, %v2278_v9 }
 0x207   :  { %v4949_v18 = vpop.eup %4948  ;;  %v1885_v15 = vsub.f32 2.0, %v1881_v56  ;;  %v7908_v19 = vadd.f32 %v1896_v17, %v7854_v57  ;;  %v2162_v62 = vadd.f32 %v2158_v6, %v11306_v31  ;;  %v2174_v3 = vmul.f32 %v2170_v44, %v2166_v1 }
 0x208   :  { %v4951_v5 = vpop.eup %4950  ;;  %vm1902_vm4 = vcmp.gt.f32.partialorder %v7884_v7, %v11307_v16  ;;  %v2274_v21 = vrot.slane %v2273_v11, 1  ;;  %v2279_v26 = vmul.f32 %v7802_v2, %v11308_v47  ;;  %v2287_v20 = vrot.slane %v2286_v34, 2 }
 0x209   :  { %v2294_v22 = vrot.slane %v2293_v4, 2  ;;  %v2175_v54 = vsub.f32 %v2159_v28, %v2171_v30  ;;  %v2176_v39 = vsub.f32 %v2160_v0, %v2172_v33  ;;  %v2283_v36 = vmul.f32 %v7811_v41, %v11309_v52 }
 0x20a   :  { %v2313_v57 = vmul.f32 %v4947_v37, %v7864_v29  ;;  %v2177_v17 = vsub.f32 %v2161_v10, %v2173_v43  ;;  %v2299_v6 = vrot.slane %v2298_v45, 4  ;;  %vm2314_vm5 = vcmp.eq.f32.partialorder %v7864_v29, inf  ;;  %v11310_v43 = vld [vmem:[#allocation74_spill] sm:$0xff] }
 0x20b   :  { %v2320_v42 = vmul.f32 %v4949_v18, %v7872_v25  ;;  %v2178_v27 = vsub.f32 %v2162_v62, %v2174_v3  ;;  %v2317_v8 = vand.u32 2147483648, %v7864_v29  ;;  %vm2321_vm6 = vcmp.eq.f32.partialorder %v7872_v25, inf }
 0x20c   :  { %v2327_v2 = vmul.f32 %v4951_v5, %v7876_v40  ;;  %v7923_v49 = vadd.f32 %v2274_v21, %v2273_v11  ;;  %v2288_v33 = vadd.f32 %v2287_v20, %v2286_v34  ;;  %v2295_v0 = vadd.f32 %v2294_v22, %v2293_v4  ;;  %v11313_v20 = vld [vmem:[#allocation73_spill] sm:$0xff] }
 0x20d   :  { %vm2328_vm7 = vcmp.eq.f32.partialorder %v7876_v40, inf  ;;  %v2305_v41 = vadd.f32 %v2283_v36, %v2279_v26  ;;  %v2315_v32 = vsel %vm2314_vm5, %v7864_v29, %v2313_v57  ;;  %vm2316_vm8 = vcmp.eq.f32.partialorder %v7864_v29, 0.0  ;;  %v4687_v57 = vld [vmem:[%s10574_s1 + $0x180] sm:$0xff] }
 0x20e   :  { %v2324_v37 = vand.u32 2147483648, %v7872_v25  ;;  %v2300_v9 = vadd.f32 %v2299_v6, %v2298_v45  ;;  %v2322_v1 = vsel %vm2321_vm6, %v7872_v25, %v2320_v42  ;;  %vm2323_vm9 = vcmp.eq.f32.partialorder %v7872_v25, 0.0 }
 0x20f   :  { %v2331_v44 = vand.u32 2147483648, %v7876_v40  ;;  %v7932_v56 = vmax.f32 %v2175_v54, 0.0  ;;  %v7934_v11 = vmax.f32 %v2176_v39, 0.0  ;;  %v2329_v34 = vsel %vm2328_vm7, %v7876_v40, %v2327_v2 }
 0x210   :  { %vm2330_vm10 = vcmp.eq.f32.partialorder %v7876_v40, 0.0  ;;  %v2289_v4 = vrot.slane %v2288_v33, 1  ;;  %v2296_v28 = vrot.slane %v2295_v0, 1  ;;  %v2318_v30 = vsel %vm2316_vm8, %v2317_v8, %v2315_v32  ;;  %v4691_v32 = vld [vmem:[%s10574_s1 + $0x1a0] sm:$0xff] }
 0x211   :  { %4952 = vrsqrt.f32 %v7923_v49  ;;  %v1889_v10 = vmul.f32 0.5, %v1885_v15  ;;  %vm1903_vm11 = vcmp.gt.f32.partialorder %v7904_v13, %v11310_v43  ;;  %v7941_v45 = vmax.f32 %v2177_v17, 0.0  ;;  %v4689_v17 = vld [vmem:[%s10574_s1 + $0x190] sm:$0xff] }
 0x212   :  { %v2325_v18 = vsel %vm2323_vm9, %v2324_v37, %v2322_v1  ;;  %v7943_v62 = vmax.f32 %v2178_v27, 0.0  ;;  %v2301_v3 = vrot.slane %v2300_v9, 2  ;;  %v2306_v5 = vrot.slane %v2305_v41, 4 }
 0x213   :  { %v2332_v21 = vsel %vm2330_vm10, %v2331_v44, %v2329_v34  ;;  %v7950_v26 = vsel %vm1902_vm4, %v7884_v7, %v11307_v16  ;;  %v7956_v15 = vsel %vm1902_vm4, 2, %v11313_v20  ;;  %4954 = vrsqrt.f32 %v7932_v56  ;;  %v11316_v16 = vld [vmem:[#allocation60_spill] sm:$0xff]  ;;  %v4692_v44 = vld [vmem:[%s10574_s1 + $0x1a8] sm:$0xff] }
 0x214   :  { %11311 = vst [vmem:[#allocation63_spill] sm:$0xff] %v7943_v62  ;;  %11312 = vst [vmem:[#allocation68_spill] sm:$0xff] %v7950_v26  ;;  %v2340_v22 = vadd.f32 1e-08, %v2318_v30  ;;  %4956 = vrsqrt.f32 %v7934_v11  ;;  %v2290_v54 = vadd.f32 %v2289_v4, %v2288_v33  ;;  %v2297_v39 = vadd.f32 %v2296_v28, %v2295_v0  ;;  %v4688_v33 = vld [vmem:[%s10574_s1 + $0x188] sm:$0xff]  ;;  %v4690_v0 = vld [vmem:[%s10574_s1 + $0x198] sm:$0xff] }
 0x215   :  { %11314 = vst [vmem:[#allocation64_spill] sm:$0xff] %v7956_v15  ;;  %v2341_v36 = vadd.f32 1e-08, %v2325_v18  ;;  %v7971_v7 = vsel %vm1903_vm11, %v7904_v13, %v11310_v43  ;;  %v7977_v6 = vsel %vm1903_vm11, 2, %v11316_v16  ;;  %4958 = vrsqrt.f32 %v7941_v45  ;;  %v4693_v4 = vld [vmem:[%s10574_s1 + $0x1b0] sm:$0xff]  ;;  %v4694_v28 = vld [vmem:[%s10574_s1 + $0x1b8] sm:$0xff] }
 0x216   :  { %11315 = vst [vmem:[#allocation69_spill] sm:$0xff] %v7971_v7  ;;  %11317 = vst [vmem:[#allocation66_spill] sm:$0xff] %v7977_v6  ;;  %v2342_v42 = vadd.f32 1e-08, %v2332_v21  ;;  %v7980_v27 = vmul.f32 0.7, %v1889_v10  ;;  %4960 = vrsqrt.f32 %v7943_v62  ;;  %v7983_v8 = vadd.f32 %v2301_v3, %v2300_v9 }
 0x217   :  { %v7985_v2 = vadd.f32 %v2306_v5, %v2305_v41  ;;  %vm2335_vm12 = vcmp.eq.f32.partialorder %v7923_v49, inf  ;;  %4962 = vrcp.f32 %v2340_v22  ;;  %v7998_v37 = vunpack.c.l.bf16 %v4687_v57  ;;  %v4695_v3 = vld [vmem:[%s10574_s1 + $0x1c0] sm:$0xff] }
 0x218   :  { %v8000_v41 = vunpack.c.l.bf16 %v4689_v17  ;;  %4964 = vrcp.f32 %v2341_v36  ;;  %v8002_v9 = vmul.f32 2.0, %v2290_v54  ;;  %v8004_v1 = vmul.f32 2.0, %v2297_v39  ;;  %v4696_v54 = vld [vmem:[%s10574_s1 + $0x1c8] sm:$0xff] }
 0x219   :  { %11318 = vst [vmem:[#allocation67_spill] sm:$0xff] %v7998_v37  ;;  %v8009_v34 = vunpack.c.h.bf16 %v4687_v57  ;;  %4966 = vrcp.f32 %v2342_v42  ;;  %v8017_v30 = vunpack.c.l.bf16 %v4688_v33  ;;  %v8019_v10 = vunpack.c.h.bf16 %v4688_v33 }
 0x21a   :  { %11319 = vst [vmem:[#allocation70_spill] sm:$0xff] %v8000_v41  ;;  %v8021_v43 = vunpack.c.h.bf16 %v4689_v17  ;;  %vm2337_vm13 = vcmp.eq.f32.partialorder %v7923_v49, 0.0  ;;  %v8027_v5 = vunpack.c.l.bf16 %v4690_v0  ;;  %v8029_v21 = vunpack.c.h.bf16 %v4690_v0 }
 0x21b   :  { %11320 = vst [vmem:[#allocation71_spill] sm:$0xff] %v8009_v34  ;;  %11321 = vst [vmem:[#allocation23_spill] sm:$0xff] %v8017_v30  ;;  %v4953_v18 = vpop.eup %4952  ;;  %v8031_v20 = vunpack.c.l.bf16 %v4691_v32  ;;  %v8033_v22 = vunpack.c.h.bf16 %v4691_v32  ;;  %v8038_v39 = vunpack.c.l.bf16 %v4692_v44  ;;  %v8040_v36 = vunpack.c.h.bf16 %v4692_v44  ;;  %v4697_v44 = vld [vmem:[%s10574_s1 + $0x1d0] sm:$0xff] }
 0x21c   :  { %11322 = vst [vmem:[#allocation59_spill] sm:$0xff] %v8019_v10  ;;  %11323 = vst [vmem:[#allocation72_spill] sm:$0xff] %v8021_v43  ;;  %v2481_v57 = vmul.f32 %v7998_v37, %v7998_v37  ;;  %v2485_v17 = vmul.f32 %v8000_v41, %v8000_v41  ;;  %v8046_v16 = vunpack.c.l.bf16 %v4693_v4  ;;  %v8048_v42 = vunpack.c.h.bf16 %v4693_v4 }
 0x21d   :  { %11324 = vst [vmem:[#allocation75_spill] sm:$0xff] %v8027_v5  ;;  %11325 = vst [vmem:[#allocation76_spill] sm:$0xff] %v8029_v21  ;;  %v8050_v33 = vunpack.c.l.bf16 %v4694_v28  ;;  %v8052_v0 = vunpack.c.h.bf16 %v4694_v28  ;;  %v8054_v32 = vpop.eup %4954  ;;  %v2334_v13 = vmul.f32 %v4953_v18, %v7923_v49  ;;  %v8060_v6 = vunpack.c.l.bf16 %v4695_v3  ;;  %v4698_v28 = vld [vmem:[%s10574_s1 + $0x1d8] sm:$0xff] }
 0x21e   :  { %11326 = vst [vmem:[#allocation77_spill] sm:$0xff] %v8031_v20  ;;  %11327 = vst [vmem:[#allocation57_spill] sm:$0xff] %v8033_v22  ;;  %v2482_v7 = vmul.f32 %v8009_v34, %v8009_v34  ;;  %v2486_v4 = vmul.f32 %v8021_v43, %v8021_v43  ;;  %v8066_v15 = vpop.eup %4956  ;;  %v8071_v26 = vunpack.c.h.bf16 %v4695_v3  ;;  %v8073_v18 = vunpack.c.l.bf16 %v4696_v54 }
 0x21f   :  { %11328 = vst [vmem:[#allocation5_spill] sm:$0xff] %v8038_v39  ;;  %11329 = vst [vmem:[#allocation65_spill] sm:$0xff] %v8040_v36  ;;  %v2483_v31 = vmul.f32 %v8017_v30, %v8017_v30  ;;  %v2487_v14 = vmul.f32 %v8027_v5, %v8027_v5  ;;  %v8079_v53 = vpop.eup %4958  ;;  %v8081_v52 = vunpack.c.h.bf16 %v4696_v54  ;;  %v2489_v47 = vmul.f32 %v8031_v20, %v8031_v20 }
 0x220   :  { %11330 = vst [vmem:[#allocation62_spill] sm:$0xff] %v8046_v16  ;;  %11331 = vst [vmem:[#allocation74_spill] sm:$0xff] %v8048_v42  ;;  %v2505_v60 = vmul.f32 %v11176_v23, %v2481_v57  ;;  %v2509_v3 = vmul.f32 %v11008_v48, %v2485_v17  ;;  %v8087_v35 = vpop.eup %4960  ;;  %v8089_v24 = vunpack.c.l.bf16 %v4697_v44  ;;  %v8091_v38 = vunpack.c.h.bf16 %v4697_v44 }
 0x221   :  { %11332 = vst [vmem:[#allocation73_spill] sm:$0xff] %v8060_v6  ;;  %11333 = vst [vmem:[#allocation60_spill] sm:$0xff] %v8079_v53  ;;  %v2484_v58 = vmul.f32 %v8019_v10, %v8019_v10  ;;  %v2488_v54 = vmul.f32 %v8029_v21, %v8029_v21  ;;  %v4963_v46 = vpop.eup %4962  ;;  %v8097_v5 = vunpack.c.l.bf16 %v4698_v28  ;;  %v2490_v57 = vmul.f32 %v8033_v22, %v8033_v22 }
 0x222   :  { %11334 = vst [vmem:[#allocation78_spill] sm:$0xff] %v8087_v35  ;;  %v2506_v17 = vmul.f32 %v5379_v50, %v2482_v7  ;;  %v2510_v20 = vmul.f32 %v5387_v59, %v2486_v4  ;;  %v4965_v30 = vpop.eup %4964  ;;  %v2336_v44 = vsel %vm2335_vm12, %v7923_v49, %v2334_v13  ;;  %v2491_v10 = vmul.f32 %v8038_v39, %v8038_v39 }
 0x223   :  { %v2507_v21 = vmul.f32 %v5381_v51, %v2483_v31  ;;  %v2511_v43 = vmul.f32 %v5389_v61, %v2487_v14  ;;  %v8110_v41 = vpop.eup %4966  ;;  %v8112_v34 = vunpack.c.h.bf16 %v4698_v28  ;;  %v2493_v7 = vmul.f32 %v8046_v16, %v8046_v16 }
 0x224   :  { %v2513_v4 = vmul.f32 %v11176_v23, %v2489_v47  ;;  %v2529_v22 = vadd.f32 %v2509_v3, %v2505_v60  ;;  %v2352_v37 = vmul.f32 %v4963_v46, %v4963_v46  ;;  %v2492_v13 = vmul.f32 %v8040_v36, %v8040_v36  ;;  %v11336_v60 = vld [vmem:[#allocation40_spill] sm:$0xff] }
 0x225   :  { %v2508_v39 = vmul.f32 %v5383_v55, %v2484_v58  ;;  %v2512_v31 = vmul.f32 %v5394_v63, %v2488_v54  ;;  %v11335_v14 = vand.u32 2147483648, %v7923_v49  ;;  %v2494_v35 = vmul.f32 %v8048_v42, %v8048_v42 }
 0x226   :  { %v2514_v16 = vmul.f32 %v5379_v50, %v2490_v57  ;;  %v2540_v47 = vadd.f32 %v2510_v20, %v2506_v17  ;;  %v2368_v3 = vmul.f32 %v4963_v46, %v11336_v60  ;;  %v2495_v36 = vmul.f32 %v8050_v33, %v8050_v33  ;;  %v11337_v17 = vld [vmem:[#allocation15_spill] sm:$0xff] }
 0x227   :  { %v2339_v28 = vsel %vm2337_vm13, %v11335_v14, %v2336_v44  ;;  %v2515_v58 = vmul.f32 %v5381_v51, %v2491_v10  ;;  %v2551_v62 = vadd.f32 %v2511_v43, %v2507_v21  ;;  %v2353_v54 = vmul.f32 %v4965_v30, %v4965_v30 }
 0x228   :  { %v2497_v53 = vmul.f32 %v8060_v6, %v8060_v6  ;;  %v2517_v44 = vmul.f32 %v11008_v48, %v2493_v7  ;;  %v2530_v14 = vadd.f32 %v2529_v22, %v2513_v4  ;;  %v2356_v42 = vmul.f32 %v2352_v37, %v7864_v29 }
 0x229   :  { %v2496_v20 = vmul.f32 %v8052_v0, %v8052_v0  ;;  %v2516_v46 = vmul.f32 %v5383_v55, %v2492_v13  ;;  %v2562_v57 = vadd.f32 %v2512_v31, %v2508_v39  ;;  %v2369_v60 = vmul.f32 %v4965_v30, %v11337_v17  ;;  %v11338_v13 = vld [vmem:[#allocation22_spill] sm:$0xff] }
 0x22a   :  { %v2498_v10 = vmul.f32 %v8071_v26, %v8071_v26  ;;  %v2518_v43 = vmul.f32 %v5387_v59, %v2494_v35  ;;  %v2541_v21 = vadd.f32 %v2540_v47, %v2514_v16  ;;  %v2372_v6 = vmul.f32 %v2368_v3, %v8002_v9 }
 0x22b   :  { %v2499_v22 = vmul.f32 %v8073_v18, %v8073_v18  ;;  %v2519_v29 = vmul.f32 %v5389_v61, %v2495_v36  ;;  %v2552_v37 = vadd.f32 %v2551_v62, %v2515_v58  ;;  %v2357_v7 = vmul.f32 %v2353_v54, %v7872_v25  ;;  %v11339_v54 = vld [vmem:[#allocation24_spill] sm:$0xff] }
 0x22c   :  { %v2501_v39 = vmul.f32 %v8089_v24, %v8089_v24  ;;  %v2521_v30 = vmul.f32 %v11176_v23, %v2497_v53  ;;  %v2531_v4 = vadd.f32 %v2530_v14, %v2517_v44  ;;  %v2360_v31 = vadd.f32 %v2356_v42, %v11338_v13 }
 0x22d   :  { %v2500_v35 = vmul.f32 %v8081_v52, %v8081_v52  ;;  %v2520_v9 = vmul.f32 %v5394_v63, %v2496_v20  ;;  %v2563_v16 = vadd.f32 %v2562_v57, %v2516_v46  ;;  %v2303_v47 = vrot.slane %v7983_v8, 1 }
 0x22e   :  { %v2502_v62 = vmul.f32 %v8091_v38, %v8091_v38  ;;  %v2522_v25 = vmul.f32 %v5379_v50, %v2498_v10  ;;  %v2542_v36 = vadd.f32 %v2541_v21, %v2518_v43  ;;  %v2343_v3 = vadd.f32 1e-08, %v2339_v28 }
 0x22f   :  { %v2503_v53 = vmul.f32 %v8097_v5, %v8097_v5  ;;  %v2523_v42 = vmul.f32 %v5381_v51, %v2499_v22  ;;  %v2553_v58 = vadd.f32 %v2552_v37, %v2519_v29  ;;  %v2361_v44 = vadd.f32 %v2357_v7, %v11339_v54 }
 0x230   :  { %v2373_v14 = vmul.f32 %v2369_v60, %v8004_v1  ;;  %v2525_v20 = vmul.f32 %v11008_v48, %v2501_v39  ;;  %v2532_v46 = vadd.f32 %v2531_v4, %v2521_v30  ;;  %v2376_v57 = vsub.f32 %v2360_v31, %v2372_v6  ;;  %v11340_v30 = vld [vmem:[#allocation58_spill] sm:$0xff] }
 0x231   :  { %v2504_v13 = vmul.f32 %v8112_v34, %v8112_v34  ;;  %v2524_v10 = vmul.f32 %v5383_v55, %v2500_v35  ;;  %v2564_v28 = vadd.f32 %v2563_v16, %v2520_v9  ;;  %v8170_v43 = vadd.f32 %v7980_v27, %v7857_v12  ;;  %v11341_v16 = vld [vmem:[#allocation25_spill] sm:$0xff] }
 0x232   :  { %v2304_v21 = vadd.f32 %v2303_v47, %v7983_v8  ;;  %v2526_v22 = vmul.f32 %v5387_v59, %v2502_v62  ;;  %v2543_v29 = vadd.f32 %v2542_v36, %v2522_v25  ;;  %4968 = vrcp.f32 %v2343_v3 }
 0x233   :  { %v2354_v1 = vmul.f32 %v8110_v41, %v8110_v41  ;;  %v2527_v6 = vmul.f32 %v5389_v61, %v2503_v53  ;;  %v2554_v60 = vadd.f32 %v2553_v58, %v2523_v42  ;;  %vm2185_vm14 = vcmp.eq.f32.partialorder %v7932_v56, inf }
 0x234   :  { %vm2187_vm15 = vcmp.eq.f32.partialorder %v7932_v56, 0.0  ;;  %v2308_v37 = vrot.slane %v7985_v2, 2  ;;  %v2533_v12 = vadd.f32 %v2532_v46, %v2525_v20  ;;  %v2377_v27 = vsub.f32 %v2361_v44, %v2373_v14  ;;  %v11344_v14 = vld [vmem:[#allocation26_spill] sm:$0xff] }
 0x235   :  { %v8180_v7 = vmax.f32 %v2376_v57, 0.0  ;;  %v2528_v8 = vmul.f32 %v5394_v63, %v2504_v13  ;;  %v2565_v39 = vadd.f32 %v2564_v28, %v2524_v10  ;;  %vm1904_vm0 = vcmp.gt.f32.partialorder %v7908_v19, %v11340_v30  ;;  %v11342_v13 = vld [vmem:[#allocation17_spill] sm:$0xff]  ;;  %v11345_v10 = vld [vmem:[#allocation63_spill] sm:$0xff]  ;;  %v11346_v28 = vld [vmem:[#allocation78_spill] sm:$0xff] }
 0x236   :  { %v2184_v4 = vmul.f32 %v8054_v32, %v7932_v56  ;;  %v2188_v31 = vand.u32 2147483648, %v7932_v56  ;;  %v2191_v35 = vmul.f32 %v8066_v15, %v7934_v11  ;;  %v2544_v9 = vadd.f32 %v2543_v29, %v2526_v22 }
 0x237   :  { %vm1905_vm1 = vcmp.gt.f32.partialorder %v8170_v43, %v11341_v16  ;;  %v2358_v47 = vmul.f32 %v2354_v1, %v7876_v40  ;;  %v2366_v62 = vmul.f32 2.0, %v2304_v21  ;;  %v2370_v25 = vmul.f32 %v8110_v41, %v11342_v13  ;;  %v11343_v41 = vld [vmem:[#allocation60_spill] sm:$0xff] }
 0x238   :  { %v2555_v36 = vadd.f32 %v2554_v60, %v2527_v6  ;;  %vm2192_vm2 = vcmp.eq.f32.partialorder %v7934_v11, inf  ;;  %vm2194_vm3 = vcmp.eq.f32.partialorder %v7934_v11, 0.0  ;;  %v2309_v32 = vadd.f32 %v2308_v37, %v7985_v2 }
 0x239   :  { %v2534_v3 = vrot.slane %v2533_v12, 4  ;;  %v2195_v15 = vand.u32 2147483648, %v7934_v11  ;;  %v8199_v53 = vmax.f32 %v2377_v27, 0.0  ;;  %4970 = vrsqrt.f32 %v8180_v7 }
 0x23a   :  { %v2566_v42 = vadd.f32 %v2565_v39, %v2528_v8  ;;  %v2186_v40 = vsel %vm2185_vm14, %v7932_v56, %v2184_v4  ;;  %v2198_v58 = vmul.f32 %v11343_v41, %v7941_v45  ;;  %vm2199_vm4 = vcmp.eq.f32.partialorder %v7941_v45, inf }
 0x23b   :  { %v2545_v44 = vrot.slane %v2544_v9, 4  ;;  %v2193_v2 = vsel %vm2192_vm2, %v7934_v11, %v2191_v35  ;;  %v2362_v20 = vadd.f32 %v2358_v47, %v11344_v14  ;;  %v2374_v46 = vmul.f32 %v2370_v25, %v2366_v62 }
 0x23c   :  { %v2556_v57 = vrot.slane %v2555_v36, 4  ;;  %vm2201_vm5 = vcmp.eq.f32.partialorder %v7941_v45, 0.0  ;;  %v2205_v21 = vmul.f32 %v11346_v28, %v11345_v10  ;;  %v2310_v22 = vrot.slane %v2309_v32, 1  ;;  %v4969_v1 = vpop.eup %4968 }
 0x23d   :  { %v2535_v29 = vadd.f32 %v2534_v3, %v2533_v12  ;;  %v2202_v6 = vand.u32 2147483648, %v7941_v45  ;;  %vm2206_vm6 = vcmp.eq.f32.partialorder %v11345_v10, inf  ;;  %4972 = vrsqrt.f32 %v8199_v53 }
 0x23e   :  { %v2567_v60 = vrot.slane %v2566_v42, 4  ;;  %v2189_v37 = vsel %vm2187_vm15, %v2188_v31, %v2186_v40  ;;  %v2196_v27 = vsel %vm2194_vm3, %v2195_v15, %v2193_v2  ;;  %vm2208_vm7 = vcmp.eq.f32.partialorder %v11345_v10, 0.0 }
 0x23f   :  { %v2546_v8 = vadd.f32 %v2545_v44, %v2544_v9  ;;  %v2200_v12 = vsel %vm2199_vm4, %v7941_v45, %v2198_v58  ;;  %v2209_v39 = vand.u32 2147483648, %v11345_v10  ;;  %v2378_v4 = vsub.f32 %v2362_v20, %v2374_v46  ;;  %v11353_v46 = vld [vmem:[#allocation43_spill] sm:$0xff] }
 0x240   :  { %v2557_v35 = vadd.f32 %v2556_v57, %v2555_v36  ;;  %v2207_v47 = vsel %vm2206_vm6, %v11345_v10, %v2205_v21  ;;  %v2311_v62 = vadd.f32 %v2310_v22, %v2309_v32  ;;  %v2355_v25 = vmul.f32 %v4969_v1, %v4969_v1  ;;  %v11349_v32 = vld [vmem:[#allocation56_spill] sm:$0xff]  ;;  %v11367_v21 = vld [vmem:[#allocation13_spill] sm:$0xff] }
 0x241   :  { %v2536_v56 = vrot.slane %v2535_v29, 2  ;;  %v8231_v11 = vsel %vm1904_vm0, %v7908_v19, %v11340_v30  ;;  %v2211_v31 = vsub.f32 2.0, %v2189_v37  ;;  %v2212_v9 = vsub.f32 2.0, %v2196_v27  ;;  %v11354_v27 = vld [vmem:[#allocation31_spill] sm:$0xff] }
 0x242   :  { %11347 = vst [vmem:[#allocation58_spill] sm:$0xff] %v8231_v11  ;;  %v2568_v3 = vadd.f32 %v2567_v60, %v2566_v42  ;;  %v8238_v36 = vsel %vm1905_vm1, %v8170_v43, %v11341_v16  ;;  %v8244_v15 = vsel %vm1904_vm0, 2, %v11349_v32  ;;  %v8248_v40 = vsel %vm2201_vm5, %v2202_v6, %v2200_v12  ;;  %v11351_v42 = vld [vmem:[#allocation61_spill] sm:$0xff] }
 0x243   :  { %11348 = vst [vmem:[#allocation25_spill] sm:$0xff] %v8238_v36  ;;  %11350 = vst [vmem:[#allocation60_spill] sm:$0xff] %v8244_v15  ;;  %v2547_v41 = vrot.slane %v2546_v8, 2  ;;  %v4971_v58 = vpop.eup %4970  ;;  %v8254_v44 = vsel %vm1905_vm1, 2, %v11351_v42  ;;  %v8258_v2 = vsel %vm2208_vm7, %v2209_v39, %v2207_v47  ;;  %v8260_v20 = vmax.f32 %v2378_v4, 0.0  ;;  %v11365_v4 = vld [vmem:[#allocation10_spill] sm:$0xff] }
 0x244   :  { %11352 = vst [vmem:[#allocation63_spill] sm:$0xff] %v8254_v44  ;;  %v2558_v19 = vrot.slane %v2557_v35, 2  ;;  %v2359_v30 = vmul.f32 %v2355_v25, %v7923_v49  ;;  %v2367_v45 = vmul.f32 2.0, %v2311_v62  ;;  %v2371_v57 = vmul.f32 %v4969_v1, %v11353_v46  ;;  %v11355_v25 = vld [vmem:[#allocation7_spill] sm:$0xff]  ;;  %v11374_v46 = vld [vmem:[#allocation57_spill] sm:$0xff] }
 0x245   :  { %v2537_v28 = vadd.f32 %v2536_v56, %v2535_v29  ;;  %v8265_v22 = vmul.f32 0.5, %v2211_v31  ;;  %v8267_v43 = vmul.f32 0.5, %v2212_v9  ;;  %v2569_v16 = vrot.slane %v2568_v3, 2  ;;  %v11356_v56 = vld [vmem:[#allocation67_spill] sm:$0xff]  ;;  %v11357_v31 = vld [vmem:[#allocation8_spill] sm:$0xff] }
 0x246   :  { %v2385_v6 = vmul.f32 %v4971_v58, %v8180_v7  ;;  %vm2386_vm8 = vcmp.eq.f32.partialorder %v8180_v7, inf  ;;  %v2548_v60 = vadd.f32 %v2547_v41, %v2546_v8  ;;  %4974 = vrsqrt.f32 %v8260_v20  ;;  %v11358_v9 = vld [vmem:[#allocation71_spill] sm:$0xff]  ;;  %v11360_v58 = vld [vmem:[#allocation70_spill] sm:$0xff] }
 0x247   :  { %v4973_v37 = vpop.eup %4972  ;;  %v2559_v29 = vadd.f32 %v2558_v19, %v2557_v35  ;;  %v8276_v12 = vadd.f32 %v2359_v30, %v11354_v27  ;;  %v8278_v39 = vmul.f32 %v2371_v57, %v2367_v45  ;;  %v2538_v47 = vrot.slane %v2537_v28, 1  ;;  %v11359_v41 = vld [vmem:[#allocation11_spill] sm:$0xff]  ;;  %v11361_v45 = vld [vmem:[#allocation12_spill] sm:$0xff] }
 0x248   :  { %v2570_v62 = vadd.f32 %v2569_v16, %v2568_v3  ;;  %v2573_v8 = vmul.f32 %v11356_v56, %v11355_v25  ;;  %v2574_v32 = vmul.f32 %v11358_v9, %v11357_v31  ;;  %v2577_v42 = vmul.f32 %v11360_v58, %v11359_v41  ;;  %v11362_v57 = vld [vmem:[#allocation72_spill] sm:$0xff]  ;;  %v4699_v3 = vld [vmem:[%s10575_s4 + $0x80] sm:$0xff]  ;;  %v11363_v9 = vld [vmem:[#allocation9_spill] sm:$0xff] }
 0x249   :  { %v8288_v35 = vsel %vm2386_vm8, %v8180_v7, %v2385_v6  ;;  %v8291_v19 = vmul.f32 %v4973_v37, %v8199_v53  ;;  %v2549_v30 = vrot.slane %v2548_v60, 1  ;;  %v2578_v10 = vmul.f32 %v11362_v57, %v11361_v45  ;;  %v4701_v16 = vld [vmem:[%s10575_s4 + $0x90] sm:$0xff]  ;;  %v11364_v58 = vld [vmem:[#allocation23_spill] sm:$0xff]  ;;  %v11369_v57 = vld [vmem:[#allocation14_spill] sm:$0xff] }
 0x24a   :  { %v2560_v56 = vrot.slane %v2559_v29, 1  ;;  %v2575_v6 = vmul.f32 %v11364_v58, %v11363_v9  ;;  %v11366_v1 = vld [vmem:[#allocation59_spill] sm:$0xff]  ;;  %v8307_v36 = vadd.f32 %v2538_v47, %v2537_v28  ;;  %v11370_v45 = vld [vmem:[#allocation76_spill] sm:$0xff]  ;;  %v11371_v41 = vld [vmem:[#allocation18_spill] sm:$0xff]  ;;  %v2571_v14 = vrot.slane %v2570_v62, 1 }
 0x24b   :  { %v2576_v37 = vmul.f32 %v11366_v1, %v11365_v4  ;;  %v11368_v49 = vld [vmem:[#allocation75_spill] sm:$0xff]  ;;  %v2580_v31 = vmul.f32 %v11370_v45, %v11369_v57  ;;  %v11372_v25 = vld [vmem:[#allocation77_spill] sm:$0xff]  ;;  %v2597_v54 = vadd.f32 %v2577_v42, %v2573_v8  ;;  %v8315_v58 = vunpack.c.l.bf16 %v4699_v3 }
 0x24c   :  { %v2579_v44 = vmul.f32 %v11368_v49, %v11367_v21  ;;  %v2581_v15 = vmul.f32 %v11372_v25, %v11371_v41  ;;  %v11373_v27 = vld [vmem:[#allocation19_spill] sm:$0xff]  ;;  %v8317_v9 = vunpack.c.l.bf16 %v4701_v16  ;;  %v8319_v1 = vadd.f32 %v2549_v30, %v2548_v60  ;;  %v11376_v49 = vld [vmem:[#allocation44_spill] sm:$0xff]  ;;  %v11377_v28 = vld [vmem:[#allocation5_spill] sm:$0xff] }
 0x24d   :  { %v2582_v11 = vmul.f32 %v11374_v46, %v11373_v27  ;;  %v2583_v47 = vmul.f32 %v11377_v28, %v11376_v49  ;;  %v11378_v21 = vld [vmem:[#allocation45_spill] sm:$0xff]  ;;  %v2608_v57 = vadd.f32 %v2578_v10, %v2574_v32  ;;  %v8325_v13 = vadd.f32 %v2560_v56, %v2559_v29  ;;  %v11380_v25 = vld [vmem:[#allocation46_spill] sm:$0xff]  ;;  %v8332_v8 = vld [vmem:[%s10575_s4 + $0x88] sm:$0xff] }
 0x24e   :  { %11375 = vst [vmem:[#allocation78_spill] sm:$0xff] %v8317_v9  ;;  %v11379_v4 = vld [vmem:[#allocation65_spill] sm:$0xff]  ;;  %v11381_v41 = vld [vmem:[#allocation62_spill] sm:$0xff]  ;;  %v8339_v42 = vunpack.c.h.bf16 %v4699_v3  ;;  %v8341_v30 = vunpack.c.h.bf16 %v4701_v16  ;;  %v11384_v10 = vld [vmem:[#allocation47_spill] sm:$0xff]  ;;  %v2619_v32 = vadd.f32 %v2579_v44, %v2575_v6  ;;  %v2630_v56 = vadd.f32 %v2580_v31, %v2576_v37 }
 0x24f   :  { %v2584_v45 = vmul.f32 %v11379_v4, %v11378_v21  ;;  %v2585_v46 = vmul.f32 %v11381_v41, %v11380_v25  ;;  %v8337_v60 = vld [vmem:[%s10575_s4 + $0x98] sm:$0xff]  ;;  %v11385_v29 = vld [vmem:[#allocation74_spill] sm:$0xff]  ;;  %4976 = vrsqrt.f32 %v8307_v36  ;;  %v8346_v28 = vadd.f32 %v2571_v14, %v2570_v62  ;;  %v11386_v31 = vld [vmem:[#allocation48_spill] sm:$0xff] }
 0x250   :  { %11382 = vst [vmem:[#allocation56_spill] sm:$0xff] %v8339_v42  ;;  %11383 = vst [vmem:[#allocation61_spill] sm:$0xff] %v8341_v30  ;;  %v2586_v4 = vmul.f32 %v11385_v29, %v11384_v10  ;;  %v4975_v41 = vpop.eup %4974  ;;  %v2598_v25 = vadd.f32 %v2597_v54, %v2581_v15  ;;  %v2762_v21 = vmul.f32 %v8315_v58, %v8315_v58  ;;  %4978 = vrsqrt.f32 %v8319_v1  ;;  %v11388_v6 = vld [vmem:[#allocation50_spill] sm:$0xff]  ;;  %v11389_v37 = vld [vmem:[#allocation73_spill] sm:$0xff] }
 0x251   :  { %v2766_v3 = vmul.f32 %v8317_v9, %v8317_v9  ;;  %v2609_v49 = vadd.f32 %v2608_v57, %v2582_v11  ;;  %v8354_v16 = vunpack.c.l.bf16 %v8332_v8  ;;  %v8357_v44 = vunpack.c.l.bf16 %v8337_v60  ;;  %v11387_v11 = vld [vmem:[#allocation49_spill] sm:$0xff]  ;;  %v11390_v27 = vld [vmem:[#allocation51_spill] sm:$0xff] }
 0x252   :  { %v2587_v14 = vmul.f32 %v8050_v33, %v11386_v31  ;;  %4980 = vrsqrt.f32 %v8325_v13  ;;  %v2763_v54 = vmul.f32 %v8339_v42, %v8339_v42  ;;  %v2767_v15 = vmul.f32 %v8341_v30, %v8341_v30 }
 0x253   :  { %v2588_v62 = vmul.f32 %v8052_v0, %v11387_v11  ;;  %v2589_v57 = vmul.f32 %v11389_v37, %v11388_v6  ;;  %v2620_v29 = vadd.f32 %v2619_v32, %v2583_v47  ;;  %v2631_v10 = vadd.f32 %v2630_v56, %v2584_v45  ;;  %v11391_v45 = vld [vmem:[#allocation52_spill] sm:$0xff]  ;;  %v11394_v37 = vld [vmem:[#allocation55_spill] sm:$0xff]  ;;  %v11396_v11 = vld [vmem:[#allocation30_spill] sm:$0xff] }
 0x254   :  { %v2590_v17 = vmul.f32 %v8071_v26, %v11390_v27  ;;  %v2599_v33 = vadd.f32 %v2598_v25, %v2585_v46  ;;  %v2770_v31 = vmul.f32 %v11176_v23, %v2762_v21  ;;  %v2774_v9 = vmul.f32 %v11008_v48, %v2766_v3  ;;  %v11392_v46 = vld [vmem:[#allocation53_spill] sm:$0xff] }
 0x255   :  { %v2610_v42 = vadd.f32 %v2609_v49, %v2586_v4  ;;  %4982 = vrsqrt.f32 %v8346_v28  ;;  %v2764_v30 = vmul.f32 %v8354_v16, %v8354_v16  ;;  %v2768_v0 = vmul.f32 %v8357_v44, %v8357_v44  ;;  %v11393_v4 = vld [vmem:[#allocation54_spill] sm:$0xff] }
 0x256   :  { %v8380_v47 = vmul.f32 %v4975_v41, %v8260_v20  ;;  %v2591_v26 = vmul.f32 %v8073_v18, %v11391_v45  ;;  %v2771_v25 = vmul.f32 %v5379_v50, %v2763_v54  ;;  %v2775_v21 = vmul.f32 %v5387_v59, %v2767_v15  ;;  %v11395_v41 = vld [vmem:[#allocation27_spill] sm:$0xff] }
 0x257   :  { %v2592_v49 = vmul.f32 %v8081_v52, %v11392_v46  ;;  %v2593_v32 = vmul.f32 %v8089_v24, %v11393_v4  ;;  %v2621_v56 = vadd.f32 %v2620_v29, %v2587_v14  ;;  %v2632_v3 = vadd.f32 %v2631_v10, %v2588_v62 }
 0x258   :  { %v2594_v27 = vmul.f32 %v8091_v38, %v11394_v37  ;;  %v2595_v6 = vmul.f32 %v8097_v5, %v11395_v41  ;;  %v2596_v18 = vmul.f32 %v8112_v34, %v11396_v11  ;;  %v2778_v54 = vadd.f32 %v2774_v9, %v2770_v31 }
 0x259   :  { %v4977_v45 = vpop.eup %4976  ;;  %v2600_v15 = vadd.f32 %v2599_v33, %v2589_v57  ;;  %v2611_v59 = vadd.f32 %v2610_v42, %v2590_v17  ;;  %v2772_v52 = vmul.f32 %v5381_v51, %v2764_v30  ;;  %v2776_v46 = vmul.f32 %v5389_v61, %v2768_v0 }
 0x25a   :  { %vm2643_vm9 = vcmp.eq.f32.partialorder %v8307_v36, inf  ;;  %vm2645_vm10 = vcmp.eq.f32.partialorder %v8307_v36, 0.0  ;;  %v2646_v38 = vand.u32 2147483648, %v8307_v36  ;;  %v2785_v24 = vadd.f32 %v2775_v21, %v2771_v25  ;;  %v4979_v10 = vpop.eup %4978 }
 0x25b   :  { %v2622_v5 = vadd.f32 %v2621_v56, %v2591_v26  ;;  %v2633_v14 = vadd.f32 %v2632_v3, %v2592_v49  ;;  %vm2650_vm11 = vcmp.eq.f32.partialorder %v8319_v1, inf  ;;  %vm2652_vm12 = vcmp.eq.f32.partialorder %v8319_v1, 0.0 }
 0x25c   :  { %v4981_v34 = vpop.eup %4980  ;;  %vm2388_vm13 = vcmp.eq.f32.partialorder %v8180_v7, 0.0  ;;  %vm2393_vm14 = vcmp.eq.f32.partialorder %v8199_v53, inf  ;;  %vm2400_vm15 = vcmp.eq.f32.partialorder %v8260_v20, inf  ;;  %v2642_v17 = vmul.f32 %v4977_v45, %v8307_v36 }
 0x25d   :  { %v8408_v9 = vunpack.c.h.bf16 %v8332_v8  ;;  %v8411_v42 = vunpack.c.h.bf16 %v8337_v60  ;;  %v2779_v30 = vrot.slane %v2778_v54, 4  ;;  %v2601_v31 = vadd.f32 %v2600_v15, %v2593_v32 }
 0x25e   :  { %v2612_v62 = vadd.f32 %v2611_v59, %v2594_v27  ;;  %v2653_v57 = vand.u32 2147483648, %v8319_v1  ;;  %v2792_v29 = vadd.f32 %v2776_v46, %v2772_v52  ;;  %v2649_v33 = vmul.f32 %v4979_v10, %v8319_v1 }
 0x25f   :  { %vm2657_vm0 = vcmp.eq.f32.partialorder %v8325_v13, inf  ;;  %vm2659_vm1 = vcmp.eq.f32.partialorder %v8325_v13, 0.0  ;;  %v2786_v0 = vrot.slane %v2785_v24, 4  ;;  %v4983_v45 = vpop.eup %4982  ;;  %v2623_v26 = vadd.f32 %v2622_v5, %v2595_v6 }
 0x260   :  { %v2634_v8 = vadd.f32 %v2633_v14, %v2596_v18  ;;  %v2656_v25 = vmul.f32 %v4981_v34, %v8325_v13  ;;  %v2660_v60 = vand.u32 2147483648, %v8325_v13  ;;  %vm2395_vm2 = vcmp.eq.f32.partialorder %v8199_v53, 0.0 }
 0x261   :  { %v2644_v59 = vsel %vm2643_vm9, %v8307_v36, %v2642_v17  ;;  %v2765_v27 = vmul.f32 %v8408_v9, %v8408_v9  ;;  %v2769_v21 = vmul.f32 %v8411_v42, %v8411_v42  ;;  %v2780_v46 = vadd.f32 %v2779_v30, %v2778_v54 }
 0x262   :  { %v2602_v49 = vrot.slane %v2601_v31, 4  ;;  %v2613_v6 = vrot.slane %v2612_v62, 4  ;;  %vm2664_vm3 = vcmp.eq.f32.partialorder %v8346_v28, inf  ;;  %v2793_v32 = vrot.slane %v2792_v29, 4 }
 0x263   :  { %vm2402_vm4 = vcmp.eq.f32.partialorder %v8260_v20, 0.0  ;;  %v2651_v56 = vsel %vm2650_vm11, %v8319_v1, %v2649_v33  ;;  %v2663_v3 = vmul.f32 %v4983_v45, %v8346_v28  ;;  %vm2666_vm5 = vcmp.eq.f32.partialorder %v8346_v28, 0.0 }
 0x264   :  { %v2787_v18 = vadd.f32 %v2786_v0, %v2785_v24  ;;  %v2624_v15 = vrot.slane %v2623_v26, 4  ;;  %v2647_v54 = vsel %vm2645_vm10, %v2646_v38, %v2644_v59  ;;  %v2658_v52 = vsel %vm2657_vm0, %v8325_v13, %v2656_v25 }
 0x265   :  { %v2667_v10 = vand.u32 2147483648, %v8346_v28  ;;  %v2635_v5 = vrot.slane %v2634_v8, 4  ;;  %v2773_v14 = vmul.f32 %v5383_v55, %v2765_v27  ;;  %v2777_v34 = vmul.f32 %v5394_v63, %v2769_v21 }
 0x266   :  { %v2781_v17 = vrot.slane %v2780_v46, 2  ;;  %v2603_v30 = vadd.f32 %v2602_v49, %v2601_v31  ;;  %v2614_v33 = vadd.f32 %v2613_v6, %v2612_v62  ;;  %v2654_v24 = vsel %vm2652_vm12, %v2653_v57, %v2651_v56 }
 0x267   :  { %v2794_v0 = vadd.f32 %v2793_v32, %v2792_v29  ;;  %v2661_v38 = vsel %vm2659_vm1, %v2660_v60, %v2658_v52  ;;  %v2665_v45 = vsel %vm2664_vm3, %v8346_v28, %v2663_v3  ;;  %v2669_v25 = vadd.f32 1e-08, %v2647_v54 }
 0x268   :  { %v2788_v59 = vrot.slane %v2787_v18, 2  ;;  %v2379_v27 = vsub.f32 %v8276_v12, %v8278_v39  ;;  %v11397_v31 = vand.u32 2147483648, %v8180_v7  ;;  %v2394_v57 = vsel %vm2393_vm14, %v8199_v53, %v8291_v19 }
 0x269   :  { %v2401_v29 = vsel %vm2400_vm15, %v8260_v20, %v8380_v47  ;;  %v2625_v60 = vadd.f32 %v2624_v15, %v2623_v26  ;;  %v2670_v21 = vadd.f32 1e-08, %v2654_v24  ;;  %v2782_v49 = vadd.f32 %v2781_v17, %v2780_v46 }
 0x26a   :  { %v2390_v62 = vsel %vm2388_vm13, %v11397_v31, %v8288_v35  ;;  %v2799_v12 = vadd.f32 %v2777_v34, %v2773_v14  ;;  %v2636_v39 = vadd.f32 %v2635_v5, %v2634_v8  ;;  %v2668_v6 = vsel %vm2666_vm5, %v2667_v10, %v2665_v45 }
 0x26b   :  { %v2671_v7 = vadd.f32 1e-08, %v2661_v38  ;;  %v2795_v35 = vrot.slane %v2794_v0, 2  ;;  %v2604_v32 = vrot.slane %v2603_v30, 2  ;;  %v2615_v56 = vrot.slane %v2614_v33, 2 }
 0x26c   :  { %4984 = vrcp.f32 %v2669_v25  ;;  %v2789_v3 = vadd.f32 %v2788_v59, %v2787_v18  ;;  %v11398_v19 = vsub.f32 2.0, %v8248_v40  ;;  %v8468_v52 = vmax.f32 %v2379_v27, 0.0 }
 0x26d   :  { %v11399_v47 = vand.u32 2147483648, %v8199_v53  ;;  %v2412_v8 = vsub.f32 2.0, %v2390_v62  ;;  %v2672_v46 = vadd.f32 1e-08, %v2668_v6  ;;  %4986 = vrcp.f32 %v2670_v21  ;;  %v11402_v6 = vld [vmem:[#allocation2_spill] sm:$0xff] }
 0x26e   :  { %v2217_v54 = vmul.f32 0.5, %v11398_v19  ;;  %v2783_v15 = vrot.slane %v2782_v49, 1  ;;  %v2800_v10 = vrot.slane %v2799_v12, 4  ;;  %v11400_v5 = vand.u32 2147483648, %v8260_v20  ;;  %v11407_v19 = vld [vmem:[#allocation42_spill] sm:$0xff] }
 0x26f   :  { %v2397_v26 = vsel %vm2395_vm2, %v11399_v47, %v2394_v57  ;;  %v2626_v14 = vrot.slane %v2625_v60, 2  ;;  %4988 = vrcp.f32 %v2671_v7  ;;  %v2796_v40 = vadd.f32 %v2795_v35, %v2794_v0  ;;  %v11403_v7 = vld [vmem:[#allocation41_spill] sm:$0xff] }
 0x270   :  { %v2404_v18 = vsel %vm2402_vm4, %v11400_v5, %v2401_v29  ;;  %v2605_v34 = vadd.f32 %v2604_v32, %v2603_v30  ;;  %v2616_v17 = vadd.f32 %v2615_v56, %v2614_v33  ;;  %v2637_v24 = vrot.slane %v2636_v39, 2  ;;  %v11405_v32 = vld [vmem:[#allocation35_spill] sm:$0xff]  ;;  %v11406_v56 = vld [vmem:[#allocation78_spill] sm:$0xff] }
 0x271   :  { %v2790_v38 = vrot.slane %v2789_v3, 1  ;;  %v11401_v53 = vsub.f32 2.0, %v8258_v2  ;;  %4990 = vrsqrt.f32 %v8468_v52  ;;  %v2420_v25 = vmul.f32 0.3, %v8265_v22 }
 0x272   :  { %v8485_v59 = vmul.f32 0.3, %v8267_v43  ;;  %v2413_v20 = vsub.f32 2.0, %v2397_v26  ;;  %4992 = vrcp.f32 %v2672_v46  ;;  %v8487_v27 = vadd.f32 %v2783_v15, %v2782_v49  ;;  %v11404_v43 = vld [vmem:[#allocation56_spill] sm:$0xff] }
 0x273   :  { %v8480_v45 = vmul.f32 0.5, %v11401_v53  ;;  %v2801_v0 = vadd.f32 %v2800_v10, %v2799_v12  ;;  %v2414_v30 = vsub.f32 2.0, %v2404_v18  ;;  %v2416_v33 = vmul.f32 0.5, %v2412_v8  ;;  %v11408_v12 = vld [vmem:[#allocation61_spill] sm:$0xff] }
 0x274   :  { %v2627_v31 = vadd.f32 %v2626_v14, %v2625_v60  ;;  %v2797_v62 = vrot.slane %v2796_v40, 1  ;;  %v2606_v57 = vrot.slane %v2605_v34, 1  ;;  %v2617_v2 = vrot.slane %v2616_v17, 1  ;;  %v11409_v8 = vld [vmem:[#allocation21_spill] sm:$0xff] }
 0x275   :  { %v2638_v29 = vadd.f32 %v2637_v24, %v2636_v39  ;;  %v8489_v21 = vadd.f32 %v2790_v38, %v2789_v3  ;;  %v2806_v22 = vmul.f32 %v8315_v58, %v11402_v6  ;;  %v2807_v35 = vmul.f32 %v11404_v43, %v11403_v7  ;;  %v11410_v39 = vld [vmem:[#allocation33_spill] sm:$0xff] }
 0x276   :  { %v2810_v49 = vmul.f32 %v11406_v56, %v11405_v32  ;;  %v2811_v47 = vmul.f32 %v11408_v12, %v11407_v19  ;;  %v4985_v26 = vpop.eup %4984  ;;  %v2802_v60 = vrot.slane %v2801_v0, 2  ;;  %v2808_v46 = vmul.f32 %v8354_v16, %v11409_v8 }
 0x277   :  { %v2812_v3 = vmul.f32 %v8357_v44, %v11410_v39  ;;  %4994 = vrsqrt.f32 %v8487_v27  ;;  %v2417_v58 = vmul.f32 0.5, %v2413_v20  ;;  %v8504_v15 = vmul.f32 0.3, %v2217_v54  ;;  %v4987_v18 = vpop.eup %4986 }
 0x278   :  { %v2628_v10 = vrot.slane %v2627_v31, 1  ;;  %v8506_v5 = vadd.f32 %v2797_v62, %v2796_v40  ;;  %v2424_v14 = vmul.f32 0.7, %v2416_v33  ;;  %v2607_v24 = vadd.f32 %v2606_v57, %v2605_v34 }
 0x279   :  { %v2639_v38 = vrot.slane %v2638_v29, 1  ;;  %4996 = vrsqrt.f32 %v8489_v21  ;;  %v4989_v53 = vpop.eup %4988  ;;  %v2681_v43 = vmul.f32 %v4985_v26, %v4985_v26  ;;  %v2814_v56 = vadd.f32 %v2810_v49, %v2806_v22 }
 0x27a   :  { %v2821_v44 = vadd.f32 %v2811_v47, %v2807_v35  ;;  %v8510_v12 = vmul.f32 0.5, %v2414_v30  ;;  %v2618_v20 = vadd.f32 %v2617_v2, %v2616_v17  ;;  %v2803_v54 = vadd.f32 %v2802_v60, %v2801_v0  ;;  %v11411_v30 = vld [vmem:[#allocation28_spill] sm:$0xff] }
 0x27b   :  { %v2828_v39 = vadd.f32 %v2812_v3, %v2808_v46  ;;  %v4991_v8 = vpop.eup %4990  ;;  %v8512_v40 = vmul.f32 0.7, %v2417_v58  ;;  %v2629_v62 = vadd.f32 %v2628_v10, %v2627_v31  ;;  %v2682_v33 = vmul.f32 %v4987_v18, %v4987_v18 }
 0x27c   :  { %4998 = vrsqrt.f32 %v8506_v5  ;;  %v4993_v34 = vpop.eup %4992  ;;  %v8515_v57 = vadd.f32 %v2424_v14, %v2420_v25  ;;  %v2640_v19 = vadd.f32 %v2639_v38, %v2638_v29  ;;  %v2683_v16 = vmul.f32 %v4989_v53, %v4989_v53  ;;  %v11412_v29 = vld [vmem:[#allocation29_spill] sm:$0xff] }
 0x27d   :  { %v2693_v7 = vmul.f32 2.0, %v2607_v24  ;;  %v2685_v22 = vmul.f32 %v2681_v43, %v8307_v36  ;;  %v2697_v35 = vmul.f32 %v4985_v26, %v11411_v30  ;;  %v2815_v17 = vrot.slane %v2814_v56, 4  ;;  %v11413_v26 = vld [vmem:[#allocation32_spill] sm:$0xff]  ;;  %v11414_v24 = vld [vmem:[#allocation34_spill] sm:$0xff] }
 0x27e   :  { %v2822_v0 = vrot.slane %v2821_v44, 4  ;;  %v2406_v2 = vmul.f32 %v4991_v8, %v8468_v52  ;;  %v2694_v49 = vmul.f32 2.0, %v2618_v20  ;;  %v2804_v47 = vrot.slane %v2803_v54, 1  ;;  %v11415_v8 = vld [vmem:[#allocation36_spill] sm:$0xff] }
 0x27f   :  { %v2829_v31 = vrot.slane %v2828_v39, 4  ;;  %vm2407_vm6 = vcmp.eq.f32.partialorder %v8468_v52, inf  ;;  %v2684_v60 = vmul.f32 %v4993_v34, %v4993_v34  ;;  %v2686_v25 = vmul.f32 %v2682_v33, %v8319_v1  ;;  %v11418_v33 = vld [vmem:[#allocation20_spill] sm:$0xff] }
 0x280   :  { %v2695_v46 = vmul.f32 2.0, %v2629_v62  ;;  %v2698_v3 = vmul.f32 %v4987_v18, %v11412_v29  ;;  %v2687_v36 = vmul.f32 %v2683_v16, %v8325_v13  ;;  %v2696_v10 = vmul.f32 2.0, %v2640_v19  ;;  %v11417_v62 = vld [vmem:[#allocation16_spill] sm:$0xff]  ;;  %v11419_v16 = vld [vmem:[#allocation37_spill] sm:$0xff] }
 0x281   :  { %v4995_v58 = vpop.eup %4994  ;;  %v2699_v14 = vmul.f32 %v4989_v53, %v11413_v26  ;;  %v2700_v38 = vmul.f32 %v4993_v34, %v11414_v24  ;;  %v2689_v43 = vadd.f32 %v2685_v22, %v11415_v8  ;;  %v2701_v20 = vmul.f32 %v2697_v35, %v2693_v7 }
 0x282   :  { %v2816_v30 = vadd.f32 %v2815_v17, %v2814_v56  ;;  %v2823_v32 = vadd.f32 %v2822_v0, %v2821_v44  ;;  %vm2409_vm7 = vcmp.eq.f32.partialorder %v8468_v52, 0.0  ;;  %v8528_v1 = vadd.f32 %v2804_v47, %v2803_v54  ;;  %v11420_v56 = vld [vmem:[#allocation38_spill] sm:$0xff] }
 0x283   :  { %v4997_v6 = vpop.eup %4996  ;;  %v2809_v18 = vmul.f32 %v8408_v9, %v11417_v62  ;;  %v2813_v13 = vmul.f32 %v8411_v42, %v11418_v33  ;;  %v2830_v19 = vadd.f32 %v2829_v31, %v2828_v39  ;;  %v2688_v53 = vmul.f32 %v2684_v60, %v8346_v28 }
 0x284   :  { %11416 = vst [vmem:[#allocation67_spill] sm:$0xff] %v8528_v1  ;;  %v2690_v34 = vadd.f32 %v2686_v25, %v11419_v16  ;;  %v2702_v22 = vmul.f32 %v2698_v3, %v2694_v49  ;;  %v2843_v7 = vmul.f32 %v4995_v58, %v8487_v27  ;;  %v2691_v44 = vadd.f32 %v2687_v36, %v11420_v56  ;;  %v11421_v49 = vld [vmem:[#allocation39_spill] sm:$0xff] }
 0x285   :  { %v2703_v35 = vmul.f32 %v2699_v14, %v2695_v46  ;;  %v2704_v17 = vmul.f32 %v2700_v38, %v2696_v10  ;;  %vm2844_vm8 = vcmp.eq.f32.partialorder %v8487_v27, inf  ;;  %v2705_v0 = vsub.f32 %v2689_v43, %v2701_v20 }
 0x286   :  { %v4999_v54 = vpop.eup %4998  ;;  %v2817_v9 = vrot.slane %v2816_v30, 2  ;;  %v2824_v47 = vrot.slane %v2823_v32, 2  ;;  %v2850_v42 = vmul.f32 %v4997_v6, %v8489_v21  ;;  %v2831_v39 = vrot.slane %v2830_v19, 2 }
 0x287   :  { %v2847_v28 = vand.u32 2147483648, %v8487_v27  ;;  %vm2851_vm9 = vcmp.eq.f32.partialorder %v8489_v21, inf  ;;  %5000 = vrsqrt.f32 %v8528_v1  ;;  %v2692_v31 = vadd.f32 %v2688_v53, %v11421_v49 }
 0x288   :  { %v2706_v60 = vsub.f32 %v2690_v34, %v2702_v22  ;;  %v2845_v25 = vsel %vm2844_vm8, %v8487_v27, %v2843_v7  ;;  %vm2846_vm10 = vcmp.eq.f32.partialorder %v8487_v27, 0.0  ;;  %v2835_v46 = vadd.f32 %v2813_v13, %v2809_v18 }
 0x289   :  { %vm2853_vm11 = vcmp.eq.f32.partialorder %v8489_v21, 0.0  ;;  %v2854_v3 = vand.u32 2147483648, %v8489_v21  ;;  %v2857_v6 = vmul.f32 %v4999_v54, %v8506_v5  ;;  %v2818_v58 = vadd.f32 %v2817_v9, %v2816_v30 }
 0x28a   :  { %v2825_v36 = vadd.f32 %v2824_v47, %v2823_v32  ;;  %v2852_v10 = vsel %vm2851_vm9, %v8489_v21, %v2850_v42  ;;  %vm2858_vm12 = vcmp.eq.f32.partialorder %v8506_v5, inf  ;;  %v2408_v14 = vsel %vm2407_vm6, %v8468_v52, %v2406_v2  ;;  %v11424_v47 = vld [vmem:[#allocation68_spill] sm:$0xff] }
 0x28b   :  { %v2707_v38 = vsub.f32 %v2691_v44, %v2703_v35  ;;  %v2832_v43 = vadd.f32 %v2831_v39, %v2830_v19  ;;  %v2848_v20 = vsel %vm2846_vm10, %v2847_v28, %v2845_v25  ;;  %v2708_v18 = vsub.f32 %v2692_v31, %v2704_v17 }
 0x28c   :  { %v8554_v13 = vmax.f32 %v2705_v0, 0.0  ;;  %v8556_v53 = vmax.f32 %v2706_v60, 0.0  ;;  %v2861_v34 = vand.u32 2147483648, %v8506_v5  ;;  %v2836_v30 = vrot.slane %v2835_v46, 4 }
 0x28d   :  { %v2855_v32 = vsel %vm2853_vm11, %v2854_v3, %v2852_v10  ;;  %v2859_v22 = vsel %vm2858_vm12, %v8506_v5, %v2857_v6  ;;  %vm2860_vm13 = vcmp.eq.f32.partialorder %v8506_v5, 0.0  ;;  %v11422_v2 = vand.u32 2147483648, %v8468_v52 }
 0x28e   :  { %v2819_v7 = vrot.slane %v2818_v58, 1  ;;  %v2826_v44 = vrot.slane %v2825_v36, 1  ;;  %v2870_v35 = vadd.f32 1e-08, %v2848_v20  ;;  %v8568_v17 = vmul.f32 0.3, %v8480_v45 }
 0x28f   :  { %v2411_v19 = vsel %vm2409_vm7, %v11422_v2, %v2408_v14  ;;  %v2426_v54 = vmul.f32 0.7, %v8510_v12  ;;  %v8571_v0 = vmax.f32 %v2707_v38, 0.0  ;;  %v2833_v9 = vrot.slane %v2832_v43, 1  ;;  %v11427_v14 = vld [vmem:[#allocation64_spill] sm:$0xff] }
 0x290   :  { %11423 = vst [vmem:[#allocation71_spill] sm:$0xff] %v8568_v17  ;;  %vm2432_vm14 = vcmp.gt.f32.partialorder %v8515_v57, %v11424_v47  ;;  %5002 = vrsqrt.f32 %v8554_v13  ;;  %v2862_v42 = vsel %vm2860_vm13, %v2861_v34, %v2859_v22  ;;  %v2871_v39 = vadd.f32 1e-08, %v2855_v32  ;;  %v4705_v38 = vld [vmem:[%s10574_s1 + $0x1f0] sm:$0xff]  ;;  %v4706_v34 = vld [vmem:[%s10574_s1 + $0x1f8] sm:$0xff]  ;;  %v4708_v22 = vld [vmem:[%s10574_s1 + $0x208] sm:$0xff] }
 0x291   :  { %v5001_v52 = vpop.eup %5000  ;;  %v2415_v28 = vsub.f32 2.0, %v2411_v19  ;;  %v8576_v31 = vmax.f32 %v2708_v18, 0.0  ;;  %5004 = vrsqrt.f32 %v8556_v53  ;;  %v8579_v45 = vadd.f32 %v2836_v30, %v2835_v46  ;;  %v4707_v30 = vld [vmem:[%s10574_s1 + $0x200] sm:$0xff]  ;;  %v4709_v2 = vld [vmem:[%s10574_s1 + $0x210] sm:$0xff] }
 0x292   :  { %v8583_v12 = vadd.f32 %v8512_v40, %v8485_v59  ;;  %v2820_v60 = vadd.f32 %v2819_v7, %v2818_v58  ;;  %v2827_v25 = vadd.f32 %v2826_v44, %v2825_v36  ;;  %5006 = vrcp.f32 %v2870_v35  ;;  %v4703_v40 = vld [vmem:[%s10574_s1 + $0x1e0] sm:$0xff]  ;;  %v4710_v35 = vld [vmem:[%s10574_s1 + $0x218] sm:$0xff] }
 0x293   :  { %11425 = vst [vmem:[#allocation70_spill] sm:$0xff] %v8576_v31  ;;  %v8586_v3 = vadd.f32 %v2426_v54, %v8504_v15  ;;  %5008 = vrsqrt.f32 %v8571_v0  ;;  %v2834_v6 = vadd.f32 %v2833_v9, %v2832_v43  ;;  %v2872_v10 = vadd.f32 1e-08, %v2862_v42  ;;  %v4711_v42 = vld [vmem:[%s10574_s1 + $0x220] sm:$0xff]  ;;  %v4714_v36 = vld [vmem:[%s10574_s1 + $0x238] sm:$0xff] }
 0x294   :  { %v8594_v46 = vsel %vm2432_vm14, %v8515_v57, %v11424_v47  ;;  %v8600_v59 = vsel %vm2432_vm14, 3, %v11427_v14  ;;  %v2864_v15 = vmul.f32 %v5001_v52, %v8528_v1  ;;  %5010 = vrcp.f32 %v2871_v39  ;;  %v4704_v57 = vld [vmem:[%s10574_s1 + $0x1e8] sm:$0xff] }
 0x295   :  { %11426 = vst [vmem:[#allocation72_spill] sm:$0xff] %v8594_v46  ;;  %11428 = vst [vmem:[#allocation23_spill] sm:$0xff] %v8600_v59  ;;  %v8606_v58 = vmul.f32 0.5, %v2415_v28  ;;  %5012 = vrsqrt.f32 %v8576_v31  ;;  %vm2865_vm15 = vcmp.eq.f32.partialorder %v8528_v1, inf  ;;  %vm2867_vm0 = vcmp.eq.f32.partialorder %v8528_v1, 0.0  ;;  %v4712_v39 = vld [vmem:[%s10574_s1 + $0x228] sm:$0xff] }
 0x296   :  { %v2868_v43 = vand.u32 2147483648, %v8528_v1  ;;  %v8619_v20 = vmul.f32 2.0, %v2820_v60  ;;  %v8621_v18 = vmul.f32 2.0, %v2827_v25  ;;  %5014 = vrcp.f32 %v2872_v10  ;;  %v4713_v10 = vld [vmem:[%s10574_s1 + $0x230] sm:$0xff] }
 0x297   :  { %11429 = vst [vmem:[#allocation59_spill] sm:$0xff] %v8606_v58  ;;  %v8629_v32 = vmul.f32 2.0, %v2834_v6  ;;  %v8637_v19 = vunpack.c.l.bf16 %v4703_v40  ;;  %v8639_v7 = vunpack.c.h.bf16 %v4703_v40  ;;  %v2866_v44 = vsel %vm2865_vm15, %v8528_v1, %v2864_v15  ;;  %v11446_v1 = vld [vmem:[#allocation6_spill] sm:$0xff] }
 0x298   :  { %v8645_v54 = vunpack.c.l.bf16 %v4704_v57  ;;  %v8647_v9 = vunpack.c.h.bf16 %v4704_v57  ;;  %v8649_v47 = vunpack.c.l.bf16 %v4705_v38  ;;  %v8657_v52 = vunpack.c.h.bf16 %v4705_v38 }
 0x299   :  { %11430 = vst [vmem:[#allocation75_spill] sm:$0xff] %v8637_v19  ;;  %11431 = vst [vmem:[#allocation76_spill] sm:$0xff] %v8639_v7  ;;  %v8659_v28 = vunpack.c.l.bf16 %v4706_v34  ;;  %v8661_v60 = vunpack.c.h.bf16 %v4706_v34  ;;  %v8663_v25 = vunpack.c.l.bf16 %v4707_v30  ;;  %v8670_v14 = vunpack.c.h.bf16 %v4707_v30 }
 0x29a   :  { %11432 = vst [vmem:[#allocation77_spill] sm:$0xff] %v8645_v54  ;;  %11433 = vst [vmem:[#allocation57_spill] sm:$0xff] %v8647_v9  ;;  %v8665_v6 = vpop.eup %5002  ;;  %v8672_v15 = vunpack.c.l.bf16 %v4708_v22  ;;  %v8674_v40 = vunpack.c.h.bf16 %v4708_v22  ;;  %v8676_v57 = vunpack.c.l.bf16 %v4709_v2  ;;  %v2869_v34 = vsel %vm2867_vm0, %v2868_v43, %v2866_v44 }
 0x29b   :  { %11434 = vst [vmem:[#allocation5_spill] sm:$0xff] %v8649_v47  ;;  %11435 = vst [vmem:[#allocation65_spill] sm:$0xff] %v8657_v52  ;;  %v8678_v38 = vpop.eup %5004  ;;  %v8685_v49 = vunpack.c.h.bf16 %v4709_v2  ;;  %v8687_v33 = vunpack.c.l.bf16 %v4710_v35  ;;  %v8689_v30 = vunpack.c.h.bf16 %v4710_v35  ;;  %v8691_v22 = vunpack.c.l.bf16 %v4711_v42 }
 0x29c   :  { %11436 = vst [vmem:[#allocation62_spill] sm:$0xff] %v8659_v28  ;;  %11437 = vst [vmem:[#allocation74_spill] sm:$0xff] %v8661_v60  ;;  %v5007_v62 = vpop.eup %5006  ;;  %v8693_v56 = vunpack.c.h.bf16 %v4711_v42  ;;  %v8695_v24 = vunpack.c.l.bf16 %v4712_v39  ;;  %v8697_v16 = vunpack.c.h.bf16 %v4712_v39  ;;  %v8701_v44 = vunpack.c.l.bf16 %v4713_v10 }
 0x29d   :  { %11438 = vst [vmem:[#allocation73_spill] sm:$0xff] %v8663_v25  ;;  %11439 = vst [vmem:[#allocation56_spill] sm:$0xff] %v8670_v14  ;;  %v8699_v43 = vpop.eup %5008  ;;  %v8703_v8 = vunpack.c.h.bf16 %v4713_v10  ;;  %v3011_v2 = vmul.f32 %v8637_v19, %v8637_v19  ;;  %v3015_v35 = vmul.f32 %v8649_v47, %v8649_v47  ;;  %v2873_v29 = vadd.f32 1e-08, %v2869_v34  ;;  %v11444_v34 = vld [vmem:[#allocation40_spill] sm:$0xff] }
 0x29e   :  { %11440 = vst [vmem:[#allocation78_spill] sm:$0xff] %v8676_v57  ;;  %11441 = vst [vmem:[#allocation61_spill] sm:$0xff] %v8685_v49  ;;  %v5011_v26 = vpop.eup %5010  ;;  %v8709_v42 = vunpack.c.l.bf16 %v4714_v36  ;;  %v3012_v39 = vmul.f32 %v8639_v7, %v8639_v7  ;;  %v3016_v59 = vmul.f32 %v8657_v52, %v8657_v52  ;;  %v2882_v10 = vmul.f32 %v5007_v62, %v5007_v62 }
 0x29f   :  { %11442 = vst [vmem:[#allocation68_spill] sm:$0xff] %v8687_v33  ;;  %v8715_v46 = vpop.eup %5012  ;;  %v8717_v11 = vunpack.c.h.bf16 %v4714_v36  ;;  %v3013_v41 = vmul.f32 %v8645_v54, %v8645_v54  ;;  %v3017_v37 = vmul.f32 %v8659_v28, %v8659_v28  ;;  %v2898_v4 = vmul.f32 %v5007_v62, %v11444_v34  ;;  %v11445_v62 = vld [vmem:[#allocation15_spill] sm:$0xff] }
 0x2a0   :  { %11443 = vst [vmem:[#allocation64_spill] sm:$0xff] %v8715_v46  ;;  %v3014_v47 = vmul.f32 %v8647_v9, %v8647_v9  ;;  %v3018_v7 = vmul.f32 %v8661_v60, %v8661_v60  ;;  %v3019_v52 = vmul.f32 %v8663_v25, %v8663_v25  ;;  %v5015_v19 = vpop.eup %5014  ;;  %v2883_v36 = vmul.f32 %v5011_v26, %v5011_v26 }
 0x2a1   :  { %v3020_v17 = vmul.f32 %v8670_v14, %v8670_v14  ;;  %v3035_v54 = vmul.f32 %v11176_v23, %v3011_v2  ;;  %v3039_v28 = vmul.f32 %v11008_v48, %v3015_v35  ;;  %5016 = vrcp.f32 %v2873_v29  ;;  %v11447_v35 = vld [vmem:[#allocation17_spill] sm:$0xff] }
 0x2a2   :  { %v2899_v34 = vmul.f32 %v5011_v26, %v11445_v62  ;;  %v3036_v9 = vmul.f32 %v5379_v50, %v3012_v39  ;;  %v3040_v58 = vmul.f32 %v11446_v1, %v3016_v59  ;;  %v2886_v60 = vmul.f32 %v2882_v10, %v8487_v27 }
 0x2a3   :  { %v3021_v25 = vmul.f32 %v8672_v15, %v8672_v15  ;;  %v3037_v46 = vmul.f32 %v5381_v51, %v3013_v41  ;;  %v3041_v14 = vmul.f32 %v5389_v61, %v3017_v37  ;;  %v2884_v31 = vmul.f32 %v5015_v19, %v5015_v19 }
 0x2a4   :  { %v2902_v2 = vmul.f32 %v2898_v4, %v8619_v20  ;;  %v3022_v29 = vmul.f32 %v8674_v40, %v8674_v40  ;;  %v3023_v26 = vmul.f32 %v8676_v57, %v8676_v57  ;;  %v2887_v59 = vmul.f32 %v2883_v36, %v8489_v21 }
 0x2a5   :  { %v2900_v27 = vmul.f32 %v5015_v19, %v11447_v35  ;;  %v3043_v39 = vmul.f32 %v11176_v23, %v3019_v52  ;;  %v3059_v10 = vadd.f32 %v3039_v28, %v3035_v54  ;;  %v3024_v41 = vmul.f32 %v8685_v49, %v8685_v49  ;;  %v11448_v52 = vld [vmem:[#allocation22_spill] sm:$0xff] }
 0x2a6   :  { %v3025_v37 = vmul.f32 %v8687_v33, %v8687_v33  ;;  %v3044_v4 = vmul.f32 %v5379_v50, %v3020_v17  ;;  %v3070_v20 = vadd.f32 %v3040_v58, %v3036_v9  ;;  %v3038_v62 = vmul.f32 %v5383_v55, %v3014_v47  ;;  %v11449_v33 = vld [vmem:[#allocation24_spill] sm:$0xff] }
 0x2a7   :  { %v3042_v57 = vmul.f32 %v5394_v63, %v3018_v7  ;;  %v3045_v21 = vmul.f32 %v5381_v51, %v3021_v25  ;;  %v3081_v36 = vadd.f32 %v3041_v14, %v3037_v46  ;;  %v2888_v19 = vmul.f32 %v2884_v31, %v8506_v5 }
 0x2a8   :  { %v2890_v54 = vadd.f32 %v2886_v60, %v11448_v52  ;;  %v2903_v28 = vmul.f32 %v2899_v34, %v8621_v18  ;;  %v3026_v35 = vmul.f32 %v8689_v30, %v8689_v30  ;;  %v2891_v49 = vadd.f32 %v2887_v59, %v11449_v33  ;;  %v11450_v34 = vld [vmem:[#allocation26_spill] sm:$0xff] }
 0x2a9   :  { %v3027_v17 = vmul.f32 %v8691_v22, %v8691_v22  ;;  %v3047_v58 = vmul.f32 %v11008_v48, %v3023_v26  ;;  %v3060_v7 = vadd.f32 %v3059_v10, %v3043_v39  ;;  %v3028_v46 = vmul.f32 %v8693_v56, %v8693_v56 }
 0x2aa   :  { %v3029_v5 = vmul.f32 %v8695_v24, %v8695_v24  ;;  %v3048_v31 = vmul.f32 %v11446_v1, %v3024_v41  ;;  %v3071_v18 = vadd.f32 %v3070_v20, %v3044_v4  ;;  %v3046_v9 = vmul.f32 %v5383_v55, %v3022_v29 }
 0x2ab   :  { %v3049_v47 = vmul.f32 %v5389_v61, %v3025_v37  ;;  %v3082_v60 = vadd.f32 %v3081_v36, %v3045_v21  ;;  %v3092_v25 = vadd.f32 %v3042_v57, %v3038_v62  ;;  %v8774_v14 = vpop.eup %5016  ;;  %v2892_v26 = vadd.f32 %v2888_v19, %v11450_v34 }
 0x2ac   :  { %v2904_v59 = vmul.f32 %v2900_v27, %v8629_v32  ;;  %v2906_v39 = vsub.f32 %v2890_v54, %v2902_v2  ;;  %v3030_v10 = vmul.f32 %v8697_v16, %v8697_v16  ;;  %v2907_v33 = vsub.f32 %v2891_v49, %v2903_v28 }
 0x2ad   :  { %v3031_v41 = vmul.f32 %v8701_v44, %v8701_v44  ;;  %v3051_v29 = vmul.f32 %v11176_v23, %v3027_v17  ;;  %v3061_v4 = vadd.f32 %v3060_v7, %v3047_v58  ;;  %v3032_v57 = vmul.f32 %v8703_v8, %v8703_v8 }
 0x2ae   :  { %v3033_v62 = vmul.f32 %v8709_v42, %v8709_v42  ;;  %v3052_v37 = vmul.f32 %v5379_v50, %v3028_v46  ;;  %v3072_v32 = vadd.f32 %v3071_v18, %v3048_v31  ;;  %v3050_v2 = vmul.f32 %v5394_v63, %v3026_v35 }
 0x2af   :  { %v3053_v27 = vmul.f32 %v5381_v51, %v3029_v5  ;;  %v3083_v49 = vadd.f32 %v3082_v60, %v3049_v47  ;;  %v3093_v20 = vadd.f32 %v3092_v25, %v3046_v9  ;;  %vm2715_vm1 = vcmp.eq.f32.partialorder %v8554_v13, inf  ;;  %v11452_v47 = vld [vmem:[#allocation69_spill] sm:$0xff] }
 0x2b0   :  { %vm2717_vm2 = vcmp.eq.f32.partialorder %v8554_v13, 0.0  ;;  %v2718_v21 = vand.u32 2147483648, %v8554_v13  ;;  %v11451_v36 = vrot.slane %v8579_v45, 2  ;;  %v2908_v54 = vsub.f32 %v2892_v26, %v2904_v59  ;;  %v11453_v26 = vld [vmem:[#allocation58_spill] sm:$0xff] }
 0x2b1   :  { %v8796_v28 = vmax.f32 %v2906_v39, 0.0  ;;  %v3055_v17 = vmul.f32 %v11008_v48, %v3031_v41  ;;  %v3062_v35 = vadd.f32 %v3061_v4, %v3051_v29  ;;  %v8799_v58 = vmax.f32 %v2907_v33, 0.0 }
 0x2b2   :  { %v2839_v19 = vadd.f32 %v11451_v36, %v8579_v45  ;;  %v3034_v7 = vmul.f32 %v8717_v11, %v8717_v11  ;;  %v3056_v46 = vmul.f32 %v11446_v1, %v3032_v57  ;;  %v3073_v5 = vadd.f32 %v3072_v32, %v3052_v37 }
 0x2b3   :  { %v3054_v31 = vmul.f32 %v5383_v55, %v3030_v10  ;;  %v3057_v18 = vmul.f32 %v5389_v61, %v3033_v62  ;;  %v3084_v9 = vadd.f32 %v3083_v49, %v3053_v27  ;;  %v3094_v45 = vadd.f32 %v3093_v20, %v3050_v2  ;;  %v11454_v49 = vld [vmem:[#allocation70_spill] sm:$0xff]  ;;  %v11455_v20 = vld [vmem:[#allocation64_spill] sm:$0xff] }
 0x2b4   :  { %vm2433_vm3 = vcmp.gt.f32.partialorder %v8583_v12, %v11452_v47  ;;  %v2714_v60 = vmul.f32 %v8665_v6, %v8554_v13  ;;  %v2721_v33 = vmul.f32 %v8678_v38, %v8556_v53  ;;  %vm2722_vm4 = vcmp.eq.f32.partialorder %v8556_v53, inf }
 0x2b5   :  { %v2840_v25 = vrot.slane %v2839_v19, 1  ;;  %vm2434_vm5 = vcmp.gt.f32.partialorder %v8586_v3, %v11453_v26  ;;  %vm2724_vm6 = vcmp.eq.f32.partialorder %v8556_v53, 0.0  ;;  %v8816_v59 = vmax.f32 %v2908_v54, 0.0 }
 0x2b6   :  { %5018 = vrsqrt.f32 %v8796_v28  ;;  %v3063_v39 = vadd.f32 %v3062_v35, %v3055_v17  ;;  %v2725_v10 = vand.u32 2147483648, %v8556_v53  ;;  %v2728_v6 = vmul.f32 %v8699_v43, %v8571_v0 }
 0x2b7   :  { %5020 = vrsqrt.f32 %v8799_v58  ;;  %v3074_v38 = vadd.f32 %v3073_v5, %v3056_v46  ;;  %vm2729_vm7 = vcmp.eq.f32.partialorder %v8571_v0, inf  ;;  %v3058_v41 = vmul.f32 %v5394_v63, %v3034_v7  ;;  %v11456_v46 = vld [vmem:[#allocation59_spill] sm:$0xff] }
 0x2b8   :  { %v3085_v29 = vadd.f32 %v3084_v9, %v3057_v18  ;;  %v3095_v4 = vadd.f32 %v3094_v45, %v3054_v31  ;;  %v2716_v57 = vsel %vm2715_vm1, %v8554_v13, %v2714_v60  ;;  %v2723_v62 = vsel %vm2722_vm4, %v8556_v53, %v2721_v33  ;;  %v11457_v31 = vld [vmem:[#allocation67_spill] sm:$0xff] }
 0x2b9   :  { %v2841_v37 = vadd.f32 %v2840_v25, %v2839_v19  ;;  %v2885_v43 = vmul.f32 %v8774_v14, %v8774_v14  ;;  %vm2731_vm8 = vcmp.eq.f32.partialorder %v8571_v0, 0.0  ;;  %v2732_v32 = vand.u32 2147483648, %v8571_v0  ;;  %v11458_v45 = vld [vmem:[#allocation43_spill] sm:$0xff] }
 0x2ba   :  { %5022 = vrsqrt.f32 %v8816_v59  ;;  %v3064_v2 = vrot.slane %v3063_v39, 4  ;;  %v2730_v27 = vsel %vm2729_vm7, %v8571_v0, %v2728_v6  ;;  %v2735_v36 = vmul.f32 %v11455_v20, %v11454_v49  ;;  %v11459_v0 = vld [vmem:[#allocation66_spill] sm:$0xff] }
 0x2bb   :  { %vm2736_vm9 = vcmp.eq.f32.partialorder %v11454_v49, inf  ;;  %v3075_v54 = vrot.slane %v3074_v38, 4  ;;  %v2719_v19 = vsel %vm2717_vm2, %v2718_v21, %v2716_v57  ;;  %v2726_v17 = vsel %vm2724_vm6, %v2725_v10, %v2723_v62 }
 0x2bc   :  { %v3086_v35 = vrot.slane %v3085_v29, 4  ;;  %v3096_v7 = vadd.f32 %v3095_v4, %v3058_v41  ;;  %v2427_v5 = vmul.f32 0.7, %v11456_v46  ;;  %v2889_v18 = vmul.f32 %v2885_v43, %v11457_v31  ;;  %v11462_v43 = vld [vmem:[#allocation31_spill] sm:$0xff] }
 0x2bd   :  { %v2897_v9 = vmul.f32 2.0, %v2841_v37  ;;  %v2901_v60 = vmul.f32 %v8774_v14, %v11458_v45  ;;  %v2733_v33 = vsel %vm2731_vm8, %v2732_v32, %v2730_v27  ;;  %vm2738_vm10 = vcmp.eq.f32.partialorder %v11454_v49, 0.0  ;;  %v11463_v27 = vld [vmem:[#allocation71_spill] sm:$0xff] }
 0x2be   :  { %v2739_v13 = vand.u32 2147483648, %v11454_v49  ;;  %v3065_v21 = vadd.f32 %v3064_v2, %v3063_v39  ;;  %v2737_v53 = vsel %vm2736_vm9, %v11454_v49, %v2735_v36  ;;  %v2741_v25 = vsub.f32 2.0, %v2719_v19 }
 0x2bf   :  { %v2742_v10 = vsub.f32 2.0, %v2726_v17  ;;  %v3076_v6 = vadd.f32 %v3075_v54, %v3074_v38  ;;  %v8858_v14 = vsel %vm2433_vm3, %v8583_v12, %v11452_v47  ;;  %v8864_v4 = vsel %vm2433_vm3, 3, %v11459_v0  ;;  %v11464_v12 = vld [vmem:[#allocation60_spill] sm:$0xff] }
 0x2c0   :  { %v5019_v41 = vpop.eup %5018  ;;  %11460 = vst [vmem:[#allocation6_spill] sm:$0xff] %v8864_v4  ;;  %v3087_v39 = vadd.f32 %v3086_v35, %v3085_v29  ;;  %v3097_v57 = vrot.slane %v3096_v7, 4  ;;  %v8871_v38 = vsel %vm2434_vm5, %v8586_v3, %v11453_v26  ;;  %v2743_v37 = vsub.f32 2.0, %v2733_v33 }
 0x2c1   :  { %v5021_v62 = vpop.eup %5020  ;;  %11461 = vst [vmem:[#allocation69_spill] sm:$0xff] %v8871_v38  ;;  %v2893_v32 = vadd.f32 %v2889_v18, %v11462_v43  ;;  %v2905_v2 = vmul.f32 %v2901_v60, %v2897_v9  ;;  %v8875_v20 = vadd.f32 %v2427_v5, %v11463_v27  ;;  %v8881_v47 = vsel %vm2434_vm5, 3, %v11464_v12 }
 0x2c2   :  { %11465 = vst [vmem:[#allocation58_spill] sm:$0xff] %v8881_v47  ;;  %v2740_v29 = vsel %vm2738_vm10, %v2739_v13, %v2737_v53  ;;  %v3066_v36 = vrot.slane %v3065_v21, 2  ;;  %v2745_v54 = vmul.f32 0.5, %v2741_v25  ;;  %v2746_v19 = vmul.f32 0.5, %v2742_v10 }
 0x2c3   :  { %v2915_v17 = vmul.f32 %v5019_v41, %v8796_v28  ;;  %v3077_v35 = vrot.slane %v3076_v6, 2  ;;  %vm2916_vm11 = vcmp.eq.f32.partialorder %v8796_v28, inf  ;;  %v2922_v5 = vmul.f32 %v5021_v62, %v8799_v58 }
 0x2c4   :  { %v5023_v46 = vpop.eup %5022  ;;  %v3088_v31 = vrot.slane %v3087_v39, 2  ;;  %v3098_v18 = vadd.f32 %v3097_v57, %v3096_v7  ;;  %v2744_v9 = vsub.f32 2.0, %v2740_v29  ;;  %v2747_v3 = vmul.f32 0.5, %v2743_v37 }
 0x2c5   :  { %v2909_v26 = vsub.f32 %v2893_v32, %v2905_v2  ;;  %vm2923_vm12 = vcmp.eq.f32.partialorder %v8799_v58, inf  ;;  %vm2918_vm13 = vcmp.eq.f32.partialorder %v8796_v28, 0.0  ;;  %v2919_v49 = vand.u32 2147483648, %v8796_v28 }
 0x2c6   :  { %vm2925_vm14 = vcmp.eq.f32.partialorder %v8799_v58, 0.0  ;;  %v3067_v60 = vadd.f32 %v3066_v36, %v3065_v21  ;;  %v2917_v33 = vsel %vm2916_vm11, %v8796_v28, %v2915_v17  ;;  %v2926_v13 = vand.u32 2147483648, %v8799_v58  ;;  %v11468_v17 = vld [vmem:[#allocation11_spill] sm:$0xff] }
 0x2c7   :  { %v2929_v53 = vmul.f32 %v5023_v46, %v8816_v59  ;;  %v3078_v25 = vadd.f32 %v3077_v35, %v3076_v6  ;;  %v2924_v7 = vsel %vm2923_vm12, %v8799_v58, %v2922_v5  ;;  %vm2930_vm15 = vcmp.eq.f32.partialorder %v8816_v59, inf  ;;  %v11469_v35 = vld [vmem:[#allocation5_spill] sm:$0xff]  ;;  %v11471_v58 = vld [vmem:[#allocation76_spill] sm:$0xff] }
 0x2c8   :  { %v3089_v10 = vadd.f32 %v3088_v31, %v3087_v39  ;;  %v3099_v41 = vrot.slane %v3098_v18, 2  ;;  %v8897_v0 = vmul.f32 0.5, %v2744_v9  ;;  %v8899_v57 = vmax.f32 %v2909_v26, 0.0  ;;  %v11470_v31 = vld [vmem:[#allocation8_spill] sm:$0xff]  ;;  %v11473_v26 = vld [vmem:[#allocation65_spill] sm:$0xff] }
 0x2c9   :  { %v8901_v62 = vmul.f32 0.3, %v2745_v54  ;;  %v8903_v21 = vmul.f32 0.3, %v2746_v19  ;;  %v2920_v37 = vsel %vm2918_vm13, %v2919_v49, %v2917_v33  ;;  %v2933_v32 = vand.u32 2147483648, %v8816_v59  ;;  %v11466_v54 = vld [vmem:[#allocation7_spill] sm:$0xff] }
 0x2ca   :  { %v8908_v6 = vmul.f32 0.3, %v2747_v3  ;;  %v3068_v2 = vrot.slane %v3067_v60, 1  ;;  %v8912_v39 = vsel %vm2925_vm14, %v2926_v13, %v2924_v7  ;;  %v2931_v27 = vsel %vm2930_vm15, %v8816_v59, %v2929_v53  ;;  %v11467_v19 = vld [vmem:[#allocation75_spill] sm:$0xff]  ;;  %v11472_v3 = vld [vmem:[#allocation12_spill] sm:$0xff]  ;;  %v11474_v13 = vld [vmem:[#allocation9_spill] sm:$0xff] }
 0x2cb   :  { %vm2932_vm0 = vcmp.eq.f32.partialorder %v8816_v59, 0.0  ;;  %v3079_v12 = vrot.slane %v3078_v25, 1  ;;  %v3090_v29 = vrot.slane %v3089_v10, 1  ;;  %v3100_v36 = vadd.f32 %v3099_v41, %v3098_v18  ;;  %v11475_v53 = vld [vmem:[#allocation77_spill] sm:$0xff]  ;;  %v4715_v41 = vld [vmem:[%s10575_s4 + $0xa0] sm:$0xff] }
 0x2cc   :  { %v3103_v28 = vmul.f32 %v11467_v19, %v11466_v54  ;;  %v3107_v46 = vmul.f32 %v11469_v35, %v11468_v17  ;;  %5024 = vrsqrt.f32 %v8899_v57  ;;  %v2942_v5 = vsub.f32 2.0, %v2920_v37  ;;  %v4717_v37 = vld [vmem:[%s10575_s4 + $0xb0] sm:$0xff]  ;;  %v11476_v35 = vld [vmem:[#allocation10_spill] sm:$0xff]  ;;  %v11484_v17 = vld [vmem:[#allocation19_spill] sm:$0xff] }
 0x2cd   :  { %v3104_v9 = vmul.f32 %v11471_v58, %v11470_v31  ;;  %v3108_v49 = vmul.f32 %v11473_v26, %v11472_v3  ;;  %v8925_v33 = vsel %vm2932_vm0, %v2933_v32, %v2931_v27  ;;  %v2943_v59 = vsub.f32 2.0, %v8912_v39  ;;  %v11477_v32 = vld [vmem:[#allocation57_spill] sm:$0xff]  ;;  %v11479_v39 = vld [vmem:[#allocation62_spill] sm:$0xff]  ;;  %v11485_v54 = vld [vmem:[#allocation56_spill] sm:$0xff] }
 0x2ce   :  { %v8928_v18 = vadd.f32 %v3068_v2, %v3067_v60  ;;  %v3105_v7 = vmul.f32 %v11475_v53, %v11474_v13  ;;  %v8938_v19 = vadd.f32 %v3079_v12, %v3078_v25  ;;  %v3106_v27 = vmul.f32 %v11477_v32, %v11476_v35  ;;  %v11478_v58 = vld [vmem:[#allocation13_spill] sm:$0xff]  ;;  %v11480_v2 = vld [vmem:[#allocation14_spill] sm:$0xff]  ;;  %v11487_v35 = vld [vmem:[#allocation44_spill] sm:$0xff] }
 0x2cf   :  { %v3109_v60 = vmul.f32 %v11479_v39, %v11478_v58  ;;  %v11481_v26 = vld [vmem:[#allocation74_spill] sm:$0xff]  ;;  %v8946_v53 = vadd.f32 %v3090_v29, %v3089_v10  ;;  %v3101_v43 = vrot.slane %v3100_v36, 1  ;;  %v11483_v13 = vld [vmem:[#allocation73_spill] sm:$0xff]  ;;  %v3127_v45 = vadd.f32 %v3107_v46, %v3103_v28 }
 0x2d0   :  { %v3110_v47 = vmul.f32 %v11481_v26, %v11480_v2  ;;  %v11482_v3 = vld [vmem:[#allocation18_spill] sm:$0xff]  ;;  %v3112_v25 = vmul.f32 %v11485_v54, %v11484_v17  ;;  %v3138_v12 = vadd.f32 %v3108_v49, %v3104_v9  ;;  %v8952_v34 = vunpack.c.l.bf16 %v4715_v41  ;;  %v11490_v26 = vld [vmem:[#allocation45_spill] sm:$0xff]  ;;  %v8971_v49 = vld [vmem:[%s10575_s4 + $0xa8] sm:$0xff] }
 0x2d1   :  { %v3111_v31 = vmul.f32 %v11483_v13, %v11482_v3  ;;  %v8954_v32 = vunpack.c.l.bf16 %v4717_v37  ;;  %v3113_v39 = vmul.f32 %v8672_v15, %v11487_v35  ;;  %5026 = vrsqrt.f32 %v8928_v18  ;;  %v11491_v46 = vld [vmem:[#allocation46_spill] sm:$0xff]  ;;  %v8976_v15 = vld [vmem:[%s10575_s4 + $0xb8] sm:$0xff] }
 0x2d2   :  { %v8959_v10 = vunpack.c.h.bf16 %v4715_v41  ;;  %v8961_v29 = vunpack.c.h.bf16 %v4717_v37  ;;  %v3114_v28 = vmul.f32 %v8674_v40, %v11490_v26  ;;  %v11492_v13 = vld [vmem:[#allocation78_spill] sm:$0xff]  ;;  %v3149_v9 = vadd.f32 %v3109_v60, %v3105_v7  ;;  %v11494_v7 = vld [vmem:[#allocation61_spill] sm:$0xff] }
 0x2d3   :  { %11486 = vst [vmem:[#allocation70_spill] sm:$0xff] %v8954_v32  ;;  %v3115_v54 = vmul.f32 %v11492_v13, %v11491_v46  ;;  %5028 = vrsqrt.f32 %v8938_v19  ;;  %v8978_v41 = vadd.f32 %v3101_v43, %v3100_v36  ;;  %v3128_v37 = vadd.f32 %v3127_v45, %v3111_v31  ;;  %v11493_v13 = vld [vmem:[#allocation47_spill] sm:$0xff]  ;;  %v11498_v58 = vld [vmem:[#allocation50_spill] sm:$0xff] }
 0x2d4   :  { %11488 = vst [vmem:[#allocation64_spill] sm:$0xff] %v8959_v10  ;;  %11489 = vst [vmem:[#allocation59_spill] sm:$0xff] %v8961_v29  ;;  %v3160_v40 = vadd.f32 %v3110_v47, %v3106_v27  ;;  %5030 = vrsqrt.f32 %v8946_v53  ;;  %v3116_v60 = vmul.f32 %v11494_v7, %v11493_v13  ;;  %v3139_v26 = vadd.f32 %v3138_v12, %v3112_v25  ;;  %v11495_v27 = vld [vmem:[#allocation48_spill] sm:$0xff]  ;;  %v11497_v7 = vld [vmem:[#allocation49_spill] sm:$0xff] }
 0x2d5   :  { %v3292_v35 = vmul.f32 %v8952_v34, %v8952_v34  ;;  %v3296_v17 = vmul.f32 %v8954_v32, %v8954_v32  ;;  %v8988_v46 = vunpack.c.l.bf16 %v8971_v49  ;;  %v8991_v43 = vunpack.c.l.bf16 %v8976_v15  ;;  %v11496_v25 = vld [vmem:[#allocation68_spill] sm:$0xff] }
 0x2d6   :  { %v3293_v45 = vmul.f32 %v8959_v10, %v8959_v10  ;;  %v3297_v47 = vmul.f32 %v8961_v29, %v8961_v29  ;;  %v8997_v36 = vpop.eup %5024  ;;  %v8999_v31 = vmul.f32 0.5, %v2942_v5  ;;  %v3117_v12 = vmul.f32 %v11496_v25, %v11495_v27  ;;  %v11499_v10 = vld [vmem:[#allocation51_spill] sm:$0xff] }
 0x2d7   :  { %v3118_v13 = vmul.f32 %v8689_v30, %v11497_v7  ;;  %v3150_v2 = vadd.f32 %v3149_v9, %v3113_v39  ;;  %v3119_v3 = vmul.f32 %v8691_v22, %v11498_v58  ;;  %v3129_v52 = vadd.f32 %v3128_v37, %v3115_v54  ;;  %v11503_v27 = vld [vmem:[#allocation55_spill] sm:$0xff]  ;;  %v11505_v58 = vld [vmem:[#allocation30_spill] sm:$0xff] }
 0x2d8   :  { %v3161_v4 = vadd.f32 %v3160_v40, %v3114_v28  ;;  %5032 = vrsqrt.f32 %v8978_v41  ;;  %v3120_v29 = vmul.f32 %v8693_v56, %v11499_v10  ;;  %v3140_v38 = vadd.f32 %v3139_v26, %v3116_v60  ;;  %v11500_v56 = vld [vmem:[#allocation52_spill] sm:$0xff]  ;;  %v11502_v40 = vld [vmem:[#allocation54_spill] sm:$0xff]  ;;  %v11504_v28 = vld [vmem:[#allocation27_spill] sm:$0xff] }
 0x2d9   :  { %v3300_v5 = vmul.f32 %v11176_v23, %v3292_v35  ;;  %v3304_v32 = vmul.f32 %v11008_v48, %v3296_v17  ;;  %v3294_v25 = vmul.f32 %v8988_v46, %v8988_v46  ;;  %v3298_v30 = vmul.f32 %v8991_v43, %v8991_v43  ;;  %v11501_v17 = vld [vmem:[#allocation53_spill] sm:$0xff] }
 0x2da   :  { %v3301_v22 = vmul.f32 %v5379_v50, %v3293_v45  ;;  %v3305_v39 = vmul.f32 %v11446_v1, %v3297_v47  ;;  %v9019_v54 = vmul.f32 0.5, %v2943_v59  ;;  %v3121_v26 = vmul.f32 %v8695_v24, %v11500_v56 }
 0x2db   :  { %v3151_v35 = vadd.f32 %v3150_v2, %v3117_v12  ;;  %v5027_v9 = vpop.eup %5026  ;;  %v3122_v37 = vmul.f32 %v8697_v16, %v11501_v17  ;;  %v3123_v60 = vmul.f32 %v8701_v44, %v11502_v40  ;;  %v3130_v10 = vadd.f32 %v3129_v52, %v3119_v3 }
 0x2dc   :  { %v3162_v7 = vadd.f32 %v3161_v4, %v3118_v13  ;;  %v3124_v47 = vmul.f32 %v8703_v8, %v11503_v27  ;;  %v3125_v59 = vmul.f32 %v8709_v42, %v11504_v28  ;;  %v3126_v24 = vmul.f32 %v8717_v11, %v11505_v58 }
 0x2dd   :  { %v5029_v45 = vpop.eup %5028  ;;  %v3308_v2 = vadd.f32 %v3304_v32, %v3300_v5  ;;  %v3141_v56 = vadd.f32 %v3140_v38, %v3120_v29  ;;  %v3302_v16 = vmul.f32 %v5381_v51, %v3294_v25  ;;  %v3306_v17 = vmul.f32 %v5389_v61, %v3298_v30 }
 0x2de   :  { %v5031_v12 = vpop.eup %5030  ;;  %v3315_v44 = vadd.f32 %v3305_v39, %v3301_v22  ;;  %v3152_v52 = vadd.f32 %v3151_v35, %v3121_v26  ;;  %v3172_v4 = vmul.f32 %v5027_v9, %v8928_v18  ;;  %vm3173_vm1 = vcmp.eq.f32.partialorder %v8928_v18, inf }
 0x2df   :  { %vm3175_vm2 = vcmp.eq.f32.partialorder %v8928_v18, 0.0  ;;  %v3131_v8 = vadd.f32 %v3130_v10, %v3123_v60  ;;  %v3163_v42 = vadd.f32 %v3162_v7, %v3122_v37  ;;  %v3176_v3 = vand.u32 2147483648, %v8928_v18 }
 0x2e0   :  { %v3179_v11 = vmul.f32 %v5029_v45, %v8938_v19  ;;  %vm3180_vm3 = vcmp.eq.f32.partialorder %v8938_v19, inf  ;;  %vm3182_vm4 = vcmp.eq.f32.partialorder %v8938_v19, 0.0  ;;  %v3186_v38 = vmul.f32 %v5031_v12, %v8946_v53 }
 0x2e1   :  { %v3309_v32 = vrot.slane %v3308_v2, 4  ;;  %v3142_v13 = vadd.f32 %v3141_v56, %v3124_v47  ;;  %vm3187_vm5 = vcmp.eq.f32.partialorder %v8946_v53, inf  ;;  %v3316_v5 = vrot.slane %v3315_v44, 4 }
 0x2e2   :  { %v5033_v29 = vpop.eup %5032  ;;  %v3322_v25 = vadd.f32 %v3306_v17, %v3302_v16  ;;  %v3153_v30 = vadd.f32 %v3152_v52, %v3125_v59  ;;  %v3174_v10 = vsel %vm3173_vm1, %v8928_v18, %v3172_v4  ;;  %v3183_v7 = vand.u32 2147483648, %v8938_v19 }
 0x2e3   :  { %vm3189_vm6 = vcmp.eq.f32.partialorder %v8946_v53, 0.0  ;;  %v3132_v22 = vrot.slane %v3131_v8, 4  ;;  %v3164_v39 = vadd.f32 %v3163_v42, %v3126_v24  ;;  %v3181_v26 = vsel %vm3180_vm3, %v8938_v19, %v3179_v11 }
 0x2e4   :  { %v3190_v35 = vand.u32 2147483648, %v8946_v53  ;;  %v3188_v56 = vsel %vm3187_vm5, %v8946_v53, %v3186_v38  ;;  %v3193_v9 = vmul.f32 %v5033_v29, %v8978_v41  ;;  %vm3194_vm7 = vcmp.eq.f32.partialorder %v8978_v41, inf }
 0x2e5   :  { %v3310_v17 = vadd.f32 %v3309_v32, %v3308_v2  ;;  %v3143_v37 = vrot.slane %v3142_v13, 4  ;;  %v3177_v60 = vsel %vm3175_vm2, %v3176_v3, %v3174_v10  ;;  %v3317_v45 = vadd.f32 %v3316_v5, %v3315_v44  ;;  %v11506_v44 = vld [vmem:[#allocation25_spill] sm:$0xff] }
 0x2e6   :  { %v3323_v47 = vrot.slane %v3322_v25, 4  ;;  %vm2937_vm8 = vcmp.eq.f32.partialorder %v8899_v57, inf  ;;  %v3154_v59 = vrot.slane %v3153_v30, 4  ;;  %v3184_v24 = vsel %vm3182_vm4, %v3183_v7, %v3181_v26 }
 0x2e7   :  { %vm3196_vm9 = vcmp.eq.f32.partialorder %v8978_v41, 0.0  ;;  %v3197_v12 = vand.u32 2147483648, %v8978_v41  ;;  %v3133_v16 = vadd.f32 %v3132_v22, %v3131_v8  ;;  %v3165_v52 = vrot.slane %v3164_v39, 4 }
 0x2e8   :  { %v3191_v2 = vsel %vm3189_vm6, %v3190_v35, %v3188_v56  ;;  %v9064_v4 = vunpack.c.h.bf16 %v8971_v49  ;;  %vm2435_vm10 = vcmp.gt.f32.partialorder %v8875_v20, %v11506_v44  ;;  %v3195_v42 = vsel %vm3194_vm7, %v8978_v41, %v3193_v9 }
 0x2e9   :  { %v3199_v3 = vadd.f32 1e-08, %v3177_v60  ;;  %v9072_v11 = vunpack.c.h.bf16 %v8976_v15  ;;  %v3311_v38 = vrot.slane %v3310_v17, 2  ;;  %v3144_v8 = vadd.f32 %v3143_v37, %v3142_v13 }
 0x2ea   :  { %v3200_v32 = vadd.f32 1e-08, %v3184_v24  ;;  %v3318_v29 = vrot.slane %v3317_v45, 2  ;;  %v3324_v5 = vadd.f32 %v3323_v47, %v3322_v25  ;;  %v11507_v10 = vsub.f32 2.0, %v8925_v33 }
 0x2eb   :  { %v2954_v7 = vmul.f32 0.7, %v8999_v31  ;;  %v3155_v22 = vadd.f32 %v3154_v59, %v3153_v30  ;;  %v3201_v26 = vadd.f32 1e-08, %v3191_v2  ;;  %v2936_v35 = vmul.f32 %v8997_v36, %v8899_v57 }
 0x2ec   :  { %v2948_v49 = vmul.f32 0.5, %v11507_v10  ;;  %v3134_v56 = vrot.slane %v3133_v16, 2  ;;  %v3166_v9 = vadd.f32 %v3165_v52, %v3164_v39  ;;  %v3198_v15 = vsel %vm3196_vm9, %v3197_v12, %v3195_v42 }
 0x2ed   :  { %5034 = vrcp.f32 %v3199_v3  ;;  %v3295_v13 = vmul.f32 %v9064_v4, %v9064_v4  ;;  %v3299_v33 = vmul.f32 %v9072_v11, %v9072_v11  ;;  %v3312_v25 = vadd.f32 %v3311_v38, %v3310_v17 }
 0x2ee   :  { %v3145_v37 = vrot.slane %v3144_v8, 2  ;;  %5036 = vrcp.f32 %v3200_v32  ;;  %v3319_v31 = vadd.f32 %v3318_v29, %v3317_v45  ;;  %v3325_v30 = vrot.slane %v3324_v5, 2  ;;  %v11509_v29 = vld [vmem:[#allocation72_spill] sm:$0xff] }
 0x2ef   :  { %v2955_v60 = vmul.f32 0.7, %v9019_v54  ;;  %v3156_v36 = vrot.slane %v3155_v22, 2  ;;  %v3202_v47 = vadd.f32 1e-08, %v3198_v15  ;;  %5038 = vrcp.f32 %v3201_v26 }
 0x2f0   :  { %vm2939_vm11 = vcmp.eq.f32.partialorder %v8899_v57, 0.0  ;;  %v2958_v39 = vadd.f32 %v2954_v7, %v8901_v62  ;;  %v3135_v59 = vadd.f32 %v3134_v56, %v3133_v16  ;;  %v3167_v24 = vrot.slane %v3166_v9, 2 }
 0x2f1   :  { %v2940_v12 = vand.u32 2147483648, %v8899_v57  ;;  %v3303_v52 = vmul.f32 %v5383_v55, %v3295_v13  ;;  %v3307_v17 = vmul.f32 %v5394_v63, %v3299_v33  ;;  %v3313_v2 = vrot.slane %v3312_v25, 1  ;;  %v11514_v33 = vld [vmem:[#allocation23_spill] sm:$0xff] }
 0x2f2   :  { %v2938_v54 = vsel %vm2937_vm8, %v8899_v57, %v2936_v35  ;;  %v3146_v45 = vadd.f32 %v3145_v37, %v3144_v8  ;;  %v3320_v42 = vrot.slane %v3319_v31, 1  ;;  %v3326_v3 = vadd.f32 %v3325_v30, %v3324_v5  ;;  %v11510_v8 = vld [vmem:[#allocation63_spill] sm:$0xff] }
 0x2f3   :  { %v2956_v38 = vmul.f32 0.7, %v2948_v49  ;;  %v9095_v32 = vadd.f32 %v2955_v60, %v8903_v21  ;;  %v3157_v62 = vadd.f32 %v3156_v36, %v3155_v22  ;;  %5040 = vrcp.f32 %v3202_v47  ;;  %v11516_v60 = vld [vmem:[#allocation2_spill] sm:$0xff]  ;;  %v11517_v47 = vld [vmem:[#allocation35_spill] sm:$0xff] }
 0x2f4   :  { %v9102_v16 = vsel %vm2435_vm10, %v8875_v20, %v11506_v44  ;;  %vm2962_vm12 = vcmp.gt.f32.partialorder %v2958_v39, %v11509_v29  ;;  %v3136_v10 = vrot.slane %v3135_v59, 1  ;;  %v3168_v7 = vadd.f32 %v3167_v24, %v3166_v9  ;;  %v11518_v24 = vld [vmem:[#allocation70_spill] sm:$0xff] }
 0x2f5   :  { %11508 = vst [vmem:[#allocation67_spill] sm:$0xff] %v9102_v16  ;;  %v9109_v5 = vsel %vm2435_vm10, 3, %v11510_v8  ;;  %v2941_v21 = vsel %vm2939_vm11, %v2940_v12, %v2938_v54  ;;  %v9113_v49 = vadd.f32 %v3313_v2, %v3312_v25  ;;  %v3329_v22 = vadd.f32 %v3307_v17, %v3303_v52  ;;  %v11521_v8 = vld [vmem:[#allocation41_spill] sm:$0xff] }
 0x2f6   :  { %11511 = vst [vmem:[#allocation66_spill] sm:$0xff] %v9109_v5  ;;  %v9116_v26 = vmul.f32 0.3, %v8897_v0  ;;  %v3147_v35 = vrot.slane %v3146_v45, 1  ;;  %v9118_v56 = vadd.f32 %v3320_v42, %v3319_v31  ;;  %v3327_v15 = vrot.slane %v3326_v3, 1 }
 0x2f7   :  { %v5035_v9 = vpop.eup %5034  ;;  %v9121_v13 = vadd.f32 %v2956_v38, %v8908_v6  ;;  %vm2963_vm13 = vcmp.gt.f32.partialorder %v9095_v32, %v8858_v14  ;;  %v9128_v20 = vsel %vm2962_vm12, %v2958_v39, %v11509_v29  ;;  %v3158_v57 = vrot.slane %v3157_v62, 1  ;;  %v11519_v39 = vld [vmem:[#allocation69_spill] sm:$0xff] }
 0x2f8   :  { %11513 = vst [vmem:[#allocation60_spill] sm:$0xff] %v9128_v20  ;;  %v5037_v44 = vpop.eup %5036  ;;  %v2945_v0 = vsub.f32 2.0, %v2941_v21  ;;  %v9133_v25 = vsel %vm2962_vm12, 4, %v11514_v33  ;;  %v3137_v37 = vadd.f32 %v3136_v10, %v3135_v59  ;;  %v3169_v31 = vrot.slane %v3168_v7, 1  ;;  %v11522_v21 = vld [vmem:[#allocation64_spill] sm:$0xff]  ;;  %v11524_v33 = vld [vmem:[#allocation59_spill] sm:$0xff] }
 0x2f9   :  { %11512 = vst [vmem:[#allocation71_spill] sm:$0xff] %v9121_v13  ;;  %11515 = vst [vmem:[#allocation75_spill] sm:$0xff] %v9133_v25  ;;  %v5039_v6 = vpop.eup %5038  ;;  %v3330_v30 = vrot.slane %v3329_v22, 4  ;;  %v3336_v36 = vmul.f32 %v8952_v34, %v11516_v60  ;;  %v3340_v12 = vmul.f32 %v11518_v24, %v11517_v47  ;;  %5042 = vrsqrt.f32 %v9113_v49  ;;  %v11525_v47 = vld [vmem:[#allocation28_spill] sm:$0xff] }
 0x2fa   :  { %v3148_v52 = vadd.f32 %v3147_v35, %v3146_v45  ;;  %v3211_v17 = vmul.f32 %v5035_v9, %v5035_v9  ;;  %v9140_v2 = vadd.f32 %v3327_v15, %v3326_v3  ;;  %5044 = vrsqrt.f32 %v9118_v56  ;;  %v11523_v15 = vld [vmem:[#allocation42_spill] sm:$0xff] }
 0x2fb   :  { %vm2964_vm14 = vcmp.gt.f32.partialorder %v9121_v13, %v11519_v39  ;;  %v9150_v34 = vsel %vm2963_vm13, %v9095_v32, %v8858_v14  ;;  %v3159_v59 = vadd.f32 %v3158_v57, %v3157_v62  ;;  %v3212_v54 = vmul.f32 %v5037_v44, %v5037_v44  ;;  %v11526_v57 = vld [vmem:[#allocation29_spill] sm:$0xff] }
 0x2fc   :  { %11520 = vst [vmem:[#allocation5_spill] sm:$0xff] %v9150_v34  ;;  %v2949_v42 = vmul.f32 0.5, %v2945_v0  ;;  %v3170_v38 = vadd.f32 %v3169_v31, %v3168_v7  ;;  %v3213_v45 = vmul.f32 %v5039_v6, %v5039_v6  ;;  %v3223_v29 = vmul.f32 2.0, %v3137_v37 }
 0x2fd   :  { %v5041_v3 = vpop.eup %5040  ;;  %v3331_v10 = vadd.f32 %v3330_v30, %v3329_v22  ;;  %v3337_v35 = vmul.f32 %v11522_v21, %v11521_v8  ;;  %v3341_v24 = vmul.f32 %v11524_v33, %v11523_v15  ;;  %v3344_v25 = vadd.f32 %v3340_v12, %v3336_v36  ;;  %v11527_v22 = vld [vmem:[#allocation21_spill] sm:$0xff]  ;;  %v11528_v21 = vld [vmem:[#allocation32_spill] sm:$0xff] }
 0x2fe   :  { %v3215_v20 = vmul.f32 %v3211_v17, %v8928_v18  ;;  %v3224_v5 = vmul.f32 2.0, %v3148_v52  ;;  %v3227_v34 = vmul.f32 %v5035_v9, %v11525_v47  ;;  %5046 = vrsqrt.f32 %v9140_v2  ;;  %v11529_v12 = vld [vmem:[#allocation33_spill] sm:$0xff] }
 0x2ff   :  { %v3216_v62 = vmul.f32 %v3212_v54, %v8938_v19  ;;  %v3225_v7 = vmul.f32 2.0, %v3159_v59  ;;  %v3228_v0 = vmul.f32 %v5037_v44, %v11526_v57  ;;  %v3338_v37 = vmul.f32 %v8988_v46, %v11527_v22  ;;  %v11531_v46 = vld [vmem:[#allocation6_spill] sm:$0xff]  ;;  %v11533_v44 = vld [vmem:[#allocation36_spill] sm:$0xff]  ;;  %v11534_v54 = vld [vmem:[#allocation37_spill] sm:$0xff] }
 0x300   :  { %v3214_v31 = vmul.f32 %v5041_v3, %v5041_v3  ;;  %v3217_v30 = vmul.f32 %v3213_v45, %v8946_v53  ;;  %v3229_v36 = vmul.f32 %v5039_v6, %v11528_v21  ;;  %v3342_v18 = vmul.f32 %v8991_v43, %v11529_v12 }
 0x301   :  { %v2957_v52 = vmul.f32 0.7, %v2949_v42  ;;  %v3332_v9 = vrot.slane %v3331_v10, 2  ;;  %v3345_v17 = vrot.slane %v3344_v25, 4  ;;  %v3351_v33 = vadd.f32 %v3341_v24, %v3337_v35  ;;  %v11535_v35 = vld [vmem:[#allocation34_spill] sm:$0xff] }
 0x302   :  { %v9172_v19 = vsel %vm2964_vm14, %v9121_v13, %v11519_v39  ;;  %v9178_v53 = vsel %vm2963_vm13, 4, %v11531_v46  ;;  %v3219_v6 = vadd.f32 %v3215_v20, %v11533_v44  ;;  %v3231_v43 = vmul.f32 %v3227_v34, %v3223_v29  ;;  %v11538_v46 = vld [vmem:[#allocation16_spill] sm:$0xff] }
 0x303   :  { %11530 = vst [vmem:[#allocation76_spill] sm:$0xff] %v9172_v19  ;;  %11532 = vst [vmem:[#allocation65_spill] sm:$0xff] %v9178_v53  ;;  %v5043_v59 = vpop.eup %5042  ;;  %v3220_v42 = vadd.f32 %v3216_v62, %v11534_v54  ;;  %v3226_v45 = vmul.f32 2.0, %v3170_v38  ;;  %v3230_v24 = vmul.f32 %v5041_v3, %v11535_v35  ;;  %v3232_v12 = vmul.f32 %v3228_v0, %v3224_v5  ;;  %v11536_v19 = vld [vmem:[#allocation38_spill] sm:$0xff]  ;;  %v11539_v62 = vld [vmem:[#allocation20_spill] sm:$0xff] }
 0x304   :  { %v5045_v15 = vpop.eup %5044  ;;  %v3218_v39 = vmul.f32 %v3214_v31, %v8978_v41  ;;  %v3221_v13 = vadd.f32 %v3217_v30, %v11536_v19  ;;  %v3233_v22 = vmul.f32 %v3229_v36, %v3225_v7  ;;  %v3358_v8 = vadd.f32 %v3342_v18, %v3338_v37 }
 0x305   :  { %v9186_v14 = vadd.f32 %v2957_v52, %v9116_v26  ;;  %v3333_v32 = vadd.f32 %v3332_v9, %v3331_v10  ;;  %v3346_v20 = vadd.f32 %v3345_v17, %v3344_v25  ;;  %v3352_v34 = vrot.slane %v3351_v33, 4  ;;  %v11540_v10 = vld [vmem:[#allocation39_spill] sm:$0xff] }
 0x306   :  { %v3235_v29 = vsub.f32 %v3219_v6, %v3231_v43  ;;  %v3339_v38 = vmul.f32 %v9064_v4, %v11538_v46  ;;  %v3343_v5 = vmul.f32 %v9072_v11, %v11539_v62  ;;  %v3373_v3 = vmul.f32 %v5043_v59, %v9113_v49  ;;  %v4721_v6 = vld [vmem:[%s10574_s1 + $0x250] sm:$0xff] }
 0x307   :  { %11537 = vst [vmem:[#allocation77_spill] sm:$0xff] %v9186_v14  ;;  %v9193_v41 = vmul.f32 %v3230_v24, %v3226_v45  ;;  %v3236_v0 = vsub.f32 %v3220_v42, %v3232_v12  ;;  %vm3374_vm15 = vcmp.eq.f32.partialorder %v9113_v49, inf  ;;  %v3380_v26 = vmul.f32 %v5045_v15, %v9118_v56  ;;  %v4728_v14 = vld [vmem:[%s10574_s1 + $0x288] sm:$0xff] }
 0x308   :  { %v5047_v7 = vpop.eup %5046  ;;  %v9198_v25 = vadd.f32 %v3218_v39, %v11540_v10  ;;  %v3237_v37 = vsub.f32 %v3221_v13, %v3233_v22  ;;  %v3359_v31 = vrot.slane %v3358_v8, 4  ;;  %vm3381_vm0 = vcmp.eq.f32.partialorder %v9118_v56, inf  ;;  %v4726_v22 = vld [vmem:[%s10574_s1 + $0x278] sm:$0xff] }
 0x309   :  { %v3334_v4 = vrot.slane %v3333_v32, 1  ;;  %v3347_v30 = vrot.slane %v3346_v20, 2  ;;  %v3353_v11 = vadd.f32 %v3352_v34, %v3351_v33  ;;  %v3377_v36 = vand.u32 2147483648, %v9113_v49  ;;  %v4719_v33 = vld [vmem:[%s10574_s1 + $0x240] sm:$0xff] }
 0x30a   :  { %v9202_v18 = vmax.f32 %v3235_v29, 0.0  ;;  %v3375_v12 = vsel %vm3374_vm15, %v9113_v49, %v3373_v3  ;;  %vm3376_vm1 = vcmp.eq.f32.partialorder %v9113_v49, 0.0  ;;  %v3384_v15 = vand.u32 2147483648, %v9118_v56 }
 0x30b   :  { %v9207_v52 = vmax.f32 %v3236_v0, 0.0  ;;  %v3382_v13 = vsel %vm3381_vm0, %v9118_v56, %v3380_v26  ;;  %vm3383_vm2 = vcmp.eq.f32.partialorder %v9118_v56, 0.0  ;;  %v3387_v39 = vmul.f32 %v5047_v7, %v9140_v2  ;;  %v4720_v26 = vld [vmem:[%s10574_s1 + $0x248] sm:$0xff]  ;;  %v4722_v7 = vld [vmem:[%s10574_s1 + $0x258] sm:$0xff] }
 0x30c   :  { %v9214_v9 = vadd.f32 %v3359_v31, %v3358_v8  ;;  %v9216_v17 = vadd.f32 %v3343_v5, %v3339_v38  ;;  %vm3388_vm3 = vcmp.eq.f32.partialorder %v9140_v2, inf  ;;  %v9225_v43 = vadd.f32 %v3334_v4, %v3333_v32  ;;  %v4723_v32 = vld [vmem:[%s10574_s1 + $0x260] sm:$0xff] }
 0x30d   :  { %v9227_v59 = vadd.f32 %v3347_v30, %v3346_v20  ;;  %v3354_v42 = vrot.slane %v3353_v11, 2  ;;  %v3378_v45 = vsel %vm3376_vm1, %v3377_v36, %v3375_v12  ;;  %v9229_v8 = vmax.f32 %v3237_v37, 0.0  ;;  %v4725_v30 = vld [vmem:[%s10574_s1 + $0x270] sm:$0xff]  ;;  %v4724_v12 = vld [vmem:[%s10574_s1 + $0x268] sm:$0xff] }
 0x30e   :  { %5048 = vrsqrt.f32 %v9202_v18  ;;  %v3385_v24 = vsel %vm3383_vm2, %v3384_v15, %v3382_v13  ;;  %v3391_v34 = vand.u32 2147483648, %v9140_v2  ;;  %v3389_v29 = vsel %vm3388_vm3, %v9140_v2, %v3387_v39 }
 0x30f   :  { %vm3390_vm4 = vcmp.eq.f32.partialorder %v9140_v2, 0.0  ;;  %v9238_v38 = vunpack.c.l.bf16 %v4719_v33  ;;  %v9240_v20 = vunpack.c.l.bf16 %v4721_v6  ;;  %5050 = vrsqrt.f32 %v9207_v52 }
 0x310   :  { %v3400_v0 = vadd.f32 1e-08, %v3378_v45  ;;  %v9252_v31 = vadd.f32 %v3354_v42, %v3353_v11  ;;  %5052 = vrsqrt.f32 %v9225_v43  ;;  %v3401_v4 = vadd.f32 1e-08, %v3385_v24  ;;  %v4727_v11 = vld [vmem:[%s10574_s1 + $0x280] sm:$0xff] }
 0x311   :  { %v9258_v36 = vsel %vm3390_vm4, %v3391_v34, %v3389_v29  ;;  %v9263_v15 = vunpack.c.h.bf16 %v4719_v33  ;;  %v9265_v13 = vunpack.c.h.bf16 %v4721_v6  ;;  %v9267_v39 = vunpack.c.l.bf16 %v4723_v32 }
 0x312   :  { %v9272_v42 = vunpack.c.l.bf16 %v4720_v26  ;;  %v9274_v45 = vunpack.c.l.bf16 %v4722_v7  ;;  %v3541_v24 = vmul.f32 %v9238_v38, %v9238_v38  ;;  %v3545_v34 = vmul.f32 %v9240_v20, %v9240_v20 }
 0x313   :  { %5054 = vrcp.f32 %v3400_v0  ;;  %v9280_v33 = vunpack.c.h.bf16 %v4720_v26  ;;  %v9282_v6 = vunpack.c.h.bf16 %v4722_v7  ;;  %v9284_v29 = vunpack.c.l.bf16 %v4725_v30  ;;  %v4729_v0 = vld [vmem:[%s10574_s1 + $0x290] sm:$0xff] }
 0x314   :  { %11541 = vst [vmem:[#allocation57_spill] sm:$0xff] %v9274_v45  ;;  %5056 = vrcp.f32 %v3401_v4  ;;  %v9286_v5 = vunpack.c.h.bf16 %v4723_v32  ;;  %v9288_v37 = vunpack.c.l.bf16 %v4724_v12  ;;  %v9290_v3 = vunpack.c.h.bf16 %v4724_v12 }
 0x315   :  { %11542 = vst [vmem:[#allocation62_spill] sm:$0xff] %v9282_v6  ;;  %11543 = vst [vmem:[#allocation74_spill] sm:$0xff] %v9284_v29  ;;  %v9298_v26 = vunpack.c.l.bf16 %v4727_v11  ;;  %v3542_v7 = vmul.f32 %v9263_v15, %v9263_v15  ;;  %v3546_v32 = vmul.f32 %v9265_v13, %v9265_v13  ;;  %v3549_v4 = vmul.f32 %v9267_v39, %v9267_v39 }
 0x316   :  { %11544 = vst [vmem:[#allocation73_spill] sm:$0xff] %v9286_v5  ;;  %11545 = vst [vmem:[#allocation56_spill] sm:$0xff] %v9288_v37  ;;  %v3543_v12 = vmul.f32 %v9272_v42, %v9272_v42  ;;  %v3547_v53 = vmul.f32 %v9274_v45, %v9274_v45  ;;  %v3565_v62 = vmul.f32 %v11176_v23, %v3541_v24  ;;  %v9314_v19 = vunpack.c.h.bf16 %v4725_v30 }
 0x317   :  { %11546 = vst [vmem:[#allocation78_spill] sm:$0xff] %v9290_v3  ;;  %11547 = vst [vmem:[#allocation61_spill] sm:$0xff] %v9298_v26  ;;  %v3569_v46 = vmul.f32 %v11008_v48, %v3545_v34  ;;  %v3544_v54 = vmul.f32 %v9280_v33, %v9280_v33  ;;  %v3548_v35 = vmul.f32 %v9282_v6, %v9282_v6  ;;  %v9322_v60 = vunpack.c.l.bf16 %v4726_v22 }
 0x318   :  { %v9312_v10 = vpop.eup %5048  ;;  %11548 = vst [vmem:[#allocation68_spill] sm:$0xff] %v9314_v19  ;;  %v3553_v21 = vmul.f32 %v9284_v29, %v9284_v29  ;;  %v9324_v57 = vunpack.c.h.bf16 %v4726_v22  ;;  %v9326_v24 = vunpack.c.l.bf16 %v4729_v0  ;;  %v3550_v34 = vmul.f32 %v9286_v5, %v9286_v5 }
 0x319   :  { %11549 = vst [vmem:[#allocation25_spill] sm:$0xff] %v9322_v60  ;;  %v9330_v30 = vpop.eup %5050  ;;  %v3557_v16 = vmul.f32 %v9298_v26, %v9298_v26  ;;  %v3566_v44 = vmul.f32 %v5379_v50, %v3542_v7  ;;  %v3570_v47 = vmul.f32 %v11446_v1, %v3546_v32  ;;  %v3573_v22 = vmul.f32 %v11176_v23, %v3549_v4 }
 0x31a   :  { %11550 = vst [vmem:[#allocation72_spill] sm:$0xff] %v9324_v57  ;;  %11551 = vst [vmem:[#allocation63_spill] sm:$0xff] %v9326_v24  ;;  %v5053_v58 = vpop.eup %5052  ;;  %vm3395_vm5 = vcmp.eq.f32.partialorder %v9225_v43, inf  ;;  %v3551_v28 = vmul.f32 %v9288_v37, %v9288_v37  ;;  %v3567_v27 = vmul.f32 %v5381_v51, %v3543_v12  ;;  %v3571_v40 = vmul.f32 %v5389_v61, %v3547_v53 }
 0x31b   :  { %v3589_v5 = vadd.f32 %v3569_v46, %v3565_v62  ;;  %v3552_v26 = vmul.f32 %v9290_v3, %v9290_v3  ;;  %v3568_v7 = vmul.f32 %v5383_v55, %v3544_v54  ;;  %v3572_v32 = vmul.f32 %v5394_v63, %v3548_v35 }
 0x31c   :  { %v3577_v4 = vmul.f32 %v11008_v48, %v3553_v21  ;;  %v9350_v29 = vunpack.c.h.bf16 %v4727_v11  ;;  %v9352_v6 = vunpack.c.l.bf16 %v4728_v14  ;;  %v3554_v37 = vmul.f32 %v9314_v19, %v9314_v19 }
 0x31d   :  { %v3561_v53 = vmul.f32 %v9326_v24, %v9326_v24  ;;  %v9358_v46 = vpop.eup %5054  ;;  %v3574_v62 = vmul.f32 %v5379_v50, %v3550_v34  ;;  %v3581_v54 = vmul.f32 %v11176_v23, %v3557_v16  ;;  %v3590_v12 = vadd.f32 %v3589_v5, %v3573_v22  ;;  %v4730_v24 = vld [vmem:[%s10574_s1 + $0x298] sm:$0xff] }
 0x31e   :  { %v3600_v35 = vadd.f32 %v3570_v47, %v3566_v44  ;;  %v9362_v3 = vpop.eup %5056  ;;  %v9364_v21 = vunpack.c.h.bf16 %v4728_v14  ;;  %v3555_v11 = vmul.f32 %v9322_v60, %v9322_v60  ;;  %v3575_v19 = vmul.f32 %v5381_v51, %v3551_v28 }
 0x31f   :  { %v3611_v45 = vadd.f32 %v3571_v40, %v3567_v27  ;;  %v3556_v34 = vmul.f32 %v9324_v57, %v9324_v57  ;;  %v3576_v16 = vmul.f32 %v5383_v55, %v3552_v26  ;;  %v3591_v47 = vadd.f32 %v3590_v12, %v3577_v4 }
 0x320   :  { %v3622_v44 = vadd.f32 %v3572_v32, %v3568_v7  ;;  %v3394_v14 = vmul.f32 %v5053_v58, %v9225_v43  ;;  %v3402_v5 = vadd.f32 1e-08, %v9258_v36  ;;  %v9377_v22 = vunpack.c.h.bf16 %v4729_v0 }
 0x321   :  { %v3585_v28 = vmul.f32 %v11008_v48, %v3561_v53  ;;  %v3558_v27 = vmul.f32 %v9350_v29, %v9350_v29  ;;  %v3578_v40 = vmul.f32 %v11446_v1, %v3554_v37  ;;  %v3592_v23 = vadd.f32 %v3591_v47, %v3581_v54 }
 0x322   :  { %v3601_v60 = vadd.f32 %v3600_v35, %v3574_v62  ;;  %v9383_v57 = vunpack.c.l.bf16 %v4730_v24  ;;  %v3559_v26 = vmul.f32 %v9352_v6, %v9352_v6  ;;  %v3579_v58 = vmul.f32 %v5389_v61, %v3555_v11 }
 0x323   :  { %v3612_v7 = vadd.f32 %v3611_v45, %v3575_v19  ;;  %v9388_v36 = vunpack.c.h.bf16 %v4730_v24  ;;  %v3560_v0 = vmul.f32 %v9364_v21, %v9364_v21  ;;  %v3580_v32 = vmul.f32 %v5394_v63, %v3556_v34 }
 0x324   :  { %v3623_v4 = vadd.f32 %v3622_v44, %v3576_v16  ;;  %vm3397_vm6 = vcmp.eq.f32.partialorder %v9225_v43, 0.0  ;;  %v3398_v37 = vand.u32 2147483648, %v9225_v43  ;;  %5058 = vrcp.f32 %v3402_v5 }
 0x325   :  { %v3593_v53 = vadd.f32 %v3592_v23, %v3585_v28  ;;  %v3396_v62 = vsel %vm3395_vm5, %v9225_v43, %v3394_v14  ;;  %v3562_v19 = vmul.f32 %v9377_v22, %v9377_v22  ;;  %v3582_v45 = vmul.f32 %v5379_v50, %v3558_v27 }
 0x326   :  { %v3602_v24 = vadd.f32 %v3601_v60, %v3578_v40  ;;  %v3356_v54 = vrot.slane %v9252_v31, 1  ;;  %v3563_v12 = vmul.f32 %v9383_v57, %v9383_v57  ;;  %v3583_v35 = vmul.f32 %v5381_v51, %v3559_v26 }
 0x327   :  { %v3613_v11 = vadd.f32 %v3612_v7, %v3579_v58  ;;  %5060 = vrsqrt.f32 %v9229_v8  ;;  %v3564_v23 = vmul.f32 %v9388_v36, %v9388_v36  ;;  %v3584_v34 = vmul.f32 %v5383_v55, %v3560_v0 }
 0x328   :  { %v3624_v16 = vadd.f32 %v3623_v4, %v3580_v32  ;;  %v11552_v47 = vsub.f32 %v9198_v25, %v9193_v41  ;;  %v11553_v44 = vrot.slane %v9216_v17, 4  ;;  %v3399_v5 = vsel %vm3397_vm6, %v3398_v37, %v3396_v62 }
 0x329   :  { %v3594_v28 = vrot.slane %v3593_v53, 4  ;;  %v11554_v27 = vrot.slane %v9227_v59, 1  ;;  %v11555_v26 = vrot.slane %v9214_v9, 2  ;;  %v3586_v41 = vmul.f32 %v11446_v1, %v3562_v19 }
 0x32a   :  { %v9412_v60 = vmax.f32 %v11552_v47, 0.0  ;;  %v3367_v14 = vadd.f32 %v11553_v44, %v9216_v17  ;;  %v3603_v25 = vadd.f32 %v3602_v24, %v3582_v45  ;;  %v3357_v7 = vadd.f32 %v3356_v54, %v9252_v31  ;;  %v11556_v47 = vld [vmem:[#allocation40_spill] sm:$0xff]  ;;  %v11557_v44 = vld [vmem:[#allocation15_spill] sm:$0xff] }
 0x32b   :  { %v3350_v40 = vadd.f32 %v11554_v27, %v9227_v59  ;;  %v3362_v58 = vadd.f32 %v11555_v26, %v9214_v9  ;;  %v3412_v17 = vmul.f32 %v9358_v46, %v9358_v46  ;;  %v3587_v0 = vmul.f32 %v5389_v61, %v3563_v12 }
 0x32c   :  { %v3614_v32 = vadd.f32 %v3613_v11, %v3583_v35  ;;  %vm3245_vm7 = vcmp.eq.f32.partialorder %v9202_v18, inf  ;;  %v3403_v4 = vadd.f32 1e-08, %v3399_v5  ;;  %v3413_v59 = vmul.f32 %v9362_v3, %v9362_v3 }
 0x32d   :  { %v3588_v37 = vmul.f32 %v5394_v63, %v3564_v23  ;;  %v3625_v9 = vadd.f32 %v3624_v16, %v3584_v34  ;;  %v3248_v62 = vand.u32 2147483648, %v9202_v18  ;;  %vm3252_vm8 = vcmp.eq.f32.partialorder %v9207_v52, inf }
 0x32e   :  { %5062 = vrsqrt.f32 %v9412_v60  ;;  %v3595_v31 = vadd.f32 %v3594_v28, %v3593_v53  ;;  %v3363_v19 = vrot.slane %v3362_v58, 1  ;;  %v3368_v45 = vrot.slane %v3367_v14, 2  ;;  %v5059_v12 = vpop.eup %5058 }
 0x32f   :  { %v3424_v24 = vmul.f32 2.0, %v3350_v40  ;;  %v3604_v54 = vadd.f32 %v3603_v25, %v3586_v41  ;;  %vm3247_vm9 = vcmp.eq.f32.partialorder %v9202_v18, 0.0  ;;  %v3416_v35 = vmul.f32 %v3412_v17, %v9113_v49  ;;  %v11558_v25 = vld [vmem:[#allocation22_spill] sm:$0xff] }
 0x330   :  { %v3425_v11 = vmul.f32 2.0, %v3357_v7  ;;  %v3428_v23 = vmul.f32 %v9358_v46, %v11556_v47  ;;  %v3615_v34 = vadd.f32 %v3614_v32, %v3587_v0  ;;  %5064 = vrcp.f32 %v3403_v4  ;;  %v11559_v32 = vld [vmem:[#allocation24_spill] sm:$0xff] }
 0x331   :  { %v3417_v16 = vmul.f32 %v3413_v59, %v9118_v56  ;;  %v3429_v53 = vmul.f32 %v9362_v3, %v11557_v44  ;;  %v3626_v5 = vadd.f32 %v3625_v9, %v3588_v37  ;;  %vm3254_vm10 = vcmp.eq.f32.partialorder %v9207_v52, 0.0  ;;  %v5061_v49 = vpop.eup %5060 }
 0x332   :  { %v3255_v28 = vand.u32 2147483648, %v9207_v52  ;;  %vm3259_vm11 = vcmp.eq.f32.partialorder %v9229_v8, inf  ;;  %v3596_v27 = vrot.slane %v3595_v31, 2  ;;  %v3244_v40 = vmul.f32 %v9312_v10, %v9202_v18 }
 0x333   :  { %v3364_v46 = vadd.f32 %v3363_v19, %v3362_v58  ;;  %v3414_v26 = vmul.f32 %v5059_v12, %v5059_v12  ;;  %v3605_v41 = vrot.slane %v3604_v54, 4  ;;  %v3251_v56 = vmul.f32 %v9330_v30, %v9207_v52  ;;  %v11560_v30 = vld [vmem:[#allocation17_spill] sm:$0xff] }
 0x334   :  { %v3420_v3 = vadd.f32 %v3416_v35, %v11558_v25  ;;  %v3432_v7 = vmul.f32 %v3428_v23, %v3424_v24  ;;  %v3616_v17 = vrot.slane %v3615_v34, 4  ;;  %v3369_v0 = vadd.f32 %v3368_v45, %v3367_v14  ;;  %v11580_v25 = vld [vmem:[#allocation56_spill] sm:$0xff] }
 0x335   :  { %v3421_v4 = vadd.f32 %v3417_v16, %v11559_v32  ;;  %v3433_v59 = vmul.f32 %v3429_v53, %v3425_v11  ;;  %v3627_v37 = vrot.slane %v3626_v5, 4  ;;  %v3258_v9 = vmul.f32 %v5061_v49, %v9229_v8  ;;  %v11561_v49 = vld [vmem:[#allocation26_spill] sm:$0xff]  ;;  %v11578_v32 = vld [vmem:[#allocation73_spill] sm:$0xff] }
 0x336   :  { %vm3261_vm12 = vcmp.eq.f32.partialorder %v9229_v8, 0.0  ;;  %v3262_v10 = vand.u32 2147483648, %v9229_v8  ;;  %v3597_v58 = vadd.f32 %v3596_v27, %v3595_v31  ;;  %v3418_v19 = vmul.f32 %v3414_v26, %v9140_v2 }
 0x337   :  { %v3426_v44 = vmul.f32 2.0, %v3364_v46  ;;  %v3430_v47 = vmul.f32 %v5059_v12, %v11560_v30  ;;  %v3606_v35 = vadd.f32 %v3605_v41, %v3604_v54  ;;  %v3246_v14 = vsel %vm3245_vm7, %v9202_v18, %v3244_v40 }
 0x338   :  { %v5063_v24 = vpop.eup %5062  ;;  %vm3266_vm13 = vcmp.eq.f32.partialorder %v9412_v60, inf  ;;  %v3436_v45 = vsub.f32 %v3420_v3, %v3432_v7  ;;  %v3617_v11 = vadd.f32 %v3616_v17, %v3615_v34  ;;  %v3253_v23 = vsel %vm3252_vm8, %v9207_v52, %v3251_v56  ;;  %v11563_v52 = vld [vmem:[#allocation11_spill] sm:$0xff] }
 0x339   :  { %v3370_v31 = vrot.slane %v3369_v0, 1  ;;  %v3437_v16 = vsub.f32 %v3421_v4, %v3433_v59  ;;  %v3628_v2 = vadd.f32 %v3627_v37, %v3626_v5  ;;  %v3260_v54 = vsel %vm3259_vm11, %v9229_v8, %v3258_v9 }
 0x33a   :  { %vm3268_vm15 = vcmp.eq.f32.partialorder %v9412_v60, 0.0  ;;  %v3269_v12 = vand.u32 2147483648, %v9412_v60  ;;  %v3598_v53 = vrot.slane %v3597_v58, 1  ;;  %v5065_v27 = vpop.eup %5064  ;;  %v3249_v34 = vsel %vm3247_vm9, %v3248_v62, %v3246_v14  ;;  %v11564_v14 = vld [vmem:[#allocation43_spill] sm:$0xff] }
 0x33b   :  { %v3422_v40 = vadd.f32 %v3418_v19, %v11561_v49  ;;  %v3434_v46 = vmul.f32 %v3430_v47, %v3426_v44  ;;  %v3607_v26 = vrot.slane %v3606_v35, 2  ;;  %v3256_v5 = vsel %vm3254_vm10, %v3255_v28, %v3253_v23  ;;  %v11562_v47 = vld [vmem:[#allocation7_spill] sm:$0xff]  ;;  %v11565_v23 = vld [vmem:[#allocation18_spill] sm:$0xff] }
 0x33c   :  { %v3265_v41 = vmul.f32 %v5063_v24, %v9412_v60  ;;  %v9476_v56 = vmax.f32 %v3436_v45, 0.0  ;;  %v3618_v3 = vrot.slane %v3617_v11, 2  ;;  %v3263_v7 = vsel %vm3261_vm12, %v3262_v10, %v3260_v54 }
 0x33d   :  { %v3371_v17 = vadd.f32 %v3370_v31, %v3369_v0  ;;  %v9480_v4 = vmax.f32 %v3437_v16, 0.0  ;;  %v3629_v18 = vrot.slane %v3628_v2, 2  ;;  %v3415_v62 = vmul.f32 %v5065_v27, %v5065_v27 }
 0x33e   :  { %v9482_v59 = vadd.f32 %v3598_v53, %v3597_v58  ;;  %v3633_v44 = vmul.f32 %v9238_v38, %v11562_v47  ;;  %v3637_v28 = vmul.f32 %v9240_v20, %v11563_v52  ;;  %v3271_v37 = vsub.f32 2.0, %v3249_v34  ;;  %v11566_v34 = vld [vmem:[#allocation8_spill] sm:$0xff] }
 0x33f   :  { %v3272_v9 = vsub.f32 2.0, %v3256_v5  ;;  %v3438_v19 = vsub.f32 %v3422_v40, %v3434_v46  ;;  %v3608_v24 = vadd.f32 %v3607_v26, %v3606_v35  ;;  %v3267_v8 = vsel %vm3266_vm13, %v9412_v60, %v3265_v41  ;;  %v11567_v40 = vld [vmem:[#allocation9_spill] sm:$0xff]  ;;  %v11568_v46 = vld [vmem:[#allocation12_spill] sm:$0xff]  ;;  %v11569_v5 = vld [vmem:[#allocation10_spill] sm:$0xff] }
 0x340   :  { %v3273_v0 = vsub.f32 2.0, %v3263_v7  ;;  %5066 = vrsqrt.f32 %v9476_v56  ;;  %v3619_v10 = vadd.f32 %v3618_v3, %v3617_v11  ;;  %v3427_v58 = vmul.f32 2.0, %v3371_v17  ;;  %v11571_v41 = vld [vmem:[#allocation57_spill] sm:$0xff]  ;;  %v11572_v7 = vld [vmem:[#allocation14_spill] sm:$0xff] }
 0x341   :  { %v3431_v45 = vmul.f32 %v5065_v27, %v11564_v14  ;;  %5068 = vrsqrt.f32 %v9480_v4  ;;  %v3630_v38 = vadd.f32 %v3629_v18, %v3628_v2  ;;  %v3419_v20 = vmul.f32 %v3415_v62, %v9225_v43  ;;  %v11573_v17 = vld [vmem:[#allocation62_spill] sm:$0xff]  ;;  %v11574_v62 = vld [vmem:[#allocation31_spill] sm:$0xff] }
 0x342   :  { %v3641_v31 = vmul.f32 %v9267_v39, %v11565_v23  ;;  %v3657_v35 = vadd.f32 %v3637_v28, %v3633_v44  ;;  %5070 = vrsqrt.f32 %v9482_v59  ;;  %v3270_v16 = vsel %vm3268_vm15, %v3269_v12, %v3267_v8  ;;  %v11570_v12 = vld [vmem:[#allocation13_spill] sm:$0xff] }
 0x343   :  { %v9500_v54 = vmul.f32 0.5, %v3271_v37  ;;  %v9502_v11 = vmax.f32 %v3438_v19, 0.0  ;;  %v3609_v53 = vrot.slane %v3608_v24, 1  ;;  %v3620_v27 = vrot.slane %v3619_v10, 1  ;;  %v11576_v37 = vld [vmem:[#allocation74_spill] sm:$0xff] }
 0x344   :  { %v3634_v2 = vmul.f32 %v9263_v15, %v11566_v34  ;;  %v3635_v43 = vmul.f32 %v9272_v42, %v11567_v40  ;;  %v3638_v39 = vmul.f32 %v9265_v13, %v11568_v46  ;;  %v3631_v26 = vrot.slane %v3630_v38, 1  ;;  %v11575_v15 = vld [vmem:[#allocation46_spill] sm:$0xff] }
 0x345   :  { %v3636_v60 = vmul.f32 %v9280_v33, %v11569_v5  ;;  %v3639_v3 = vmul.f32 %v11571_v41, %v11570_v12  ;;  %v3640_v18 = vmul.f32 %v11573_v17, %v11572_v7  ;;  %v3423_v44 = vadd.f32 %v3419_v20, %v11574_v62  ;;  %v11577_v41 = vld [vmem:[#allocation19_spill] sm:$0xff]  ;;  %v11579_v17 = vld [vmem:[#allocation44_spill] sm:$0xff] }
 0x346   :  { %v3435_v28 = vmul.f32 %v3431_v45, %v3427_v58  ;;  %v3645_v19 = vmul.f32 %v11576_v37, %v11575_v15  ;;  %v3658_v42 = vadd.f32 %v3657_v35, %v3641_v31  ;;  %v3274_v8 = vsub.f32 2.0, %v3270_v16  ;;  %v11581_v37 = vld [vmem:[#allocation45_spill] sm:$0xff]  ;;  %v11582_v31 = vld [vmem:[#allocation78_spill] sm:$0xff] }
 0x347   :  { %v9519_v14 = vmul.f32 0.5, %v3272_v9  ;;  %v9521_v13 = vmul.f32 0.5, %v3273_v0  ;;  %v9523_v49 = vadd.f32 %v3609_v53, %v3608_v24  ;;  %v9525_v33 = vadd.f32 %v3620_v27, %v3619_v10  ;;  %v11583_v24 = vld [vmem:[#allocation50_spill] sm:$0xff]  ;;  %v11584_v10 = vld [vmem:[#allocation61_spill] sm:$0xff] }
 0x348   :  { %v3642_v30 = vmul.f32 %v11578_v32, %v11577_v41  ;;  %v3643_v20 = vmul.f32 %v11580_v25, %v11579_v17  ;;  %v3668_v58 = vadd.f32 %v3638_v39, %v3634_v2  ;;  %v9531_v45 = vadd.f32 %v3631_v26, %v3630_v38  ;;  %v11586_v39 = vld [vmem:[#allocation68_spill] sm:$0xff] }
 0x349   :  { %v3644_v35 = vmul.f32 %v11582_v31, %v11581_v37  ;;  %v3679_v9 = vadd.f32 %v3639_v3, %v3635_v43  ;;  %v3690_v16 = vadd.f32 %v3640_v18, %v3636_v60  ;;  %v3439_v62 = vsub.f32 %v3423_v44, %v3435_v28  ;;  %v11585_v43 = vld [vmem:[#allocation47_spill] sm:$0xff]  ;;  %v11587_v60 = vld [vmem:[#allocation48_spill] sm:$0xff]  ;;  %v11588_v3 = vld [vmem:[#allocation25_spill] sm:$0xff] }
 0x34a   :  { %v5067_v0 = vpop.eup %5066  ;;  %5072 = vrsqrt.f32 %v9502_v11  ;;  %v3649_v53 = vmul.f32 %v11584_v10, %v11583_v24  ;;  %v3659_v27 = vadd.f32 %v3658_v42, %v3645_v19  ;;  %v9538_v15 = vmul.f32 0.5, %v3274_v8  ;;  %v11589_v28 = vld [vmem:[#allocation49_spill] sm:$0xff]  ;;  %v11590_v19 = vld [vmem:[#allocation72_spill] sm:$0xff]  ;;  %v4731_v10 = vld [vmem:[%s10575_s4 + $0xc0] sm:$0xff] }
 0x34b   :  { %v5069_v32 = vpop.eup %5068  ;;  %5074 = vrsqrt.f32 %v9523_v49  ;;  %v3646_v26 = vmul.f32 %v11586_v39, %v11585_v43  ;;  %v3647_v18 = vmul.f32 %v11588_v3, %v11587_v60  ;;  %v3669_v44 = vadd.f32 %v3668_v58, %v3642_v30  ;;  %v4733_v39 = vld [vmem:[%s10575_s4 + $0xd0] sm:$0xff]  ;;  %v11591_v58 = vld [vmem:[#allocation54_spill] sm:$0xff]  ;;  %v11592_v3 = vld [vmem:[#allocation63_spill] sm:$0xff] }
 0x34c   :  { %v5071_v2 = vpop.eup %5070  ;;  %5076 = vrsqrt.f32 %v9525_v33  ;;  %v3648_v42 = vmul.f32 %v11590_v19, %v11589_v28  ;;  %v3680_v8 = vadd.f32 %v3679_v9, %v3643_v20  ;;  %v3691_v31 = vadd.f32 %v3690_v16, %v3644_v35  ;;  %v11593_v9 = vld [vmem:[#allocation51_spill] sm:$0xff]  ;;  %v11594_v25 = vld [vmem:[#allocation52_spill] sm:$0xff] }
 0x34d   :  { %5078 = vrsqrt.f32 %v9531_v45  ;;  %v9557_v38 = vmax.f32 %v3439_v62, 0.0  ;;  %v9560_v30 = vmul.f32 %v5067_v0, %v9476_v56  ;;  %v3653_v19 = vmul.f32 %v11592_v3, %v11591_v58  ;;  %v11595_v3 = vld [vmem:[#allocation53_spill] sm:$0xff] }
 0x34e   :  { %v3660_v20 = vadd.f32 %v3659_v27, %v3649_v53  ;;  %v9565_v35 = vmul.f32 %v5069_v32, %v9480_v4  ;;  %v3650_v16 = vmul.f32 %v9350_v29, %v11593_v9  ;;  %v3651_v24 = vmul.f32 %v9352_v6, %v11594_v25  ;;  %v11596_v27 = vld [vmem:[#allocation55_spill] sm:$0xff]  ;;  %v11598_v25 = vld [vmem:[#allocation30_spill] sm:$0xff] }
 0x34f   :  { %v3702_v28 = vmul.f32 %v5071_v2, %v9482_v59  ;;  %v3670_v62 = vadd.f32 %v3669_v44, %v3646_v26  ;;  %vm3703_vm0 = vcmp.eq.f32.partialorder %v9482_v59, inf  ;;  %v9573_v0 = vunpack.c.l.bf16 %v4731_v10  ;;  %v11597_v9 = vld [vmem:[#allocation27_spill] sm:$0xff] }
 0x350   :  { %v9575_v60 = vunpack.c.l.bf16 %v4733_v39  ;;  %v3652_v53 = vmul.f32 %v9364_v21, %v11595_v3  ;;  %v3654_v32 = vmul.f32 %v9377_v22, %v11596_v27  ;;  %v3681_v58 = vadd.f32 %v3680_v8, %v3647_v18 }
 0x351   :  { %v3692_v29 = vadd.f32 %v3691_v31, %v3648_v42  ;;  %v3655_v6 = vmul.f32 %v9383_v57, %v11597_v9  ;;  %v3656_v2 = vmul.f32 %v9388_v36, %v11598_v25  ;;  %v3661_v26 = vadd.f32 %v3660_v20, %v3653_v19  ;;  %v9598_v57 = vld [vmem:[%s10575_s4 + $0xc8] sm:$0xff]  ;;  %v9603_v36 = vld [vmem:[%s10575_s4 + $0xd8] sm:$0xff] }
 0x352   :  { %v3706_v44 = vand.u32 2147483648, %v9482_v59  ;;  %v3704_v43 = vsel %vm3703_vm0, %v9482_v59, %v3702_v28  ;;  %vm3705_vm1 = vcmp.eq.f32.partialorder %v9482_v59, 0.0  ;;  %v9588_v37 = vunpack.c.h.bf16 %v4731_v10 }
 0x353   :  { %v9590_v21 = vunpack.c.h.bf16 %v4733_v39  ;;  %v3671_v18 = vadd.f32 %v3670_v62, %v3650_v16  ;;  %vm3710_vm2 = vcmp.eq.f32.partialorder %v9523_v49, inf  ;;  %v3822_v28 = vmul.f32 %v9573_v0, %v9573_v0 }
 0x354   :  { %v9592_v22 = vpop.eup %5072  ;;  %v3826_v42 = vmul.f32 %v9575_v60, %v9575_v60  ;;  %vm3446_vm3 = vcmp.eq.f32.partialorder %v9476_v56, inf  ;;  %vm3453_vm4 = vcmp.eq.f32.partialorder %v9480_v4, inf  ;;  %v3682_v31 = vadd.f32 %v3681_v58, %v3651_v24 }
 0x355   :  { %v5075_v8 = vpop.eup %5074  ;;  %v3693_v10 = vadd.f32 %v3692_v29, %v3652_v53  ;;  %vm3712_vm5 = vcmp.eq.f32.partialorder %v9523_v49, 0.0  ;;  %v3713_v39 = vand.u32 2147483648, %v9523_v49  ;;  %v3662_v20 = vrot.slane %v3661_v26, 4 }
 0x356   :  { %v5077_v19 = vpop.eup %5076  ;;  %v3707_v16 = vsel %vm3705_vm1, %v3706_v44, %v3704_v43  ;;  %vm3717_vm6 = vcmp.eq.f32.partialorder %v9525_v33, inf  ;;  %vm3719_vm7 = vcmp.eq.f32.partialorder %v9525_v33, 0.0  ;;  %v9618_v25 = vunpack.c.l.bf16 %v9598_v57  ;;  %v11599_v44 = vld [vmem:[#allocation4_spill] sm:$0xff] }
 0x357   :  { %v5079_v62 = vpop.eup %5078  ;;  %v9621_v24 = vunpack.c.l.bf16 %v9603_v36  ;;  %v3823_v58 = vmul.f32 %v9588_v37, %v9588_v37  ;;  %v3827_v53 = vmul.f32 %v9590_v21, %v9590_v21  ;;  %v3672_v29 = vadd.f32 %v3671_v18, %v3654_v32 }
 0x358   :  { %v3709_v43 = vmul.f32 %v5075_v8, %v9523_v49  ;;  %v3830_v9 = vmul.f32 %v11599_v44, %v3822_v28  ;;  %v3834_v27 = vmul.f32 %v11008_v48, %v3826_v42  ;;  %vm3448_vm8 = vcmp.eq.f32.partialorder %v9476_v56, 0.0 }
 0x359   :  { %v3683_v3 = vadd.f32 %v3682_v31, %v3655_v6  ;;  %v3694_v17 = vadd.f32 %v3693_v10, %v3656_v2  ;;  %v3716_v41 = vmul.f32 %v5077_v19, %v9525_v33  ;;  %v3729_v23 = vadd.f32 1e-08, %v3707_v16 }
 0x35a   :  { %vm3455_vm9 = vcmp.eq.f32.partialorder %v9480_v4, 0.0  ;;  %v3663_v7 = vadd.f32 %v3662_v20, %v3661_v26  ;;  %v3720_v12 = vand.u32 2147483648, %v9525_v33  ;;  %v3723_v32 = vmul.f32 %v5079_v62, %v9531_v45 }
 0x35b   :  { %vm3724_vm10 = vcmp.eq.f32.partialorder %v9531_v45, inf  ;;  %vm3460_vm11 = vcmp.eq.f32.partialorder %v9502_v11, inf  ;;  %v3824_v18 = vmul.f32 %v9618_v25, %v9618_v25  ;;  %v3828_v6 = vmul.f32 %v9621_v24, %v9621_v24 }
 0x35c   :  { %v3831_v2 = vmul.f32 %v5379_v50, %v3823_v58  ;;  %v3835_v28 = vmul.f32 %v11446_v1, %v3827_v53  ;;  %v3673_v42 = vrot.slane %v3672_v29, 4  ;;  %v3711_v26 = vsel %vm3710_vm2, %v9523_v49, %v3709_v43 }
 0x35d   :  { %v3727_v8 = vand.u32 2147483648, %v9531_v45  ;;  %v3838_v31 = vadd.f32 %v3834_v27, %v3830_v9  ;;  %v3684_v10 = vrot.slane %v3683_v3, 4  ;;  %v3695_v19 = vrot.slane %v3694_v17, 4 }
 0x35e   :  { %v3718_v20 = vsel %vm3717_vm6, %v9525_v33, %v3716_v41  ;;  %5080 = vrcp.f32 %v3729_v23  ;;  %vm3462_vm12 = vcmp.eq.f32.partialorder %v9502_v11, 0.0  ;;  %v3664_v16 = vrot.slane %v3663_v7, 2 }
 0x35f   :  { %5082 = vrsqrt.f32 %v9557_v38  ;;  %v3725_v62 = vsel %vm3724_vm10, %v9531_v45, %v3723_v32  ;;  %vm3726_vm13 = vcmp.eq.f32.partialorder %v9531_v45, 0.0  ;;  %v3714_v9 = vsel %vm3712_vm5, %v3713_v39, %v3711_v26 }
 0x360   :  { %v3832_v27 = vmul.f32 %v5381_v51, %v3824_v18  ;;  %v3836_v58 = vmul.f32 %v5389_v61, %v3828_v6  ;;  %v3845_v41 = vadd.f32 %v3835_v28, %v3831_v2  ;;  %v3447_v23 = vsel %vm3446_vm3, %v9476_v56, %v9560_v30 }
 0x361   :  { %v3454_v53 = vsel %vm3453_vm4, %v9480_v4, %v9565_v35  ;;  %v3721_v43 = vsel %vm3719_vm7, %v3720_v12, %v3718_v20  ;;  %v3839_v32 = vrot.slane %v3838_v31, 4  ;;  %v3674_v39 = vadd.f32 %v3673_v42, %v3672_v29 }
 0x362   :  { %v3685_v26 = vadd.f32 %v3684_v10, %v3683_v3  ;;  %v3696_v18 = vadd.f32 %v3695_v19, %v3694_v17  ;;  %v3728_v46 = vsel %vm3726_vm13, %v3727_v8, %v3725_v62  ;;  %v3459_v6 = vmul.f32 %v9592_v22, %v9502_v11 }
 0x363   :  { %v3665_v2 = vadd.f32 %v3664_v16, %v3663_v7  ;;  %v3730_v28 = vadd.f32 1e-08, %v3714_v9  ;;  %v9673_v30 = vunpack.c.h.bf16 %v9598_v57  ;;  %v3731_v5 = vadd.f32 1e-08, %v3721_v43 }
 0x364   :  { %v9676_v40 = vunpack.c.h.bf16 %v9603_v36  ;;  %v3846_v35 = vrot.slane %v3845_v41, 4  ;;  %v3852_v34 = vadd.f32 %v3836_v58, %v3832_v27  ;;  %v11600_v12 = vand.u32 2147483648, %v9476_v56 }
 0x365   :  { %v3463_v3 = vand.u32 2147483648, %v9502_v11  ;;  %v3732_v29 = vadd.f32 1e-08, %v3728_v46  ;;  %v3840_v22 = vadd.f32 %v3839_v32, %v3838_v31  ;;  %v11601_v7 = vand.u32 2147483648, %v9480_v4 }
 0x366   :  { %v3450_v17 = vsel %vm3448_vm8, %v11600_v12, %v3447_v23  ;;  %v3675_v42 = vrot.slane %v3674_v39, 2  ;;  %v3686_v8 = vrot.slane %v3685_v26, 2  ;;  %v3697_v36 = vrot.slane %v3696_v18, 2 }
 0x367   :  { %v3457_v57 = vsel %vm3455_vm9, %v11601_v7, %v3454_v53  ;;  %v3461_v10 = vsel %vm3460_vm11, %v9502_v11, %v3459_v6  ;;  %v3666_v19 = vrot.slane %v3665_v2, 1  ;;  %5084 = vrcp.f32 %v3730_v28 }
 0x368   :  { %v3825_v56 = vmul.f32 %v9673_v30, %v9673_v30  ;;  %v5081_v20 = vpop.eup %5080  ;;  %5086 = vrcp.f32 %v3731_v5  ;;  %v3829_v46 = vmul.f32 %v9676_v40, %v9676_v40  ;;  %v3847_v31 = vadd.f32 %v3846_v35, %v3845_v41 }
 0x369   :  { %v3853_v4 = vrot.slane %v3852_v34, 4  ;;  %v5083_v16 = vpop.eup %5082  ;;  %v3472_v62 = vsub.f32 2.0, %v3450_v17  ;;  %v3480_v9 = vmul.f32 0.3, %v9500_v54  ;;  %5088 = vrcp.f32 %v3732_v29 }
 0x36a   :  { %v3841_v27 = vrot.slane %v3840_v22, 2  ;;  %v3464_v58 = vsel %vm3462_vm12, %v3463_v3, %v3461_v10  ;;  %v3676_v23 = vadd.f32 %v3675_v42, %v3674_v39  ;;  %v3687_v53 = vadd.f32 %v3686_v8, %v3685_v26 }
 0x36b   :  { %v3698_v43 = vadd.f32 %v3697_v36, %v3696_v18  ;;  %v3473_v32 = vsub.f32 2.0, %v3457_v57  ;;  %v9698_v5 = vmul.f32 0.3, %v9519_v14  ;;  %v3667_v6 = vadd.f32 %v3666_v19, %v3665_v2  ;;  %v11602_v57 = vld [vmem:[#allocation28_spill] sm:$0xff] }
 0x36c   :  { %v3741_v28 = vmul.f32 %v5081_v20, %v5081_v20  ;;  %v3833_v41 = vmul.f32 %v5383_v55, %v3825_v56  ;;  %v3837_v35 = vmul.f32 %v5394_v63, %v3829_v46  ;;  %v3848_v12 = vrot.slane %v3847_v31, 2 }
 0x36d   :  { %v3854_v54 = vadd.f32 %v3853_v4, %v3852_v34  ;;  %vm3467_vm15 = vcmp.eq.f32.partialorder %v9557_v38, inf  ;;  %v3474_v17 = vsub.f32 2.0, %v3464_v58  ;;  %v3476_v11 = vmul.f32 0.5, %v3472_v62  ;;  %v11603_v58 = vld [vmem:[#allocation36_spill] sm:$0xff] }
 0x36e   :  { %v3842_v3 = vadd.f32 %v3841_v27, %v3840_v22  ;;  %v3466_v39 = vmul.f32 %v5083_v16, %v9557_v38  ;;  %v3677_v26 = vrot.slane %v3676_v23, 1  ;;  %v3688_v18 = vrot.slane %v3687_v53, 1 }
 0x36f   :  { %v3699_v29 = vrot.slane %v3698_v43, 1  ;;  %v3477_v14 = vmul.f32 0.5, %v3473_v32  ;;  %v3745_v2 = vmul.f32 %v3741_v28, %v9482_v59  ;;  %v3753_v7 = vmul.f32 2.0, %v3667_v6 }
 0x370   :  { %v3757_v42 = vmul.f32 %v5081_v20, %v11602_v57  ;;  %v9707_v8 = vmul.f32 0.3, %v9521_v13  ;;  %v3849_v34 = vadd.f32 %v3848_v12, %v3847_v31  ;;  %v3855_v36 = vrot.slane %v3854_v54, 2 }
 0x371   :  { %v3859_v10 = vadd.f32 %v3837_v35, %v3833_v41  ;;  %v5085_v19 = vpop.eup %5084  ;;  %vm3469_vm0 = vcmp.eq.f32.partialorder %v9557_v38, 0.0  ;;  %v3470_v22 = vand.u32 2147483648, %v9557_v38  ;;  %v3484_v56 = vmul.f32 0.7, %v3476_v11 }
 0x372   :  { %v3843_v46 = vrot.slane %v3842_v3, 1  ;;  %v5087_v4 = vpop.eup %5086  ;;  %v3468_v59 = vsel %vm3467_vm15, %v9557_v38, %v3466_v39  ;;  %v3678_v16 = vadd.f32 %v3677_v26, %v3676_v23  ;;  %v3689_v20 = vadd.f32 %v3688_v18, %v3687_v53  ;;  %v11605_v23 = vld [vmem:[#allocation67_spill] sm:$0xff]  ;;  %v11606_v53 = vld [vmem:[#allocation77_spill] sm:$0xff] }
 0x373   :  { %v3700_v62 = vadd.f32 %v3699_v29, %v3698_v43  ;;  %v5089_v13 = vpop.eup %5088  ;;  %v3478_v27 = vmul.f32 0.5, %v3474_v17  ;;  %v3485_v31 = vmul.f32 0.7, %v3477_v14  ;;  %v3749_v32 = vadd.f32 %v3745_v2, %v11603_v58  ;;  %v11607_v29 = vld [vmem:[#allocation29_spill] sm:$0xff]  ;;  %v11609_v38 = vld [vmem:[#allocation35_spill] sm:$0xff]  ;;  %v11619_v58 = vld [vmem:[#allocation16_spill] sm:$0xff] }
 0x374   :  { %v3761_v6 = vmul.f32 %v3757_v42, %v3753_v7  ;;  %v3742_v28 = vmul.f32 %v5085_v19, %v5085_v19  ;;  %v3850_v41 = vrot.slane %v3849_v34, 1  ;;  %v3856_v35 = vadd.f32 %v3855_v36, %v3854_v54  ;;  %v11608_v54 = vld [vmem:[#allocation2_spill] sm:$0xff] }
 0x375   :  { %v3860_v12 = vrot.slane %v3859_v10, 4  ;;  %v3471_v11 = vsel %vm3469_vm0, %v3470_v22, %v3468_v59  ;;  %v9717_v57 = vadd.f32 %v3484_v56, %v3480_v9  ;;  %v3743_v52 = vmul.f32 %v5087_v4, %v5087_v4 }
 0x376   :  { %v9719_v39 = vadd.f32 %v3843_v46, %v3842_v3  ;;  %vm2965_vm1 = vcmp.gt.f32.partialorder %v11606_v53, %v11605_v23  ;;  %v3744_v43 = vmul.f32 %v5089_v13, %v5089_v13  ;;  %v3754_v17 = vmul.f32 2.0, %v3678_v16  ;;  %v11610_v46 = vld [vmem:[#allocation32_spill] sm:$0xff]  ;;  %v11611_v16 = vld [vmem:[#allocation41_spill] sm:$0xff] }
 0x377   :  { %v3755_v26 = vmul.f32 2.0, %v3689_v20  ;;  %v3756_v18 = vmul.f32 2.0, %v3700_v62  ;;  %v3758_v14 = vmul.f32 %v5085_v19, %v11607_v29  ;;  %v3765_v2 = vsub.f32 %v3749_v32, %v3761_v6  ;;  %v11612_v20 = vld [vmem:[#allocation34_spill] sm:$0xff] }
 0x378   :  { %11604 = vst [vmem:[#allocation23_spill] sm:$0xff] %v9719_v39  ;;  %v3866_v7 = vmul.f32 %v9573_v0, %v11608_v54  ;;  %v3870_v9 = vmul.f32 %v9575_v60, %v11609_v38  ;;  %v3746_v42 = vmul.f32 %v3742_v28, %v9523_v49  ;;  %v9729_v3 = vadd.f32 %v3850_v41, %v3849_v34  ;;  %v11613_v60 = vld [vmem:[#allocation21_spill] sm:$0xff]  ;;  %v11614_v34 = vld [vmem:[#allocation42_spill] sm:$0xff] }
 0x379   :  { %v3857_v36 = vrot.slane %v3856_v35, 1  ;;  %v3861_v22 = vadd.f32 %v3860_v12, %v3859_v10  ;;  %v3747_v56 = vmul.f32 %v3743_v52, %v9525_v33  ;;  %v3759_v59 = vmul.f32 %v5087_v4, %v11610_v46  ;;  %v11615_v52 = vld [vmem:[#allocation33_spill] sm:$0xff]  ;;  %v11617_v12 = vld [vmem:[#allocation38_spill] sm:$0xff] }
 0x37a   :  { %v3867_v19 = vmul.f32 %v9588_v37, %v11611_v16  ;;  %5090 = vrsqrt.f32 %v9719_v39  ;;  %v3748_v0 = vmul.f32 %v3744_v43, %v9531_v45  ;;  %v3760_v62 = vmul.f32 %v5089_v13, %v11612_v20  ;;  %v11616_v37 = vld [vmem:[#allocation37_spill] sm:$0xff] }
 0x37b   :  { %v3868_v49 = vmul.f32 %v9618_v25, %v11613_v60  ;;  %v3871_v32 = vmul.f32 %v9590_v21, %v11614_v34  ;;  %v3762_v10 = vmul.f32 %v3758_v14, %v3754_v17  ;;  %v9742_v6 = vmax.f32 %v3765_v2, 0.0  ;;  %v11618_v14 = vld [vmem:[#allocation39_spill] sm:$0xff] }
 0x37c   :  { %v3872_v33 = vmul.f32 %v9621_v24, %v11615_v52  ;;  %v3874_v4 = vadd.f32 %v3870_v9, %v3866_v7  ;;  %v3750_v28 = vadd.f32 %v3746_v42, %v11616_v37  ;;  %v9747_v41 = vadd.f32 %v3857_v36, %v3856_v35  ;;  %v11620_v35 = vld [vmem:[#allocation20_spill] sm:$0xff] }
 0x37d   :  { %v3862_v45 = vrot.slane %v3861_v22, 2  ;;  %5092 = vrsqrt.f32 %v9729_v3  ;;  %v3486_v13 = vmul.f32 0.7, %v3478_v27  ;;  %v3489_v25 = vadd.f32 %v3485_v31, %v9698_v5 }
 0x37e   :  { %v3751_v43 = vadd.f32 %v3747_v56, %v11617_v12  ;;  %v3763_v21 = vmul.f32 %v3759_v59, %v3755_v26  ;;  %v3475_v17 = vsub.f32 2.0, %v3471_v11  ;;  %v3752_v2 = vadd.f32 %v3748_v0, %v11618_v14  ;;  %v11629_v0 = vld [vmem:[#allocation5_spill] sm:$0xff] }
 0x37f   :  { %v3764_v20 = vmul.f32 %v3760_v62, %v3756_v18  ;;  %v3869_v24 = vmul.f32 %v9673_v30, %v11619_v58  ;;  %5094 = vrsqrt.f32 %v9742_v6  ;;  %v3873_v7 = vmul.f32 %v9676_v40, %v11620_v35  ;;  %v11622_v30 = vld [vmem:[#allocation58_spill] sm:$0xff] }
 0x380   :  { %v3881_v9 = vadd.f32 %v3871_v32, %v3867_v19  ;;  %v3888_v42 = vadd.f32 %v3872_v33, %v3868_v49  ;;  %v3766_v27 = vsub.f32 %v3750_v28, %v3762_v10  ;;  %v3863_v36 = vadd.f32 %v3862_v45, %v3861_v22  ;;  %v11626_v40 = vld [vmem:[#allocation66_spill] sm:$0xff]  ;;  %v11628_v19 = vld [vmem:[#allocation60_spill] sm:$0xff] }
 0x381   :  { %v3875_v5 = vrot.slane %v3874_v4, 4  ;;  %5096 = vrsqrt.f32 %v9747_v41  ;;  %v9764_v31 = vsel %vm2965_vm1, %v11606_v53, %v11605_v23  ;;  %v9770_v18 = vsel %vm2964_vm14, 4, %v11622_v30 }
 0x382   :  { %11621 = vst [vmem:[#allocation70_spill] sm:$0xff] %v9764_v31  ;;  %11625 = vst [vmem:[#allocation64_spill] sm:$0xff] %v9770_v18  ;;  %v9776_v22 = vsel %vm2965_vm1, 4, %v11626_v40  ;;  %v3767_v56 = vsub.f32 %v3751_v43, %v3763_v21  ;;  %v3479_v59 = vmul.f32 0.5, %v3475_v17  ;;  %vm3492_vm2 = vcmp.gt.f32.partialorder %v9717_v57, %v11628_v19 }
 0x383   :  { %11627 = vst [vmem:[#allocation59_spill] sm:$0xff] %v9776_v22  ;;  %vm3493_vm3 = vcmp.gt.f32.partialorder %v3489_v25, %v11629_v0  ;;  %v3768_v62 = vsub.f32 %v3752_v2, %v3764_v20  ;;  %v9782_v32 = vmul.f32 0.3, %v9538_v15  ;;  %v3882_v10 = vrot.slane %v3881_v9, 4  ;;  %v11633_v15 = vld [vmem:[#allocation75_spill] sm:$0xff] }
 0x384   :  { %v5091_v49 = vpop.eup %5090  ;;  %v3889_v33 = vrot.slane %v3888_v42, 4  ;;  %v3895_v28 = vadd.f32 %v3873_v7, %v3869_v24  ;;  %v9785_v45 = vadd.f32 %v3486_v13, %v9707_v8  ;;  %v9787_v23 = vmax.f32 %v3766_v27, 0.0  ;;  %v11636_v24 = vld [vmem:[#allocation65_spill] sm:$0xff] }
 0x385   :  { %v3864_v53 = vrot.slane %v3863_v36, 1  ;;  %v3876_v43 = vadd.f32 %v3875_v5, %v3874_v4  ;;  %v9791_v21 = vsel %vm3492_vm2, %v9717_v57, %v11628_v19  ;;  %v9796_v20 = vsel %vm3493_vm3, %v3489_v25, %v11629_v0 }
 0x386   :  { %11630 = vst [vmem:[#allocation6_spill] sm:$0xff] %v9785_v45  ;;  %11631 = vst [vmem:[#allocation57_spill] sm:$0xff] %v9791_v21  ;;  %v9799_v17 = vsel %vm3492_vm2, 5, %v11633_v15  ;;  %v9801_v2 = vmax.f32 %v3767_v56, 0.0  ;;  %v9803_v13 = vmul.f32 0.7, %v3479_v59  ;;  %v3903_v7 = vmul.f32 %v5091_v49, %v9719_v39 }
 0x387   :  { %11632 = vst [vmem:[#allocation62_spill] sm:$0xff] %v9796_v20  ;;  %11634 = vst [vmem:[#allocation74_spill] sm:$0xff] %v9799_v17  ;;  %v5093_v8 = vpop.eup %5092  ;;  %v9808_v4 = vsel %vm3493_vm3, 5, %v11636_v24  ;;  %v9810_v57 = vmax.f32 %v3768_v62, 0.0  ;;  %v9813_v27 = vadd.f32 %v3882_v10, %v3881_v9  ;;  %v9815_v5 = vadd.f32 %v3889_v33, %v3888_v42  ;;  %v4736_v33 = vld [vmem:[%s10574_s1 + $0x2a8] sm:$0xff]  ;;  %v4745_v21 = vld [vmem:[%s10574_s1 + $0x2f0] sm:$0xff] }
 0x388   :  { %11635 = vst [vmem:[#allocation73_spill] sm:$0xff] %v9803_v13  ;;  %11637 = vst [vmem:[#allocation56_spill] sm:$0xff] %v9808_v4  ;;  %v3896_v30 = vrot.slane %v3895_v28, 4  ;;  %vm3904_vm14 = vcmp.eq.f32.partialorder %v9719_v39, inf  ;;  %5098 = vrsqrt.f32 %v9787_v23  ;;  %v9820_v26 = vadd.f32 %v3864_v53, %v3863_v36  ;;  %v4735_v36 = vld [vmem:[%s10574_s1 + $0x2a0] sm:$0xff]  ;;  %v4737_v53 = vld [vmem:[%s10574_s1 + $0x2b0] sm:$0xff] }
 0x389   :  { %v3877_v25 = vrot.slane %v3876_v43, 2  ;;  %v5095_v40 = vpop.eup %5094  ;;  %5100 = vrsqrt.f32 %v9801_v2  ;;  %v3907_v9 = vand.u32 2147483648, %v9719_v39  ;;  %v3910_v42 = vmul.f32 %v5093_v8, %v9729_v3  ;;  %v4744_v62 = vld [vmem:[%s10574_s1 + $0x2e8] sm:$0xff] }
 0x38a   :  { %v3905_v0 = vsel %vm3904_vm14, %v9719_v39, %v3903_v7  ;;  %vm3906_vm4 = vcmp.eq.f32.partialorder %v9719_v39, 0.0  ;;  %vm3911_vm5 = vcmp.eq.f32.partialorder %v9729_v3, inf  ;;  %5102 = vrsqrt.f32 %v9810_v57  ;;  %v4739_v7 = vld [vmem:[%s10574_s1 + $0x2c0] sm:$0xff] }
 0x38b   :  { %v5097_v59 = vpop.eup %5096  ;;  %v9836_v10 = vadd.f32 %v3896_v30, %v3895_v28  ;;  %v9845_v15 = vmul.f32 %v5095_v40, %v9742_v6  ;;  %v9847_v8 = vadd.f32 %v3877_v25, %v3876_v43  ;;  %5104 = vrsqrt.f32 %v9820_v26  ;;  %v4738_v28 = vld [vmem:[%s10574_s1 + $0x2b8] sm:$0xff]  ;;  %v4740_v25 = vld [vmem:[%s10574_s1 + $0x2c8] sm:$0xff]  ;;  %v4741_v40 = vld [vmem:[%s10574_s1 + $0x2d0] sm:$0xff] }
 0x38c   :  { %v9857_v30 = vsel %vm3906_vm4, %v3907_v9, %v3905_v0  ;;  %v9860_v19 = vsel %vm3911_vm5, %v9729_v3, %v3910_v42  ;;  %v9863_v43 = vmul.f32 %v5097_v59, %v9747_v41  ;;  %v9871_v56 = vunpack.c.l.bf16 %v4735_v36  ;;  %v4742_v9 = vld [vmem:[%s10574_s1 + $0x2d8] sm:$0xff]  ;;  %v4743_v42 = vld [vmem:[%s10574_s1 + $0x2e0] sm:$0xff] }
 0x38d   :  { %v9879_v59 = vunpack.c.h.bf16 %v4735_v36  ;;  %v9881_v0 = vunpack.c.l.bf16 %v4736_v33  ;;  %v9883_v11 = vunpack.c.h.bf16 %v4736_v33  ;;  %v9885_v49 = vunpack.c.l.bf16 %v4737_v53 }
 0x38e   :  { %11638 = vst [vmem:[#allocation78_spill] sm:$0xff] %v9871_v56  ;;  %v9890_v24 = vunpack.c.h.bf16 %v4737_v53  ;;  %v9892_v22 = vunpack.c.l.bf16 %v4738_v28  ;;  %v9894_v18 = vunpack.c.h.bf16 %v4738_v28  ;;  %v9896_v4 = vunpack.c.l.bf16 %v4739_v7  ;;  %v4746_v53 = vld [vmem:[%s10574_s1 + $0x2f8] sm:$0xff] }
 0x38f   :  { %11639 = vst [vmem:[#allocation61_spill] sm:$0xff] %v9879_v59  ;;  %11640 = vst [vmem:[#allocation68_spill] sm:$0xff] %v9881_v0  ;;  %v9898_v36 = vunpack.c.h.bf16 %v4739_v7  ;;  %v9900_v17 = vunpack.c.l.bf16 %v4740_v25  ;;  %v9902_v33 = vunpack.c.h.bf16 %v4740_v25  ;;  %v9904_v20 = vunpack.c.l.bf16 %v4741_v40 }
 0x390   :  { %11641 = vst [vmem:[#allocation25_spill] sm:$0xff] %v9883_v11  ;;  %11642 = vst [vmem:[#allocation72_spill] sm:$0xff] %v9885_v49  ;;  %v9912_v28 = vunpack.c.h.bf16 %v4741_v40  ;;  %v9914_v31 = vunpack.c.l.bf16 %v4742_v9  ;;  %v9916_v7 = vunpack.c.h.bf16 %v4742_v9  ;;  %v9918_v14 = vunpack.c.l.bf16 %v4743_v42 }
 0x391   :  { %11643 = vst [vmem:[#allocation63_spill] sm:$0xff] %v9890_v24  ;;  %11644 = vst [vmem:[#allocation4_spill] sm:$0xff] %v9892_v22  ;;  %v9922_v12 = vunpack.c.h.bf16 %v4743_v42  ;;  %v9924_v37 = vunpack.c.l.bf16 %v4744_v62  ;;  %v4071_v46 = vmul.f32 %v9871_v56, %v9871_v56  ;;  %v4072_v35 = vmul.f32 %v9879_v59, %v9879_v59 }
 0x392   :  { %11645 = vst [vmem:[#allocation67_spill] sm:$0xff] %v9894_v18  ;;  %11646 = vst [vmem:[#allocation77_spill] sm:$0xff] %v9896_v4  ;;  %v9920_v25 = vpop.eup %5098  ;;  %v4073_v9 = vmul.f32 %v9881_v0, %v9881_v0  ;;  %v4075_v29 = vmul.f32 %v9885_v49, %v9885_v49  ;;  %v4076_v42 = vmul.f32 %v9890_v24, %v9890_v24  ;;  %v9940_v52 = vunpack.c.h.bf16 %v4744_v62 }
 0x393   :  { %11647 = vst [vmem:[#allocation58_spill] sm:$0xff] %v9898_v36  ;;  %11648 = vst [vmem:[#allocation71_spill] sm:$0xff] %v9900_v17  ;;  %v9930_v40 = vpop.eup %5100  ;;  %v4077_v58 = vmul.f32 %v9892_v22, %v9892_v22  ;;  %v9942_v60 = vunpack.c.l.bf16 %v4745_v21  ;;  %v9944_v34 = vunpack.c.h.bf16 %v4745_v21  ;;  %v9946_v16 = vunpack.c.l.bf16 %v4746_v53 }
 0x394   :  { %11649 = vst [vmem:[#allocation69_spill] sm:$0xff] %v9902_v33  ;;  %11650 = vst [vmem:[#allocation66_spill] sm:$0xff] %v9904_v20  ;;  %v9948_v38 = vpop.eup %5102  ;;  %v9950_v54 = vunpack.c.h.bf16 %v4746_v53  ;;  %v4074_v0 = vmul.f32 %v9883_v11, %v9883_v11  ;;  %v4078_v24 = vmul.f32 %v9894_v18, %v9894_v18  ;;  %v4079_v62 = vmul.f32 %v9896_v4, %v9896_v4 }
 0x395   :  { %11651 = vst [vmem:[#allocation60_spill] sm:$0xff] %v9912_v28  ;;  %11652 = vst [vmem:[#allocation5_spill] sm:$0xff] %v9914_v31  ;;  %v9958_v22 = vpop.eup %5104  ;;  %vm3913_vm6 = vcmp.eq.f32.partialorder %v9729_v3, 0.0  ;;  %v4080_v21 = vmul.f32 %v9898_v36, %v9898_v36  ;;  %v4081_v53 = vmul.f32 %v9900_v17, %v9900_v17  ;;  %v4095_v59 = vmul.f32 %v11599_v44, %v4071_v46 }
 0x396   :  { %11653 = vst [vmem:[#allocation75_spill] sm:$0xff] %v9916_v7  ;;  %11654 = vst [vmem:[#allocation65_spill] sm:$0xff] %v9918_v14  ;;  %v4096_v11 = vmul.f32 %v5379_v50, %v4072_v35  ;;  %v4097_v39 = vmul.f32 %v5381_v51, %v4073_v9  ;;  %v4099_v18 = vmul.f32 %v11008_v48, %v4075_v29  ;;  %vm3918_vm7 = vcmp.eq.f32.partialorder %v9747_v41, inf }
 0x397   :  { %11655 = vst [vmem:[#allocation79_spill] sm:$0xff] %v9922_v12  ;;  %11656 = vst [vmem:[#allocation80_spill] sm:$0xff] %v9946_v16  ;;  %v4100_v4 = vmul.f32 %v11446_v1, %v4076_v42  ;;  %v4101_v49 = vmul.f32 %v5389_v61, %v4077_v58  ;;  %v4082_v56 = vmul.f32 %v9902_v33, %v9902_v33  ;;  %vm3775_vm8 = vcmp.eq.f32.partialorder %v9742_v6, inf }
 0x398   :  { %v4083_v36 = vmul.f32 %v9904_v20, %v9904_v20  ;;  %v4084_v17 = vmul.f32 %v9912_v28, %v9912_v28  ;;  %v4085_v46 = vmul.f32 %v9914_v31, %v9914_v31  ;;  %v4086_v29 = vmul.f32 %v9916_v7, %v9916_v7 }
 0x399   :  { %v4087_v58 = vmul.f32 %v9918_v14, %v9918_v14  ;;  %v4098_v35 = vmul.f32 %v5383_v55, %v4074_v0  ;;  %v4102_v9 = vmul.f32 %v5394_v63, %v4078_v24  ;;  %v4088_v42 = vmul.f32 %v9922_v12, %v9922_v12 }
 0x39a   :  { %v4089_v28 = vmul.f32 %v9924_v37, %v9924_v37  ;;  %v4103_v31 = vmul.f32 %v11599_v44, %v4079_v62  ;;  %v4104_v20 = vmul.f32 %v5379_v50, %v4080_v21  ;;  %v4105_v33 = vmul.f32 %v5381_v51, %v4081_v53 }
 0x39b   :  { %v4119_v7 = vadd.f32 %v4099_v18, %v4095_v59  ;;  %v4130_v47 = vadd.f32 %v4100_v4, %v4096_v11  ;;  %v4141_v13 = vadd.f32 %v4101_v49, %v4097_v39  ;;  %v4091_v0 = vmul.f32 %v9942_v60, %v9942_v60 }
 0x39c   :  { %v4092_v24 = vmul.f32 %v9944_v34, %v9944_v34  ;;  %v4107_v12 = vmul.f32 %v11008_v48, %v4083_v36  ;;  %v4108_v14 = vmul.f32 %v11446_v1, %v4084_v17  ;;  %v4093_v62 = vmul.f32 %v9946_v16, %v9946_v16 }
 0x39d   :  { %v4106_v21 = vmul.f32 %v5383_v55, %v4082_v56  ;;  %v4109_v18 = vmul.f32 %v5389_v61, %v4085_v46  ;;  %v4152_v39 = vadd.f32 %v4102_v9, %v4098_v35  ;;  %vm3782_vm9 = vcmp.eq.f32.partialorder %v9787_v23, inf }
 0x39e   :  { %v4111_v4 = vmul.f32 %v11599_v44, %v4087_v58  ;;  %v4112_v11 = vmul.f32 %v5379_v50, %v4088_v42  ;;  %v4120_v49 = vadd.f32 %v4119_v7, %v4103_v31  ;;  %v4131_v59 = vadd.f32 %v4130_v47, %v4104_v20 }
 0x39f   :  { %v4090_v17 = vmul.f32 %v9940_v52, %v9940_v52  ;;  %v4110_v36 = vmul.f32 %v5394_v63, %v4086_v29  ;;  %v4113_v53 = vmul.f32 %v5381_v51, %v4089_v28  ;;  %v4142_v16 = vadd.f32 %v4141_v13, %v4105_v33 }
 0x3a0   :  { %vm3777_vm10 = vcmp.eq.f32.partialorder %v9742_v6, 0.0  ;;  %v4115_v56 = vmul.f32 %v11008_v48, %v4091_v0  ;;  %v4116_v46 = vmul.f32 %v11446_v1, %v4092_v24  ;;  %v4121_v35 = vadd.f32 %v4120_v49, %v4107_v12 }
 0x3a1   :  { %v4132_v58 = vadd.f32 %v4131_v59, %v4108_v14  ;;  %vm3784_vm11 = vcmp.eq.f32.partialorder %v9787_v23, 0.0  ;;  %vm3789_vm12 = vcmp.eq.f32.partialorder %v9801_v2, inf  ;;  %v11657_v47 = vand.u32 2147483648, %v9729_v3 }
 0x3a2   :  { %v3921_v20 = vand.u32 2147483648, %v9747_v41  ;;  %v4143_v13 = vadd.f32 %v4142_v16, %v4109_v18  ;;  %v4153_v33 = vadd.f32 %v4152_v39, %v4106_v21  ;;  %v3930_v28 = vadd.f32 1e-08, %v9857_v30 }
 0x3a3   :  { %v3915_v31 = vsel %vm3913_vm6, %v11657_v47, %v9860_v19  ;;  %v4117_v7 = vmul.f32 %v5389_v61, %v4093_v62  ;;  %v4122_v12 = vadd.f32 %v4121_v35, %v4111_v4  ;;  %v4133_v14 = vadd.f32 %v4132_v58, %v4112_v11 }
 0x3a4   :  { %vm3796_vm13 = vcmp.eq.f32.partialorder %v9810_v57, inf  ;;  %v4094_v29 = vmul.f32 %v9950_v54, %v9950_v54  ;;  %v4114_v9 = vmul.f32 %v5383_v55, %v4090_v17  ;;  %v4144_v42 = vadd.f32 %v4143_v13, %v4113_v53  ;;  %v11660_v17 = vld [vmem:[#allocation76_spill] sm:$0xff] }
 0x3a5   :  { %v4154_v0 = vadd.f32 %v4153_v33, %v4110_v36  ;;  %vm3791_vm15 = vcmp.eq.f32.partialorder %v9801_v2, 0.0  ;;  %v3919_v16 = vsel %vm3918_vm7, %v9747_v41, %v9863_v43  ;;  %vm3920_vm0 = vcmp.eq.f32.partialorder %v9747_v41, 0.0 }
 0x3a6   :  { %v4123_v19 = vadd.f32 %v4122_v12, %v4115_v56  ;;  %v4134_v30 = vadd.f32 %v4133_v14, %v4116_v46  ;;  %v3781_v24 = vmul.f32 %v9920_v25, %v9787_v23  ;;  %v3799_v62 = vand.u32 2147483648, %v9810_v57 }
 0x3a7   :  { %v11658_v21 = vrot.slane %v9813_v27, 2  ;;  %v11659_v39 = vrot.slane %v9815_v5, 2  ;;  %v3898_v11 = vrot.slane %v9836_v10, 2  ;;  %v3931_v43 = vadd.f32 1e-08, %v3915_v31 }
 0x3a8   :  { %v4124_v49 = vrot.slane %v4123_v19, 4  ;;  %v4145_v59 = vadd.f32 %v4144_v42, %v4117_v7  ;;  %vm3494_vm1 = vcmp.gt.f32.partialorder %v9785_v45, %v11660_v17  ;;  %v3922_v36 = vsel %vm3920_vm0, %v3921_v20, %v3919_v16 }
 0x3a9   :  { %v3885_v18 = vadd.f32 %v11658_v21, %v9813_v27  ;;  %v3892_v4 = vadd.f32 %v11659_v39, %v9815_v5  ;;  %5106 = vrcp.f32 %v3930_v28  ;;  %v4118_v25 = vmul.f32 %v5394_v63, %v4094_v29 }
 0x3aa   :  { %v4155_v53 = vadd.f32 %v4154_v0, %v4114_v9  ;;  %v3776_v27 = vsel %vm3775_vm8, %v9742_v6, %v9845_v15  ;;  %v3788_v5 = vmul.f32 %v9930_v40, %v9801_v2  ;;  %v3879_v56 = vrot.slane %v9847_v8, 1 }
 0x3ab   :  { %v4135_v46 = vrot.slane %v4134_v30, 4  ;;  %v3783_v35 = vsel %vm3782_vm9, %v9787_v23, %v3781_v24  ;;  %v3795_v58 = vmul.f32 %v9948_v38, %v9810_v57  ;;  %v3924_v47 = vmul.f32 %v9958_v22, %v9820_v26 }
 0x3ac   :  { %v4125_v31 = vadd.f32 %v4124_v49, %v4123_v19  ;;  %vm3925_vm2 = vcmp.eq.f32.partialorder %v9820_v26, inf  ;;  %v3932_v15 = vadd.f32 1e-08, %v3922_v36  ;;  %5108 = vrcp.f32 %v3931_v43 }
 0x3ad   :  { %v4146_v20 = vrot.slane %v4145_v59, 4  ;;  %v11661_v40 = vand.u32 2147483648, %v9742_v6  ;;  %v3886_v33 = vrot.slane %v3885_v18, 1  ;;  %v3899_v28 = vadd.f32 %v3898_v11, %v9836_v10 }
 0x3ae   :  { %v4156_v7 = vadd.f32 %v4155_v53, %v4118_v25  ;;  %v11662_v38 = vand.u32 2147483648, %v9787_v23  ;;  %v3790_v12 = vsel %vm3789_vm12, %v9801_v2, %v3788_v5  ;;  %v3928_v14 = vand.u32 2147483648, %v9820_v26  ;;  %v11664_v53 = vld [vmem:[#allocation73_spill] sm:$0xff] }
 0x3af   :  { %v3779_v13 = vsel %vm3777_vm10, %v11661_v40, %v3776_v27  ;;  %v4136_v29 = vadd.f32 %v4135_v46, %v4134_v30  ;;  %v3893_v9 = vrot.slane %v3892_v4, 1  ;;  %v3926_v6 = vsel %vm3925_vm2, %v9820_v26, %v3924_v47 }
 0x3b0   :  { %v3786_v22 = vsel %vm3784_vm11, %v11662_v38, %v3783_v35  ;;  %vm3927_vm3 = vcmp.eq.f32.partialorder %v9820_v26, 0.0  ;;  %v4126_v42 = vrot.slane %v4125_v31, 2  ;;  %v3797_v10 = vsel %vm3796_vm13, %v9810_v57, %v3795_v58 }
 0x3b1   :  { %vm3798_vm14 = vcmp.eq.f32.partialorder %v9810_v57, 0.0  ;;  %5110 = vrcp.f32 %v3932_v15  ;;  %v4147_v23 = vadd.f32 %v4146_v20, %v4145_v59  ;;  %v11663_v0 = vand.u32 2147483648, %v9801_v2 }
 0x3b2   :  { %v3801_v19 = vsub.f32 2.0, %v3779_v13  ;;  %v3802_v30 = vsub.f32 2.0, %v3786_v22  ;;  %v4157_v24 = vrot.slane %v4156_v7, 4  ;;  %v3880_v21 = vadd.f32 %v3879_v56, %v9847_v8  ;;  %v11669_v13 = vld [vmem:[#allocation40_spill] sm:$0xff]  ;;  %v11670_v22 = vld [vmem:[#allocation7_spill] sm:$0xff] }
 0x3b3   :  { %v10085_v16 = vsel %vm3791_vm15, %v11663_v0, %v3790_v12  ;;  %v3900_v39 = vrot.slane %v3899_v28, 1  ;;  %v3929_v11 = vsel %vm3927_vm3, %v3928_v14, %v3926_v6  ;;  %v4137_v43 = vrot.slane %v4136_v29, 2  ;;  %v5107_v49 = vpop.eup %5106  ;;  %v11671_v12 = vld [vmem:[#allocation78_spill] sm:$0xff]  ;;  %v11673_v6 = vld [vmem:[#allocation72_spill] sm:$0xff] }
 0x3b4   :  { %v10088_v36 = vsel %vm3798_vm14, %v3799_v62, %v3797_v10  ;;  %v3887_v57 = vadd.f32 %v3886_v33, %v3885_v18  ;;  %v3894_v25 = vadd.f32 %v3893_v9, %v3892_v4  ;;  %v4127_v59 = vadd.f32 %v4126_v42, %v4125_v31  ;;  %v11672_v9 = vld [vmem:[#allocation11_spill] sm:$0xff] }
 0x3b5   :  { %v10092_v27 = vadd.f32 %v11664_v53, %v9782_v32  ;;  %v10099_v2 = vsel %vm3494_vm1, %v9785_v45, %v11660_v17  ;;  %v4148_v5 = vrot.slane %v4147_v23, 2  ;;  %v10102_v56 = vmul.f32 0.5, %v3801_v19  ;;  %v11674_v10 = vld [vmem:[#allocation15_spill] sm:$0xff]  ;;  %v11681_v53 = vld [vmem:[#allocation25_spill] sm:$0xff]  ;;  %v11688_v17 = vld [vmem:[#allocation18_spill] sm:$0xff] }
 0x3b6   :  { %11666 = vst [vmem:[#allocation81_spill] sm:$0xff] %v10099_v2  ;;  %v10104_v62 = vmul.f32 0.5, %v3802_v30  ;;  %v3933_v18 = vadd.f32 1e-08, %v3929_v11  ;;  %v4158_v4 = vadd.f32 %v4157_v24, %v4156_v7  ;;  %v5109_v46 = vpop.eup %5108  ;;  %v3901_v35 = vadd.f32 %v3900_v39, %v3899_v28  ;;  %v11677_v39 = vld [vmem:[#allocation61_spill] sm:$0xff] }
 0x3b7   :  { %11665 = vst [vmem:[#allocation73_spill] sm:$0xff] %v10092_v27  ;;  %11667 = vst [vmem:[#allocation82_spill] sm:$0xff] %v10102_v56  ;;  %v3942_v58 = vmul.f32 %v5107_v49, %v5107_v49  ;;  %v4138_v47 = vadd.f32 %v4137_v43, %v4136_v29  ;;  %v3954_v31 = vmul.f32 2.0, %v3880_v21  ;;  %v3955_v15 = vmul.f32 2.0, %v3887_v57  ;;  %v11675_v29 = vld [vmem:[#allocation23_spill] sm:$0xff]  ;;  %v11676_v21 = vld [vmem:[#allocation8_spill] sm:$0xff] }
 0x3b8   :  { %11668 = vst [vmem:[#allocation83_spill] sm:$0xff] %v10104_v62  ;;  %v3956_v20 = vmul.f32 2.0, %v3894_v25  ;;  %v4128_v40 = vrot.slane %v4127_v59, 1  ;;  %v3958_v33 = vmul.f32 %v5107_v49, %v11669_v13  ;;  %v4149_v38 = vadd.f32 %v4148_v5, %v4147_v23  ;;  %v11678_v43 = vld [vmem:[#allocation9_spill] sm:$0xff]  ;;  %v11679_v23 = vld [vmem:[#allocation68_spill] sm:$0xff]  ;;  %v11680_v25 = vld [vmem:[#allocation10_spill] sm:$0xff] }
 0x3b9   :  { %v4163_v14 = vmul.f32 %v11671_v12, %v11670_v22  ;;  %v4167_v42 = vmul.f32 %v11673_v6, %v11672_v9  ;;  %5112 = vrcp.f32 %v3933_v18  ;;  %v3943_v7 = vmul.f32 %v5109_v46, %v5109_v46  ;;  %v11682_v18 = vld [vmem:[#allocation12_spill] sm:$0xff]  ;;  %v11683_v22 = vld [vmem:[#allocation63_spill] sm:$0xff] }
 0x3ba   :  { %v3959_v0 = vmul.f32 %v5109_v46, %v11674_v10  ;;  %v4159_v28 = vrot.slane %v4158_v4, 2  ;;  %v3946_v30 = vmul.f32 %v3942_v58, %v11675_v29  ;;  %v4139_v24 = vrot.slane %v4138_v47, 1  ;;  %v11684_v46 = vld [vmem:[#allocation13_spill] sm:$0xff]  ;;  %v11685_v9 = vld [vmem:[#allocation4_spill] sm:$0xff]  ;;  %v11686_v58 = vld [vmem:[#allocation14_spill] sm:$0xff] }
 0x3bb   :  { %v5111_v19 = vpop.eup %5110  ;;  %v4164_v11 = vmul.f32 %v11677_v39, %v11676_v21  ;;  %v4165_v49 = vmul.f32 %v11679_v23, %v11678_v43  ;;  %v10118_v57 = vadd.f32 %v4128_v40, %v4127_v59  ;;  %v4166_v5 = vmul.f32 %v11681_v53, %v11680_v25  ;;  %v11687_v29 = vld [vmem:[#allocation67_spill] sm:$0xff]  ;;  %v11689_v21 = vld [vmem:[#allocation77_spill] sm:$0xff]  ;;  %v11690_v25 = vld [vmem:[#allocation22_spill] sm:$0xff] }
 0x3bc   :  { %v4168_v12 = vmul.f32 %v11683_v22, %v11682_v18  ;;  %v4169_v6 = vmul.f32 %v11685_v9, %v11684_v46  ;;  %v4150_v32 = vrot.slane %v4149_v38, 1  ;;  %v4170_v8 = vmul.f32 %v11687_v29, %v11686_v58  ;;  %v11691_v18 = vld [vmem:[#allocation19_spill] sm:$0xff]  ;;  %v11692_v22 = vld [vmem:[#allocation58_spill] sm:$0xff]  ;;  %v11693_v9 = vld [vmem:[#allocation44_spill] sm:$0xff] }
 0x3bd   :  { %v4171_v39 = vmul.f32 %v11689_v21, %v11688_v17  ;;  %v4187_v45 = vadd.f32 %v4167_v42, %v4163_v14  ;;  %v3944_v43 = vmul.f32 %v5111_v19, %v5111_v19  ;;  %v3947_v59 = vmul.f32 %v3943_v7, %v9729_v3  ;;  %v11694_v27 = vld [vmem:[#allocation71_spill] sm:$0xff]  ;;  %v11695_v58 = vld [vmem:[#allocation45_spill] sm:$0xff]  ;;  %v11700_v21 = vld [vmem:[#allocation24_spill] sm:$0xff] }
 0x3be   :  { %v3962_v40 = vmul.f32 %v3958_v33, %v3954_v31  ;;  %v4160_v23 = vadd.f32 %v4159_v28, %v4158_v4  ;;  %v3950_v53 = vadd.f32 %v3946_v30, %v11690_v25  ;;  %v10132_v2 = vadd.f32 %v4139_v24, %v4138_v47  ;;  %v11696_v29 = vld [vmem:[#allocation69_spill] sm:$0xff]  ;;  %v11697_v4 = vld [vmem:[#allocation46_spill] sm:$0xff] }
 0x3bf   :  { %v4172_v46 = vmul.f32 %v11692_v22, %v11691_v18  ;;  %v4173_v62 = vmul.f32 %v11694_v27, %v11693_v9  ;;  %v4174_v56 = vmul.f32 %v11696_v29, %v11695_v58  ;;  %v4198_v17 = vadd.f32 %v4168_v12, %v4164_v11  ;;  %v11698_v31 = vld [vmem:[#allocation66_spill] sm:$0xff]  ;;  %v11699_v28 = vld [vmem:[#allocation17_spill] sm:$0xff]  ;;  %v11702_v12 = vld [vmem:[#allocation60_spill] sm:$0xff] }
 0x3c0   :  { %v4209_v14 = vadd.f32 %v4169_v6, %v4165_v49  ;;  %5114 = vrsqrt.f32 %v10118_v57  ;;  %v10141_v3 = vadd.f32 %v4150_v32, %v4149_v38  ;;  %v4175_v33 = vmul.f32 %v11698_v31, %v11697_v4  ;;  %v11701_v49 = vld [vmem:[#allocation47_spill] sm:$0xff]  ;;  %v11703_v38 = vld [vmem:[#allocation48_spill] sm:$0xff]  ;;  %v11704_v6 = vld [vmem:[#allocation5_spill] sm:$0xff] }
 0x3c1   :  { %v4188_v47 = vadd.f32 %v4187_v45, %v4171_v39  ;;  %v4220_v42 = vadd.f32 %v4170_v8, %v4166_v5  ;;  %v3948_v7 = vmul.f32 %v3944_v43, %v9747_v41  ;;  %v3960_v30 = vmul.f32 %v5111_v19, %v11699_v28  ;;  %v11705_v45 = vld [vmem:[#allocation49_spill] sm:$0xff]  ;;  %v11706_v8 = vld [vmem:[#allocation75_spill] sm:$0xff] }
 0x3c2   :  { %v10147_v24 = vmul.f32 %v3959_v0, %v3955_v15  ;;  %v4161_v27 = vrot.slane %v4160_v23, 1  ;;  %v10150_v18 = vadd.f32 %v3947_v59, %v11700_v21  ;;  %v3966_v11 = vsub.f32 %v3950_v53, %v3962_v40  ;;  %v11707_v15 = vld [vmem:[#allocation50_spill] sm:$0xff]  ;;  %v11708_v0 = vld [vmem:[#allocation65_spill] sm:$0xff]  ;;  %v11713_v31 = vld [vmem:[#allocation79_spill] sm:$0xff] }
 0x3c3   :  { %v4176_v32 = vmul.f32 %v11702_v12, %v11701_v49  ;;  %v4177_v22 = vmul.f32 %v11704_v6, %v11703_v38  ;;  %v10156_v9 = vpop.eup %5112  ;;  %v4178_v41 = vmul.f32 %v11706_v8, %v11705_v45  ;;  %v4199_v5 = vadd.f32 %v4198_v17, %v4172_v46  ;;  %v11711_v46 = vld [vmem:[#allocation26_spill] sm:$0xff]  ;;  %v11719_v45 = vld [vmem:[#allocation80_spill] sm:$0xff] }
 0x3c4   :  { %v4210_v19 = vadd.f32 %v4209_v14, %v4173_v62  ;;  %5116 = vrsqrt.f32 %v10132_v2  ;;  %v4179_v39 = vmul.f32 %v11708_v0, %v11707_v15  ;;  %v4189_v43 = vadd.f32 %v4188_v47, %v4175_v33  ;;  %v11714_v33 = vld [vmem:[#allocation52_spill] sm:$0xff] }
 0x3c5   :  { %v4221_v59 = vadd.f32 %v4220_v42, %v4174_v56  ;;  %5118 = vrsqrt.f32 %v10141_v3  ;;  %v11709_v40 = vsub.f32 2.0, %v10085_v16  ;;  %v10168_v58 = vmul.f32 2.0, %v3901_v35  ;;  %v11712_v16 = vld [vmem:[#allocation51_spill] sm:$0xff]  ;;  %v4747_v42 = vld [vmem:[%s10575_s4 + $0xe0] sm:$0xff] }
 0x3c6   :  { %v10170_v29 = vmul.f32 %v3960_v30, %v3956_v20  ;;  %v10172_v4 = vadd.f32 %v4161_v27, %v4160_v23  ;;  %v10176_v62 = vmul.f32 %v10156_v9, %v10156_v9  ;;  %v10179_v17 = vadd.f32 %v3948_v7, %v11711_v46  ;;  %v4748_v7 = vld [vmem:[%s10575_s4 + $0xe8] sm:$0xff]  ;;  %v11715_v30 = vld [vmem:[#allocation53_spill] sm:$0xff] }
 0x3c7   :  { %v10166_v53 = vmul.f32 0.5, %v11709_v40  ;;  %v10183_v14 = vmax.f32 %v3966_v11, 0.0  ;;  %v4180_v35 = vmul.f32 %v11713_v31, %v11712_v16  ;;  %v4181_v20 = vmul.f32 %v9924_v37, %v11714_v33  ;;  %v11716_v11 = vld [vmem:[#allocation54_spill] sm:$0xff]  ;;  %v11717_v37 = vld [vmem:[#allocation55_spill] sm:$0xff] }
 0x3c8   :  { %v4200_v23 = vadd.f32 %v4199_v5, %v4176_v32  ;;  %v4211_v47 = vadd.f32 %v4210_v19, %v4177_v22  ;;  %v4182_v27 = vmul.f32 %v9940_v52, %v11715_v30  ;;  %v4183_v49 = vmul.f32 %v9942_v60, %v11716_v11  ;;  %v11718_v22 = vld [vmem:[#allocation27_spill] sm:$0xff]  ;;  %v11720_v5 = vld [vmem:[#allocation30_spill] sm:$0xff]  ;;  %v4749_v60 = vld [vmem:[%s10575_s4 + $0xf0] sm:$0xff] }
 0x3c9   :  { %11710 = vst [vmem:[#allocation40_spill] sm:$0xff] %v10166_v53  ;;  %v4190_v12 = vadd.f32 %v4189_v43, %v4179_v39  ;;  %v4222_v38 = vadd.f32 %v4221_v59, %v4178_v41  ;;  %v4184_v32 = vmul.f32 %v9944_v34, %v11717_v37  ;;  %v4185_v8 = vmul.f32 %v11719_v45, %v11718_v22  ;;  %v4750_v52 = vld [vmem:[%s10575_s4 + $0xf8] sm:$0xff] }
 0x3ca   :  { %v5115_v6 = vpop.eup %5114  ;;  %v4186_v19 = vmul.f32 %v9950_v54, %v11720_v5  ;;  %5120 = vrsqrt.f32 %v10172_v4  ;;  %vm4233_vm4 = vcmp.eq.f32.partialorder %v10118_v57, inf  ;;  %v10213_v41 = vunpack.c.l.bf16 %v4747_v42 }
 0x3cb   :  { %v10215_v34 = vunpack.c.h.bf16 %v4747_v42  ;;  %v10217_v15 = vunpack.c.l.bf16 %v4748_v7  ;;  %v4201_v0 = vadd.f32 %v4200_v23, %v4180_v35  ;;  %v4212_v54 = vadd.f32 %v4211_v47, %v4181_v20 }
 0x3cc   :  { %vm4235_vm5 = vcmp.eq.f32.partialorder %v10118_v57, 0.0  ;;  %v4236_v39 = vand.u32 2147483648, %v10118_v57  ;;  %vm4240_vm6 = vcmp.eq.f32.partialorder %v10132_v2, inf  ;;  %v4191_v43 = vadd.f32 %v4190_v12, %v4183_v49 }
 0x3cd   :  { %v4223_v59 = vadd.f32 %v4222_v38, %v4182_v27  ;;  %v4232_v40 = vmul.f32 %v5115_v6, %v10118_v57  ;;  %v4243_v16 = vand.u32 2147483648, %v10132_v2  ;;  %vm4242_vm7 = vcmp.eq.f32.partialorder %v10132_v2, 0.0 }
 0x3ce   :  { %v5117_v31 = vpop.eup %5116  ;;  %vm4247_vm8 = vcmp.eq.f32.partialorder %v10141_v3, inf  ;;  %v10226_v33 = vunpack.c.l.bf16 %v4749_v60  ;;  %v10228_v35 = vunpack.c.h.bf16 %v4749_v60  ;;  %v10230_v20 = vunpack.c.l.bf16 %v4750_v52 }
 0x3cf   :  { %v5119_v23 = vpop.eup %5118  ;;  %v10232_v47 = vunpack.c.h.bf16 %v4748_v7  ;;  %v4352_v42 = vmul.f32 %v10213_v41, %v10213_v41  ;;  %v4353_v30 = vmul.f32 %v10215_v34, %v10215_v34  ;;  %v4354_v27 = vmul.f32 %v10217_v15, %v10217_v15 }
 0x3d0   :  { %v4202_v11 = vadd.f32 %v4201_v0, %v4184_v32  ;;  %v4213_v49 = vadd.f32 %v4212_v54, %v4185_v8  ;;  %vm4249_vm9 = vcmp.eq.f32.partialorder %v10141_v3, 0.0  ;;  %v10241_v12 = vunpack.c.h.bf16 %v4750_v52 }
 0x3d1   :  { %v4192_v38 = vrot.slane %v4191_v43, 4  ;;  %v4224_v6 = vadd.f32 %v4223_v59, %v4186_v19  ;;  %v4234_v7 = vsel %vm4233_vm4, %v10118_v57, %v4232_v40  ;;  %v4239_v37 = vmul.f32 %v5117_v31, %v10132_v2 }
 0x3d2   :  { %v4246_v22 = vmul.f32 %v5119_v23, %v10141_v3  ;;  %v4356_v45 = vmul.f32 %v10226_v33, %v10226_v33  ;;  %v4357_v32 = vmul.f32 %v10228_v35, %v10228_v35  ;;  %v4358_v8 = vmul.f32 %v10230_v20, %v10230_v20 }
 0x3d3   :  { %v4355_v5 = vmul.f32 %v10232_v47, %v10232_v47  ;;  %v4360_v19 = vmul.f32 %v11599_v44, %v4352_v42  ;;  %v4361_v60 = vmul.f32 %v5379_v50, %v4353_v30  ;;  %v4362_v52 = vmul.f32 %v5381_v51, %v4354_v27 }
 0x3d4   :  { %v5121_v0 = vpop.eup %5120  ;;  %v4359_v54 = vmul.f32 %v10241_v12, %v10241_v12  ;;  %v4364_v59 = vmul.f32 %v11008_v48, %v4356_v45  ;;  %v4365_v40 = vmul.f32 %v11446_v1, %v4357_v32  ;;  %v4366_v31 = vmul.f32 %v5389_v61, %v4358_v8 }
 0x3d5   :  { %v4203_v23 = vrot.slane %v4202_v11, 4  ;;  %v4214_v56 = vrot.slane %v4213_v49, 4  ;;  %v4225_v53 = vrot.slane %v4224_v6, 4  ;;  %v4250_v46 = vand.u32 2147483648, %v10141_v3 }
 0x3d6   :  { %v4241_v50 = vsel %vm4240_vm6, %v10132_v2, %v4239_v37  ;;  %v4368_v51 = vadd.f32 %v4364_v59, %v4360_v19  ;;  %v4375_v44 = vadd.f32 %v4365_v40, %v4361_v60  ;;  %v4382_v42 = vadd.f32 %v4366_v31, %v4362_v52  ;;  %v11721_v31 = vld [vmem:[#allocation43_spill] sm:$0xff] }
 0x3d7   :  { %v4193_v30 = vadd.f32 %v4192_v38, %v4191_v43  ;;  %v4237_v48 = vsel %vm4235_vm5, %v4236_v39, %v4234_v7  ;;  %v4248_v61 = vsel %vm4247_vm8, %v10141_v3, %v4246_v22  ;;  %v4253_v1 = vmul.f32 %v5121_v0, %v10172_v4 }
 0x3d8   :  { %v4363_v27 = vmul.f32 %v5383_v55, %v4355_v5  ;;  %v4367_v45 = vmul.f32 %v5394_v63, %v4359_v54  ;;  %v4369_v32 = vrot.slane %v4368_v51, 4  ;;  %v4376_v8 = vrot.slane %v4375_v44, 4 }
 0x3d9   :  { %v4204_v37 = vadd.f32 %v4203_v23, %v4202_v11  ;;  %v4244_v19 = vsel %vm4242_vm7, %v4243_v16, %v4241_v50  ;;  %vm4254_vm10 = vcmp.eq.f32.partialorder %v10172_v4, inf  ;;  %v4383_v43 = vrot.slane %v4382_v42, 4 }
 0x3da   :  { %vm4256_vm11 = vcmp.eq.f32.partialorder %v10172_v4, 0.0  ;;  %v4257_v39 = vand.u32 2147483648, %v10172_v4  ;;  %v4370_v38 = vadd.f32 %v4369_v32, %v4368_v51  ;;  %v4377_v7 = vadd.f32 %v4376_v8, %v4375_v44 }
 0x3db   :  { %v4215_v22 = vadd.f32 %v4214_v56, %v4213_v49  ;;  %v4226_v60 = vadd.f32 %v4225_v53, %v4224_v6  ;;  %v4251_v55 = vsel %vm4249_vm9, %v4250_v46, %v4248_v61  ;;  %v4259_v63 = vadd.f32 1e-08, %v4237_v48 }
 0x3dc   :  { %v4194_v5 = vrot.slane %v4193_v30, 2  ;;  %v4255_v11 = vsel %vm4254_vm10, %v10172_v4, %v4253_v1  ;;  %v4260_v52 = vadd.f32 1e-08, %v4244_v19  ;;  %v4389_v16 = vadd.f32 %v4367_v45, %v4363_v27 }
 0x3dd   :  { %v4205_v0 = vrot.slane %v4204_v37, 2  ;;  %v4371_v54 = vrot.slane %v4370_v38, 2  ;;  %v4378_v59 = vrot.slane %v4377_v7, 2  ;;  %v4384_v40 = vadd.f32 %v4383_v43, %v4382_v42 }
 0x3de   :  { %v3961_v23 = vmul.f32 %v10156_v9, %v11721_v31  ;;  %v3968_v56 = vsub.f32 %v10179_v17, %v10170_v29  ;;  %v11722_v53 = vsub.f32 %v10150_v18, %v10147_v24  ;;  %v4261_v49 = vadd.f32 1e-08, %v4251_v55 }
 0x3df   :  { %v3949_v6 = vmul.f32 %v10176_v62, %v9820_v26  ;;  %v4258_v50 = vsel %vm4256_vm11, %v4257_v39, %v4255_v11  ;;  %5122 = vrcp.f32 %v4259_v63  ;;  %v4372_v51 = vadd.f32 %v4371_v54, %v4370_v38  ;;  %v11724_v62 = vld [vmem:[#allocation31_spill] sm:$0xff]  ;;  %v11728_v54 = vld [vmem:[#allocation42_spill] sm:$0xff] }
 0x3e0   :  { %v10291_v46 = vmax.f32 %v11722_v53, 0.0  ;;  %v4216_v44 = vrot.slane %v4215_v22, 2  ;;  %5124 = vrcp.f32 %v4260_v52  ;;  %v4379_v9 = vadd.f32 %v4378_v59, %v4377_v7  ;;  %v11725_v7 = vld [vmem:[#allocation2_spill] sm:$0xff]  ;;  %v11727_v52 = vld [vmem:[#allocation41_spill] sm:$0xff] }
 0x3e1   :  { %v4390_v42 = vrot.slane %v4389_v16, 4  ;;  %v4195_v48 = vadd.f32 %v4194_v5, %v4193_v30  ;;  %v4206_v29 = vadd.f32 %v4205_v0, %v4204_v37  ;;  %v4227_v17 = vrot.slane %v4226_v60, 2 }
 0x3e2   :  { %v4385_v61 = vrot.slane %v4384_v40, 2  ;;  %v11723_v24 = vsub.f32 2.0, %v10088_v36  ;;  %v4262_v1 = vadd.f32 1e-08, %v4258_v50  ;;  %5126 = vrcp.f32 %v4261_v49 }
 0x3e3   :  { %v4373_v26 = vrot.slane %v4372_v51, 1  ;;  %v3953_v27 = vadd.f32 %v3949_v6, %v11724_v62  ;;  %v3965_v45 = vmul.f32 %v3961_v23, %v10168_v58  ;;  %5128 = vrsqrt.f32 %v10183_v14  ;;  %v11726_v58 = vld [vmem:[#allocation35_spill] sm:$0xff]  ;;  %v11730_v23 = vld [vmem:[#allocation33_spill] sm:$0xff] }
 0x3e4   :  { %v10299_v18 = vmul.f32 0.5, %v11723_v24  ;;  %v4386_v32 = vadd.f32 %v4385_v61, %v4384_v40  ;;  %v10304_v8 = vmax.f32 %v3968_v56, 0.0  ;;  %5130 = vrsqrt.f32 %v10291_v46 }
 0x3e5   :  { %v4380_v30 = vrot.slane %v4379_v9, 1  ;;  %v4391_v37 = vadd.f32 %v4390_v42, %v4389_v16  ;;  %v4196_v19 = vrot.slane %v4195_v48, 1  ;;  %v4207_v36 = vrot.slane %v4206_v29, 1 }
 0x3e6   :  { %v4217_v43 = vadd.f32 %v4216_v44, %v4215_v22  ;;  %v4228_v39 = vadd.f32 %v4227_v17, %v4226_v60  ;;  %5132 = vrcp.f32 %v4262_v1  ;;  %v10307_v38 = vadd.f32 %v4373_v26, %v4372_v51  ;;  %v11729_v60 = vld [vmem:[#allocation21_spill] sm:$0xff] }
 0x3e7   :  { %v4396_v55 = vmul.f32 %v10213_v41, %v11725_v7  ;;  %v4400_v63 = vmul.f32 %v10226_v33, %v11726_v58  ;;  %v3969_v5 = vsub.f32 %v3953_v27, %v3965_v45  ;;  %v4387_v11 = vrot.slane %v4386_v32, 1  ;;  %v11733_v58 = vld [vmem:[#allocation29_spill] sm:$0xff] }
 0x3e8   :  { %v4397_v0 = vmul.f32 %v10215_v34, %v11727_v52  ;;  %v4401_v16 = vmul.f32 %v10228_v35, %v11728_v54  ;;  %v10317_v59 = vadd.f32 %v4380_v30, %v4379_v9  ;;  %v4392_v22 = vrot.slane %v4391_v37, 2  ;;  %v11731_v30 = vld [vmem:[#allocation28_spill] sm:$0xff] }
 0x3e9   :  { %v4398_v40 = vmul.f32 %v10217_v15, %v11729_v60  ;;  %v4402_v41 = vmul.f32 %v10230_v20, %v11730_v23  ;;  %v5123_v56 = vpop.eup %5122  ;;  %v3979_v33 = vand.u32 2147483648, %v10183_v14  ;;  %v4197_v53 = vadd.f32 %v4196_v19, %v4195_v48 }
 0x3ea   :  { %v4218_v49 = vrot.slane %v4217_v43, 1  ;;  %v4229_v6 = vrot.slane %v4228_v39, 1  ;;  %v5125_v50 = vpop.eup %5124  ;;  %v3986_v34 = vand.u32 2147483648, %v10291_v46  ;;  %v4208_v51 = vadd.f32 %v4207_v36, %v4206_v29  ;;  %v11732_v36 = vld [vmem:[#allocation16_spill] sm:$0xff] }
 0x3eb   :  { %v4404_v35 = vadd.f32 %v4400_v63, %v4396_v55  ;;  %5134 = vrsqrt.f32 %v10307_v38  ;;  %v10326_v44 = vmax.f32 %v3969_v5, 0.0  ;;  %v10329_v15 = vadd.f32 %v4387_v11, %v4386_v32  ;;  %v11734_v11 = vld [vmem:[#allocation20_spill] sm:$0xff] }
 0x3ec   :  { %5136 = vrsqrt.f32 %v10304_v8  ;;  %v4411_v20 = vadd.f32 %v4401_v16, %v4397_v0  ;;  %v5127_v9 = vpop.eup %5126  ;;  %v4271_v42 = vmul.f32 %v5123_v56, %v5123_v56  ;;  %v4393_v17 = vadd.f32 %v4392_v22, %v4391_v37 }
 0x3ed   :  { %v4418_v48 = vadd.f32 %v4402_v41, %v4398_v40  ;;  %5138 = vrsqrt.f32 %v10317_v59  ;;  %v5129_v61 = vpop.eup %5128  ;;  %v4219_v24 = vadd.f32 %v4218_v49, %v4217_v43  ;;  %v4230_v1 = vadd.f32 %v4229_v6, %v4228_v39  ;;  %v11735_v40 = vld [vmem:[#allocation32_spill] sm:$0xff] }
 0x3ee   :  { %v4272_v29 = vmul.f32 %v5125_v50, %v5125_v50  ;;  %v4283_v26 = vmul.f32 2.0, %v4197_v53  ;;  %v5131_v27 = vpop.eup %5130  ;;  %v4284_v45 = vmul.f32 2.0, %v4208_v51  ;;  %v4287_v19 = vmul.f32 %v5123_v56, %v11731_v30 }
 0x3ef   :  { %v4399_v32 = vmul.f32 %v10232_v47, %v11732_v36  ;;  %v4405_v7 = vrot.slane %v4404_v35, 4  ;;  %v4273_v55 = vmul.f32 %v5127_v9, %v5127_v9  ;;  %v4288_v63 = vmul.f32 %v5125_v50, %v11733_v58  ;;  %v11736_v50 = vld [vmem:[#allocation36_spill] sm:$0xff] }
 0x3f0   :  { %v4412_v37 = vrot.slane %v4411_v20, 4  ;;  %5140 = vrsqrt.f32 %v10329_v15  ;;  %v5133_v5 = vpop.eup %5132  ;;  %v4275_v43 = vmul.f32 %v4271_v42, %v10118_v57  ;;  %v4394_v39 = vrot.slane %v4393_v17, 1 }
 0x3f1   :  { %v4403_v52 = vmul.f32 %v10241_v12, %v11734_v11  ;;  %v4419_v0 = vrot.slane %v4418_v48, 4  ;;  %v10341_v54 = vmul.f32 %v5129_v61, %v10183_v14  ;;  %v10344_v47 = vmul.f32 %v5131_v27, %v10291_v46 }
 0x3f2   :  { %v4276_v16 = vmul.f32 %v4272_v29, %v10132_v2  ;;  %v4285_v22 = vmul.f32 2.0, %v4219_v24  ;;  %v10347_v60 = vmul.f32 2.0, %v4230_v1  ;;  %v4289_v23 = vmul.f32 %v5127_v9, %v11735_v40  ;;  %v11737_v1 = vld [vmem:[#allocation37_spill] sm:$0xff] }
 0x3f3   :  { %v10350_v41 = vmul.f32 %v4287_v19, %v4283_v26  ;;  %v4406_v57 = vadd.f32 %v4405_v7, %v4404_v35  ;;  %v4274_v56 = vmul.f32 %v5133_v5, %v5133_v5  ;;  %v4277_v12 = vmul.f32 %v4273_v55, %v10141_v3 }
 0x3f4   :  { %v10353_v53 = vmul.f32 %v4288_v63, %v4284_v45  ;;  %v4413_v49 = vadd.f32 %v4412_v37, %v4411_v20  ;;  %v4279_v51 = vadd.f32 %v4275_v43, %v11736_v50  ;;  %v10356_v42 = vadd.f32 %v4394_v39, %v4393_v17  ;;  %v11738_v43 = vld [vmem:[#allocation38_spill] sm:$0xff] }
 0x3f5   :  { %v5135_v6 = vpop.eup %5134  ;;  %v4420_v2 = vadd.f32 %v4419_v0, %v4418_v48  ;;  %v4425_v61 = vadd.f32 %v4403_v52, %v4399_v32  ;;  %v4280_v9 = vadd.f32 %v4276_v16, %v11737_v1  ;;  %vm4434_vm12 = vcmp.eq.f32.partialorder %v10307_v38, inf }
 0x3f6   :  { %v10358_v24 = vpop.eup %5136  ;;  %vm4436_vm13 = vcmp.eq.f32.partialorder %v10307_v38, 0.0  ;;  %v4437_v3 = vand.u32 2147483648, %v10307_v38  ;;  %vm3976_vm15 = vcmp.eq.f32.partialorder %v10183_v14, inf  ;;  %vm3983_vm0 = vcmp.eq.f32.partialorder %v10291_v46, inf }
 0x3f7   :  { %v5139_v35 = vpop.eup %5138  ;;  %v4407_v20 = vrot.slane %v4406_v57, 2  ;;  %v4433_v17 = vmul.f32 %v5135_v6, %v10307_v38  ;;  %vm4441_vm2 = vcmp.eq.f32.partialorder %v10317_v59, inf  ;;  %v4444_v48 = vand.u32 2147483648, %v10317_v59 }
 0x3f8   :  { %v4293_v29 = vmul.f32 %v4289_v23, %v4285_v22  ;;  %v4414_v26 = vrot.slane %v4413_v49, 2  ;;  %v4440_v27 = vmul.f32 %v5139_v35, %v10317_v59  ;;  %vm4443_vm3 = vcmp.eq.f32.partialorder %v10317_v59, 0.0  ;;  %v11739_v22 = vld [vmem:[#allocation34_spill] sm:$0xff] }
 0x3f9   :  { %v4421_v45 = vrot.slane %v4420_v2, 2  ;;  %v4426_v30 = vrot.slane %v4425_v61, 4  ;;  %v4435_v19 = vsel %vm4434_vm12, %v10307_v38, %v4433_v17  ;;  %5142 = vrsqrt.f32 %v10356_v42 }
 0x3fa   :  { %v5141_v36 = vpop.eup %5140  ;;  %vm3978_vm14 = vcmp.eq.f32.partialorder %v10183_v14, 0.0  ;;  %v4438_v32 = vsel %vm4436_vm13, %v4437_v3, %v4435_v19  ;;  %v4442_v7 = vsel %vm4441_vm2, %v10317_v59, %v4440_v27  ;;  %vm4448_vm4 = vcmp.eq.f32.partialorder %v10329_v15, inf }
 0x3fb   :  { %v4451_v55 = vand.u32 2147483648, %v10329_v15  ;;  %v4408_v58 = vadd.f32 %v4407_v20, %v4406_v57  ;;  %v4445_v63 = vsel %vm4443_vm3, %v4444_v48, %v4442_v7  ;;  %v4447_v37 = vmul.f32 %v5141_v36, %v10329_v15 }
 0x3fc   :  { %vm4450_vm5 = vcmp.eq.f32.partialorder %v10329_v15, 0.0  ;;  %vm3985_vm6 = vcmp.eq.f32.partialorder %v10291_v46, 0.0  ;;  %v4281_v39 = vadd.f32 %v4277_v12, %v11738_v43  ;;  %v4415_v11 = vadd.f32 %v4414_v26, %v4413_v49 }
 0x3fd   :  { %v4460_v52 = vadd.f32 1e-08, %v4438_v32  ;;  %v4461_v0 = vadd.f32 1e-08, %v4445_v63  ;;  %v4278_v16 = vmul.f32 %v4274_v56, %v10172_v4  ;;  %v4290_v40 = vmul.f32 %v5133_v5, %v11739_v22  ;;  %v11740_v5 = vld [vmem:[#allocation39_spill] sm:$0xff] }
 0x3fe   :  { %v4295_v23 = vsub.f32 %v4279_v51, %v10350_v41  ;;  %v4449_v57 = vsel %vm4448_vm4, %v10329_v15, %v4447_v37  ;;  %v4296_v6 = vsub.f32 %v4280_v9, %v10353_v53  ;;  %v4422_v50 = vadd.f32 %v4421_v45, %v4420_v2 }
 0x3ff   :  { %v4452_v1 = vsel %vm4450_vm5, %v4451_v55, %v4449_v57  ;;  %5144 = vrcp.f32 %v4460_v52  ;;  %v4409_v3 = vrot.slane %v4408_v58, 1  ;;  %v4427_v35 = vadd.f32 %v4426_v30, %v4425_v61 }
 0x400   :  { %v4462_v20 = vadd.f32 1e-08, %v4452_v1  ;;  %5146 = vrcp.f32 %v4461_v0  ;;  %vm3990_vm7 = vcmp.eq.f32.partialorder %v10304_v8, inf  ;;  %v4297_v4 = vsub.f32 %v4281_v39, %v4293_v29 }
 0x401   :  { %5148 = vrsqrt.f32 %v10326_v44  ;;  %v4416_v56 = vrot.slane %v4415_v11, 1  ;;  %v4282_v12 = vadd.f32 %v4278_v16, %v11740_v5  ;;  %v4294_v41 = vmul.f32 %v4290_v40, %v10347_v60 }
 0x402   :  { %v10394_v49 = vmax.f32 %v4295_v23, 0.0  ;;  %5150 = vrcp.f32 %v4462_v20  ;;  %v3977_v53 = vsel %vm3976_vm15, %v10183_v14, %v10341_v54  ;;  %v3984_v51 = vsel %vm3983_vm0, %v10291_v46, %v10344_v47 }
 0x403   :  { %vm3992_vm8 = vcmp.eq.f32.partialorder %v10304_v8, 0.0  ;;  %v10405_v2 = vmax.f32 %v4296_v6, 0.0  ;;  %v4423_v61 = vrot.slane %v4422_v50, 1  ;;  %v5143_v9 = vpop.eup %5142  ;;  %v4410_v60 = vadd.f32 %v4409_v3, %v4408_v58 }
 0x404   :  { %v4428_v17 = vrot.slane %v4427_v35, 2  ;;  %vm4455_vm9 = vcmp.eq.f32.partialorder %v10356_v42, inf  ;;  %v4458_v48 = vand.u32 2147483648, %v10356_v42  ;;  %v10409_v29 = vmax.f32 %v4297_v4, 0.0 }
 0x405   :  { %v4417_v54 = vadd.f32 %v4416_v56, %v4415_v11  ;;  %v4454_v26 = vmul.f32 %v5143_v9, %v10356_v42  ;;  %vm4457_vm10 = vcmp.eq.f32.partialorder %v10356_v42, 0.0  ;;  %v3980_v47 = vsel %vm3978_vm14, %v3979_v33, %v3977_v53 }
 0x406   :  { %v3989_v27 = vmul.f32 %v10358_v24, %v10304_v8  ;;  %v4298_v45 = vsub.f32 %v4282_v12, %v4294_v41  ;;  %5152 = vrsqrt.f32 %v10394_v49  ;;  %v3993_v30 = vand.u32 2147483648, %v10304_v8 }
 0x407   :  { %5154 = vrsqrt.f32 %v10405_v2  ;;  %v4424_v19 = vadd.f32 %v4423_v61, %v4422_v50  ;;  %v4456_v36 = vsel %vm4455_vm9, %v10356_v42, %v4454_v26  ;;  %v3987_v32 = vsel %vm3985_vm6, %v3986_v34, %v3984_v51 }
 0x408   :  { %v4429_v14 = vadd.f32 %v4428_v17, %v4427_v35  ;;  %v4459_v33 = vsel %vm4457_vm10, %v4458_v48, %v4456_v36  ;;  %v4484_v7 = vmul.f32 2.0, %v4410_v60  ;;  %v4002_v24 = vsub.f32 2.0, %v3980_v47 }
 0x409   :  { %v5145_v55 = vpop.eup %5144  ;;  %5156 = vrsqrt.f32 %v10409_v29  ;;  %v4463_v58 = vadd.f32 1e-08, %v4459_v33  ;;  %v4485_v63 = vmul.f32 2.0, %v4417_v54  ;;  %v3991_v43 = vsel %vm3990_vm7, %v10304_v8, %v3989_v27 }
 0x40a   :  { %v5147_v37 = vpop.eup %5146  ;;  %v10431_v39 = vmax.f32 %v4298_v45, 0.0  ;;  %v4472_v11 = vmul.f32 %v5145_v55, %v5145_v55  ;;  %v4488_v46 = vmul.f32 %v5145_v55, %v11669_v13  ;;  %v4486_v0 = vmul.f32 2.0, %v4424_v19 }
 0x40b   :  { %v5149_v34 = vpop.eup %5148  ;;  %5158 = vrcp.f32 %v4463_v58  ;;  %v4473_v52 = vmul.f32 %v5147_v37, %v5147_v37  ;;  %v4489_v16 = vmul.f32 %v5147_v37, %v11674_v10  ;;  %v4003_v40 = vsub.f32 2.0, %v3987_v32 }
 0x40c   :  { %v5151_v22 = vpop.eup %5150  ;;  %v4430_v23 = vrot.slane %v4429_v14, 1  ;;  %v4476_v57 = vmul.f32 %v4472_v11, %v10307_v38  ;;  %v4492_v6 = vmul.f32 %v4488_v46, %v4484_v7  ;;  %v3994_v13 = vsel %vm3992_vm8, %v3993_v30, %v3991_v43 }
 0x40d   :  { %v4474_v50 = vmul.f32 %v5151_v22, %v5151_v22  ;;  %v4477_v1 = vmul.f32 %v4473_v52, %v10317_v59  ;;  %v4490_v3 = vmul.f32 %v5151_v22, %v11699_v28  ;;  %v4493_v35 = vmul.f32 %v4489_v16, %v4485_v63  ;;  %v11741_v28 = vld [vmem:[#allocation82_spill] sm:$0xff] }
 0x40e   :  { %v3996_v20 = vmul.f32 %v5149_v34, %v10326_v44  ;;  %v4006_v4 = vmul.f32 0.5, %v4002_v24  ;;  %v4480_v10 = vadd.f32 %v4476_v57, %v11690_v25  ;;  %5160 = vrsqrt.f32 %v10431_v39  ;;  %v11742_v25 = vld [vmem:[#allocation26_spill] sm:$0xff]  ;;  %v11744_v34 = vld [vmem:[#allocation40_spill] sm:$0xff] }
 0x40f   :  { %v4478_v56 = vmul.f32 %v4474_v50, %v10329_v15  ;;  %v4481_v38 = vadd.f32 %v4477_v1, %v11700_v21  ;;  %v4494_v5 = vmul.f32 %v4490_v3, %v4486_v0  ;;  %vm3997_vm11 = vcmp.eq.f32.partialorder %v10326_v44, inf  ;;  %v11745_v57 = vld [vmem:[#allocation70_spill] sm:$0xff] }
 0x410   :  { %v5153_v12 = vpop.eup %5152  ;;  %v4010_v59 = vmul.f32 0.3, %v11741_v28  ;;  %v4431_v41 = vadd.f32 %v4430_v23, %v4429_v14  ;;  %v4496_v8 = vsub.f32 %v4480_v10, %v4492_v6  ;;  %vm3999_vm12 = vcmp.eq.f32.partialorder %v10326_v44, 0.0  ;;  %v11746_v6 = vld [vmem:[#allocation73_spill] sm:$0xff] }
 0x411   :  { %v5155_v53 = vpop.eup %5154  ;;  %v4000_v51 = vand.u32 2147483648, %v10326_v44  ;;  %v4482_v61 = vadd.f32 %v4478_v56, %v11742_v25  ;;  %v4497_v9 = vsub.f32 %v4481_v38, %v4493_v35  ;;  %v4004_v60 = vsub.f32 2.0, %v3994_v13 }
 0x412   :  { %v4007_v15 = vmul.f32 0.5, %v4003_v40  ;;  %v4014_v17 = vmul.f32 0.7, %v4006_v4  ;;  %v10450_v21 = vmax.f32 %v4496_v8, 0.0  ;;  %v3998_v54 = vsel %vm3997_vm11, %v10326_v44, %v3996_v20 }
 0x413   :  { %v5157_v48 = vpop.eup %5156  ;;  %v4304_v26 = vmul.f32 %v5153_v12, %v10394_v49  ;;  %v4498_v47 = vsub.f32 %v4482_v61, %v4494_v5  ;;  %v10454_v27 = vmax.f32 %v4497_v9, 0.0  ;;  %vm4305_vm13 = vcmp.eq.f32.partialorder %v10394_v49, inf }
 0x414   :  { %v4311_v45 = vmul.f32 %v5155_v53, %v10405_v2  ;;  %v4487_v30 = vmul.f32 2.0, %v4431_v41  ;;  %5162 = vrsqrt.f32 %v10450_v21  ;;  %vm4307_vm15 = vcmp.eq.f32.partialorder %v10394_v49, 0.0 }
 0x415   :  { %v5159_v19 = vpop.eup %5158  ;;  %vm4312_vm0 = vcmp.eq.f32.partialorder %v10405_v2, inf  ;;  %v10461_v36 = vmax.f32 %v4498_v47, 0.0  ;;  %5164 = vrsqrt.f32 %v10454_v27  ;;  %v4308_v32 = vand.u32 2147483648, %v10394_v49 }
 0x416   :  { %v4318_v14 = vmul.f32 %v5157_v48, %v10409_v29  ;;  %v4475_v33 = vmul.f32 %v5159_v19, %v5159_v19  ;;  %v4491_v7 = vmul.f32 %v5159_v19, %v11721_v31  ;;  %v4306_v55 = vsel %vm4305_vm13, %v10394_v49, %v4304_v26  ;;  %v11743_v31 = vld [vmem:[#allocation83_spill] sm:$0xff] }
 0x417   :  { %v4315_v24 = vand.u32 2147483648, %v10405_v2  ;;  %vm4319_vm2 = vcmp.eq.f32.partialorder %v10409_v29, inf  ;;  %5166 = vrsqrt.f32 %v10461_v36  ;;  %v4313_v58 = vsel %vm4312_vm0, %v10405_v2, %v4311_v45 }
 0x418   :  { %vm4314_vm3 = vcmp.eq.f32.partialorder %v10405_v2, 0.0  ;;  %v4479_v63 = vmul.f32 %v4475_v33, %v10356_v42  ;;  %v4495_v37 = vmul.f32 %v4491_v7, %v4487_v30  ;;  %v5161_v43 = vpop.eup %5160  ;;  %v4001_v11 = vsel %vm3999_vm12, %v4000_v51, %v3998_v54 }
 0x419   :  { %v4011_v46 = vmul.f32 0.3, %v11743_v31  ;;  %v10478_v52 = vmul.f32 0.3, %v11744_v34  ;;  %v4322_v0 = vand.u32 2147483648, %v10409_v29  ;;  %v4309_v16 = vsel %vm4307_vm15, %v4308_v32, %v4306_v55 }
 0x41a   :  { %v4320_v22 = vsel %vm4319_vm2, %v10409_v29, %v4318_v14  ;;  %vm4321_vm14 = vcmp.eq.f32.partialorder %v10409_v29, 0.0  ;;  %v4483_v42 = vadd.f32 %v4479_v63, %v11724_v62  ;;  %v4008_v2 = vmul.f32 0.5, %v4004_v60 }
 0x41b   :  { %v4015_v40 = vmul.f32 0.7, %v4007_v15  ;;  %v10486_v44 = vadd.f32 %v4014_v17, %v4010_v59  ;;  %v4316_v23 = vsel %vm4314_vm3, %v4315_v24, %v4313_v58  ;;  %vm3495_vm4 = vcmp.gt.f32.partialorder %v11746_v6, %v11745_v57 }
 0x41c   :  { %v4005_v50 = vsub.f32 2.0, %v4001_v11  ;;  %v4325_v1 = vmul.f32 %v5161_v43, %v10431_v39  ;;  %vm4326_vm5 = vcmp.eq.f32.partialorder %v10431_v39, inf  ;;  %v4499_v49 = vsub.f32 %v4483_v42, %v4495_v37  ;;  %v11749_v42 = vld [vmem:[#allocation81_spill] sm:$0xff] }
 0x41d   :  { %v4323_v3 = vsel %vm4321_vm14, %v4322_v0, %v4320_v22  ;;  %vm4328_vm6 = vcmp.eq.f32.partialorder %v10431_v39, 0.0  ;;  %v4329_v29 = vand.u32 2147483648, %v10431_v39  ;;  %v4331_v62 = vsub.f32 2.0, %v4309_v16 }
 0x41e   :  { %v5163_v35 = vpop.eup %5162  ;;  %v4332_v13 = vsub.f32 2.0, %v4316_v23  ;;  %v10494_v20 = vmax.f32 %v4499_v49, 0.0  ;;  %vm4506_vm7 = vcmp.eq.f32.partialorder %v10450_v21, inf  ;;  %v4509_v4 = vand.u32 2147483648, %v10450_v21 }
 0x41f   :  { %v5165_v10 = vpop.eup %5164  ;;  %v4505_v56 = vmul.f32 %v5163_v35, %v10450_v21  ;;  %vm4508_vm8 = vcmp.eq.f32.partialorder %v10450_v21, 0.0  ;;  %vm4513_vm9 = vcmp.eq.f32.partialorder %v10454_v27, inf  ;;  %v4516_v38 = vand.u32 2147483648, %v10454_v27 }
 0x420   :  { %v4327_v5 = vsel %vm4326_vm5, %v10431_v39, %v4325_v1  ;;  %v4512_v12 = vmul.f32 %v5165_v10, %v10454_v27  ;;  %vm4515_vm10 = vcmp.eq.f32.partialorder %v10454_v27, 0.0  ;;  %5168 = vrsqrt.f32 %v10494_v20  ;;  %v11748_v39 = vld [vmem:[#allocation62_spill] sm:$0xff] }
 0x421   :  { %v5167_v28 = vpop.eup %5166  ;;  %v4333_v59 = vsub.f32 2.0, %v4323_v3  ;;  %v4507_v41 = vsel %vm4506_vm7, %v10450_v21, %v4505_v56  ;;  %vm4520_vm11 = vcmp.eq.f32.partialorder %v10461_v36, inf  ;;  %v4523_v8 = vand.u32 2147483648, %v10461_v36  ;;  %v11750_v3 = vld [vmem:[#allocation74_spill] sm:$0xff]  ;;  %v11752_v56 = vld [vmem:[#allocation64_spill] sm:$0xff] }
 0x422   :  { %v4510_v53 = vsel %vm4508_vm8, %v4509_v4, %v4507_v41  ;;  %v4514_v51 = vsel %vm4513_vm9, %v10454_v27, %v4512_v12  ;;  %v4519_v25 = vmul.f32 %v5167_v28, %v10461_v36  ;;  %vm4522_vm12 = vcmp.eq.f32.partialorder %v10461_v36, 0.0  ;;  %v11755_v28 = vld [vmem:[#allocation59_spill] sm:$0xff] }
 0x423   :  { %v4335_v61 = vmul.f32 0.5, %v4331_v62  ;;  %v4336_v9 = vmul.f32 0.5, %v4332_v13  ;;  %v4517_v60 = vsel %vm4515_vm10, %v4516_v38, %v4514_v51  ;;  %v4532_v15 = vsub.f32 2.0, %v4510_v53  ;;  %v11751_v62 = vld [vmem:[#allocation56_spill] sm:$0xff] }
 0x424   :  { %v4009_v17 = vmul.f32 0.5, %v4005_v50  ;;  %v4016_v48 = vmul.f32 0.7, %v4008_v2  ;;  %v4521_v54 = vsel %vm4520_vm11, %v10461_v36, %v4519_v25  ;;  %v4533_v21 = vsub.f32 2.0, %v4517_v60 }
 0x425   :  { %v4019_v26 = vadd.f32 %v4015_v40, %v4011_v46  ;;  %v4337_v47 = vmul.f32 0.5, %v4333_v59  ;;  %v4524_v45 = vsel %vm4522_vm12, %v4523_v8, %v4521_v54  ;;  %v4536_v30 = vmul.f32 0.5, %v4532_v15 }
 0x426   :  { %v4013_v19 = vmul.f32 0.3, %v10299_v18  ;;  %v4330_v27 = vsel %vm4328_vm6, %v4329_v29, %v4327_v5  ;;  %v4534_v32 = vsub.f32 2.0, %v4524_v45  ;;  %v4537_v14 = vmul.f32 0.5, %v4533_v21  ;;  %v11747_v18 = vld [vmem:[#allocation57_spill] sm:$0xff] }
 0x427   :  { %v3499_v33 = vsel %vm3495_vm4, %v11746_v6, %v11745_v57  ;;  %v4540_v7 = vmul.f32 0.3, %v4335_v61  ;;  %v4541_v36 = vmul.f32 0.3, %v4336_v9  ;;  %v4544_v55 = vmul.f32 0.7, %v4536_v30 }
 0x428   :  { %v4017_v24 = vmul.f32 0.7, %v4009_v17  ;;  %v4020_v58 = vadd.f32 %v4016_v48, %v10478_v52  ;;  %v4538_v63 = vmul.f32 0.5, %v4534_v32  ;;  %v4545_v37 = vmul.f32 0.7, %v4537_v14  ;;  %v11756_v48 = vld [vmem:[#allocation3_spill] sm:$0xff] }
 0x429   :  { %vm4022_vm13 = vcmp.gt.f32.partialorder %v10486_v44, %v11747_v18  ;;  %vm4023_vm15 = vcmp.gt.f32.partialorder %v4019_v26, %v11748_v39  ;;  %v4334_v43 = vsub.f32 2.0, %v4330_v27  ;;  %v4542_v11 = vmul.f32 0.3, %v4337_v47 }
 0x42a   :  { %v5169_v31 = vpop.eup %5168  ;;  %vm4527_vm0 = vcmp.eq.f32.partialorder %v10494_v20, inf  ;;  %vm4529_vm2 = vcmp.eq.f32.partialorder %v10494_v20, 0.0  ;;  %v4530_v46 = vand.u32 2147483648, %v10494_v20  ;;  %v4546_v0 = vmul.f32 0.7, %v4538_v63 }
 0x42b   :  { %v4526_v34 = vmul.f32 %v5169_v31, %v10494_v20  ;;  %v4548_v52 = vadd.f32 %v4544_v55, %v4540_v7  ;;  %v4549_v16 = vadd.f32 %v4545_v37, %v4541_v36  ;;  %v4021_v22 = vadd.f32 %v4017_v24, %v4013_v19 }
 0x42c   :  { %vm4024_vm3 = vcmp.gt.f32.partialorder %v4020_v58, %v11749_v42  ;;  %v4026_v2 = vsel %vm4022_vm13, %v10486_v44, %v11747_v18  ;;  %v4027_v40 = vsel %vm4023_vm15, %v4019_v26, %v11748_v39  ;;  %v4338_v23 = vmul.f32 0.5, %v4334_v43 }
 0x42d   :  { %v4528_v50 = vsel %vm4527_vm0, %v10494_v20, %v4526_v34  ;;  %v5217_v1 = vmov 1966171168   ;;  %v4030_v29 = vsel %vm4022_vm13, 6, %v11750_v3  ;;  %v4031_v35 = vsel %vm4023_vm15, 6, %v11751_v62 }
 0x42e   :  { %v4571_v49 = vunpack.c.l.s4 %v5217_v1  ;;  %v4531_v13 = vsel %vm4529_vm2, %v4530_v46, %v4528_v50  ;;  %v4550_v10 = vadd.f32 %v4546_v0, %v4542_v11  ;;  %vm4552_vm14 = vcmp.gt.f32.partialorder %v4548_v52, %v4026_v2 }
 0x42f   :  { %v4535_v4 = vsub.f32 2.0, %v4531_v13  ;;  %vm4553_vm5 = vcmp.gt.f32.partialorder %v4549_v16, %v4027_v40  ;;  %v3502_v12 = vsel %vm3494_vm1, 5, %v11752_v56  ;;  %v3503_v44 = vsel %vm3495_vm4, 5, %v11755_v28 }
 0x430   :  { %vm4025_vm6 = vcmp.gt.f32.partialorder %v4021_v22, %v3499_v33  ;;  %v4028_v20 = vsel %vm4024_vm3, %v4020_v58, %v11749_v42  ;;  %v4543_v41 = vmul.f32 0.3, %v4338_v23  ;;  %v4572_v8 = vunpack.c.0.s8 %v4571_v49 }
 0x431   :  { %v4539_v59 = vmul.f32 0.5, %v4535_v4  ;;  %v4556_v53 = vsel %vm4552_vm14, %v4548_v52, %v4026_v2  ;;  %v4557_v51 = vsel %vm4553_vm5, %v4549_v16, %v4027_v40  ;;  %v4560_v25 = vsel %vm4552_vm14, 7, %v4030_v29 }
 0x432   :  { %v4561_v61 = vsel %vm4553_vm5, 7, %v4031_v35  ;;  %v4032_v9 = vsel %vm4024_vm3, 6, %v3502_v12  ;;  %vm4554_vm1 = vcmp.gt.f32.partialorder %v4550_v10, %v4028_v20  ;;  %v4029_v15 = vsel %vm4025_vm6, %v4021_v22, %v3499_v33 }
 0x433   :  { %v4547_v60 = vmul.f32 0.7, %v4539_v59  ;;  %v4033_v57 = vsel %vm4025_vm6, 6, %v3503_v44  ;;  %v4568_v17 = vcombine.low %v4556_v53, %v4557_v51  ;;  %v4575_v54 = vsub.s32 %v4572_v8, %v11756_v48 }
 0x434   :  { %v4598_v21 = vcombine.low %v4560_v25, %v4561_v61  ;;  %v4558_v26 = vsel %vm4554_vm1, %v4550_v10, %v4028_v20  ;;  %v4562_v47 = vsel %vm4554_vm1, 7, %v4032_v9  ;;  %v11757_v33 = vlaneseq }
 0x435   :  { %v4551_v6 = vadd.f32 %v4547_v60, %v4543_v41  ;;  %v4576_v27 = vrot.slane %v4568_v17, %v4575_v54 }
 0x436   :  { %v4606_v14 = vrot.slane %v4598_v21, %v4575_v54  ;;  %vm4595_vm7 = vcmp.lt.s32.totalorder %v11757_v33, 512 }
 0x437   :  { %vm4555_vm4 = vcmp.gt.f32.partialorder %v4551_v6, %v4029_v15 }
 0x438   :  { %v4559_v45 = vsel %vm4555_vm4, %v4551_v6, %v4029_v15  ;;  %v4563_v30 = vsel %vm4555_vm4, 7, %v4033_v57 }
 0x439   :  { %v4569_v19 = vcombine.low %v4558_v26, %v4559_v45  ;;  %v4599_v32 = vcombine.low %v4562_v47, %v4563_v30 }
 0x43b   :  { %v4583_v7 = vrot.slane %v4569_v19, %v4575_v54  ;;  %v4613_v36 = vrot.slane %v4599_v32, %v4575_v54 }
 0x43d   :  { %v4584_v55 = vcombine.low %v4576_v27, %v4583_v7  ;;  %v4614_v24 = vcombine.low %v4606_v14, %v4613_v36 }
 0x43f   :  { %v4591_v58 = vrot.slane %v4584_v55, %v4575_v54  ;;  %v4621_v63 = vrot.slane %v4614_v24, %v4575_v54 }
 0x441   :  { %4597 = vst.msk [vmem:[%s10576_s5] sm:$0xf] %vm4595_vm7, %v4591_v58  ;;  %4622 = vst.msk [vmem:[%s10577_s6] sm:$0xf] %vm4595_vm7, %v4621_v63 }

</bundles_post_ra>
